<compile_context>
chip_gen: v7x
topology: tpu7x:2x2x1
jax: 0.10.0
libtpu: 0.0.40
codegen_flags: <defaults>
</compile_context>

<pallas_src>
from functools import partial

import jax
import jax.numpy as jnp
import numpy as np
from jax.experimental import pallas as pl
from jax.experimental.pallas import tpu as pltpu


def _round_up(x, m):
    return (x + m - 1) // m * m


def _lanes(c):
    return _round_up(c, 128)


def _vmem_limit_bytes():
    """Generation-aware scoped-VMEM request (v7x has only 64 MiB per TC)."""
    cap = None
    try:
        cap = getattr(pltpu.get_tpu_info(), "vmem_capacity_bytes", None)
    except Exception:
        cap = None
    if not cap:
        return 40 * 1024 * 1024
    return int(min(cap * 0.55, 100 * 1024 * 1024))


VMEM_LIMIT = _vmem_limit_bytes()


def _sub_rows(cout_p):
    """In-kernel M sub-chunk size: keeps the live f32 accumulator ~128 KiB."""
    return max(64, min(1024, _round_up(131072 // (4 * cout_p), 8)))


# ---------------------------------------------------------------------------
# Pallas kernels
# ---------------------------------------------------------------------------
def _conv_s2_kernel(x_ref, w_ref, o_ref, *stats_refs, taps, m_rows, sub,
                    ws_p, wo, slope, with_stats):
    """One (image, row-block) tile of a 4x4 / stride-2 conv.

    The conv is a sum of 4 "tap" GEMMs over the space-to-depth input (row
    windows at static offsets).  M is processed in static sub-chunks; each
    chunk's tap results are summed as values (no scratch-accumulator RMW) and
    the epilogue -- LeakyReLU, or bf16 store plus masked per-channel BN
    statistics -- is fused into the chunk's single store.
    """
    for ci, s in enumerate(range(0, m_rows, sub)):
        cr = min(sub, m_rows - s)
        d0 = taps[0]
        acc = jnp.dot(x_ref[s + d0:s + d0 + cr, :], w_ref[0],
                      preferred_element_type=jnp.float32)
        for t in range(1, 4):
            d = taps[t]
            acc = acc + jnp.dot(x_ref[s + d:s + d + cr, :], w_ref[t],
                                preferred_element_type=jnp.float32)
        if with_stats:
            o_ref[s:s + cr, :] = acc.astype(o_ref.dtype)
            # Valid-column mask built in-kernel: col = row mod ws_p < wo.
            # f32 floor-division (0.5 offset gives robust rounding margins)
            # keeps the lowering to plain VPU ops (no integer div/rem).
            rf = (jax.lax.broadcasted_iota(jnp.int32, (cr, 1), 0)
                  .astype(jnp.float32) + (s + 0.5))
            col = rf - ws_p * jnp.floor(rf / ws_p)
            macc = jnp.where(col < wo, acc, 0.0)
            psum = jnp.sum(macc, axis=0, keepdims=True)
            psq = jnp.sum(macc * acc, axis=0, keepdims=True)
            sum_ref, sq_ref = stats_refs
            if ci == 0:
                sum_ref[...] = psum
                sq_ref[...] = psq
            else:
                sum_ref[...] += psum
                sq_ref[...] += psq
        else:
            y = jnp.where(acc >= 0, acc, slope * acc)
            o_ref[s:s + cr, :] = y.astype(o_ref.dtype)


def _conv_valid_kernel(x_ref, w_ref, o_ref, *, taps, m_rows):
    """Stride-1 valid KxK conv of one image: kh*kw tap GEMMs summed as
    values, single f32 store (no per-tap RMW of the output block)."""
    t0, d0 = taps[0]
    acc = jnp.dot(x_ref[d0:d0 + m_rows, :], w_ref[t0],
                  preferred_element_type=jnp.float32)
    for t, d in taps[1:]:
        acc = acc + jnp.dot(x_ref[d:d + m_rows, :], w_ref[t],
                            preferred_element_type=jnp.float32)
    o_ref[...] = acc


# ---------------------------------------------------------------------------
# Per-layer drivers (layout plumbing in XLA, GEMMs in Pallas)
# ---------------------------------------------------------------------------
def _pack_w_s2(w_hwio, cout_p):
    """(4,4,Cin,Cout) HWIO -> (4 taps, 4*Cin, cout_p) bf16 with K ordering
    (di, dj, c) matching the space-to-depth channel layout; tap = bi*2+bj."""
    _, _, cin, cout = w_hwio.shape
    w2 = w_hwio.reshape(2, 2, 2, 2, cin, cout)          # (bi, di, bj, dj, c, co)
    w2 = jnp.transpose(w2, (0, 2, 1, 3, 4, 5)).reshape(4, 4 * cin, cout)
    if cout_p > cout:
        w2 = jnp.pad(w2, ((0, 0), (0, 0), (0, cout_p - cout)))
    return w2.astype(jnp.bfloat16)


def _choose_br(ho, ws_p, c4, cout_p, budget):
    """Largest row block (in output rows) dividing ho whose tile fits VMEM.
    br == ho (one grid step per image) whenever possible."""
    sub = _sub_rows(cout_p)

    def need(br):
        rows_in = (br + 2) * ws_p
        m_rows = br * ws_p
        byt = 2 * rows_in * _lanes(c4) * 2           # input  (double-buffered)
        byt += 2 * m_rows * cout_p * 2               # output (double-buffered)
        byt += 2 * 4 * c4 * cout_p * 2               # tap weights
        byt += 6 * sub * cout_p * 4                  # chunk f32 working set
        byt += 2 * sub * _lanes(c4) * 2              # chunk LHS working set
        return byt + (2 << 20)

    for br in range(ho, 0, -1):
        if ho % br == 0 and need(br) <= budget:
            return br
    return 1


def _conv_s2_layer(act, w_hwio, *, with_stats, slope):
    """4x4 / stride-2 / pad-1 conv of NHWC bf16 `act`.

    Returns (out4, stats, meta):
      out4  : (N, ho, ws_p, cout_p) bf16 -- pre-BN for stats layers, LeakyReLU
              already applied otherwise.  Column `wo` and channels >= cout are
              garbage/padding; the caller slices them off.
      stats : None, or (sum, sumsq) partial per-channel sums over the valid
              output positions, shape (N, mb, 1, cout_p) f32.
    """
    n, h, wdim, cin = act.shape
    assert h % 2 == 0 and wdim % 2 == 0
    ho, wo = h // 2, wdim // 2
    ws_p = wo + 1                       # s2d columns after spatial pad of 1
    c4 = 4 * cin
    cout = w_hwio.shape[-1]
    cout_p = _round_up(max(cout, 128), 128)

    br = _choose_br(ho, ws_p, c4, cout_p, VMEM_LIMIT - (4 << 20))
    mb = ho // br
    m_rows = br * ws_p
    rows_in = (br + 2) * ws_p
    sub = _sub_rows(cout_p)

    # --- XLA layout plumbing: one pad + space-to-depth copy ----------------
    xp = jnp.pad(act, ((0, 0), (1, 1), (1, 1), (0, 0)))
    hs = ho + 1
    x = xp.reshape(n, hs, 2, ws_p, 2, cin)
    x = jnp.transpose(x, (0, 1, 3, 2, 4, 5)).reshape(n, hs, ws_p, c4)
    x = jnp.pad(x, ((0, 0), (0, 1), (0, 0), (0, 0)))   # extra zero block row
    xflat = x.reshape(n, (hs + 1) * ws_p, c4)          # -> every tap in-bounds
    if mb == 1:
        xparts = xflat[:, None]                        # (n, 1, rows_in, c4)
    else:                                              # overlapping row blocks
        xparts = jnp.stack(
            [jax.lax.slice_in_dim(xflat, k * m_rows, k * m_rows + rows_in,
                                  axis=1) for k in range(mb)], axis=1)

    w_taps = _pack_w_s2(w_hwio, cout_p)
    taps = (0, 1, ws_p, ws_p + 1)
    kernel = partial(_conv_s2_kernel, taps=taps, m_rows=m_rows, sub=sub,
                     ws_p=ws_p, wo=wo, slope=slope, with_stats=with_stats)

    x_spec = pl.BlockSpec((None, None, rows_in, c4), lambda b, i: (b, i, 0, 0))
    w_spec = pl.BlockSpec((4, c4, cout_p), lambda b, i: (0, 0, 0))
    o_spec = pl.BlockSpec((None, None, m_rows, cout_p),
                          lambda b, i: (b, i, 0, 0))
    o_shape = jax.ShapeDtypeStruct((n, mb, m_rows, cout_p), jnp.bfloat16)
    cparams = pltpu.CompilerParams(
        dimension_semantics=("parallel", "parallel"),
        vmem_limit_bytes=VMEM_LIMIT)

    if with_stats:
        s_spec = pl.BlockSpec((None, None, 1, cout_p),
                              lambda b, i: (b, i, 0, 0))
        s_shape = jax.ShapeDtypeStruct((n, mb, 1, cout_p), jnp.float32)
        out, ssum, ssq = pl.pallas_call(
            kernel,
            out_shape=(o_shape, s_shape, s_shape),
            grid=(n, mb),
            in_specs=[x_spec, w_spec],
            out_specs=(o_spec, s_spec, s_spec),
            compiler_params=cparams,
        )(xparts, w_taps)
        stats = (ssum, ssq)
    else:
        out = pl.pallas_call(
            kernel,
            out_shape=o_shape,
            grid=(n, mb),
            in_specs=[x_spec, w_spec],
            out_specs=o_spec,
            compiler_params=cparams,
        )(xparts, w_taps)
        stats = None

    out4 = out.reshape(n, ho, ws_p, cout_p)
    return out4, stats, (ho, wo, cout_p)


def _conv_valid_layer(act, w_hwio):
    """Final 4x4 / stride-1 / valid conv.  act: (N, H, W, Cin) bf16."""
    n, h, wdim, cin = act.shape
    kh, kw, _, cout = w_hwio.shape
    assert h >= kh and wdim >= kw
    ho, wo = h - kh + 1, wdim - kw + 1
    cout_p = _round_up(max(cout, 128), 128)
    m_rows = ho * wdim
    rows_in = h * wdim + 8              # zero tail keeps every tap in-bounds

    xflat = jnp.pad(act.reshape(n, h * wdim, cin), ((0, 0), (0, 8), (0, 0)))
    w_taps = w_hwio.reshape(kh * kw, cin, cout)
    if cout_p > cout:
        w_taps = jnp.pad(w_taps, ((0, 0), (0, 0), (0, cout_p - cout)))
    w_taps = w_taps.astype(jnp.bfloat16)
    taps = tuple((ki * kw + kj, ki * wdim + kj)
                 for ki in range(kh) for kj in range(kw))

    out = pl.pallas_call(
        partial(_conv_valid_kernel, taps=taps, m_rows=m_rows),
        out_shape=jax.ShapeDtypeStruct((n, m_rows, cout_p), jnp.float32),
        grid=(n,),
        in_specs=[pl.BlockSpec((None, rows_in, cin), lambda b: (b, 0, 0)),
                  pl.BlockSpec((kh * kw, cin, cout_p), lambda b: (0, 0, 0))],
        out_specs=pl.BlockSpec((None, m_rows, cout_p), lambda b: (b, 0, 0)),
        compiler_params=pltpu.CompilerParams(
            dimension_semantics=("parallel",),
            vmem_limit_bytes=VMEM_LIMIT),
    )(xflat, w_taps)
    return out, ho, wo


# ---------------------------------------------------------------------------
# Network
# ---------------------------------------------------------------------------
def init_params(key, n_channels=3, n_fmaps=64, std=0.02):
    """Deterministic normal(0, std) init (as in weight_init(0.0, 0.02)), HWIO."""
    cfgs = [(n_channels * 2, n_fmaps),
            (n_fmaps, n_fmaps * 2),
            (n_fmaps * 2, n_fmaps * 4),
            (n_fmaps * 4, n_fmaps * 8),
            (n_fmaps * 8, 1)]
    params = {}
    keys = jax.random.split(key, len(cfgs))
    for idx, ((cin, cout), k) in enumerate(zip(cfgs, keys), start=1):
        params[f"w{idx}"] = (
            jax.random.normal(k, (4, 4, cin, cout), jnp.float32) * std)
    return params


def pix2pix_discriminator(x_nchw, y_nchw, params, slope=0.2, eps=1e-5):
    """Forward pass. x, y: (N, C, H, W) float32. Returns flat vector."""
    n = x_nchw.shape[0]
    h = jnp.concatenate([x_nchw, y_nchw], axis=1)              # NCHW concat
    act = jnp.transpose(h, (0, 2, 3, 1)).astype(jnp.bfloat16)  # NHWC bf16

    for name, use_bn in (("w1", False), ("w2", True),
                         ("w3", True), ("w4", True)):
        w = params[name]
        cout = w.shape[-1]
        out4, stats, (ho, wo, cout_p) = _conv_s2_layer(
            act, w, with_stats=use_bn, slope=slope)
        a = out4[:, :, :wo, :cout]             # drop garbage col / chan padding
        if use_bn:
            ssum, ssq = stats
            cnt = float(n * ho * wo)
            s1 = jnp.sum(ssum, axis=(0, 1, 2))[:cout]
            s2 = jnp.sum(ssq, axis=(0, 1, 2))[:cout]
            mean = s1 / cnt
            var = jnp.maximum(s2 / cnt - mean * mean, 0.0)     # biased variance
            scale = jax.lax.rsqrt(var + eps)                   # gamma = 1
            shift = -mean * scale                              # beta = 0
            # BN apply + LeakyReLU fused (by XLA) into the slice/relayout copy.
            a = a.astype(jnp.float32) * scale + shift
            a = jnp.where(a >= 0, a, slope * a)
        act = a.astype(jnp.bfloat16)

    out5, ho5, wo5 = _conv_valid_layer(act, params["w5"])
    wdim = act.shape[2]
    res = out5[:, :, 0].reshape(n, ho5, wdim)[:, :, :wo5]      # (N, Ho, Wo)
    return res.reshape(-1).astype(jnp.float32)


# ---------------------------------------------------------------------------
# Pure-JAX reference (numerical cross-check)
# ---------------------------------------------------------------------------
def ref_forward(x_nchw, y_nchw, params, slope=0.2, eps=1e-5):
    h = jnp.transpose(jnp.concatenate([x_nchw, y_nchw], axis=1), (0, 2, 3, 1))

    def conv(h, w, stride, pad):
        return jax.lax.conv_general_dilated(
            h, w, window_strides=(stride, stride),
            padding=[(pad, pad), (pad, pad)],
            dimension_numbers=("NHWC", "HWIO", "NHWC"))

    def leaky(h):
        return jnp.where(h >= 0, h, slope * h)

    def bn(h):
        mean = jnp.mean(h, axis=(0, 1, 2), keepdims=True)
        var = jnp.mean((h - mean) ** 2, axis=(0, 1, 2), keepdims=True)
        return (h - mean) / jnp.sqrt(var + eps)

    h = leaky(conv(h, params["w1"], 2, 1))
    h = leaky(bn(conv(h, params["w2"], 2, 1)))
    h = leaky(bn(conv(h, params["w3"], 2, 1)))
    h = leaky(bn(conv(h, params["w4"], 2, 1)))
    h = conv(h, params["w5"], 1, 0)
    return jnp.transpose(h, (0, 3, 1, 2)).reshape(-1)


if __name__ == "__main__":
    key = jax.random.PRNGKey(0)
    kx, ky, kp = jax.random.split(key, 3)

    # small shapes: batch=2, n_channels=3, 64x64 spatial (the minimum for four
    # stride-2 downsamples + the final 4x4 valid conv), n_fmaps=8.
    N, C, H, W = 2, 3, 64, 64
    F = 8
    x = jax.random.normal(kx, (N, C, H, W), jnp.float32)
    y = jax.random.normal(ky, (N, C, H, W), jnp.float32)
    params = init_params(kp, n_channels=C, n_fmaps=F)

    fwd = jax.jit(lambda a, b: pix2pix_discriminator(a, b, params))
    out = fwd(x, y)
    jax.block_until_ready(out)

    assert out.shape == (N,), out.shape
    ref = ref_forward(x, y, params)
    np.testing.assert_allclose(np.asarray(out), np.asarray(ref),
                               rtol=5e-2, atol=5e-2)
    print("KERNEL_OK")
</pallas_src>

<mosaic_0001>
module attributes {stable_mosaic.version = 11 : i64} {
  func.func @_conv_s2_kernel(%arg0: i32, %arg1: i32, %arg2: memref<1x1x1122x24xbf16, #tpu.memory_space<vmem>>, %arg3: memref<4x24x128xbf16, #tpu.memory_space<vmem>>, %arg4: memref<1x1x1056x128xbf16, #tpu.memory_space<vmem>>) attributes {dimension_semantics = [#tpu.dimension_semantics<parallel>, #tpu.dimension_semantics<parallel>], iteration_bounds = array<i64: 2, 1>, scalar_prefetch = 0 : i64, scratch_operands = 0 : i64, tpu.core_type = #tpu.core_type<tc>, window_params = [{transform_indices = @transform_0, window_bounds = array<i64: 1, 1, 1122, 24>}, {pipeline_mode = #tpu.pipeline_mode<synchronous>, transform_indices = @transform_1, window_bounds = array<i64: 4, 24, 128>}, {transform_indices = @transform_2, window_bounds = array<i64: 1, 1, 1056, 128>}]} {
    %c0 = arith.constant 0 : index
    %c0_0 = arith.constant 0 : index
    %c0_1 = arith.constant 0 : index
    %c0_2 = arith.constant 0 : index
    %0 = vector.load %arg2[%c0, %c0_0, %c0_1, %c0_2] : memref<1x1x1122x24xbf16, #tpu.memory_space<vmem>>, vector<1x1x256x24xbf16>
    %1 = vector.shape_cast %0 : vector<1x1x256x24xbf16> to vector<256x24xbf16>
    %c0_3 = arith.constant 0 : index
    %c0_4 = arith.constant 0 : index
    %c0_5 = arith.constant 0 : index
    %2 = vector.load %arg3[%c0_3, %c0_4, %c0_5] : memref<4x24x128xbf16, #tpu.memory_space<vmem>>, vector<1x24x128xbf16>
    %3 = vector.shape_cast %2 : vector<1x24x128xbf16> to vector<24x128xbf16>
    %cst = arith.constant dense<0.000000e+00> : vector<256x128xf32>
    %4 = tpu.matmul %1, %3, %cst {dimension_numbers = #tpu.dot_dimension_numbers<[1], [0], [0], [1], [0, 0, 1, 1], [], []>} : vector<256x24xbf16>, vector<24x128xbf16>, vector<256x128xf32> -> vector<256x128xf32>
    %c0_6 = arith.constant 0 : index
    %c0_7 = arith.constant 0 : index
    %c1 = arith.constant 1 : index
    %c0_8 = arith.constant 0 : index
    %5 = vector.load %arg2[%c0_6, %c0_7, %c1, %c0_8] : memref<1x1x1122x24xbf16, #tpu.memory_space<vmem>>, vector<1x1x256x24xbf16>
    %6 = vector.shape_cast %5 : vector<1x1x256x24xbf16> to vector<256x24xbf16>
    %c1_9 = arith.constant 1 : index
    %c0_10 = arith.constant 0 : index
    %c0_11 = arith.constant 0 : index
    %7 = vector.load %arg3[%c1_9, %c0_10, %c0_11] : memref<4x24x128xbf16, #tpu.memory_space<vmem>>, vector<1x24x128xbf16>
    %8 = vector.shape_cast %7 : vector<1x24x128xbf16> to vector<24x128xbf16>
    %cst_12 = arith.constant dense<0.000000e+00> : vector<256x128xf32>
    %9 = tpu.matmul %6, %8, %cst_12 {dimension_numbers = #tpu.dot_dimension_numbers<[1], [0], [0], [1], [0, 0, 1, 1], [], []>} : vector<256x24xbf16>, vector<24x128xbf16>, vector<256x128xf32> -> vector<256x128xf32>
    %10 = arith.addf %4, %9 : vector<256x128xf32>
    %c0_13 = arith.constant 0 : index
    %c0_14 = arith.constant 0 : index
    %c33 = arith.constant 33 : index
    %c0_15 = arith.constant 0 : index
    %11 = vector.load %arg2[%c0_13, %c0_14, %c33, %c0_15] : memref<1x1x1122x24xbf16, #tpu.memory_space<vmem>>, vector<1x1x256x24xbf16>
    %12 = vector.shape_cast %11 : vector<1x1x256x24xbf16> to vector<256x24xbf16>
    %c2 = arith.constant 2 : index
    %c0_16 = arith.constant 0 : index
    %c0_17 = arith.constant 0 : index
    %13 = vector.load %arg3[%c2, %c0_16, %c0_17] : memref<4x24x128xbf16, #tpu.memory_space<vmem>>, vector<1x24x128xbf16>
    %14 = vector.shape_cast %13 : vector<1x24x128xbf16> to vector<24x128xbf16>
    %cst_18 = arith.constant dense<0.000000e+00> : vector<256x128xf32>
    %15 = tpu.matmul %12, %14, %cst_18 {dimension_numbers = #tpu.dot_dimension_numbers<[1], [0], [0], [1], [0, 0, 1, 1], [], []>} : vector<256x24xbf16>, vector<24x128xbf16>, vector<256x128xf32> -> vector<256x128xf32>
    %16 = arith.addf %10, %15 : vector<256x128xf32>
    %c0_19 = arith.constant 0 : index
    %c0_20 = arith.constant 0 : index
    %c34 = arith.constant 34 : index
    %c0_21 = arith.constant 0 : index
    %17 = vector.load %arg2[%c0_19, %c0_20, %c34, %c0_21] : memref<1x1x1122x24xbf16, #tpu.memory_space<vmem>>, vector<1x1x256x24xbf16>
    %18 = vector.shape_cast %17 : vector<1x1x256x24xbf16> to vector<256x24xbf16>
    %c3 = arith.constant 3 : index
    %c0_22 = arith.constant 0 : index
    %c0_23 = arith.constant 0 : index
    %19 = vector.load %arg3[%c3, %c0_22, %c0_23] : memref<4x24x128xbf16, #tpu.memory_space<vmem>>, vector<1x24x128xbf16>
    %20 = vector.shape_cast %19 : vector<1x24x128xbf16> to vector<24x128xbf16>
    %cst_24 = arith.constant dense<0.000000e+00> : vector<256x128xf32>
    %21 = tpu.matmul %18, %20, %cst_24 {dimension_numbers = #tpu.dot_dimension_numbers<[1], [0], [0], [1], [0, 0, 1, 1], [], []>} : vector<256x24xbf16>, vector<24x128xbf16>, vector<256x128xf32> -> vector<256x128xf32>
    %22 = arith.addf %16, %21 : vector<256x128xf32>
    %cst_25 = arith.constant 0.000000e+00 : f32
    %23 = vector.broadcast %cst_25 : f32 to vector<256x128xf32>
    %24 = arith.cmpf oge, %22, %23 : vector<256x128xf32>
    %cst_26 = arith.constant 2.000000e-01 : f32
    %25 = vector.broadcast %cst_26 : f32 to vector<256x128xf32>
    %26 = arith.mulf %25, %22 : vector<256x128xf32>
    %27 = arith.select %24, %22, %26 : vector<256x128xi1>, vector<256x128xf32>
    %28 = arith.truncf %27 : vector<256x128xf32> to vector<256x128xbf16>
    %c0_27 = arith.constant 0 : index
    %c0_28 = arith.constant 0 : index
    %c0_29 = arith.constant 0 : index
    %c0_30 = arith.constant 0 : index
    %29 = vector.load %arg4[%c0_27, %c0_28, %c0_29, %c0_30] : memref<1x1x1056x128xbf16, #tpu.memory_space<vmem>>, vector<1x1x256x128xbf16>
    %30 = vector.shape_cast %29 : vector<1x1x256x128xbf16> to vector<256x128xbf16>
    %31 = vector.shape_cast %28 : vector<256x128xbf16> to vector<1x1x256x128xbf16>
    tpu.vector_store %arg4[%c0_27, %c0_28, %c0_29, %c0_30], %31 {strides = array<i32>} : memref<1x1x1056x128xbf16, #tpu.memory_space<vmem>>, vector<1x1x256x128xbf16>,
    %c0_31 = arith.constant 0 : index
    %c0_32 = arith.constant 0 : index
    %c256 = arith.constant 256 : index
    %c0_33 = arith.constant 0 : index
    %32 = vector.load %arg2[%c0_31, %c0_32, %c256, %c0_33] : memref<1x1x1122x24xbf16, #tpu.memory_space<vmem>>, vector<1x1x256x24xbf16>
    %33 = vector.shape_cast %32 : vector<1x1x256x24xbf16> to vector<256x24xbf16>
    %c0_34 = arith.constant 0 : index
    %c0_35 = arith.constant 0 : index
    %c0_36 = arith.constant 0 : index
    %34 = vector.load %arg3[%c0_34, %c0_35, %c0_36] : memref<4x24x128xbf16, #tpu.memory_space<vmem>>, vector<1x24x128xbf16>
    %35 = vector.shape_cast %34 : vector<1x24x128xbf16> to vector<24x128xbf16>
    %cst_37 = arith.constant dense<0.000000e+00> : vector<256x128xf32>
    %36 = tpu.matmul %33, %35, %cst_37 {dimension_numbers = #tpu.dot_dimension_numbers<[1], [0], [0], [1], [0, 0, 1, 1], [], []>} : vector<256x24xbf16>, vector<24x128xbf16>, vector<256x128xf32> -> vector<256x128xf32>
    %c0_38 = arith.constant 0 : index
    %c0_39 = arith.constant 0 : index
    %c257 = arith.constant 257 : index
    %c0_40 = arith.constant 0 : index
    %37 = vector.load %arg2[%c0_38, %c0_39, %c257, %c0_40] : memref<1x1x1122x24xbf16, #tpu.memory_space<vmem>>, vector<1x1x256x24xbf16>
    %38 = vector.shape_cast %37 : vector<1x1x256x24xbf16> to vector<256x24xbf16>
    %c1_41 = arith.constant 1 : index
    %c0_42 = arith.constant 0 : index
    %c0_43 = arith.constant 0 : index
    %39 = vector.load %arg3[%c1_41, %c0_42, %c0_43] : memref<4x24x128xbf16, #tpu.memory_space<vmem>>, vector<1x24x128xbf16>
    %40 = vector.shape_cast %39 : vector<1x24x128xbf16> to vector<24x128xbf16>
    %cst_44 = arith.constant dense<0.000000e+00> : vector<256x128xf32>
    %41 = tpu.matmul %38, %40, %cst_44 {dimension_numbers = #tpu.dot_dimension_numbers<[1], [0], [0], [1], [0, 0, 1, 1], [], []>} : vector<256x24xbf16>, vector<24x128xbf16>, vector<256x128xf32> -> vector<256x128xf32>
    %42 = arith.addf %36, %41 : vector<256x128xf32>
    %c0_45 = arith.constant 0 : index
    %c0_46 = arith.constant 0 : index
    %c289 = arith.constant 289 : index
    %c0_47 = arith.constant 0 : index
    %43 = vector.load %arg2[%c0_45, %c0_46, %c289, %c0_47] : memref<1x1x1122x24xbf16, #tpu.memory_space<vmem>>, vector<1x1x256x24xbf16>
    %44 = vector.shape_cast %43 : vector<1x1x256x24xbf16> to vector<256x24xbf16>
    %c2_48 = arith.constant 2 : index
    %c0_49 = arith.constant 0 : index
    %c0_50 = arith.constant 0 : index
    %45 = vector.load %arg3[%c2_48, %c0_49, %c0_50] : memref<4x24x128xbf16, #tpu.memory_space<vmem>>, vector<1x24x128xbf16>
    %46 = vector.shape_cast %45 : vector<1x24x128xbf16> to vector<24x128xbf16>
    %cst_51 = arith.constant dense<0.000000e+00> : vector<256x128xf32>
    %47 = tpu.matmul %44, %46, %cst_51 {dimension_numbers = #tpu.dot_dimension_numbers<[1], [0], [0], [1], [0, 0, 1, 1], [], []>} : vector<256x24xbf16>, vector<24x128xbf16>, vector<256x128xf32> -> vector<256x128xf32>
    %48 = arith.addf %42, %47 : vector<256x128xf32>
    %c0_52 = arith.constant 0 : index
    %c0_53 = arith.constant 0 : index
    %c290 = arith.constant 290 : index
    %c0_54 = arith.constant 0 : index
    %49 = vector.load %arg2[%c0_52, %c0_53, %c290, %c0_54] : memref<1x1x1122x24xbf16, #tpu.memory_space<vmem>>, vector<1x1x256x24xbf16>
    %50 = vector.shape_cast %49 : vector<1x1x256x24xbf16> to vector<256x24xbf16>
    %c3_55 = arith.constant 3 : index
    %c0_56 = arith.constant 0 : index
    %c0_57 = arith.constant 0 : index
    %51 = vector.load %arg3[%c3_55, %c0_56, %c0_57] : memref<4x24x128xbf16, #tpu.memory_space<vmem>>, vector<1x24x128xbf16>
    %52 = vector.shape_cast %51 : vector<1x24x128xbf16> to vector<24x128xbf16>
    %cst_58 = arith.constant dense<0.000000e+00> : vector<256x128xf32>
    %53 = tpu.matmul %50, %52, %cst_58 {dimension_numbers = #tpu.dot_dimension_numbers<[1], [0], [0], [1], [0, 0, 1, 1], [], []>} : vector<256x24xbf16>, vector<24x128xbf16>, vector<256x128xf32> -> vector<256x128xf32>
    %54 = arith.addf %48, %53 : vector<256x128xf32>
    %cst_59 = arith.constant 0.000000e+00 : f32
    %55 = vector.broadcast %cst_59 : f32 to vector<256x128xf32>
    %56 = arith.cmpf oge, %54, %55 : vector<256x128xf32>
    %cst_60 = arith.constant 2.000000e-01 : f32
    %57 = vector.broadcast %cst_60 : f32 to vector<256x128xf32>
    %58 = arith.mulf %57, %54 : vector<256x128xf32>
    %59 = arith.select %56, %54, %58 : vector<256x128xi1>, vector<256x128xf32>
    %60 = arith.truncf %59 : vector<256x128xf32> to vector<256x128xbf16>
    %c0_61 = arith.constant 0 : index
    %c0_62 = arith.constant 0 : index
    %c256_63 = arith.constant 256 : index
    %c0_64 = arith.constant 0 : index
    %61 = vector.load %arg4[%c0_61, %c0_62, %c256_63, %c0_64] : memref<1x1x1056x128xbf16, #tpu.memory_space<vmem>>, vector<1x1x256x128xbf16>
    %62 = vector.shape_cast %61 : vector<1x1x256x128xbf16> to vector<256x128xbf16>
    %63 = vector.shape_cast %60 : vector<256x128xbf16> to vector<1x1x256x128xbf16>
    tpu.vector_store %arg4[%c0_61, %c0_62, %c256_63, %c0_64], %63 {strides = array<i32>} : memref<1x1x1056x128xbf16, #tpu.memory_space<vmem>>, vector<1x1x256x128xbf16>,
    %c0_65 = arith.constant 0 : index
    %c0_66 = arith.constant 0 : index
    %c512 = arith.constant 512 : index
    %c0_67 = arith.constant 0 : index
    %64 = vector.load %arg2[%c0_65, %c0_66, %c512, %c0_67] : memref<1x1x1122x24xbf16, #tpu.memory_space<vmem>>, vector<1x1x256x24xbf16>
    %65 = vector.shape_cast %64 : vector<1x1x256x24xbf16> to vector<256x24xbf16>
    %c0_68 = arith.constant 0 : index
    %c0_69 = arith.constant 0 : index
    %c0_70 = arith.constant 0 : index
    %66 = vector.load %arg3[%c0_68, %c0_69, %c0_70] : memref<4x24x128xbf16, #tpu.memory_space<vmem>>, vector<1x24x128xbf16>
    %67 = vector.shape_cast %66 : vector<1x24x128xbf16> to vector<24x128xbf16>
    %cst_71 = arith.constant dense<0.000000e+00> : vector<256x128xf32>
    %68 = tpu.matmul %65, %67, %cst_71 {dimension_numbers = #tpu.dot_dimension_numbers<[1], [0], [0], [1], [0, 0, 1, 1], [], []>} : vector<256x24xbf16>, vector<24x128xbf16>, vector<256x128xf32> -> vector<256x128xf32>
    %c0_72 = arith.constant 0 : index
    %c0_73 = arith.constant 0 : index
    %c513 = arith.constant 513 : index
    %c0_74 = arith.constant 0 : index
    %69 = vector.load %arg2[%c0_72, %c0_73, %c513, %c0_74] : memref<1x1x1122x24xbf16, #tpu.memory_space<vmem>>, vector<1x1x256x24xbf16>
    %70 = vector.shape_cast %69 : vector<1x1x256x24xbf16> to vector<256x24xbf16>
    %c1_75 = arith.constant 1 : index
    %c0_76 = arith.constant 0 : index
    %c0_77 = arith.constant 0 : index
    %71 = vector.load %arg3[%c1_75, %c0_76, %c0_77] : memref<4x24x128xbf16, #tpu.memory_space<vmem>>, vector<1x24x128xbf16>
    %72 = vector.shape_cast %71 : vector<1x24x128xbf16> to vector<24x128xbf16>
    %cst_78 = arith.constant dense<0.000000e+00> : vector<256x128xf32>
    %73 = tpu.matmul %70, %72, %cst_78 {dimension_numbers = #tpu.dot_dimension_numbers<[1], [0], [0], [1], [0, 0, 1, 1], [], []>} : vector<256x24xbf16>, vector<24x128xbf16>, vector<256x128xf32> -> vector<256x128xf32>
    %74 = arith.addf %68, %73 : vector<256x128xf32>
    %c0_79 = arith.constant 0 : index
    %c0_80 = arith.constant 0 : index
    %c545 = arith.constant 545 : index
    %c0_81 = arith.constant 0 : index
    %75 = vector.load %arg2[%c0_79, %c0_80, %c545, %c0_81] : memref<1x1x1122x24xbf16, #tpu.memory_space<vmem>>, vector<1x1x256x24xbf16>
    %76 = vector.shape_cast %75 : vector<1x1x256x24xbf16> to vector<256x24xbf16>
    %c2_82 = arith.constant 2 : index
    %c0_83 = arith.constant 0 : index
    %c0_84 = arith.constant 0 : index
    %77 = vector.load %arg3[%c2_82, %c0_83, %c0_84] : memref<4x24x128xbf16, #tpu.memory_space<vmem>>, vector<1x24x128xbf16>
    %78 = vector.shape_cast %77 : vector<1x24x128xbf16> to vector<24x128xbf16>
    %cst_85 = arith.constant dense<0.000000e+00> : vector<256x128xf32>
    %79 = tpu.matmul %76, %78, %cst_85 {dimension_numbers = #tpu.dot_dimension_numbers<[1], [0], [0], [1], [0, 0, 1, 1], [], []>} : vector<256x24xbf16>, vector<24x128xbf16>, vector<256x128xf32> -> vector<256x128xf32>
    %80 = arith.addf %74, %79 : vector<256x128xf32>
    %c0_86 = arith.constant 0 : index
    %c0_87 = arith.constant 0 : index
    %c546 = arith.constant 546 : index
    %c0_88 = arith.constant 0 : index
    %81 = vector.load %arg2[%c0_86, %c0_87, %c546, %c0_88] : memref<1x1x1122x24xbf16, #tpu.memory_space<vmem>>, vector<1x1x256x24xbf16>
    %82 = vector.shape_cast %81 : vector<1x1x256x24xbf16> to vector<256x24xbf16>
    %c3_89 = arith.constant 3 : index
    %c0_90 = arith.constant 0 : index
    %c0_91 = arith.constant 0 : index
    %83 = vector.load %arg3[%c3_89, %c0_90, %c0_91] : memref<4x24x128xbf16, #tpu.memory_space<vmem>>, vector<1x24x128xbf16>
    %84 = vector.shape_cast %83 : vector<1x24x128xbf16> to vector<24x128xbf16>
    %cst_92 = arith.constant dense<0.000000e+00> : vector<256x128xf32>
    %85 = tpu.matmul %82, %84, %cst_92 {dimension_numbers = #tpu.dot_dimension_numbers<[1], [0], [0], [1], [0, 0, 1, 1], [], []>} : vector<256x24xbf16>, vector<24x128xbf16>, vector<256x128xf32> -> vector<256x128xf32>
    %86 = arith.addf %80, %85 : vector<256x128xf32>
    %cst_93 = arith.constant 0.000000e+00 : f32
    %87 = vector.broadcast %cst_93 : f32 to vector<256x128xf32>
    %88 = arith.cmpf oge, %86, %87 : vector<256x128xf32>
    %cst_94 = arith.constant 2.000000e-01 : f32
    %89 = vector.broadcast %cst_94 : f32 to vector<256x128xf32>
    %90 = arith.mulf %89, %86 : vector<256x128xf32>
    %91 = arith.select %88, %86, %90 : vector<256x128xi1>, vector<256x128xf32>
    %92 = arith.truncf %91 : vector<256x128xf32> to vector<256x128xbf16>
    %c0_95 = arith.constant 0 : index
    %c0_96 = arith.constant 0 : index
    %c512_97 = arith.constant 512 : index
    %c0_98 = arith.constant 0 : index
    %93 = vector.load %arg4[%c0_95, %c0_96, %c512_97, %c0_98] : memref<1x1x1056x128xbf16, #tpu.memory_space<vmem>>, vector<1x1x256x128xbf16>
    %94 = vector.shape_cast %93 : vector<1x1x256x128xbf16> to vector<256x128xbf16>
    %95 = vector.shape_cast %92 : vector<256x128xbf16> to vector<1x1x256x128xbf16>
    tpu.vector_store %arg4[%c0_95, %c0_96, %c512_97, %c0_98], %95 {strides = array<i32>} : memref<1x1x1056x128xbf16, #tpu.memory_space<vmem>>, vector<1x1x256x128xbf16>,
    %c0_99 = arith.constant 0 : index
    %c0_100 = arith.constant 0 : index
    %c768 = arith.constant 768 : index
    %c0_101 = arith.constant 0 : index
    %96 = vector.load %arg2[%c0_99, %c0_100, %c768, %c0_101] : memref<1x1x1122x24xbf16, #tpu.memory_space<vmem>>, vector<1x1x256x24xbf16>
    %97 = vector.shape_cast %96 : vector<1x1x256x24xbf16> to vector<256x24xbf16>
    %c0_102 = arith.constant 0 : index
    %c0_103 = arith.constant 0 : index
    %c0_104 = arith.constant 0 : index
    %98 = vector.load %arg3[%c0_102, %c0_103, %c0_104] : memref<4x24x128xbf16, #tpu.memory_space<vmem>>, vector<1x24x128xbf16>
    %99 = vector.shape_cast %98 : vector<1x24x128xbf16> to vector<24x128xbf16>
    %cst_105 = arith.constant dense<0.000000e+00> : vector<256x128xf32>
    %100 = tpu.matmul %97, %99, %cst_105 {dimension_numbers = #tpu.dot_dimension_numbers<[1], [0], [0], [1], [0, 0, 1, 1], [], []>} : vector<256x24xbf16>, vector<24x128xbf16>, vector<256x128xf32> -> vector<256x128xf32>
    %c0_106 = arith.constant 0 : index
    %c0_107 = arith.constant 0 : index
    %c769 = arith.constant 769 : index
    %c0_108 = arith.constant 0 : index
    %101 = vector.load %arg2[%c0_106, %c0_107, %c769, %c0_108] : memref<1x1x1122x24xbf16, #tpu.memory_space<vmem>>, vector<1x1x256x24xbf16>
    %102 = vector.shape_cast %101 : vector<1x1x256x24xbf16> to vector<256x24xbf16>
    %c1_109 = arith.constant 1 : index
    %c0_110 = arith.constant 0 : index
    %c0_111 = arith.constant 0 : index
    %103 = vector.load %arg3[%c1_109, %c0_110, %c0_111] : memref<4x24x128xbf16, #tpu.memory_space<vmem>>, vector<1x24x128xbf16>
    %104 = vector.shape_cast %103 : vector<1x24x128xbf16> to vector<24x128xbf16>
    %cst_112 = arith.constant dense<0.000000e+00> : vector<256x128xf32>
    %105 = tpu.matmul %102, %104, %cst_112 {dimension_numbers = #tpu.dot_dimension_numbers<[1], [0], [0], [1], [0, 0, 1, 1], [], []>} : vector<256x24xbf16>, vector<24x128xbf16>, vector<256x128xf32> -> vector<256x128xf32>
    %106 = arith.addf %100, %105 : vector<256x128xf32>
    %c0_113 = arith.constant 0 : index
    %c0_114 = arith.constant 0 : index
    %c801 = arith.constant 801 : index
    %c0_115 = arith.constant 0 : index
    %107 = vector.load %arg2[%c0_113, %c0_114, %c801, %c0_115] : memref<1x1x1122x24xbf16, #tpu.memory_space<vmem>>, vector<1x1x256x24xbf16>
    %108 = vector.shape_cast %107 : vector<1x1x256x24xbf16> to vector<256x24xbf16>
    %c2_116 = arith.constant 2 : index
    %c0_117 = arith.constant 0 : index
    %c0_118 = arith.constant 0 : index
    %109 = vector.load %arg3[%c2_116, %c0_117, %c0_118] : memref<4x24x128xbf16, #tpu.memory_space<vmem>>, vector<1x24x128xbf16>
    %110 = vector.shape_cast %109 : vector<1x24x128xbf16> to vector<24x128xbf16>
    %cst_119 = arith.constant dense<0.000000e+00> : vector<256x128xf32>
    %111 = tpu.matmul %108, %110, %cst_119 {dimension_numbers = #tpu.dot_dimension_numbers<[1], [0], [0], [1], [0, 0, 1, 1], [], []>} : vector<256x24xbf16>, vector<24x128xbf16>, vector<256x128xf32> -> vector<256x128xf32>
    %112 = arith.addf %106, %111 : vector<256x128xf32>
    %c0_120 = arith.constant 0 : index
    %c0_121 = arith.constant 0 : index
    %c802 = arith.constant 802 : index
    %c0_122 = arith.constant 0 : index
    %113 = vector.load %arg2[%c0_120, %c0_121, %c802, %c0_122] : memref<1x1x1122x24xbf16, #tpu.memory_space<vmem>>, vector<1x1x256x24xbf16>
    %114 = vector.shape_cast %113 : vector<1x1x256x24xbf16> to vector<256x24xbf16>
    %c3_123 = arith.constant 3 : index
    %c0_124 = arith.constant 0 : index
    %c0_125 = arith.constant 0 : index
    %115 = vector.load %arg3[%c3_123, %c0_124, %c0_125] : memref<4x24x128xbf16, #tpu.memory_space<vmem>>, vector<1x24x128xbf16>
    %116 = vector.shape_cast %115 : vector<1x24x128xbf16> to vector<24x128xbf16>
    %cst_126 = arith.constant dense<0.000000e+00> : vector<256x128xf32>
    %117 = tpu.matmul %114, %116, %cst_126 {dimension_numbers = #tpu.dot_dimension_numbers<[1], [0], [0], [1], [0, 0, 1, 1], [], []>} : vector<256x24xbf16>, vector<24x128xbf16>, vector<256x128xf32> -> vector<256x128xf32>
    %118 = arith.addf %112, %117 : vector<256x128xf32>
    %cst_127 = arith.constant 0.000000e+00 : f32
    %119 = vector.broadcast %cst_127 : f32 to vector<256x128xf32>
    %120 = arith.cmpf oge, %118, %119 : vector<256x128xf32>
    %cst_128 = arith.constant 2.000000e-01 : f32
    %121 = vector.broadcast %cst_128 : f32 to vector<256x128xf32>
    %122 = arith.mulf %121, %118 : vector<256x128xf32>
    %123 = arith.select %120, %118, %122 : vector<256x128xi1>, vector<256x128xf32>
    %124 = arith.truncf %123 : vector<256x128xf32> to vector<256x128xbf16>
    %c0_129 = arith.constant 0 : index
    %c0_130 = arith.constant 0 : index
    %c768_131 = arith.constant 768 : index
    %c0_132 = arith.constant 0 : index
    %125 = vector.load %arg4[%c0_129, %c0_130, %c768_131, %c0_132] : memref<1x1x1056x128xbf16, #tpu.memory_space<vmem>>, vector<1x1x256x128xbf16>
    %126 = vector.shape_cast %125 : vector<1x1x256x128xbf16> to vector<256x128xbf16>
    %127 = vector.shape_cast %124 : vector<256x128xbf16> to vector<1x1x256x128xbf16>
    tpu.vector_store %arg4[%c0_129, %c0_130, %c768_131, %c0_132], %127 {strides = array<i32>} : memref<1x1x1056x128xbf16, #tpu.memory_space<vmem>>, vector<1x1x256x128xbf16>,
    %c0_133 = arith.constant 0 : index
    %c0_134 = arith.constant 0 : index
    %c1024 = arith.constant 1024 : index
    %c0_135 = arith.constant 0 : index
    %128 = vector.load %arg2[%c0_133, %c0_134, %c1024, %c0_135] : memref<1x1x1122x24xbf16, #tpu.memory_space<vmem>>, vector<1x1x32x24xbf16>
    %129 = vector.shape_cast %128 : vector<1x1x32x24xbf16> to vector<32x24xbf16>
    %c0_136 = arith.constant 0 : index
    %c0_137 = arith.constant 0 : index
    %c0_138 = arith.constant 0 : index
    %130 = vector.load %arg3[%c0_136, %c0_137, %c0_138] : memref<4x24x128xbf16, #tpu.memory_space<vmem>>, vector<1x24x128xbf16>
    %131 = vector.shape_cast %130 : vector<1x24x128xbf16> to vector<24x128xbf16>
    %cst_139 = arith.constant dense<0.000000e+00> : vector<32x128xf32>
    %132 = tpu.matmul %129, %131, %cst_139 {dimension_numbers = #tpu.dot_dimension_numbers<[1], [0], [0], [1], [0, 0, 1, 1], [], []>} : vector<32x24xbf16>, vector<24x128xbf16>, vector<32x128xf32> -> vector<32x128xf32>
    %c0_140 = arith.constant 0 : index
    %c0_141 = arith.constant 0 : index
    %c1025 = arith.constant 1025 : index
    %c0_142 = arith.constant 0 : index
    %133 = vector.load %arg2[%c0_140, %c0_141, %c1025, %c0_142] : memref<1x1x1122x24xbf16, #tpu.memory_space<vmem>>, vector<1x1x32x24xbf16>
    %134 = vector.shape_cast %133 : vector<1x1x32x24xbf16> to vector<32x24xbf16>
    %c1_143 = arith.constant 1 : index
    %c0_144 = arith.constant 0 : index
    %c0_145 = arith.constant 0 : index
    %135 = vector.load %arg3[%c1_143, %c0_144, %c0_145] : memref<4x24x128xbf16, #tpu.memory_space<vmem>>, vector<1x24x128xbf16>
    %136 = vector.shape_cast %135 : vector<1x24x128xbf16> to vector<24x128xbf16>
    %cst_146 = arith.constant dense<0.000000e+00> : vector<32x128xf32>
    %137 = tpu.matmul %134, %136, %cst_146 {dimension_numbers = #tpu.dot_dimension_numbers<[1], [0], [0], [1], [0, 0, 1, 1], [], []>} : vector<32x24xbf16>, vector<24x128xbf16>, vector<32x128xf32> -> vector<32x128xf32>
    %138 = arith.addf %132, %137 : vector<32x128xf32>
    %c0_147 = arith.constant 0 : index
    %c0_148 = arith.constant 0 : index
    %c1057 = arith.constant 1057 : index
    %c0_149 = arith.constant 0 : index
    %139 = vector.load %arg2[%c0_147, %c0_148, %c1057, %c0_149] : memref<1x1x1122x24xbf16, #tpu.memory_space<vmem>>, vector<1x1x32x24xbf16>
    %140 = vector.shape_cast %139 : vector<1x1x32x24xbf16> to vector<32x24xbf16>
    %c2_150 = arith.constant 2 : index
    %c0_151 = arith.constant 0 : index
    %c0_152 = arith.constant 0 : index
    %141 = vector.load %arg3[%c2_150, %c0_151, %c0_152] : memref<4x24x128xbf16, #tpu.memory_space<vmem>>, vector<1x24x128xbf16>
    %142 = vector.shape_cast %141 : vector<1x24x128xbf16> to vector<24x128xbf16>
    %cst_153 = arith.constant dense<0.000000e+00> : vector<32x128xf32>
    %143 = tpu.matmul %140, %142, %cst_153 {dimension_numbers = #tpu.dot_dimension_numbers<[1], [0], [0], [1], [0, 0, 1, 1], [], []>} : vector<32x24xbf16>, vector<24x128xbf16>, vector<32x128xf32> -> vector<32x128xf32>
    %144 = arith.addf %138, %143 : vector<32x128xf32>
    %c0_154 = arith.constant 0 : index
    %c0_155 = arith.constant 0 : index
    %c1058 = arith.constant 1058 : index
    %c0_156 = arith.constant 0 : index
    %145 = vector.load %arg2[%c0_154, %c0_155, %c1058, %c0_156] : memref<1x1x1122x24xbf16, #tpu.memory_space<vmem>>, vector<1x1x32x24xbf16>
    %146 = vector.shape_cast %145 : vector<1x1x32x24xbf16> to vector<32x24xbf16>
    %c3_157 = arith.constant 3 : index
    %c0_158 = arith.constant 0 : index
    %c0_159 = arith.constant 0 : index
    %147 = vector.load %arg3[%c3_157, %c0_158, %c0_159] : memref<4x24x128xbf16, #tpu.memory_space<vmem>>, vector<1x24x128xbf16>
    %148 = vector.shape_cast %147 : vector<1x24x128xbf16> to vector<24x128xbf16>
    %cst_160 = arith.constant dense<0.000000e+00> : vector<32x128xf32>
    %149 = tpu.matmul %146, %148, %cst_160 {dimension_numbers = #tpu.dot_dimension_numbers<[1], [0], [0], [1], [0, 0, 1, 1], [], []>} : vector<32x24xbf16>, vector<24x128xbf16>, vector<32x128xf32> -> vector<32x128xf32>
    %150 = arith.addf %144, %149 : vector<32x128xf32>
    %cst_161 = arith.constant 0.000000e+00 : f32
    %151 = vector.broadcast %cst_161 : f32 to vector<32x128xf32>
    %152 = arith.cmpf oge, %150, %151 : vector<32x128xf32>
    %cst_162 = arith.constant 2.000000e-01 : f32
    %153 = vector.broadcast %cst_162 : f32 to vector<32x128xf32>
    %154 = arith.mulf %153, %150 : vector<32x128xf32>
    %155 = arith.select %152, %150, %154 : vector<32x128xi1>, vector<32x128xf32>
    %156 = arith.truncf %155 : vector<32x128xf32> to vector<32x128xbf16>
    %c0_163 = arith.constant 0 : index
    %c0_164 = arith.constant 0 : index
    %c1024_165 = arith.constant 1024 : index
    %c0_166 = arith.constant 0 : index
    %157 = vector.load %arg4[%c0_163, %c0_164, %c1024_165, %c0_166] : memref<1x1x1056x128xbf16, #tpu.memory_space<vmem>>, vector<1x1x32x128xbf16>
    %158 = vector.shape_cast %157 : vector<1x1x32x128xbf16> to vector<32x128xbf16>
    %159 = vector.shape_cast %156 : vector<32x128xbf16> to vector<1x1x32x128xbf16>
    tpu.vector_store %arg4[%c0_163, %c0_164, %c1024_165, %c0_166], %159 {strides = array<i32>} : memref<1x1x1056x128xbf16, #tpu.memory_space<vmem>>, vector<1x1x32x128xbf16>,
    return
  }
  func.func @transform_0(%arg0: i32, %arg1: i32) -> (i32, i32, i32, i32) {
    %c0_i32 = arith.constant 0 : i32
    %c0_i32_0 = arith.constant 0 : i32
    %c0_i32_1 = arith.constant 0 : i32
    return %arg0, %arg1, %c0_i32, %c0_i32_0 : i32, i32, i32, i32
  }
  func.func @transform_1(%arg0: i32, %arg1: i32) -> (i32, i32, i32) {
    %c0_i32 = arith.constant 0 : i32
    %c0_i32_0 = arith.constant 0 : i32
    %c0_i32_1 = arith.constant 0 : i32
    %c0_i32_2 = arith.constant 0 : i32
    return %c0_i32, %c0_i32_0, %c0_i32_1 : i32, i32, i32
  }
  func.func @transform_2(%arg0: i32, %arg1: i32) -> (i32, i32, i32, i32) {
    %c0_i32 = arith.constant 0 : i32
    %c0_i32_0 = arith.constant 0 : i32
    %c0_i32_1 = arith.constant 0 : i32
    return %arg0, %arg1, %c0_i32, %c0_i32_0 : i32, i32, i32, i32
  }
}

module attributes {stable_mosaic.version = 11 : i64} {
  func.func @_conv_s2_kernel(%arg0: i32, %arg1: i32, %arg2: memref<1x1x306x32xbf16, #tpu.memory_space<vmem>>, %arg3: memref<4x32x128xbf16, #tpu.memory_space<vmem>>, %arg4: memref<1x1x272x128xbf16, #tpu.memory_space<vmem>>, %arg5: memref<1x1x1x128xf32, #tpu.memory_space<vmem>>, %arg6: memref<1x1x1x128xf32, #tpu.memory_space<vmem>>) attributes {dimension_semantics = [#tpu.dimension_semantics<parallel>, #tpu.dimension_semantics<parallel>], iteration_bounds = array<i64: 2, 1>, scalar_prefetch = 0 : i64, scratch_operands = 0 : i64, tpu.core_type = #tpu.core_type<tc>, window_params = [{transform_indices = @transform_0, window_bounds = array<i64: 1, 1, 306, 32>}, {pipeline_mode = #tpu.pipeline_mode<synchronous>, transform_indices = @transform_1, window_bounds = array<i64: 4, 32, 128>}, {transform_indices = @transform_2, window_bounds = array<i64: 1, 1, 272, 128>}, {transform_indices = @transform_3, window_bounds = array<i64: 1, 1, 1, 128>}, {transform_indices = @transform_4, window_bounds = array<i64: 1, 1, 1, 128>}]} {
    %c0 = arith.constant 0 : index
    %c0_0 = arith.constant 0 : index
    %c0_1 = arith.constant 0 : index
    %c0_2 = arith.constant 0 : index
    %0 = vector.load %arg2[%c0, %c0_0, %c0_1, %c0_2] : memref<1x1x306x32xbf16, #tpu.memory_space<vmem>>, vector<1x1x256x32xbf16>
    %1 = vector.shape_cast %0 : vector<1x1x256x32xbf16> to vector<256x32xbf16>
    %c0_3 = arith.constant 0 : index
    %c0_4 = arith.constant 0 : index
    %c0_5 = arith.constant 0 : index
    %2 = vector.load %arg3[%c0_3, %c0_4, %c0_5] : memref<4x32x128xbf16, #tpu.memory_space<vmem>>, vector<1x32x128xbf16>
    %3 = vector.shape_cast %2 : vector<1x32x128xbf16> to vector<32x128xbf16>
    %cst = arith.constant dense<0.000000e+00> : vector<256x128xf32>
    %4 = tpu.matmul %1, %3, %cst {dimension_numbers = #tpu.dot_dimension_numbers<[1], [0], [0], [1], [0, 0, 1, 1], [], []>} : vector<256x32xbf16>, vector<32x128xbf16>, vector<256x128xf32> -> vector<256x128xf32>
    %c0_6 = arith.constant 0 : index
    %c0_7 = arith.constant 0 : index
    %c1 = arith.constant 1 : index
    %c0_8 = arith.constant 0 : index
    %5 = vector.load %arg2[%c0_6, %c0_7, %c1, %c0_8] : memref<1x1x306x32xbf16, #tpu.memory_space<vmem>>, vector<1x1x256x32xbf16>
    %6 = vector.shape_cast %5 : vector<1x1x256x32xbf16> to vector<256x32xbf16>
    %c1_9 = arith.constant 1 : index
    %c0_10 = arith.constant 0 : index
    %c0_11 = arith.constant 0 : index
    %7 = vector.load %arg3[%c1_9, %c0_10, %c0_11] : memref<4x32x128xbf16, #tpu.memory_space<vmem>>, vector<1x32x128xbf16>
    %8 = vector.shape_cast %7 : vector<1x32x128xbf16> to vector<32x128xbf16>
    %cst_12 = arith.constant dense<0.000000e+00> : vector<256x128xf32>
    %9 = tpu.matmul %6, %8, %cst_12 {dimension_numbers = #tpu.dot_dimension_numbers<[1], [0], [0], [1], [0, 0, 1, 1], [], []>} : vector<256x32xbf16>, vector<32x128xbf16>, vector<256x128xf32> -> vector<256x128xf32>
    %10 = arith.addf %4, %9 : vector<256x128xf32>
    %c0_13 = arith.constant 0 : index
    %c0_14 = arith.constant 0 : index
    %c17 = arith.constant 17 : index
    %c0_15 = arith.constant 0 : index
    %11 = vector.load %arg2[%c0_13, %c0_14, %c17, %c0_15] : memref<1x1x306x32xbf16, #tpu.memory_space<vmem>>, vector<1x1x256x32xbf16>
    %12 = vector.shape_cast %11 : vector<1x1x256x32xbf16> to vector<256x32xbf16>
    %c2 = arith.constant 2 : index
    %c0_16 = arith.constant 0 : index
    %c0_17 = arith.constant 0 : index
    %13 = vector.load %arg3[%c2, %c0_16, %c0_17] : memref<4x32x128xbf16, #tpu.memory_space<vmem>>, vector<1x32x128xbf16>
    %14 = vector.shape_cast %13 : vector<1x32x128xbf16> to vector<32x128xbf16>
    %cst_18 = arith.constant dense<0.000000e+00> : vector<256x128xf32>
    %15 = tpu.matmul %12, %14, %cst_18 {dimension_numbers = #tpu.dot_dimension_numbers<[1], [0], [0], [1], [0, 0, 1, 1], [], []>} : vector<256x32xbf16>, vector<32x128xbf16>, vector<256x128xf32> -> vector<256x128xf32>
    %16 = arith.addf %10, %15 : vector<256x128xf32>
    %c0_19 = arith.constant 0 : index
    %c0_20 = arith.constant 0 : index
    %c18 = arith.constant 18 : index
    %c0_21 = arith.constant 0 : index
    %17 = vector.load %arg2[%c0_19, %c0_20, %c18, %c0_21] : memref<1x1x306x32xbf16, #tpu.memory_space<vmem>>, vector<1x1x256x32xbf16>
    %18 = vector.shape_cast %17 : vector<1x1x256x32xbf16> to vector<256x32xbf16>
    %c3 = arith.constant 3 : index
    %c0_22 = arith.constant 0 : index
    %c0_23 = arith.constant 0 : index
    %19 = vector.load %arg3[%c3, %c0_22, %c0_23] : memref<4x32x128xbf16, #tpu.memory_space<vmem>>, vector<1x32x128xbf16>
    %20 = vector.shape_cast %19 : vector<1x32x128xbf16> to vector<32x128xbf16>
    %cst_24 = arith.constant dense<0.000000e+00> : vector<256x128xf32>
    %21 = tpu.matmul %18, %20, %cst_24 {dimension_numbers = #tpu.dot_dimension_numbers<[1], [0], [0], [1], [0, 0, 1, 1], [], []>} : vector<256x32xbf16>, vector<32x128xbf16>, vector<256x128xf32> -> vector<256x128xf32>
    %22 = arith.addf %16, %21 : vector<256x128xf32>
    %23 = arith.truncf %22 : vector<256x128xf32> to vector<256x128xbf16>
    %c0_25 = arith.constant 0 : index
    %c0_26 = arith.constant 0 : index
    %c0_27 = arith.constant 0 : index
    %c0_28 = arith.constant 0 : index
    %24 = vector.load %arg4[%c0_25, %c0_26, %c0_27, %c0_28] : memref<1x1x272x128xbf16, #tpu.memory_space<vmem>>, vector<1x1x256x128xbf16>
    %25 = vector.shape_cast %24 : vector<1x1x256x128xbf16> to vector<256x128xbf16>
    %26 = vector.shape_cast %23 : vector<256x128xbf16> to vector<1x1x256x128xbf16>
    tpu.vector_store %arg4[%c0_25, %c0_26, %c0_27, %c0_28], %26 {strides = array<i32>} : memref<1x1x272x128xbf16, #tpu.memory_space<vmem>>, vector<1x1x256x128xbf16>,
    %27 = tpu.iota {dimensions = array<i32: 0>} : vector<256x1xi32>
    %28 = arith.sitofp %27 : vector<256x1xi32> to vector<256x1xf32>
    %cst_29 = arith.constant 5.000000e-01 : f32
    %29 = vector.broadcast %cst_29 : f32 to vector<256x1xf32>
    %30 = arith.addf %28, %29 : vector<256x1xf32>
    %cst_30 = arith.constant 1.700000e+01 : f32
    %31 = vector.broadcast %cst_30 : f32 to vector<256x1xf32>
    %32 = arith.divf %30, %31 : vector<256x1xf32>
    %33 = math.floor %32 : vector<256x1xf32>
    %cst_31 = arith.constant 1.700000e+01 : f32
    %34 = vector.broadcast %cst_31 : f32 to vector<256x1xf32>
    %35 = arith.mulf %34, %33 : vector<256x1xf32>
    %36 = arith.subf %30, %35 : vector<256x1xf32>
    %cst_32 = arith.constant 1.600000e+01 : f32
    %37 = vector.broadcast %cst_32 : f32 to vector<256x1xf32>
    %38 = arith.cmpf olt, %36, %37 : vector<256x1xf32>
    %cst_33 = arith.constant 0.000000e+00 : f32
    %39 = vector.shape_cast %38 : vector<256x1xi1> to vector<256x1xi1>
    %40 = vector.broadcast %39 : vector<256x1xi1> to vector<256x128xi1>
    %41 = vector.broadcast %cst_33 : f32 to vector<256x128xf32>
    %42 = arith.select %40, %22, %41 : vector<256x128xi1>, vector<256x128xf32>
    %cst_34 = arith.constant dense<0.000000e+00> : vector<128xf32>
    %43 = vector.multi_reduction <add>, %42, %cst_34 [0] : vector<256x128xf32> to vector<128xf32>
    %44 = vector.shape_cast %43 : vector<128xf32> to vector<1x128xf32>
    %45 = arith.mulf %42, %22 : vector<256x128xf32>
    %cst_35 = arith.constant dense<0.000000e+00> : vector<128xf32>
    %46 = vector.multi_reduction <add>, %45, %cst_35 [0] : vector<256x128xf32> to vector<128xf32>
    %47 = vector.shape_cast %46 : vector<128xf32> to vector<1x128xf32>
    %c0_36 = arith.constant 0 : index
    %c0_37 = arith.constant 0 : index
    %c0_38 = arith.constant 0 : index
    %c0_39 = arith.constant 0 : index
    %48 = vector.load %arg5[%c0_36, %c0_37, %c0_38, %c0_39] : memref<1x1x1x128xf32, #tpu.memory_space<vmem>>, vector<1x1x1x128xf32>
    %49 = vector.shape_cast %48 : vector<1x1x1x128xf32> to vector<1x128xf32>
    %50 = vector.shape_cast %44 : vector<1x128xf32> to vector<1x1x1x128xf32>
    tpu.vector_store %arg5[%c0_36, %c0_37, %c0_38, %c0_39], %50 {strides = array<i32>} : memref<1x1x1x128xf32, #tpu.memory_space<vmem>>, vector<1x1x1x128xf32>,
    %c0_40 = arith.constant 0 : index
    %c0_41 = arith.constant 0 : index
    %c0_42 = arith.constant 0 : index
    %c0_43 = arith.constant 0 : index
    %51 = vector.load %arg6[%c0_40, %c0_41, %c0_42, %c0_43] : memref<1x1x1x128xf32, #tpu.memory_space<vmem>>, vector<1x1x1x128xf32>
    %52 = vector.shape_cast %51 : vector<1x1x1x128xf32> to vector<1x128xf32>
    %53 = vector.shape_cast %47 : vector<1x128xf32> to vector<1x1x1x128xf32>
    tpu.vector_store %arg6[%c0_40, %c0_41, %c0_42, %c0_43], %53 {strides = array<i32>} : memref<1x1x1x128xf32, #tpu.memory_space<vmem>>, vector<1x1x1x128xf32>,
    %c0_44 = arith.constant 0 : index
    %c0_45 = arith.constant 0 : index
    %c256 = arith.constant 256 : index
    %c0_46 = arith.constant 0 : index
    %54 = vector.load %arg2[%c0_44, %c0_45, %c256, %c0_46] : memref<1x1x306x32xbf16, #tpu.memory_space<vmem>>, vector<1x1x16x32xbf16>
    %55 = vector.shape_cast %54 : vector<1x1x16x32xbf16> to vector<16x32xbf16>
    %c0_47 = arith.constant 0 : index
    %c0_48 = arith.constant 0 : index
    %c0_49 = arith.constant 0 : index
    %56 = vector.load %arg3[%c0_47, %c0_48, %c0_49] : memref<4x32x128xbf16, #tpu.memory_space<vmem>>, vector<1x32x128xbf16>
    %57 = vector.shape_cast %56 : vector<1x32x128xbf16> to vector<32x128xbf16>
    %cst_50 = arith.constant dense<0.000000e+00> : vector<16x128xf32>
    %58 = tpu.matmul %55, %57, %cst_50 {dimension_numbers = #tpu.dot_dimension_numbers<[1], [0], [0], [1], [0, 0, 1, 1], [], []>} : vector<16x32xbf16>, vector<32x128xbf16>, vector<16x128xf32> -> vector<16x128xf32>
    %c0_51 = arith.constant 0 : index
    %c0_52 = arith.constant 0 : index
    %c257 = arith.constant 257 : index
    %c0_53 = arith.constant 0 : index
    %59 = vector.load %arg2[%c0_51, %c0_52, %c257, %c0_53] : memref<1x1x306x32xbf16, #tpu.memory_space<vmem>>, vector<1x1x16x32xbf16>
    %60 = vector.shape_cast %59 : vector<1x1x16x32xbf16> to vector<16x32xbf16>
    %c1_54 = arith.constant 1 : index
    %c0_55 = arith.constant 0 : index
    %c0_56 = arith.constant 0 : index
    %61 = vector.load %arg3[%c1_54, %c0_55, %c0_56] : memref<4x32x128xbf16, #tpu.memory_space<vmem>>, vector<1x32x128xbf16>
    %62 = vector.shape_cast %61 : vector<1x32x128xbf16> to vector<32x128xbf16>
    %cst_57 = arith.constant dense<0.000000e+00> : vector<16x128xf32>
    %63 = tpu.matmul %60, %62, %cst_57 {dimension_numbers = #tpu.dot_dimension_numbers<[1], [0], [0], [1], [0, 0, 1, 1], [], []>} : vector<16x32xbf16>, vector<32x128xbf16>, vector<16x128xf32> -> vector<16x128xf32>
    %64 = arith.addf %58, %63 : vector<16x128xf32>
    %c0_58 = arith.constant 0 : index
    %c0_59 = arith.constant 0 : index
    %c273 = arith.constant 273 : index
    %c0_60 = arith.constant 0 : index
    %65 = vector.load %arg2[%c0_58, %c0_59, %c273, %c0_60] : memref<1x1x306x32xbf16, #tpu.memory_space<vmem>>, vector<1x1x16x32xbf16>
    %66 = vector.shape_cast %65 : vector<1x1x16x32xbf16> to vector<16x32xbf16>
    %c2_61 = arith.constant 2 : index
    %c0_62 = arith.constant 0 : index
    %c0_63 = arith.constant 0 : index
    %67 = vector.load %arg3[%c2_61, %c0_62, %c0_63] : memref<4x32x128xbf16, #tpu.memory_space<vmem>>, vector<1x32x128xbf16>
    %68 = vector.shape_cast %67 : vector<1x32x128xbf16> to vector<32x128xbf16>
    %cst_64 = arith.constant dense<0.000000e+00> : vector<16x128xf32>
    %69 = tpu.matmul %66, %68, %cst_64 {dimension_numbers = #tpu.dot_dimension_numbers<[1], [0], [0], [1], [0, 0, 1, 1], [], []>} : vector<16x32xbf16>, vector<32x128xbf16>, vector<16x128xf32> -> vector<16x128xf32>
    %70 = arith.addf %64, %69 : vector<16x128xf32>
    %c0_65 = arith.constant 0 : index
    %c0_66 = arith.constant 0 : index
    %c274 = arith.constant 274 : index
    %c0_67 = arith.constant 0 : index
    %71 = vector.load %arg2[%c0_65, %c0_66, %c274, %c0_67] : memref<1x1x306x32xbf16, #tpu.memory_space<vmem>>, vector<1x1x16x32xbf16>
    %72 = vector.shape_cast %71 : vector<1x1x16x32xbf16> to vector<16x32xbf16>
    %c3_68 = arith.constant 3 : index
    %c0_69 = arith.constant 0 : index
    %c0_70 = arith.constant 0 : index
    %73 = vector.load %arg3[%c3_68, %c0_69, %c0_70] : memref<4x32x128xbf16, #tpu.memory_space<vmem>>, vector<1x32x128xbf16>
    %74 = vector.shape_cast %73 : vector<1x32x128xbf16> to vector<32x128xbf16>
    %cst_71 = arith.constant dense<0.000000e+00> : vector<16x128xf32>
    %75 = tpu.matmul %72, %74, %cst_71 {dimension_numbers = #tpu.dot_dimension_numbers<[1], [0], [0], [1], [0, 0, 1, 1], [], []>} : vector<16x32xbf16>, vector<32x128xbf16>, vector<16x128xf32> -> vector<16x128xf32>
    %76 = arith.addf %70, %75 : vector<16x128xf32>
    %77 = arith.truncf %76 : vector<16x128xf32> to vector<16x128xbf16>
    %c0_72 = arith.constant 0 : index
    %c0_73 = arith.constant 0 : index
    %c256_74 = arith.constant 256 : index
    %c0_75 = arith.constant 0 : index
    %78 = vector.load %arg4[%c0_72, %c0_73, %c256_74, %c0_75] : memref<1x1x272x128xbf16, #tpu.memory_space<vmem>>, vector<1x1x16x128xbf16>
    %79 = vector.shape_cast %78 : vector<1x1x16x128xbf16> to vector<16x128xbf16>
    %80 = vector.shape_cast %77 : vector<16x128xbf16> to vector<1x1x16x128xbf16>
    tpu.vector_store %arg4[%c0_72, %c0_73, %c256_74, %c0_75], %80 {strides = array<i32>} : memref<1x1x272x128xbf16, #tpu.memory_space<vmem>>, vector<1x1x16x128xbf16>,
    %81 = tpu.iota {dimensions = array<i32: 0>} : vector<16x1xi32>
    %82 = arith.sitofp %81 : vector<16x1xi32> to vector<16x1xf32>
    %cst_76 = arith.constant 2.565000e+02 : f32
    %83 = vector.broadcast %cst_76 : f32 to vector<16x1xf32>
    %84 = arith.addf %82, %83 : vector<16x1xf32>
    %cst_77 = arith.constant 1.700000e+01 : f32
    %85 = vector.broadcast %cst_77 : f32 to vector<16x1xf32>
    %86 = arith.divf %84, %85 : vector<16x1xf32>
    %87 = math.floor %86 : vector<16x1xf32>
    %cst_78 = arith.constant 1.700000e+01 : f32
    %88 = vector.broadcast %cst_78 : f32 to vector<16x1xf32>
    %89 = arith.mulf %88, %87 : vector<16x1xf32>
    %90 = arith.subf %84, %89 : vector<16x1xf32>
    %cst_79 = arith.constant 1.600000e+01 : f32
    %91 = vector.broadcast %cst_79 : f32 to vector<16x1xf32>
    %92 = arith.cmpf olt, %90, %91 : vector<16x1xf32>
    %cst_80 = arith.constant 0.000000e+00 : f32
    %93 = vector.shape_cast %92 : vector<16x1xi1> to vector<16x1xi1>
    %94 = vector.broadcast %93 : vector<16x1xi1> to vector<16x128xi1>
    %95 = vector.broadcast %cst_80 : f32 to vector<16x128xf32>
    %96 = arith.select %94, %76, %95 : vector<16x128xi1>, vector<16x128xf32>
    %cst_81 = arith.constant dense<0.000000e+00> : vector<128xf32>
    %97 = vector.multi_reduction <add>, %96, %cst_81 [0] : vector<16x128xf32> to vector<128xf32>
    %98 = vector.shape_cast %97 : vector<128xf32> to vector<1x128xf32>
    %99 = arith.mulf %96, %76 : vector<16x128xf32>
    %cst_82 = arith.constant dense<0.000000e+00> : vector<128xf32>
    %100 = vector.multi_reduction <add>, %99, %cst_82 [0] : vector<16x128xf32> to vector<128xf32>
    %101 = vector.shape_cast %100 : vector<128xf32> to vector<1x128xf32>
    %c0_83 = arith.constant 0 : index
    %c0_84 = arith.constant 0 : index
    %c0_85 = arith.constant 0 : index
    %c0_86 = arith.constant 0 : index
    %102 = vector.load %arg5[%c0_83, %c0_84, %c0_85, %c0_86] : memref<1x1x1x128xf32, #tpu.memory_space<vmem>>, vector<1x1x1x128xf32>
    %103 = vector.shape_cast %102 : vector<1x1x1x128xf32> to vector<1x128xf32>
    %104 = arith.addf %103, %98 : vector<1x128xf32>
    %c0_87 = arith.constant 0 : index
    %c0_88 = arith.constant 0 : index
    %c0_89 = arith.constant 0 : index
    %c0_90 = arith.constant 0 : index
    %105 = vector.load %arg5[%c0_87, %c0_88, %c0_89, %c0_90] : memref<1x1x1x128xf32, #tpu.memory_space<vmem>>, vector<1x1x1x128xf32>
    %106 = vector.shape_cast %105 : vector<1x1x1x128xf32> to vector<1x128xf32>
    %107 = vector.shape_cast %104 : vector<1x128xf32> to vector<1x1x1x128xf32>
    tpu.vector_store %arg5[%c0_87, %c0_88, %c0_89, %c0_90], %107 {strides = array<i32>} : memref<1x1x1x128xf32, #tpu.memory_space<vmem>>, vector<1x1x1x128xf32>,
    %c0_91 = arith.constant 0 : index
    %c0_92 = arith.constant 0 : index
    %c0_93 = arith.constant 0 : index
    %c0_94 = arith.constant 0 : index
    %108 = vector.load %arg6[%c0_91, %c0_92, %c0_93, %c0_94] : memref<1x1x1x128xf32, #tpu.memory_space<vmem>>, vector<1x1x1x128xf32>
    %109 = vector.shape_cast %108 : vector<1x1x1x128xf32> to vector<1x128xf32>
    %110 = arith.addf %109, %101 : vector<1x128xf32>
    %c0_95 = arith.constant 0 : index
    %c0_96 = arith.constant 0 : index
    %c0_97 = arith.constant 0 : index
    %c0_98 = arith.constant 0 : index
    %111 = vector.load %arg6[%c0_95, %c0_96, %c0_97, %c0_98] : memref<1x1x1x128xf32, #tpu.memory_space<vmem>>, vector<1x1x1x128xf32>
    %112 = vector.shape_cast %111 : vector<1x1x1x128xf32> to vector<1x128xf32>
    %113 = vector.shape_cast %110 : vector<1x128xf32> to vector<1x1x1x128xf32>
    tpu.vector_store %arg6[%c0_95, %c0_96, %c0_97, %c0_98], %113 {strides = array<i32>} : memref<1x1x1x128xf32, #tpu.memory_space<vmem>>, vector<1x1x1x128xf32>,
    return
  }
  func.func @transform_0(%arg0: i32, %arg1: i32) -> (i32, i32, i32, i32) {
    %c0_i32 = arith.constant 0 : i32
    %c0_i32_0 = arith.constant 0 : i32
    %c0_i32_1 = arith.constant 0 : i32
    return %arg0, %arg1, %c0_i32, %c0_i32_0 : i32, i32, i32, i32
  }
  func.func @transform_1(%arg0: i32, %arg1: i32) -> (i32, i32, i32) {
    %c0_i32 = arith.constant 0 : i32
    %c0_i32_0 = arith.constant 0 : i32
    %c0_i32_1 = arith.constant 0 : i32
    %c0_i32_2 = arith.constant 0 : i32
    return %c0_i32, %c0_i32_0, %c0_i32_1 : i32, i32, i32
  }
  func.func @transform_2(%arg0: i32, %arg1: i32) -> (i32, i32, i32, i32) {
    %c0_i32 = arith.constant 0 : i32
    %c0_i32_0 = arith.constant 0 : i32
    %c0_i32_1 = arith.constant 0 : i32
    return %arg0, %arg1, %c0_i32, %c0_i32_0 : i32, i32, i32, i32
  }
  func.func @transform_3(%arg0: i32, %arg1: i32) -> (i32, i32, i32, i32) {
    %c0_i32 = arith.constant 0 : i32
    %c0_i32_0 = arith.constant 0 : i32
    %c0_i32_1 = arith.constant 0 : i32
    return %arg0, %arg1, %c0_i32, %c0_i32_0 : i32, i32, i32, i32
  }
  func.func @transform_4(%arg0: i32, %arg1: i32) -> (i32, i32, i32, i32) {
    %c0_i32 = arith.constant 0 : i32
    %c0_i32_0 = arith.constant 0 : i32
    %c0_i32_1 = arith.constant 0 : i32
    return %arg0, %arg1, %c0_i32, %c0_i32_0 : i32, i32, i32, i32
  }
}

module attributes {stable_mosaic.version = 11 : i64} {
  func.func @_conv_s2_kernel(%arg0: i32, %arg1: i32, %arg2: memref<1x1x90x64xbf16, #tpu.memory_space<vmem>>, %arg3: memref<4x64x128xbf16, #tpu.memory_space<vmem>>, %arg4: memref<1x1x72x128xbf16, #tpu.memory_space<vmem>>, %arg5: memref<1x1x1x128xf32, #tpu.memory_space<vmem>>, %arg6: memref<1x1x1x128xf32, #tpu.memory_space<vmem>>) attributes {dimension_semantics = [#tpu.dimension_semantics<parallel>, #tpu.dimension_semantics<parallel>], iteration_bounds = array<i64: 2, 1>, scalar_prefetch = 0 : i64, scratch_operands = 0 : i64, tpu.core_type = #tpu.core_type<tc>, window_params = [{transform_indices = @transform_0, window_bounds = array<i64: 1, 1, 90, 64>}, {pipeline_mode = #tpu.pipeline_mode<synchronous>, transform_indices = @transform_1, window_bounds = array<i64: 4, 64, 128>}, {transform_indices = @transform_2, window_bounds = array<i64: 1, 1, 72, 128>}, {transform_indices = @transform_3, window_bounds = array<i64: 1, 1, 1, 128>}, {transform_indices = @transform_4, window_bounds = array<i64: 1, 1, 1, 128>}]} {
    %c0 = arith.constant 0 : index
    %c0_0 = arith.constant 0 : index
    %c0_1 = arith.constant 0 : index
    %c0_2 = arith.constant 0 : index
    %0 = vector.load %arg2[%c0, %c0_0, %c0_1, %c0_2] : memref<1x1x90x64xbf16, #tpu.memory_space<vmem>>, vector<1x1x72x64xbf16>
    %1 = vector.shape_cast %0 : vector<1x1x72x64xbf16> to vector<72x64xbf16>
    %c0_3 = arith.constant 0 : index
    %c0_4 = arith.constant 0 : index
    %c0_5 = arith.constant 0 : index
    %2 = vector.load %arg3[%c0_3, %c0_4, %c0_5] : memref<4x64x128xbf16, #tpu.memory_space<vmem>>, vector<1x64x128xbf16>
    %3 = vector.shape_cast %2 : vector<1x64x128xbf16> to vector<64x128xbf16>
    %cst = arith.constant dense<0.000000e+00> : vector<72x128xf32>
    %4 = tpu.matmul %1, %3, %cst {dimension_numbers = #tpu.dot_dimension_numbers<[1], [0], [0], [1], [0, 0, 1, 1], [], []>} : vector<72x64xbf16>, vector<64x128xbf16>, vector<72x128xf32> -> vector<72x128xf32>
    %c0_6 = arith.constant 0 : index
    %c0_7 = arith.constant 0 : index
    %c1 = arith.constant 1 : index
    %c0_8 = arith.constant 0 : index
    %5 = vector.load %arg2[%c0_6, %c0_7, %c1, %c0_8] : memref<1x1x90x64xbf16, #tpu.memory_space<vmem>>, vector<1x1x72x64xbf16>
    %6 = vector.shape_cast %5 : vector<1x1x72x64xbf16> to vector<72x64xbf16>
    %c1_9 = arith.constant 1 : index
    %c0_10 = arith.constant 0 : index
    %c0_11 = arith.constant 0 : index
    %7 = vector.load %arg3[%c1_9, %c0_10, %c0_11] : memref<4x64x128xbf16, #tpu.memory_space<vmem>>, vector<1x64x128xbf16>
    %8 = vector.shape_cast %7 : vector<1x64x128xbf16> to vector<64x128xbf16>
    %cst_12 = arith.constant dense<0.000000e+00> : vector<72x128xf32>
    %9 = tpu.matmul %6, %8, %cst_12 {dimension_numbers = #tpu.dot_dimension_numbers<[1], [0], [0], [1], [0, 0, 1, 1], [], []>} : vector<72x64xbf16>, vector<64x128xbf16>, vector<72x128xf32> -> vector<72x128xf32>
    %10 = arith.addf %4, %9 : vector<72x128xf32>
    %c0_13 = arith.constant 0 : index
    %c0_14 = arith.constant 0 : index
    %c9 = arith.constant 9 : index
    %c0_15 = arith.constant 0 : index
    %11 = vector.load %arg2[%c0_13, %c0_14, %c9, %c0_15] : memref<1x1x90x64xbf16, #tpu.memory_space<vmem>>, vector<1x1x72x64xbf16>
    %12 = vector.shape_cast %11 : vector<1x1x72x64xbf16> to vector<72x64xbf16>
    %c2 = arith.constant 2 : index
    %c0_16 = arith.constant 0 : index
    %c0_17 = arith.constant 0 : index
    %13 = vector.load %arg3[%c2, %c0_16, %c0_17] : memref<4x64x128xbf16, #tpu.memory_space<vmem>>, vector<1x64x128xbf16>
    %14 = vector.shape_cast %13 : vector<1x64x128xbf16> to vector<64x128xbf16>
    %cst_18 = arith.constant dense<0.000000e+00> : vector<72x128xf32>
    %15 = tpu.matmul %12, %14, %cst_18 {dimension_numbers = #tpu.dot_dimension_numbers<[1], [0], [0], [1], [0, 0, 1, 1], [], []>} : vector<72x64xbf16>, vector<64x128xbf16>, vector<72x128xf32> -> vector<72x128xf32>
    %16 = arith.addf %10, %15 : vector<72x128xf32>
    %c0_19 = arith.constant 0 : index
    %c0_20 = arith.constant 0 : index
    %c10 = arith.constant 10 : index
    %c0_21 = arith.constant 0 : index
    %17 = vector.load %arg2[%c0_19, %c0_20, %c10, %c0_21] : memref<1x1x90x64xbf16, #tpu.memory_space<vmem>>, vector<1x1x72x64xbf16>
    %18 = vector.shape_cast %17 : vector<1x1x72x64xbf16> to vector<72x64xbf16>
    %c3 = arith.constant 3 : index
    %c0_22 = arith.constant 0 : index
    %c0_23 = arith.constant 0 : index
    %19 = vector.load %arg3[%c3, %c0_22, %c0_23] : memref<4x64x128xbf16, #tpu.memory_space<vmem>>, vector<1x64x128xbf16>
    %20 = vector.shape_cast %19 : vector<1x64x128xbf16> to vector<64x128xbf16>
    %cst_24 = arith.constant dense<0.000000e+00> : vector<72x128xf32>
    %21 = tpu.matmul %18, %20, %cst_24 {dimension_numbers = #tpu.dot_dimension_numbers<[1], [0], [0], [1], [0, 0, 1, 1], [], []>} : vector<72x64xbf16>, vector<64x128xbf16>, vector<72x128xf32> -> vector<72x128xf32>
    %22 = arith.addf %16, %21 : vector<72x128xf32>
    %23 = arith.truncf %22 : vector<72x128xf32> to vector<72x128xbf16>
    %c0_25 = arith.constant 0 : index
    %c0_26 = arith.constant 0 : index
    %c0_27 = arith.constant 0 : index
    %c0_28 = arith.constant 0 : index
    %24 = vector.load %arg4[%c0_25, %c0_26, %c0_27, %c0_28] : memref<1x1x72x128xbf16, #tpu.memory_space<vmem>>, vector<1x1x72x128xbf16>
    %25 = vector.shape_cast %24 : vector<1x1x72x128xbf16> to vector<72x128xbf16>
    %26 = vector.shape_cast %23 : vector<72x128xbf16> to vector<1x1x72x128xbf16>
    tpu.vector_store %arg4[%c0_25, %c0_26, %c0_27, %c0_28], %26 {strides = array<i32>} : memref<1x1x72x128xbf16, #tpu.memory_space<vmem>>, vector<1x1x72x128xbf16>,
    %27 = tpu.iota {dimensions = array<i32: 0>} : vector<72x1xi32>
    %28 = arith.sitofp %27 : vector<72x1xi32> to vector<72x1xf32>
    %cst_29 = arith.constant 5.000000e-01 : f32
    %29 = vector.broadcast %cst_29 : f32 to vector<72x1xf32>
    %30 = arith.addf %28, %29 : vector<72x1xf32>
    %cst_30 = arith.constant 9.000000e+00 : f32
    %31 = vector.broadcast %cst_30 : f32 to vector<72x1xf32>
    %32 = arith.divf %30, %31 : vector<72x1xf32>
    %33 = math.floor %32 : vector<72x1xf32>
    %cst_31 = arith.constant 9.000000e+00 : f32
    %34 = vector.broadcast %cst_31 : f32 to vector<72x1xf32>
    %35 = arith.mulf %34, %33 : vector<72x1xf32>
    %36 = arith.subf %30, %35 : vector<72x1xf32>
    %cst_32 = arith.constant 8.000000e+00 : f32
    %37 = vector.broadcast %cst_32 : f32 to vector<72x1xf32>
    %38 = arith.cmpf olt, %36, %37 : vector<72x1xf32>
    %cst_33 = arith.constant 0.000000e+00 : f32
    %39 = vector.shape_cast %38 : vector<72x1xi1> to vector<72x1xi1>
    %40 = vector.broadcast %39 : vector<72x1xi1> to vector<72x128xi1>
    %41 = vector.broadcast %cst_33 : f32 to vector<72x128xf32>
    %42 = arith.select %40, %22, %41 : vector<72x128xi1>, vector<72x128xf32>
    %cst_34 = arith.constant dense<0.000000e+00> : vector<128xf32>
    %43 = vector.multi_reduction <add>, %42, %cst_34 [0] : vector<72x128xf32> to vector<128xf32>
    %44 = vector.shape_cast %43 : vector<128xf32> to vector<1x128xf32>
    %45 = arith.mulf %42, %22 : vector<72x128xf32>
    %cst_35 = arith.constant dense<0.000000e+00> : vector<128xf32>
    %46 = vector.multi_reduction <add>, %45, %cst_35 [0] : vector<72x128xf32> to vector<128xf32>
    %47 = vector.shape_cast %46 : vector<128xf32> to vector<1x128xf32>
    %c0_36 = arith.constant 0 : index
    %c0_37 = arith.constant 0 : index
    %c0_38 = arith.constant 0 : index
    %c0_39 = arith.constant 0 : index
    %48 = vector.load %arg5[%c0_36, %c0_37, %c0_38, %c0_39] : memref<1x1x1x128xf32, #tpu.memory_space<vmem>>, vector<1x1x1x128xf32>
    %49 = vector.shape_cast %48 : vector<1x1x1x128xf32> to vector<1x128xf32>
    %50 = vector.shape_cast %44 : vector<1x128xf32> to vector<1x1x1x128xf32>
    tpu.vector_store %arg5[%c0_36, %c0_37, %c0_38, %c0_39], %50 {strides = array<i32>} : memref<1x1x1x128xf32, #tpu.memory_space<vmem>>, vector<1x1x1x128xf32>,
    %c0_40 = arith.constant 0 : index
    %c0_41 = arith.constant 0 : index
    %c0_42 = arith.constant 0 : index
    %c0_43 = arith.constant 0 : index
    %51 = vector.load %arg6[%c0_40, %c0_41, %c0_42, %c0_43] : memref<1x1x1x128xf32, #tpu.memory_space<vmem>>, vector<1x1x1x128xf32>
    %52 = vector.shape_cast %51 : vector<1x1x1x128xf32> to vector<1x128xf32>
    %53 = vector.shape_cast %47 : vector<1x128xf32> to vector<1x1x1x128xf32>
    tpu.vector_store %arg6[%c0_40, %c0_41, %c0_42, %c0_43], %53 {strides = array<i32>} : memref<1x1x1x128xf32, #tpu.memory_space<vmem>>, vector<1x1x1x128xf32>,
    return
  }
  func.func @transform_0(%arg0: i32, %arg1: i32) -> (i32, i32, i32, i32) {
    %c0_i32 = arith.constant 0 : i32
    %c0_i32_0 = arith.constant 0 : i32
    %c0_i32_1 = arith.constant 0 : i32
    return %arg0, %arg1, %c0_i32, %c0_i32_0 : i32, i32, i32, i32
  }
  func.func @transform_1(%arg0: i32, %arg1: i32) -> (i32, i32, i32) {
    %c0_i32 = arith.constant 0 : i32
    %c0_i32_0 = arith.constant 0 : i32
    %c0_i32_1 = arith.constant 0 : i32
    %c0_i32_2 = arith.constant 0 : i32
    return %c0_i32, %c0_i32_0, %c0_i32_1 : i32, i32, i32
  }
  func.func @transform_2(%arg0: i32, %arg1: i32) -> (i32, i32, i32, i32) {
    %c0_i32 = arith.constant 0 : i32
    %c0_i32_0 = arith.constant 0 : i32
    %c0_i32_1 = arith.constant 0 : i32
    return %arg0, %arg1, %c0_i32, %c0_i32_0 : i32, i32, i32, i32
  }
  func.func @transform_3(%arg0: i32, %arg1: i32) -> (i32, i32, i32, i32) {
    %c0_i32 = arith.constant 0 : i32
    %c0_i32_0 = arith.constant 0 : i32
    %c0_i32_1 = arith.constant 0 : i32
    return %arg0, %arg1, %c0_i32, %c0_i32_0 : i32, i32, i32, i32
  }
  func.func @transform_4(%arg0: i32, %arg1: i32) -> (i32, i32, i32, i32) {
    %c0_i32 = arith.constant 0 : i32
    %c0_i32_0 = arith.constant 0 : i32
    %c0_i32_1 = arith.constant 0 : i32
    return %arg0, %arg1, %c0_i32, %c0_i32_0 : i32, i32, i32, i32
  }
}

module attributes {stable_mosaic.version = 11 : i64} {
  func.func @_conv_s2_kernel(%arg0: i32, %arg1: i32, %arg2: memref<1x1x30x128xbf16, #tpu.memory_space<vmem>>, %arg3: memref<4x128x128xbf16, #tpu.memory_space<vmem>>, %arg4: memref<1x1x20x128xbf16, #tpu.memory_space<vmem>>, %arg5: memref<1x1x1x128xf32, #tpu.memory_space<vmem>>, %arg6: memref<1x1x1x128xf32, #tpu.memory_space<vmem>>) attributes {dimension_semantics = [#tpu.dimension_semantics<parallel>, #tpu.dimension_semantics<parallel>], iteration_bounds = array<i64: 2, 1>, scalar_prefetch = 0 : i64, scratch_operands = 0 : i64, tpu.core_type = #tpu.core_type<tc>, window_params = [{transform_indices = @transform_0, window_bounds = array<i64: 1, 1, 30, 128>}, {pipeline_mode = #tpu.pipeline_mode<synchronous>, transform_indices = @transform_1, window_bounds = array<i64: 4, 128, 128>}, {transform_indices = @transform_2, window_bounds = array<i64: 1, 1, 20, 128>}, {transform_indices = @transform_3, window_bounds = array<i64: 1, 1, 1, 128>}, {transform_indices = @transform_4, window_bounds = array<i64: 1, 1, 1, 128>}]} {
    %c0 = arith.constant 0 : index
    %c0_0 = arith.constant 0 : index
    %c0_1 = arith.constant 0 : index
    %c0_2 = arith.constant 0 : index
    %0 = vector.load %arg2[%c0, %c0_0, %c0_1, %c0_2] : memref<1x1x30x128xbf16, #tpu.memory_space<vmem>>, vector<1x1x20x128xbf16>
    %1 = vector.shape_cast %0 : vector<1x1x20x128xbf16> to vector<20x128xbf16>
    %c0_3 = arith.constant 0 : index
    %c0_4 = arith.constant 0 : index
    %c0_5 = arith.constant 0 : index
    %2 = vector.load %arg3[%c0_3, %c0_4, %c0_5] : memref<4x128x128xbf16, #tpu.memory_space<vmem>>, vector<1x128x128xbf16>
    %3 = vector.shape_cast %2 : vector<1x128x128xbf16> to vector<128x128xbf16>
    %cst = arith.constant dense<0.000000e+00> : vector<20x128xf32>
    %4 = tpu.matmul %1, %3, %cst {dimension_numbers = #tpu.dot_dimension_numbers<[1], [0], [0], [1], [0, 0, 1, 1], [], []>} : vector<20x128xbf16>, vector<128x128xbf16>, vector<20x128xf32> -> vector<20x128xf32>
    %c0_6 = arith.constant 0 : index
    %c0_7 = arith.constant 0 : index
    %c1 = arith.constant 1 : index
    %c0_8 = arith.constant 0 : index
    %5 = vector.load %arg2[%c0_6, %c0_7, %c1, %c0_8] : memref<1x1x30x128xbf16, #tpu.memory_space<vmem>>, vector<1x1x20x128xbf16>
    %6 = vector.shape_cast %5 : vector<1x1x20x128xbf16> to vector<20x128xbf16>
    %c1_9 = arith.constant 1 : index
    %c0_10 = arith.constant 0 : index
    %c0_11 = arith.constant 0 : index
    %7 = vector.load %arg3[%c1_9, %c0_10, %c0_11] : memref<4x128x128xbf16, #tpu.memory_space<vmem>>, vector<1x128x128xbf16>
    %8 = vector.shape_cast %7 : vector<1x128x128xbf16> to vector<128x128xbf16>
    %cst_12 = arith.constant dense<0.000000e+00> : vector<20x128xf32>
    %9 = tpu.matmul %6, %8, %cst_12 {dimension_numbers = #tpu.dot_dimension_numbers<[1], [0], [0], [1], [0, 0, 1, 1], [], []>} : vector<20x128xbf16>, vector<128x128xbf16>, vector<20x128xf32> -> vector<20x128xf32>
    %10 = arith.addf %4, %9 : vector<20x128xf32>
    %c0_13 = arith.constant 0 : index
    %c0_14 = arith.constant 0 : index
    %c5 = arith.constant 5 : index
    %c0_15 = arith.constant 0 : index
    %11 = vector.load %arg2[%c0_13, %c0_14, %c5, %c0_15] : memref<1x1x30x128xbf16, #tpu.memory_space<vmem>>, vector<1x1x20x128xbf16>
    %12 = vector.shape_cast %11 : vector<1x1x20x128xbf16> to vector<20x128xbf16>
    %c2 = arith.constant 2 : index
    %c0_16 = arith.constant 0 : index
    %c0_17 = arith.constant 0 : index
    %13 = vector.load %arg3[%c2, %c0_16, %c0_17] : memref<4x128x128xbf16, #tpu.memory_space<vmem>>, vector<1x128x128xbf16>
    %14 = vector.shape_cast %13 : vector<1x128x128xbf16> to vector<128x128xbf16>
    %cst_18 = arith.constant dense<0.000000e+00> : vector<20x128xf32>
    %15 = tpu.matmul %12, %14, %cst_18 {dimension_numbers = #tpu.dot_dimension_numbers<[1], [0], [0], [1], [0, 0, 1, 1], [], []>} : vector<20x128xbf16>, vector<128x128xbf16>, vector<20x128xf32> -> vector<20x128xf32>
    %16 = arith.addf %10, %15 : vector<20x128xf32>
    %c0_19 = arith.constant 0 : index
    %c0_20 = arith.constant 0 : index
    %c6 = arith.constant 6 : index
    %c0_21 = arith.constant 0 : index
    %17 = vector.load %arg2[%c0_19, %c0_20, %c6, %c0_21] : memref<1x1x30x128xbf16, #tpu.memory_space<vmem>>, vector<1x1x20x128xbf16>
    %18 = vector.shape_cast %17 : vector<1x1x20x128xbf16> to vector<20x128xbf16>
    %c3 = arith.constant 3 : index
    %c0_22 = arith.constant 0 : index
    %c0_23 = arith.constant 0 : index
    %19 = vector.load %arg3[%c3, %c0_22, %c0_23] : memref<4x128x128xbf16, #tpu.memory_space<vmem>>, vector<1x128x128xbf16>
    %20 = vector.shape_cast %19 : vector<1x128x128xbf16> to vector<128x128xbf16>
    %cst_24 = arith.constant dense<0.000000e+00> : vector<20x128xf32>
    %21 = tpu.matmul %18, %20, %cst_24 {dimension_numbers = #tpu.dot_dimension_numbers<[1], [0], [0], [1], [0, 0, 1, 1], [], []>} : vector<20x128xbf16>, vector<128x128xbf16>, vector<20x128xf32> -> vector<20x128xf32>
    %22 = arith.addf %16, %21 : vector<20x128xf32>
    %23 = arith.truncf %22 : vector<20x128xf32> to vector<20x128xbf16>
    %c0_25 = arith.constant 0 : index
    %c0_26 = arith.constant 0 : index
    %c0_27 = arith.constant 0 : index
    %c0_28 = arith.constant 0 : index
    %24 = vector.load %arg4[%c0_25, %c0_26, %c0_27, %c0_28] : memref<1x1x20x128xbf16, #tpu.memory_space<vmem>>, vector<1x1x20x128xbf16>
    %25 = vector.shape_cast %24 : vector<1x1x20x128xbf16> to vector<20x128xbf16>
    %26 = vector.shape_cast %23 : vector<20x128xbf16> to vector<1x1x20x128xbf16>
    tpu.vector_store %arg4[%c0_25, %c0_26, %c0_27, %c0_28], %26 {strides = array<i32>} : memref<1x1x20x128xbf16, #tpu.memory_space<vmem>>, vector<1x1x20x128xbf16>,
    %27 = tpu.iota {dimensions = array<i32: 0>} : vector<20x1xi32>
    %28 = arith.sitofp %27 : vector<20x1xi32> to vector<20x1xf32>
    %cst_29 = arith.constant 5.000000e-01 : f32
    %29 = vector.broadcast %cst_29 : f32 to vector<20x1xf32>
    %30 = arith.addf %28, %29 : vector<20x1xf32>
    %cst_30 = arith.constant 5.000000e+00 : f32
    %31 = vector.broadcast %cst_30 : f32 to vector<20x1xf32>
    %32 = arith.divf %30, %31 : vector<20x1xf32>
    %33 = math.floor %32 : vector<20x1xf32>
    %cst_31 = arith.constant 5.000000e+00 : f32
    %34 = vector.broadcast %cst_31 : f32 to vector<20x1xf32>
    %35 = arith.mulf %34, %33 : vector<20x1xf32>
    %36 = arith.subf %30, %35 : vector<20x1xf32>
    %cst_32 = arith.constant 4.000000e+00 : f32
    %37 = vector.broadcast %cst_32 : f32 to vector<20x1xf32>
    %38 = arith.cmpf olt, %36, %37 : vector<20x1xf32>
    %cst_33 = arith.constant 0.000000e+00 : f32
    %39 = vector.shape_cast %38 : vector<20x1xi1> to vector<20x1xi1>
    %40 = vector.broadcast %39 : vector<20x1xi1> to vector<20x128xi1>
    %41 = vector.broadcast %cst_33 : f32 to vector<20x128xf32>
    %42 = arith.select %40, %22, %41 : vector<20x128xi1>, vector<20x128xf32>
    %cst_34 = arith.constant dense<0.000000e+00> : vector<128xf32>
    %43 = vector.multi_reduction <add>, %42, %cst_34 [0] : vector<20x128xf32> to vector<128xf32>
    %44 = vector.shape_cast %43 : vector<128xf32> to vector<1x128xf32>
    %45 = arith.mulf %42, %22 : vector<20x128xf32>
    %cst_35 = arith.constant dense<0.000000e+00> : vector<128xf32>
    %46 = vector.multi_reduction <add>, %45, %cst_35 [0] : vector<20x128xf32> to vector<128xf32>
    %47 = vector.shape_cast %46 : vector<128xf32> to vector<1x128xf32>
    %c0_36 = arith.constant 0 : index
    %c0_37 = arith.constant 0 : index
    %c0_38 = arith.constant 0 : index
    %c0_39 = arith.constant 0 : index
    %48 = vector.load %arg5[%c0_36, %c0_37, %c0_38, %c0_39] : memref<1x1x1x128xf32, #tpu.memory_space<vmem>>, vector<1x1x1x128xf32>
    %49 = vector.shape_cast %48 : vector<1x1x1x128xf32> to vector<1x128xf32>
    %50 = vector.shape_cast %44 : vector<1x128xf32> to vector<1x1x1x128xf32>
    tpu.vector_store %arg5[%c0_36, %c0_37, %c0_38, %c0_39], %50 {strides = array<i32>} : memref<1x1x1x128xf32, #tpu.memory_space<vmem>>, vector<1x1x1x128xf32>,
    %c0_40 = arith.constant 0 : index
    %c0_41 = arith.constant 0 : index
    %c0_42 = arith.constant 0 : index
    %c0_43 = arith.constant 0 : index
    %51 = vector.load %arg6[%c0_40, %c0_41, %c0_42, %c0_43] : memref<1x1x1x128xf32, #tpu.memory_space<vmem>>, vector<1x1x1x128xf32>
    %52 = vector.shape_cast %51 : vector<1x1x1x128xf32> to vector<1x128xf32>
    %53 = vector.shape_cast %47 : vector<1x128xf32> to vector<1x1x1x128xf32>
    tpu.vector_store %arg6[%c0_40, %c0_41, %c0_42, %c0_43], %53 {strides = array<i32>} : memref<1x1x1x128xf32, #tpu.memory_space<vmem>>, vector<1x1x1x128xf32>,
    return
  }
  func.func @transform_0(%arg0: i32, %arg1: i32) -> (i32, i32, i32, i32) {
    %c0_i32 = arith.constant 0 : i32
    %c0_i32_0 = arith.constant 0 : i32
    %c0_i32_1 = arith.constant 0 : i32
    return %arg0, %arg1, %c0_i32, %c0_i32_0 : i32, i32, i32, i32
  }
  func.func @transform_1(%arg0: i32, %arg1: i32) -> (i32, i32, i32) {
    %c0_i32 = arith.constant 0 : i32
    %c0_i32_0 = arith.constant 0 : i32
    %c0_i32_1 = arith.constant 0 : i32
    %c0_i32_2 = arith.constant 0 : i32
    return %c0_i32, %c0_i32_0, %c0_i32_1 : i32, i32, i32
  }
  func.func @transform_2(%arg0: i32, %arg1: i32) -> (i32, i32, i32, i32) {
    %c0_i32 = arith.constant 0 : i32
    %c0_i32_0 = arith.constant 0 : i32
    %c0_i32_1 = arith.constant 0 : i32
    return %arg0, %arg1, %c0_i32, %c0_i32_0 : i32, i32, i32, i32
  }
  func.func @transform_3(%arg0: i32, %arg1: i32) -> (i32, i32, i32, i32) {
    %c0_i32 = arith.constant 0 : i32
    %c0_i32_0 = arith.constant 0 : i32
    %c0_i32_1 = arith.constant 0 : i32
    return %arg0, %arg1, %c0_i32, %c0_i32_0 : i32, i32, i32, i32
  }
  func.func @transform_4(%arg0: i32, %arg1: i32) -> (i32, i32, i32, i32) {
    %c0_i32 = arith.constant 0 : i32
    %c0_i32_0 = arith.constant 0 : i32
    %c0_i32_1 = arith.constant 0 : i32
    return %arg0, %arg1, %c0_i32, %c0_i32_0 : i32, i32, i32, i32
  }
}

module attributes {stable_mosaic.version = 11 : i64} {
  func.func @_conv_valid_kernel(%arg0: i32, %arg1: memref<1x24x64xbf16, #tpu.memory_space<vmem>>, %arg2: memref<16x64x128xbf16, #tpu.memory_space<vmem>>, %arg3: memref<1x4x128xf32, #tpu.memory_space<vmem>>) attributes {dimension_semantics = [#tpu.dimension_semantics<parallel>], iteration_bounds = array<i64: 2>, scalar_prefetch = 0 : i64, scratch_operands = 0 : i64, tpu.core_type = #tpu.core_type<tc>, window_params = [{transform_indices = @transform_0, window_bounds = array<i64: 1, 24, 64>}, {pipeline_mode = #tpu.pipeline_mode<synchronous>, transform_indices = @transform_1, window_bounds = array<i64: 16, 64, 128>}, {transform_indices = @transform_2, window_bounds = array<i64: 1, 4, 128>}]} {
    %c0 = arith.constant 0 : index
    %c0_0 = arith.constant 0 : index
    %c0_1 = arith.constant 0 : index
    %0 = vector.load %arg1[%c0, %c0_0, %c0_1] : memref<1x24x64xbf16, #tpu.memory_space<vmem>>, vector<1x4x64xbf16>
    %1 = vector.shape_cast %0 : vector<1x4x64xbf16> to vector<4x64xbf16>
    %c0_2 = arith.constant 0 : index
    %c0_3 = arith.constant 0 : index
    %c0_4 = arith.constant 0 : index
    %2 = vector.load %arg2[%c0_2, %c0_3, %c0_4] : memref<16x64x128xbf16, #tpu.memory_space<vmem>>, vector<1x64x128xbf16>
    %3 = vector.shape_cast %2 : vector<1x64x128xbf16> to vector<64x128xbf16>
    %cst = arith.constant dense<0.000000e+00> : vector<4x128xf32>
    %4 = tpu.matmul %1, %3, %cst {dimension_numbers = #tpu.dot_dimension_numbers<[1], [0], [0], [1], [0, 0, 1, 1], [], []>} : vector<4x64xbf16>, vector<64x128xbf16>, vector<4x128xf32> -> vector<4x128xf32>
    %c0_5 = arith.constant 0 : index
    %c1 = arith.constant 1 : index
    %c0_6 = arith.constant 0 : index
    %5 = vector.load %arg1[%c0_5, %c1, %c0_6] : memref<1x24x64xbf16, #tpu.memory_space<vmem>>, vector<1x4x64xbf16>
    %6 = vector.shape_cast %5 : vector<1x4x64xbf16> to vector<4x64xbf16>
    %c1_7 = arith.constant 1 : index
    %c0_8 = arith.constant 0 : index
    %c0_9 = arith.constant 0 : index
    %7 = vector.load %arg2[%c1_7, %c0_8, %c0_9] : memref<16x64x128xbf16, #tpu.memory_space<vmem>>, vector<1x64x128xbf16>
    %8 = vector.shape_cast %7 : vector<1x64x128xbf16> to vector<64x128xbf16>
    %cst_10 = arith.constant dense<0.000000e+00> : vector<4x128xf32>
    %9 = tpu.matmul %6, %8, %cst_10 {dimension_numbers = #tpu.dot_dimension_numbers<[1], [0], [0], [1], [0, 0, 1, 1], [], []>} : vector<4x64xbf16>, vector<64x128xbf16>, vector<4x128xf32> -> vector<4x128xf32>
    %10 = arith.addf %4, %9 : vector<4x128xf32>
    %c0_11 = arith.constant 0 : index
    %c2 = arith.constant 2 : index
    %c0_12 = arith.constant 0 : index
    %11 = vector.load %arg1[%c0_11, %c2, %c0_12] : memref<1x24x64xbf16, #tpu.memory_space<vmem>>, vector<1x4x64xbf16>
    %12 = vector.shape_cast %11 : vector<1x4x64xbf16> to vector<4x64xbf16>
    %c2_13 = arith.constant 2 : index
    %c0_14 = arith.constant 0 : index
    %c0_15 = arith.constant 0 : index
    %13 = vector.load %arg2[%c2_13, %c0_14, %c0_15] : memref<16x64x128xbf16, #tpu.memory_space<vmem>>, vector<1x64x128xbf16>
    %14 = vector.shape_cast %13 : vector<1x64x128xbf16> to vector<64x128xbf16>
    %cst_16 = arith.constant dense<0.000000e+00> : vector<4x128xf32>
    %15 = tpu.matmul %12, %14, %cst_16 {dimension_numbers = #tpu.dot_dimension_numbers<[1], [0], [0], [1], [0, 0, 1, 1], [], []>} : vector<4x64xbf16>, vector<64x128xbf16>, vector<4x128xf32> -> vector<4x128xf32>
    %16 = arith.addf %10, %15 : vector<4x128xf32>
    %c0_17 = arith.constant 0 : index
    %c3 = arith.constant 3 : index
    %c0_18 = arith.constant 0 : index
    %17 = vector.load %arg1[%c0_17, %c3, %c0_18] : memref<1x24x64xbf16, #tpu.memory_space<vmem>>, vector<1x4x64xbf16>
    %18 = vector.shape_cast %17 : vector<1x4x64xbf16> to vector<4x64xbf16>
    %c3_19 = arith.constant 3 : index
    %c0_20 = arith.constant 0 : index
    %c0_21 = arith.constant 0 : index
    %19 = vector.load %arg2[%c3_19, %c0_20, %c0_21] : memref<16x64x128xbf16, #tpu.memory_space<vmem>>, vector<1x64x128xbf16>
    %20 = vector.shape_cast %19 : vector<1x64x128xbf16> to vector<64x128xbf16>
    %cst_22 = arith.constant dense<0.000000e+00> : vector<4x128xf32>
    %21 = tpu.matmul %18, %20, %cst_22 {dimension_numbers = #tpu.dot_dimension_numbers<[1], [0], [0], [1], [0, 0, 1, 1], [], []>} : vector<4x64xbf16>, vector<64x128xbf16>, vector<4x128xf32> -> vector<4x128xf32>
    %22 = arith.addf %16, %21 : vector<4x128xf32>
    %c0_23 = arith.constant 0 : index
    %c4 = arith.constant 4 : index
    %c0_24 = arith.constant 0 : index
    %23 = vector.load %arg1[%c0_23, %c4, %c0_24] : memref<1x24x64xbf16, #tpu.memory_space<vmem>>, vector<1x4x64xbf16>
    %24 = vector.shape_cast %23 : vector<1x4x64xbf16> to vector<4x64xbf16>
    %c4_25 = arith.constant 4 : index
    %c0_26 = arith.constant 0 : index
    %c0_27 = arith.constant 0 : index
    %25 = vector.load %arg2[%c4_25, %c0_26, %c0_27] : memref<16x64x128xbf16, #tpu.memory_space<vmem>>, vector<1x64x128xbf16>
    %26 = vector.shape_cast %25 : vector<1x64x128xbf16> to vector<64x128xbf16>
    %cst_28 = arith.constant dense<0.000000e+00> : vector<4x128xf32>
    %27 = tpu.matmul %24, %26, %cst_28 {dimension_numbers = #tpu.dot_dimension_numbers<[1], [0], [0], [1], [0, 0, 1, 1], [], []>} : vector<4x64xbf16>, vector<64x128xbf16>, vector<4x128xf32> -> vector<4x128xf32>
    %28 = arith.addf %22, %27 : vector<4x128xf32>
    %c0_29 = arith.constant 0 : index
    %c5 = arith.constant 5 : index
    %c0_30 = arith.constant 0 : index
    %29 = vector.load %arg1[%c0_29, %c5, %c0_30] : memref<1x24x64xbf16, #tpu.memory_space<vmem>>, vector<1x4x64xbf16>
    %30 = vector.shape_cast %29 : vector<1x4x64xbf16> to vector<4x64xbf16>
    %c5_31 = arith.constant 5 : index
    %c0_32 = arith.constant 0 : index
    %c0_33 = arith.constant 0 : index
    %31 = vector.load %arg2[%c5_31, %c0_32, %c0_33] : memref<16x64x128xbf16, #tpu.memory_space<vmem>>, vector<1x64x128xbf16>
    %32 = vector.shape_cast %31 : vector<1x64x128xbf16> to vector<64x128xbf16>
    %cst_34 = arith.constant dense<0.000000e+00> : vector<4x128xf32>
    %33 = tpu.matmul %30, %32, %cst_34 {dimension_numbers = #tpu.dot_dimension_numbers<[1], [0], [0], [1], [0, 0, 1, 1], [], []>} : vector<4x64xbf16>, vector<64x128xbf16>, vector<4x128xf32> -> vector<4x128xf32>
    %34 = arith.addf %28, %33 : vector<4x128xf32>
    %c0_35 = arith.constant 0 : index
    %c6 = arith.constant 6 : index
    %c0_36 = arith.constant 0 : index
    %35 = vector.load %arg1[%c0_35, %c6, %c0_36] : memref<1x24x64xbf16, #tpu.memory_space<vmem>>, vector<1x4x64xbf16>
    %36 = vector.shape_cast %35 : vector<1x4x64xbf16> to vector<4x64xbf16>
    %c6_37 = arith.constant 6 : index
    %c0_38 = arith.constant 0 : index
    %c0_39 = arith.constant 0 : index
    %37 = vector.load %arg2[%c6_37, %c0_38, %c0_39] : memref<16x64x128xbf16, #tpu.memory_space<vmem>>, vector<1x64x128xbf16>
    %38 = vector.shape_cast %37 : vector<1x64x128xbf16> to vector<64x128xbf16>
    %cst_40 = arith.constant dense<0.000000e+00> : vector<4x128xf32>
    %39 = tpu.matmul %36, %38, %cst_40 {dimension_numbers = #tpu.dot_dimension_numbers<[1], [0], [0], [1], [0, 0, 1, 1], [], []>} : vector<4x64xbf16>, vector<64x128xbf16>, vector<4x128xf32> -> vector<4x128xf32>
    %40 = arith.addf %34, %39 : vector<4x128xf32>
    %c0_41 = arith.constant 0 : index
    %c7 = arith.constant 7 : index
    %c0_42 = arith.constant 0 : index
    %41 = vector.load %arg1[%c0_41, %c7, %c0_42] : memref<1x24x64xbf16, #tpu.memory_space<vmem>>, vector<1x4x64xbf16>
    %42 = vector.shape_cast %41 : vector<1x4x64xbf16> to vector<4x64xbf16>
    %c7_43 = arith.constant 7 : index
    %c0_44 = arith.constant 0 : index
    %c0_45 = arith.constant 0 : index
    %43 = vector.load %arg2[%c7_43, %c0_44, %c0_45] : memref<16x64x128xbf16, #tpu.memory_space<vmem>>, vector<1x64x128xbf16>
    %44 = vector.shape_cast %43 : vector<1x64x128xbf16> to vector<64x128xbf16>
    %cst_46 = arith.constant dense<0.000000e+00> : vector<4x128xf32>
    %45 = tpu.matmul %42, %44, %cst_46 {dimension_numbers = #tpu.dot_dimension_numbers<[1], [0], [0], [1], [0, 0, 1, 1], [], []>} : vector<4x64xbf16>, vector<64x128xbf16>, vector<4x128xf32> -> vector<4x128xf32>
    %46 = arith.addf %40, %45 : vector<4x128xf32>
    %c0_47 = arith.constant 0 : index
    %c8 = arith.constant 8 : index
    %c0_48 = arith.constant 0 : index
    %47 = vector.load %arg1[%c0_47, %c8, %c0_48] : memref<1x24x64xbf16, #tpu.memory_space<vmem>>, vector<1x4x64xbf16>
    %48 = vector.shape_cast %47 : vector<1x4x64xbf16> to vector<4x64xbf16>
    %c8_49 = arith.constant 8 : index
    %c0_50 = arith.constant 0 : index
    %c0_51 = arith.constant 0 : index
    %49 = vector.load %arg2[%c8_49, %c0_50, %c0_51] : memref<16x64x128xbf16, #tpu.memory_space<vmem>>, vector<1x64x128xbf16>
    %50 = vector.shape_cast %49 : vector<1x64x128xbf16> to vector<64x128xbf16>
    %cst_52 = arith.constant dense<0.000000e+00> : vector<4x128xf32>
    %51 = tpu.matmul %48, %50, %cst_52 {dimension_numbers = #tpu.dot_dimension_numbers<[1], [0], [0], [1], [0, 0, 1, 1], [], []>} : vector<4x64xbf16>, vector<64x128xbf16>, vector<4x128xf32> -> vector<4x128xf32>
    %52 = arith.addf %46, %51 : vector<4x128xf32>
    %c0_53 = arith.constant 0 : index
    %c9 = arith.constant 9 : index
    %c0_54 = arith.constant 0 : index
    %53 = vector.load %arg1[%c0_53, %c9, %c0_54] : memref<1x24x64xbf16, #tpu.memory_space<vmem>>, vector<1x4x64xbf16>
    %54 = vector.shape_cast %53 : vector<1x4x64xbf16> to vector<4x64xbf16>
    %c9_55 = arith.constant 9 : index
    %c0_56 = arith.constant 0 : index
    %c0_57 = arith.constant 0 : index
    %55 = vector.load %arg2[%c9_55, %c0_56, %c0_57] : memref<16x64x128xbf16, #tpu.memory_space<vmem>>, vector<1x64x128xbf16>
    %56 = vector.shape_cast %55 : vector<1x64x128xbf16> to vector<64x128xbf16>
    %cst_58 = arith.constant dense<0.000000e+00> : vector<4x128xf32>
    %57 = tpu.matmul %54, %56, %cst_58 {dimension_numbers = #tpu.dot_dimension_numbers<[1], [0], [0], [1], [0, 0, 1, 1], [], []>} : vector<4x64xbf16>, vector<64x128xbf16>, vector<4x128xf32> -> vector<4x128xf32>
    %58 = arith.addf %52, %57 : vector<4x128xf32>
    %c0_59 = arith.constant 0 : index
    %c10 = arith.constant 10 : index
    %c0_60 = arith.constant 0 : index
    %59 = vector.load %arg1[%c0_59, %c10, %c0_60] : memref<1x24x64xbf16, #tpu.memory_space<vmem>>, vector<1x4x64xbf16>
    %60 = vector.shape_cast %59 : vector<1x4x64xbf16> to vector<4x64xbf16>
    %c10_61 = arith.constant 10 : index
    %c0_62 = arith.constant 0 : index
    %c0_63 = arith.constant 0 : index
    %61 = vector.load %arg2[%c10_61, %c0_62, %c0_63] : memref<16x64x128xbf16, #tpu.memory_space<vmem>>, vector<1x64x128xbf16>
    %62 = vector.shape_cast %61 : vector<1x64x128xbf16> to vector<64x128xbf16>
    %cst_64 = arith.constant dense<0.000000e+00> : vector<4x128xf32>
    %63 = tpu.matmul %60, %62, %cst_64 {dimension_numbers = #tpu.dot_dimension_numbers<[1], [0], [0], [1], [0, 0, 1, 1], [], []>} : vector<4x64xbf16>, vector<64x128xbf16>, vector<4x128xf32> -> vector<4x128xf32>
    %64 = arith.addf %58, %63 : vector<4x128xf32>
    %c0_65 = arith.constant 0 : index
    %c11 = arith.constant 11 : index
    %c0_66 = arith.constant 0 : index
    %65 = vector.load %arg1[%c0_65, %c11, %c0_66] : memref<1x24x64xbf16, #tpu.memory_space<vmem>>, vector<1x4x64xbf16>
    %66 = vector.shape_cast %65 : vector<1x4x64xbf16> to vector<4x64xbf16>
    %c11_67 = arith.constant 11 : index
    %c0_68 = arith.constant 0 : index
    %c0_69 = arith.constant 0 : index
    %67 = vector.load %arg2[%c11_67, %c0_68, %c0_69] : memref<16x64x128xbf16, #tpu.memory_space<vmem>>, vector<1x64x128xbf16>
    %68 = vector.shape_cast %67 : vector<1x64x128xbf16> to vector<64x128xbf16>
    %cst_70 = arith.constant dense<0.000000e+00> : vector<4x128xf32>
    %69 = tpu.matmul %66, %68, %cst_70 {dimension_numbers = #tpu.dot_dimension_numbers<[1], [0], [0], [1], [0, 0, 1, 1], [], []>} : vector<4x64xbf16>, vector<64x128xbf16>, vector<4x128xf32> -> vector<4x128xf32>
    %70 = arith.addf %64, %69 : vector<4x128xf32>
    %c0_71 = arith.constant 0 : index
    %c12 = arith.constant 12 : index
    %c0_72 = arith.constant 0 : index
    %71 = vector.load %arg1[%c0_71, %c12, %c0_72] : memref<1x24x64xbf16, #tpu.memory_space<vmem>>, vector<1x4x64xbf16>
    %72 = vector.shape_cast %71 : vector<1x4x64xbf16> to vector<4x64xbf16>
    %c12_73 = arith.constant 12 : index
    %c0_74 = arith.constant 0 : index
    %c0_75 = arith.constant 0 : index
    %73 = vector.load %arg2[%c12_73, %c0_74, %c0_75] : memref<16x64x128xbf16, #tpu.memory_space<vmem>>, vector<1x64x128xbf16>
    %74 = vector.shape_cast %73 : vector<1x64x128xbf16> to vector<64x128xbf16>
    %cst_76 = arith.constant dense<0.000000e+00> : vector<4x128xf32>
    %75 = tpu.matmul %72, %74, %cst_76 {dimension_numbers = #tpu.dot_dimension_numbers<[1], [0], [0], [1], [0, 0, 1, 1], [], []>} : vector<4x64xbf16>, vector<64x128xbf16>, vector<4x128xf32> -> vector<4x128xf32>
    %76 = arith.addf %70, %75 : vector<4x128xf32>
    %c0_77 = arith.constant 0 : index
    %c13 = arith.constant 13 : index
    %c0_78 = arith.constant 0 : index
    %77 = vector.load %arg1[%c0_77, %c13, %c0_78] : memref<1x24x64xbf16, #tpu.memory_space<vmem>>, vector<1x4x64xbf16>
    %78 = vector.shape_cast %77 : vector<1x4x64xbf16> to vector<4x64xbf16>
    %c13_79 = arith.constant 13 : index
    %c0_80 = arith.constant 0 : index
    %c0_81 = arith.constant 0 : index
    %79 = vector.load %arg2[%c13_79, %c0_80, %c0_81] : memref<16x64x128xbf16, #tpu.memory_space<vmem>>, vector<1x64x128xbf16>
    %80 = vector.shape_cast %79 : vector<1x64x128xbf16> to vector<64x128xbf16>
    %cst_82 = arith.constant dense<0.000000e+00> : vector<4x128xf32>
    %81 = tpu.matmul %78, %80, %cst_82 {dimension_numbers = #tpu.dot_dimension_numbers<[1], [0], [0], [1], [0, 0, 1, 1], [], []>} : vector<4x64xbf16>, vector<64x128xbf16>, vector<4x128xf32> -> vector<4x128xf32>
    %82 = arith.addf %76, %81 : vector<4x128xf32>
    %c0_83 = arith.constant 0 : index
    %c14 = arith.constant 14 : index
    %c0_84 = arith.constant 0 : index
    %83 = vector.load %arg1[%c0_83, %c14, %c0_84] : memref<1x24x64xbf16, #tpu.memory_space<vmem>>, vector<1x4x64xbf16>
    %84 = vector.shape_cast %83 : vector<1x4x64xbf16> to vector<4x64xbf16>
    %c14_85 = arith.constant 14 : index
    %c0_86 = arith.constant 0 : index
    %c0_87 = arith.constant 0 : index
    %85 = vector.load %arg2[%c14_85, %c0_86, %c0_87] : memref<16x64x128xbf16, #tpu.memory_space<vmem>>, vector<1x64x128xbf16>
    %86 = vector.shape_cast %85 : vector<1x64x128xbf16> to vector<64x128xbf16>
    %cst_88 = arith.constant dense<0.000000e+00> : vector<4x128xf32>
    %87 = tpu.matmul %84, %86, %cst_88 {dimension_numbers = #tpu.dot_dimension_numbers<[1], [0], [0], [1], [0, 0, 1, 1], [], []>} : vector<4x64xbf16>, vector<64x128xbf16>, vector<4x128xf32> -> vector<4x128xf32>
    %88 = arith.addf %82, %87 : vector<4x128xf32>
    %c0_89 = arith.constant 0 : index
    %c15 = arith.constant 15 : index
    %c0_90 = arith.constant 0 : index
    %89 = vector.load %arg1[%c0_89, %c15, %c0_90] : memref<1x24x64xbf16, #tpu.memory_space<vmem>>, vector<1x4x64xbf16>
    %90 = vector.shape_cast %89 : vector<1x4x64xbf16> to vector<4x64xbf16>
    %c15_91 = arith.constant 15 : index
    %c0_92 = arith.constant 0 : index
    %c0_93 = arith.constant 0 : index
    %91 = vector.load %arg2[%c15_91, %c0_92, %c0_93] : memref<16x64x128xbf16, #tpu.memory_space<vmem>>, vector<1x64x128xbf16>
    %92 = vector.shape_cast %91 : vector<1x64x128xbf16> to vector<64x128xbf16>
    %cst_94 = arith.constant dense<0.000000e+00> : vector<4x128xf32>
    %93 = tpu.matmul %90, %92, %cst_94 {dimension_numbers = #tpu.dot_dimension_numbers<[1], [0], [0], [1], [0, 0, 1, 1], [], []>} : vector<4x64xbf16>, vector<64x128xbf16>, vector<4x128xf32> -> vector<4x128xf32>
    %94 = arith.addf %88, %93 : vector<4x128xf32>
    %c0_95 = arith.constant 0 : index
    %c0_96 = arith.constant 0 : index
    %c0_97 = arith.constant 0 : index
    %95 = vector.load %arg3[%c0_95, %c0_96, %c0_97] : memref<1x4x128xf32, #tpu.memory_space<vmem>>, vector<1x4x128xf32>
    %96 = vector.shape_cast %95 : vector<1x4x128xf32> to vector<4x128xf32>
    %97 = vector.shape_cast %94 : vector<4x128xf32> to vector<1x4x128xf32>
    tpu.vector_store %arg3[%c0_95, %c0_96, %c0_97], %97 {strides = array<i32>} : memref<1x4x128xf32, #tpu.memory_space<vmem>>, vector<1x4x128xf32>,
    return
  }
  func.func @transform_0(%arg0: i32) -> (i32, i32, i32) {
    %c0_i32 = arith.constant 0 : i32
    %c0_i32_0 = arith.constant 0 : i32
    %c0_i32_1 = arith.constant 0 : i32
    return %arg0, %c0_i32, %c0_i32_0 : i32, i32, i32
  }
  func.func @transform_1(%arg0: i32) -> (i32, i32, i32) {
    %c0_i32 = arith.constant 0 : i32
    %c0_i32_0 = arith.constant 0 : i32
    %c0_i32_1 = arith.constant 0 : i32
    %c0_i32_2 = arith.constant 0 : i32
    return %c0_i32, %c0_i32_0, %c0_i32_1 : i32, i32, i32
  }
  func.func @transform_2(%arg0: i32) -> (i32, i32, i32) {
    %c0_i32 = arith.constant 0 : i32
    %c0_i32_0 = arith.constant 0 : i32
    %c0_i32_1 = arith.constant 0 : i32
    return %arg0, %c0_i32, %c0_i32_0 : i32, i32, i32
  }
}

</mosaic_0001>

<bundles_post_ra>
// kernel: _lambda_.5
= control target key start
LH: loop header
LB: loop body
LE: loop exit
PB: predicated region body
PF: predicated region fallthrough
CT: control target
= control target key end

     0   :  { %s10370_s9 = smov 0   ;;  %s10372_s10 = smov 0   ;;  %s12328_s0 = inlined_call_operand.vmem [shape: bf16[2,1,1122,24], index: 0, kind: input, shape index: {}]   ;;  %s12329_s1 = inlined_call_operand.vmem [shape: bf16[4,24,128], index: 1, kind: input, shape index: {}]   ;;  %s12330_s2 = inlined_call_operand.vmem [shape: bf16[2,1,1056,128], index: 2, kind: output, shape index: {}]  }
   0x1   :  { %s10374_s11 = smov 0  }
   0x2 LB: > { %s24_s12 = sadd.s32 1, %s10349_s10  ;;  %p7619_p0 = scmp.ge.s32.totalorder %s10353_s11, 1  ;;  %s10353_s11 = sphi %s10374_s11, %s12_s11   ;;  %s10349_s10 = sphi %s10372_s10, %s12413_s10   ;;  %s10345_s9 = sphi %s10370_s9, %s12412_s9  }
   0x3   : > { %p26_p1 = scmp.ge.s32.totalorder %s24_s12, 2  ;;  %p132_p2 = scmp.lt.s32.totalorder %s10353_s11, 3 }
   0x5   : > { %s12415_s12 = smov (%p26_p1, %s24_s12), 0  ;;  %p133_p3 = pnand %p7619_p0, %p132_p2 }
   0x7   : > { %136 = sbr.rel (%p133_p3) target bundleno = 782 (0x30e), region = 28 }
   0xe   : > { %v10138_v0 = vld [vmem:[%s12329_s1 + $0xc] sm:$0xff]   ;;  %v10139_v1 = vld [vmem:[%s12329_s1 + $0x14] ss:$0 sps:$4 sm:$0xff]   ;;  %vm495_vm0 = vcmask 1043456   ;;  %p162_p4 = scmp.lt.s32.totalorder %s10345_s9, 1  ;;  %v10399_v2 = vld [vmem:[%s12329_s1] sm:$0xff]  }
   0xf   : > { %9083 = vmatprep.subr.bf16.mxu0 %v10138_v0  ;;  %9691 = vmatprep.subr.bf16.mxu1 %v10138_v0  ;;  %v497_v3 = vsel %vm495_vm0, %v10139_v1, 0  ;;  %v10407_v4 = vld [vmem:[%s12329_s1 + $0xc] sm:$0xff]   ;;  %v10413_v5 = vld [vmem:[%s12329_s1 + $0x14] ss:$0 sps:$4 sm:$0xff]   ;;  %vm446_vm1 = vcmask 195584   ;;  %v10489_v51 = vld [vmem:[%s12329_s1 + $0x18] sm:$0xff]  }
  0x10   : > { %9084 = vmatpush3.bf16.msra.mxu0 %v10138_v0  ;;  %9693 = vmatpush3.bf16.msra.mxu1 %v10138_v0  ;;  %s12417_s9 = smov (!%p162_p4, %s10345_s9), 1  ;;  %v10159_v6 = vld [vmem:[%s12329_s1 + $0x8] ss:$0 sps:$4 sm:$0xff]   ;;  %vm304_vm2 = vsmask.f32 7424  ;;  %v10443_v15 = vsel %vm495_vm0, %v10413_v5, 0 }
  0x11   : > { %10091 = vmatprep.subr.msk.bf16.mxu0 %vm495_vm0, %v10139_v1  ;;  %10092 = vmatprep.subr.msk.bf16.mxu1 %vm495_vm0, %v10139_v1  ;;  %s10112_s21 = smul.u32 564, %s12417_s9  ;;  %v10446_v16 = vsel %vm495_vm0, %v10159_v6, 0  ;;  %v10504_v60 = vld [vmem:[%s12329_s1] sm:$0xff]   ;;  %vm1378_vm3 = vcmask 1046528  }
  0x12   : > { %s10113_s7 = smul.u32 528, %s12417_s9 }
  0x13   : > { %s10418_s26 = scalar_lea.vmem %s12328_s0, %s10112_s21 }
  0x14   : > { %9086 = vmatpush3.bf16.msra.mxu0 %v497_v3  ;;  %9694 = vmatpush3.bf16.msra.mxu1 %v497_v3  ;;  %v10426_v7 = vld [vmem:[%s10418_s26] sm:$0xff]   ;;  %v10429_v8 = vld [vmem:[%s10418_s26 + $0x8] sm:$0xff]   ;;  %v10449_v19 = vld [vmem:[%s10418_s26 + $0x10] sm:$0xff]   ;;  %s11867_s13 = scalar_lea.vmem %s12330_s2, %s10113_s7 }
  0x15   : > { %9119 = vmatprep.subr.bf16.mxu0 %v10399_v2  ;;  %9227 = vmatprep.subr.bf16.mxu1 %v10407_v4  ;;  %v306_v9 = vshrl.u32 %v10426_v7, 16  ;;  %v308_v10 = vshll.u32 %v10426_v7, 16  ;;  %v313_v11 = vshll.u32 %v10429_v8, 16  ;;  %v317_v12 = vshrl.u32 %v10429_v8, 16  ;;  %v10436_v13 = vld [vmem:[%s10418_s26 + $0x60] sm:$0xff]   ;;  %v10439_v14 = vld [vmem:[%s10418_s26 + $0x68] sm:$0xff]  }
  0x16   : > { %v10452_v20 = vld [vmem:[%s10418_s26 + $0x70] sm:$0xff]   ;;  %v401_v21 = vshll.u32 %v10436_v13, 16  ;;  %v405_v22 = vshrl.u32 %v10436_v13, 16  ;;  %v409_v23 = vshll.u32 %v10439_v14, 16  ;;  %v413_v24 = vshrl.u32 %v10439_v14, 16  ;;  %v10463_v31 = vld [vmem:[%s10418_s26 + $0x18] sm:$0xff]  }
  0x17   : > { %v310_v17 = vrot.slane %v308_v10, 1  ;;  %v315_v18 = vrot.slane %v313_v11, 1  ;;  %v321_v27 = vshll.u32 %v10449_v19, 16  ;;  %v417_v28 = vshll.u32 %v10452_v20, 16  ;;  %v10471_v39 = vld [vmem:[%s10418_s26 + $0x78] sm:$0xff]   ;;  %v10475_v41 = vld [vmem:[%s10418_s26 + $0x20] sm:$0xff]  }
  0x18   : > { %v10460_v29 = vrot.slane %v401_v21, 1  ;;  %v411_v30 = vrot.slane %v409_v23, 1  ;;  %v325_v32 = vshrl.u32 %v10449_v19, 16  ;;  %v329_v38 = vshll.u32 %v10463_v31, 16  ;;  %v10480_v45 = vld [vmem:[%s10418_s26 + $0x28] sm:$0xff]   ;;  %v10511_v1 = vld [vmem:[%s10418_s26 + $0x80] sm:$0xff]  }
  0x19   : > { %v311_v25 = vor.u32 %v310_v17, %v306_v9  ;;  %v319_v26 = vor.u32 %v317_v12, %v315_v18  ;;  %v323_v34 = vrot.slane %v321_v27, 1  ;;  %v419_v35 = vrot.slane %v417_v28, 1  ;;  %v10150_v50 = vld [vmem:[%s10418_s26 + $0x80] ss:$0 sps:$4 sm:$0x11]   ;;  %v10519_v11 = vld [vmem:[%s10418_s26 + $0x30] sm:$0xff]  }
  0x1a   : > { %v407_v36 = vor.u32 %v405_v22, %v10460_v29  ;;  %v415_v37 = vor.u32 %v413_v24, %v411_v30  ;;  %v421_v40 = vshrl.u32 %v10452_v20, 16  ;;  %v333_v44 = vshrl.u32 %v10463_v31, 16  ;;  %v10534_v23 = vld [vmem:[%s10418_s26 + $0x90] sm:$0xff]   ;;  %v10537_v24 = vld [vmem:[%s10418_s26 + $0x38] sm:$0xff]  }
  0x1b   : > { %v316_v33 = vsel %vm304_vm2, %v311_v25, %v315_v18  ;;  %v324_v42 = vsel %vm304_vm2, %v319_v26, %v323_v34  ;;  %v327_v43 = vor.u32 %v325_v32, %v323_v34  ;;  %v331_v48 = vrot.slane %v329_v38, 1  ;;  %v10542_v28 = vld [vmem:[%s10418_s26 + $0x98] sm:$0xff]   ;;  %v10549_v34 = vld [vmem:[%s10418_s26 + $0x40] sm:$0xff]  }
  0x1c   : > { %9087 = vmatprep.mubr.msk.bf16.mxu0 %vm446_vm1, %v316_v33  ;;  %v412_v46 = vsel %vm304_vm2, %v407_v36, %v411_v30  ;;  %v420_v47 = vsel %vm304_vm2, %v415_v37, %v419_v35  ;;  %v423_v49 = vor.u32 %v421_v40, %v419_v35  ;;  %v425_v52 = vshll.u32 %v10471_v39, 16 }
  0x1d   : > { %9088 = vmatmul.mubr.msk.bf16.vlgmr.msra.gmra.mrb[0].mxu0 %vm446_vm1, %v324_v42  ;;  %9111 = vmatprep.mubr.msk.bf16.mxu1 %vm446_vm1, %v412_v46  ;;  %v337_v53 = vshll.u32 %v10475_v41, 16  ;;  %v429_v54 = vshrl.u32 %v10471_v39, 16  ;;  %v341_v55 = vshrl.u32 %v10475_v41, 16  ;;  %v332_v56 = vsel %vm304_vm2, %v327_v43, %v331_v48 }
  0x1e   : > { %9120 = vmatpush3.bf16.msra.mxu0 %v10399_v2  ;;  %9112 = vmatmul.mubr.msk.bf16.vlgmr.msra.gmra.mrb[0].mxu1 %vm446_vm1, %v420_v47  ;;  %v335_v57 = vor.u32 %v333_v44, %v331_v48  ;;  %v433_v58 = vshll.u32 %v10150_v50, 16  ;;  %v345_v59 = vshll.u32 %v10480_v45, 16  ;;  %v427_v61 = vrot.slane %v425_v52, 1  ;;  %v10514_v2 = vld [vmem:[%s10418_s26 + $0x88] sm:$0xff]   ;;  %v10557_v48 = vld [vmem:[%s10418_s26 + $0xa0] sm:$0xff]  }
  0x1f   : > { %10093 = vmatprep.subr.msk.bf16.mxu0 %vm495_vm0, %v10159_v6  ;;  %9091 = vmatprep.mubr.msk.bf16.mxu0 %vm446_vm1, %v332_v56  ;;  %v339_v62 = vrot.slane %v337_v53, 1  ;;  %v2051_v12 = vshll.u32 %v10514_v2, 16  ;;  %v2055_v17 = vshrl.u32 %v10514_v2, 16  ;;  %v353_v22 = vshll.u32 %v10519_v11, 16  ;;  %v10563_v53 = vld [vmem:[%s10418_s26 + $0x48] sm:$0xff]  }
  0x20   : > { %9228 = vmatpush3.bf16.msra.mxu1 %v10407_v4  ;;  %v435_v63 = vrot.slane %v433_v58, 1  ;;  %v347_v0 = vrot.slane %v345_v59, 1  ;;  %v428_v3 = vsel %vm304_vm2, %v423_v49, %v427_v61  ;;  %v431_v9 = vor.u32 %v429_v54, %v427_v61 }
  0x21   : > { %10096 = vmatprep.subr.msk.bf16.mxu1 %vm495_vm0, %v10413_v5  ;;  %v340_v6 = vsel %vm304_vm2, %v335_v57, %v339_v62  ;;  %v343_v10 = vor.u32 %v341_v55, %v339_v62  ;;  %9115 = vmatprep.mubr.msk.bf16.mxu1 %vm446_vm1, %v428_v3  ;;  %v2044_v4 = vshrl.u32 %v10511_v1, 16  ;;  %v2046_v5 = vshll.u32 %v10511_v1, 16  ;;  %v10569_v57 = vld [vmem:[%s10418_s26 + $0xa8] sm:$0xff]  }
  0x22   : > { %9122 = vmatpush3.bf16.msra.mxu0 %v10446_v16  ;;  %v436_v18 = vsel %vm304_vm2, %v431_v9, %v435_v63  ;;  %v349_v16 = vshrl.u32 %v10480_v45, 16  ;;  %v2053_v26 = vrot.slane %v2051_v12, 1  ;;  %v357_v27 = vshrl.u32 %v10519_v11, 16 }
  0x23   : > { %9155 = vmatprep.subr.bf16.mxu0 %v10489_v51  ;;  %v348_v21 = vsel %vm304_vm2, %v343_v10, %v347_v0  ;;  %v2048_v25 = vrot.slane %v2046_v5, 1  ;;  %v355_v30 = vrot.slane %v353_v22, 1  ;;  %v2059_v32 = vshll.u32 %v10534_v23, 16  ;;  %v10583_v10 = vld [vmem:[%s10418_s26 + $0xb0] sm:$0xff]  }
  0x24   : > { %9230 = vmatpush3.bf16.msra.mxu1 %v10443_v15  ;;  %v351_v15 = vor.u32 %v349_v16, %v347_v0  ;;  %v361_v33 = vshll.u32 %v10537_v24, 16  ;;  %v2063_v36 = vshrl.u32 %v10534_v23, 16  ;;  %v2067_v37 = vshll.u32 %v10542_v28, 16 }
  0x25   : > { %9092 = vmatmul.mubr.msk.bf16.gmra.mrb[4].mxu0 %vm446_vm1, %v340_v6  ;;  %9263 = vmatprep.subr.bf16.mxu1 %v10504_v60  ;;  %v2049_v35 = vor.u32 %v2048_v25, %v2044_v4  ;;  %v2057_v38 = vor.u32 %v2055_v17, %v2053_v26  ;;  %v2061_v40 = vrot.slane %v2059_v32, 1  ;;  %v359_v42 = vor.u32 %v357_v27, %v355_v30  ;;  %v10579_v6 = vld [vmem:[%s10418_s26 + $0x50] sm:$0xff]   ;;  %v10593_v25 = vld [vmem:[%s10418_s26 + $0xb8] sm:$0xff]  }
  0x26   : > { %9095 = vmatprep.mubr.msk.bf16.mxu0 %vm446_vm1, %v348_v21  ;;  %9116 = vmatmul.mubr.msk.bf16.gmra.mrb[4].mxu1 %vm446_vm1, %v436_v18  ;;  %v363_v43 = vrot.slane %v361_v33, 1  ;;  %v2069_v46 = vrot.slane %v2067_v37, 1  ;;  %v369_v47 = vshll.u32 %v10549_v34, 16  ;;  %v356_v49 = vsel %vm304_vm2, %v351_v15, %v355_v30  ;;  %v10589_v18 = vld [vmem:[%s10418_s26 + $0x58] sm:$0xff]  }
  0x27   : > { %v2054_v44 = vsel %vm304_vm2, %v2049_v35, %v2053_v26  ;;  %v2065_v50 = vor.u32 %v2063_v36, %v2061_v40  ;;  %v365_v52 = vshrl.u32 %v10537_v24, 16  ;;  %v2075_v55 = vshll.u32 %v10557_v48, 16 }
  0x28   : > { %9231 = vmatprep.mubr.msk.bf16.mxu1 %vm446_vm1, %v2054_v44  ;;  %v364_v54 = vsel %vm304_vm2, %v359_v42, %v363_v43  ;;  %v373_v56 = vshrl.u32 %v10549_v34, 16  ;;  %v2062_v58 = vsel %vm304_vm2, %v2057_v38, %v2061_v40  ;;  %v2071_v59 = vshrl.u32 %v10542_v28, 16 }
  0x29   : > { %v377_v61 = vshll.u32 %v10563_v53, 16  ;;  %v2070_v62 = vsel %vm304_vm2, %v2065_v50, %v2069_v46  ;;  %v371_v63 = vrot.slane %v369_v47, 1  ;;  %v2079_v0 = vshrl.u32 %v10557_v48, 16  ;;  %v10610_v47 = vld [vmem:[%s10418_s26 + $0xc0] sm:$0xff]   ;;  %v10616_v50 = vld [vmem:[%s12329_s1 + $0x18] sm:$0xff]  }
  0x2a   : > { %v2083_v3 = vshll.u32 %v10569_v57, 16  ;;  %v367_v9 = vor.u32 %v365_v52, %v363_v43  ;;  %v2077_v4 = vrot.slane %v2075_v55, 1  ;;  %v2073_v17 = vor.u32 %v2071_v59, %v2069_v46  ;;  %v10619_v55 = vld [vmem:[%s10418_s26 + $0xc8] sm:$0xff]  }
  0x2b   : > { %v375_v5 = vor.u32 %v373_v56, %v371_v63  ;;  %v379_v12 = vrot.slane %v377_v61, 1  ;;  %v385_v22 = vshll.u32 %v10579_v6, 16  ;;  %v381_v27 = vshrl.u32 %v10563_v53, 16  ;;  %v10176_v56 = vld [vmem:[%s12329_s1 + $0x8] ss:$0 sps:$4 sm:$0xff]  }
  0x2c   : > { %v2081_v21 = vor.u32 %v2079_v0, %v2077_v4  ;;  %v2085_v16 = vrot.slane %v2083_v3, 1  ;;  %v372_v26 = vsel %vm304_vm2, %v367_v9, %v371_v63  ;;  %v2091_v15 = vshll.u32 %v10583_v10, 16 }
  0x2d   : > { %9096 = vmatmul.mubr.msk.bf16.gmra.mrb[8].mxu0 %vm446_vm1, %v356_v49  ;;  %v380_v30 = vsel %vm304_vm2, %v375_v5, %v379_v12  ;;  %v389_v32 = vshrl.u32 %v10579_v6, 16  ;;  %v2078_v33 = vsel %vm304_vm2, %v2073_v17, %v2077_v4  ;;  %v2087_v35 = vshrl.u32 %v10569_v57, 16 }
  0x2e   : > { %9099 = vmatprep.mubr.msk.bf16.mxu0 %vm446_vm1, %v364_v54  ;;  %9232 = vmatmul.mubr.msk.bf16.vlgmr.msra.gmra.mrb[8].mxu1 %vm446_vm1, %v2062_v58  ;;  %v2086_v36 = vsel %vm304_vm2, %v2081_v21, %v2085_v16  ;;  %v387_v37 = vrot.slane %v385_v22, 1  ;;  %v2095_v38 = vshrl.u32 %v10583_v10, 16  ;;  %v2099_v40 = vshll.u32 %v10593_v25, 16  ;;  %v10640_v21 = vld [vmem:[%s10418_s26 + $0xd0] sm:$0xff]  }
  0x2f   : > { %9235 = vmatprep.mubr.msk.bf16.mxu1 %vm446_vm1, %v2070_v62  ;;  %9264 = vmatpush3.bf16.msra.mxu1 %v10504_v60  ;;  %v393_v60 = vshll.u32 %v10589_v18, 16  ;;  %v383_v42 = vor.u32 %v381_v27, %v379_v12  ;;  %v2093_v43 = vrot.slane %v2091_v15, 1  ;;  %v2089_v49 = vor.u32 %v2087_v35, %v2085_v16  ;;  %v10644_v27 = vld [vmem:[%s10418_s26 + $0xd8] sm:$0xff]  }
  0x30   : > { %v391_v44 = vor.u32 %v389_v32, %v387_v37  ;;  %v2101_v54 = vrot.slane %v2099_v40, 1  ;;  %v397_v59 = vshrl.u32 %v10589_v18, 16  ;;  %v2107_v62 = vshll.u32 %v10610_v47, 16  ;;  %10097 = vmatprep.subr.msk.bf16.mxu1 %vm495_vm0, %v10176_v56 }
  0x31   : > { %v395_v46 = vrot.slane %v393_v60, 1  ;;  %v2097_v52 = vor.u32 %v2095_v38, %v2093_v43  ;;  %v388_v58 = vsel %vm304_vm2, %v383_v42, %v387_v37  ;;  %v2438_v63 = vsel %vm495_vm0, %v10176_v56, 0  ;;  %v10658_v37 = vld [vmem:[%s10418_s26 + $0xe0] sm:$0xff]  }
  0x32   : > { %v2094_v0 = vsel %vm304_vm2, %v2089_v49, %v2093_v43  ;;  %v2103_v3 = vshrl.u32 %v10593_v25, 16  ;;  %v2111_v4 = vshrl.u32 %v10610_v47, 16  ;;  %v2115_v5 = vshll.u32 %v10619_v55, 16  ;;  %v10663_v43 = vld [vmem:[%s10418_s26 + $0xe8] sm:$0xff]  }
  0x33   : > { %v396_v61 = vsel %vm304_vm2, %v391_v44, %v395_v46  ;;  %9266 = vmatpush3.bf16.msra.mxu1 %v2438_v63  ;;  %v2102_v9 = vsel %vm304_vm2, %v2097_v52, %v2101_v54  ;;  %v399_v12 = vor.u32 %v397_v59, %v395_v46  ;;  %v2109_v17 = vrot.slane %v2107_v62, 1  ;;  %v10181_v46 = vld [vmem:[%s12329_s1 + $0x20] ss:$0 sps:$4 sm:$0xff]   ;;  %v10681_v59 = vld [vmem:[%s10418_s26 + $0xf0] sm:$0xff]   ;;  %v10692_v63 = vld [vmem:[%s10418_s26 + $0xf8] sm:$0xff]  }
  0x34   : > { %9299 = vmatprep.subr.bf16.mxu1 %v10616_v50  ;;  %v2105_v16 = vor.u32 %v2103_v3, %v2101_v54  ;;  %v2123_v32 = vshll.u32 %v10640_v21, 16  ;;  %v2127_v35 = vshrl.u32 %v10640_v21, 16  ;;  %v2139_v44 = vshll.u32 %v10658_v37, 16 }
  0x35   : > { %9100 = vmatmul.mubr.msk.bf16.gmra.mrb[12].mxu0 %vm446_vm1, %v372_v26  ;;  %v2113_v22 = vor.u32 %v2111_v4, %v2109_v17  ;;  %v2117_v26 = vrot.slane %v2115_v5, 1  ;;  %v404_v15 = vsel %vm304_vm2, %v399_v12, %v10460_v29  ;;  %v2135_v49 = vshrl.u32 %v10644_v27, 16 }
  0x36   : > { %9103 = vmatprep.mubr.msk.bf16.mxu0 %vm446_vm1, %v380_v30  ;;  %9236 = vmatmul.mubr.msk.bf16.gmra.mrb[12].mxu1 %vm446_vm1, %v2078_v33  ;;  %v2119_v30 = vshrl.u32 %v10619_v55, 16  ;;  %v2110_v60 = vsel %vm304_vm2, %v2105_v16, %v2109_v17  ;;  %v2125_v29 = vrot.slane %v2123_v32, 1  ;;  %v2143_v54 = vshrl.u32 %v10658_v37, 16  ;;  %v10180_v17 = vld [vmem:[%s10418_s26 + $0x100] ss:$0 sps:$4 sm:$0x11]  }
  0x37   : > { %9239 = vmatprep.mubr.msk.bf16.mxu1 %vm446_vm1, %v2086_v36  ;;  %v2118_v33 = vsel %vm304_vm2, %v2113_v22, %v2117_v26  ;;  %v2131_v36 = vshll.u32 %v10644_v27, 16  ;;  %v2147_v56 = vshll.u32 %v10663_v43, 16  ;;  %v2159_v5 = vshrl.u32 %v10681_v59, 16 }
  0x38   : > { %v2121_v38 = vor.u32 %v2119_v30, %v2117_v26  ;;  %v2129_v40 = vor.u32 %v2127_v35, %v2125_v29  ;;  %v2163_v12 = vshll.u32 %v10692_v63, 16  ;;  %v2167_v30 = vshrl.u32 %v10692_v63, 16 }
  0x39   : > { %v2133_v42 = vrot.slane %v2131_v36, 1  ;;  %v2171_v32 = vshll.u32 %v10180_v17, 16  ;;  %v866_v36 = vld [vmem:[%s10418_s26 + $0x14] sm:$0xf] }
  0x3b   : > { %v2134_v52 = vsel %vm304_vm2, %v2129_v40, %v2133_v42  ;;  %v10732_v40 = vld [vmem:[%s10418_s26 + $0x20] sm:$0xff]  }
  0x3d   : > { %9104 = vmatmul.mubr.msk.bf16.gmra.mrb[16].mxu0 %vm446_vm1, %v388_v58  ;;  %v2141_v58 = vrot.slane %v2139_v44, 1 }
  0x3e   : > { %9107 = vmatprep.mubr.msk.bf16.mxu0 %vm446_vm1, %v396_v61  ;;  %9240 = vmatmul.mubr.msk.bf16.gmra.mrb[16].mxu1 %vm446_vm1, %v2094_v0  ;;  %v10688_v61 = vld [vmem:[%s12329_s1 + $0x24] sm:$0xff]   ;;  %v2155_v0 = vshll.u32 %v10681_v59, 16 }
  0x3f   : > { %9243 = vmatprep.mubr.msk.bf16.mxu1 %vm446_vm1, %v2102_v9  ;;  %v2145_v62 = vor.u32 %v2143_v54, %v2141_v58  ;;  %v2151_v9 = vshrl.u32 %v10663_v43, 16 }
  0x40   : > { %v2157_v16 = vrot.slane %v2155_v0, 1 }
  0x42   : > { %v2161_v26 = vor.u32 %v2159_v5, %v2157_v16  ;;  %v10797_v5 = vld [vmem:[%s10418_s26 + $0x50] sm:$0xff]  }
  0x45   : > { %9108 = vmatmul.mubr.msk.bf16.gmra.mrb[20].mxu0 %vm446_vm1, %v404_v15 }
  0x46   : > { %9123 = vmatprep.mubr.msk.bf16.mxu0 %vm446_vm1, %v10426_v7  ;;  %9244 = vmatmul.mubr.msk.bf16.gmra.mrb[20].mxu1 %vm446_vm1, %v2110_v60  ;;  %v2126_v7 = vsel %vm304_vm2, %v2121_v38, %v2125_v29  ;;  %v10725_v29 = vld [vmem:[%s10418_s26 + $0x18] sm:$0xff]  }
  0x47   : > { %9247 = vmatprep.mubr.msk.bf16.mxu1 %vm446_vm1, %v2118_v33  ;;  %v2173_v33 = vrot.slane %v2171_v32, 1  ;;  %v1380_v44 = vrot.slane %v10725_v29, 1  ;;  %v1394_v32 = vrot.slane %v10797_v5, 1 }
  0x4d   : > { %9124 = vmatmul.mubr.msk.bf16.vlgmr.msra.gmra.mrb[0].mxu0 %vm446_vm1, %v10429_v8  ;;  %v1175_v8 = vsel %vm495_vm0, %v10181_v46, 0 }
  0x4e   : > { %9156 = vmatpush3.bf16.msra.mxu0 %v10489_v51  ;;  %9127 = vmatprep.mubr.msk.bf16.mxu0 %vm446_vm1, %v10449_v19  ;;  %v2137_v51 = vor.u32 %v2135_v49, %v2133_v42  ;;  %v2149_v19 = vrot.slane %v2147_v56, 1  ;;  %v10757_v56 = vld [vmem:[%s10418_s26 + $0x38] sm:$0xff]  }
  0x4f   : > { %9248 = vmatmul.mubr.msk.bf16.gmra.mrb[24].mxu1 %vm446_vm1, %v2126_v7  ;;  %10094 = vmatprep.subr.msk.bf16.mxu0 %vm495_vm0, %v10181_v46  ;;  %v10742_v7 = vld [vmem:[%s10418_s26 + $0x30] sm:$0xff]   ;;  %v1388_v0 = vrot.slane %v10757_v56, 1 }
  0x50   : > { %9251 = vmatprep.mubr.msk.bf16.mxu1 %vm446_vm1, %v2134_v52  ;;  %v2142_v3 = vsel %vm304_vm2, %v2137_v51, %v2141_v58  ;;  %v2150_v4 = vsel %vm304_vm2, %v2145_v62, %v2149_v19  ;;  %v2153_v22 = vor.u32 %v2151_v9, %v2149_v19  ;;  %v10189_v52 = vld [vmem:[%s12329_s1 + $0x20] ss:$0 sps:$4 sm:$0xff]   ;;  %v993_v51 = vshll.u32 %v10725_v29, 16 }
  0x51   : > { %v10770_v19 = vld [vmem:[%s10418_s26 + $0x40] sm:$0xff]  }
  0x52   : > { %9158 = vmatpush3.bf16.msra.mxu0 %v1175_v8  ;;  %v2158_v15 = vsel %vm304_vm2, %v2153_v22, %v2157_v16  ;;  %v1386_v8 = vrot.slane %v10742_v7, 1  ;;  %v10802_v16 = vld [vmem:[%s10418_s26 + $0x58] sm:$0xff]  }
  0x53   : > { %9191 = vmatprep.subr.bf16.mxu0 %v10688_v61 }
  0x54   : > { %v10790_v9 = vsel %vm1378_vm3, %v1386_v8, %v1388_v0 }
  0x55   : > { %9128 = vmatmul.mubr.msk.bf16.gmra.mrb[4].mxu0 %vm446_vm1, %v10463_v31  ;;  %v2165_v31 = vrot.slane %v2163_v12, 1 }
  0x56   : > { %9131 = vmatprep.mubr.msk.bf16.mxu0 %vm446_vm1, %v10475_v41 }
  0x57   : > { %9252 = vmatmul.mubr.msk.bf16.gmra.mrb[28].mxu1 %vm446_vm1, %v2142_v3  ;;  %v2166_v41 = vsel %vm304_vm2, %v2161_v26, %v2165_v31  ;;  %v2169_v60 = vor.u32 %v2167_v30, %v2165_v31  ;;  %v10781_v3 = vld [vmem:[%s10418_s26 + $0x48] sm:$0xff]   ;;  %v10813_v30 = vld [vmem:[%s10418_s26 + $0x60] sm:$0xff]  }
  0x58   : > { %9255 = vmatprep.mubr.msk.bf16.mxu1 %vm446_vm1, %v2150_v4  ;;  %v1392_v26 = vrot.slane %v10781_v3, 1 }
  0x59   : > { %v2174_v35 = vsel %vm304_vm2, %v2169_v60, %v2173_v33  ;;  %v10820_v33 = vld [vmem:[%s10418_s26 + $0x94] sm:$0xf] }
  0x5d   : > { %9132 = vmatmul.mubr.msk.bf16.gmra.mrb[8].mxu0 %vm446_vm1, %v10480_v45  ;;  %v1370_v45 = vld [vmem:[%s10418_s26 + $0x10] sm:$0xe] }
  0x5e   : > { %9135 = vmatprep.mubr.msk.bf16.mxu0 %vm446_vm1, %v10519_v11  ;;  %v865_v11 = vld [vmem:[%s10418_s26 + $0x10] sm:$0xf]  ;;  %v7719_v38 = vcombine.low %v1370_v45, %v866_v36 }
  0x5f   : > { %9256 = vmatmul.mubr.msk.bf16.gmra.mrb[32].mxu1 %vm446_vm1, %v2158_v15  ;;  %v10739_v46 = vcombine.low %v865_v11, %v866_v36  ;;  %v10810_v15 = vld [vmem:[%s10418_s26 + $0x98] sm:$0xff]   ;;  %v10836_v11 = vld [vmem:[%s10418_s26 + $0xa8] sm:$0xff]  }
  0x60   : > { %9259 = vmatprep.mubr.msk.bf16.mxu1 %vm446_vm1, %v2166_v41  ;;  %v1379_v42 = vrot.slane %v7719_v38, 1  ;;  %v3105_v41 = vld [vmem:[%s10418_s26 + $0x90] sm:$0xe]  ;;  %v10839_v38 = vsel %vm1378_vm3, %v1392_v26, %v1394_v32  ;;  %v10880_v36 = vld [vmem:[%s10418_s26 + $0xc8] sm:$0xff]  }
  0x61   : > { %v988_v62 = vshll.u32 %v10739_v46, 16  ;;  %v986_v12 = vshrl.u32 %v10739_v46, 16  ;;  %v3113_v46 = vrot.slane %v10810_v15, 1 }
  0x62   : > { %v10745_v49 = vsel %vm1378_vm3, %v1379_v42, %v1380_v44  ;;  %v10844_v42 = vld [vmem:[%s10418_s26 + $0x70] sm:$0xff]  }
  0x63   : > { %v990_v60 = vrot.slane %v988_v62, 1 }
  0x65   : > { %9136 = vmatmul.mubr.msk.bf16.gmra.mrb[12].mxu0 %vm446_vm1, %v10537_v24  ;;  %v10735_v24 = vld [vmem:[%s10418_s26 + $0x28] sm:$0xff]  }
  0x66   : > { %9139 = vmatprep.mubr.msk.bf16.mxu0 %vm446_vm1, %v10549_v34  ;;  %v1382_v34 = vrot.slane %v10732_v40, 1 }
  0x67   : > { %9260 = vmatmul.mubr.msk.bf16.gmra.mrb[36].mxu1 %vm446_vm1, %v2174_v35  ;;  %v10823_v35 = vld [vmem:[%s10418_s26 + $0xa0] sm:$0xff]  }
  0x68   : > { %9267 = vmatprep.mubr.msk.bf16.mxu1 %vm446_vm1, %v10511_v1  ;;  %v1384_v1 = vrot.slane %v10735_v24, 1  ;;  %v10752_v54 = vsel %vm1378_vm3, %v1380_v44, %v1382_v34  ;;  %v10847_v44 = vld [vmem:[%s10418_s26 + $0xb0] sm:$0xff]  }
  0x69   : > { %v3119_v4 = vrot.slane %v10847_v44, 1 }
  0x6a   : > { %v10760_v58 = vsel %vm1378_vm3, %v1382_v34, %v1384_v1  ;;  %v7867_v34 = vcombine.low %v3105_v41, %v10820_v33  ;;  %v10877_v41 = vld [vmem:[%s10418_s26 + $0x88] sm:$0xff]  }
  0x6d   : > { %9140 = vmatmul.mubr.msk.bf16.gmra.mrb[16].mxu0 %vm446_vm1, %v10563_v53  ;;  %v10773_v53 = vsel %vm1378_vm3, %v1384_v1, %v1386_v8  ;;  %v10855_v1 = vld [vmem:[%s10418_s26 + $0x78] sm:$0xff]   ;;  %v10862_v8 = vld [vmem:[%s10418_s26 + $0x80] sm:$0xff]  }
  0x6e   : > { %9143 = vmatprep.mubr.msk.bf16.mxu0 %vm446_vm1, %v10579_v6  ;;  %v2910_v6 = vsel %vm495_vm0, %v10189_v52, 0 }
  0x6f   : > { %9268 = vmatmul.mubr.msk.bf16.vlgmr.msra.gmra.mrb[8].mxu1 %vm446_vm1, %v10514_v2  ;;  %v10787_v2 = vld [vmem:[%s12329_s1 + $0x24] sm:$0xff]  }
  0x70   : > { %9271 = vmatprep.mubr.msk.bf16.mxu1 %vm446_vm1, %v10534_v23  ;;  %9300 = vmatpush3.bf16.msra.mxu1 %v10616_v50  ;;  %v1390_v23 = vrot.slane %v10770_v19, 1  ;;  %v10793_v50 = vrot.slane %v993_v51, 1  ;;  %v10865_v51 = vld [vmem:[%s10418_s26 + $0xc0] sm:$0xff]  }
  0x71   : > { %10098 = vmatprep.subr.msk.bf16.mxu1 %vm495_vm0, %v10189_v52  ;;  %v10858_v52 = vld [vmem:[%s10418_s26 + $0xb8] sm:$0xff]  }
  0x72   : > { %v10805_v22 = vsel %vm1378_vm3, %v1388_v0, %v1390_v23  ;;  %v10827_v45 = vsel %vm1378_vm3, %v1390_v23, %v1392_v26  ;;  %v3112_v0 = vrot.slane %v7867_v34, 1  ;;  %v3117_v26 = vrot.slane %v10836_v11, 1 }
  0x73   : > { %v1402_v34 = vrot.slane %v10844_v42, 1 }
  0x74   : > { %9302 = vmatpush3.bf16.msra.mxu1 %v2910_v6  ;;  %v3115_v6 = vrot.slane %v10823_v35, 1  ;;  %v10883_v31 = vsel %vm1378_vm3, %v3112_v0, %v3113_v46  ;;  %v3121_v0 = vrot.slane %v10858_v52, 1 }
  0x75   : > { %9144 = vmatmul.mubr.msk.bf16.gmra.mrb[20].mxu0 %vm446_vm1, %v10589_v18  ;;  %9335 = vmatprep.subr.bf16.mxu1 %v10787_v2  ;;  %v10833_v18 = vld [vmem:[%s10418_s26 + $0x68] sm:$0xff]   ;;  %12343 = vst [vmem:[#allocation4_spill] sm:$0xff] %v10883_v31 }
  0x76   : > { %9147 = vmatprep.mubr.msk.bf16.mxu0 %vm446_vm1, %v10436_v13  ;;  %v1396_v13 = vrot.slane %v10802_v16, 1  ;;  %v10917_v31 = vsel %vm1378_vm3, %v3119_v4, %v3121_v0 }
  0x77   : > { %9272 = vmatmul.mubr.msk.bf16.gmra.mrb[12].mxu1 %vm446_vm1, %v10542_v28  ;;  %v1398_v28 = vrot.slane %v10813_v30, 1 }
  0x78   : > { %9275 = vmatprep.mubr.msk.bf16.mxu1 %vm446_vm1, %v10557_v48  ;;  %v10868_v62 = vsel %vm1378_vm3, %v1394_v32, %v1396_v13  ;;  %v1400_v48 = vrot.slane %v10833_v18, 1  ;;  %v10886_v32 = vsel %vm1378_vm3, %v3113_v46, %v3115_v6 }
  0x79   : > { %12341 = vst [vmem:[#allocation2_spill] sm:$0xff] %v10868_v62  ;;  %v10872_v23 = vsel %vm1378_vm3, %v1396_v13, %v1398_v28  ;;  %12344 = vst [vmem:[#allocation5_spill] sm:$0xff] %v10886_v32  ;;  %v10891_v13 = vld [vmem:[%s10418_s26 + $0x90] ss:$0 sps:$4 sm:$0x11]   ;;  %v1404_v62 = vrot.slane %v10855_v1, 1  ;;  %v10907_v32 = vsel %vm1378_vm3, %v3117_v26, %v3119_v4 }
  0x7a   : > { %12342 = vst [vmem:[#allocation3_spill] sm:$0xff] %v10872_v23  ;;  %v10894_v17 = vsel %vm1378_vm3, %v1398_v28, %v1400_v48  ;;  %v10897_v23 = vsel %vm1378_vm3, %v3115_v6, %v3117_v26  ;;  %v10904_v46 = vsel %vm1378_vm3, %v1400_v48, %v1402_v34  ;;  %v1406_v28 = vrot.slane %v10862_v8, 1  ;;  %v10932_v4 = vld [vmem:[%s10418_s26 + $0xd0] sm:$0xff]  }
  0x7b   : > { %12345 = vst [vmem:[#allocation6_spill] sm:$0xff] %v10894_v17  ;;  %12346 = vst [vmem:[#allocation7_spill] sm:$0xff] %v10897_v23  ;;  %v3123_v17 = vrot.slane %v10865_v51, 1  ;;  %v991_v6 = vor.u32 %v990_v60, %v986_v12  ;;  %v10914_v23 = vsel %vm1378_vm3, %v1402_v34, %v1404_v62  ;;  %v1408_v26 = vrot.slane %v10877_v41, 1 }
  0x7c   : > { %v1410_v12 = vrot.slane %v10891_v13, 1 }
  0x7d   : > { %9148 = vmatmul.mubr.msk.bf16.gmra.mrb[24].mxu0 %vm446_vm1, %v10439_v14  ;;  %v10922_v14 = vsel %vm1378_vm3, %v1404_v62, %v1406_v28  ;;  %v10925_v48 = vsel %vm1378_vm3, %v3121_v0, %v3123_v17  ;;  %v996_v34 = vsel %vm304_vm2, %v991_v6, %v10793_v50  ;;  %v12352_v0 = vshll.u32 %v10732_v40, 16 }
  0x7e   : > { %9151 = vmatprep.mubr.msk.bf16.mxu0 %vm446_vm1, %v10452_v20  ;;  %12347 = vst [vmem:[#allocation8_spill] sm:$0xff] %v10922_v14  ;;  %12348 = vst [vmem:[#allocation9_spill] sm:$0xff] %v10925_v48  ;;  %v3125_v20 = vrot.slane %v10880_v36, 1  ;;  %v10942_v62 = vsel %vm1378_vm3, %v1408_v26, %v1410_v12  ;;  %v10960_v12 = vld [vmem:[%s10418_s26 + $0xe0] sm:$0xff]   ;;  %v10990_v14 = vld [vmem:[%s10418_s26 + $0xe8] sm:$0xff]  }
  0x7f   : > { %9276 = vmatmul.mubr.msk.bf16.gmra.mrb[16].mxu1 %vm446_vm1, %v10569_v57  ;;  %v10936_v57 = vsel %vm1378_vm3, %v1406_v28, %v1408_v26  ;;  %12351 = vst [vmem:[#allocation12_spill] sm:$0xff] %v10942_v62  ;;  %v1003_v48 = vrot.slane %v12352_v0, 1  ;;  %v1017_v28 = vshll.u32 %v10742_v7, 16  ;;  %v12356_v62 = vshll.u32 %v10735_v24, 16 }
  0x80   : > { %9279 = vmatprep.mubr.msk.bf16.mxu1 %vm446_vm1, %v10583_v10  ;;  %12349 = vst [vmem:[#allocation10_spill] sm:$0xff] %v10936_v57  ;;  %v10939_v60 = vsel %vm1378_vm3, %v3123_v17, %v3125_v20  ;;  %v3127_v10 = vrot.slane %v10932_v4, 1  ;;  %v10953_v57 = vld [vmem:[%s10418_s26 + $0xd8] sm:$0xff]   ;;  %v12353_v17 = vshrl.u32 %v10725_v29, 16 }
  0x81   : > { %12350 = vst [vmem:[#allocation11_spill] sm:$0xff] %v10939_v60  ;;  %v1011_v60 = vrot.slane %v12356_v62, 1  ;;  %v3129_v29 = vrot.slane %v10953_v57, 1 }
  0x82   : > { %v999_v26 = vor.u32 %v12353_v17, %v10793_v50  ;;  %v10963_v6 = vsel %vm1378_vm3, %v3125_v20, %v3127_v10  ;;  %v1013_v50 = vshrl.u32 %v10735_v24, 16  ;;  %v1025_v20 = vshll.u32 %v10757_v56, 16 }
  0x83   : > { %12354 = vst [vmem:[#allocation13_spill] sm:$0xff] %v10963_v6  ;;  %v10979_v17 = vsel %vm1378_vm3, %v3127_v10, %v3129_v29  ;;  %v10997_v10 = vld [vmem:[%s10418_s26 + $0xf0] sm:$0xff]  }
  0x84   : > { %v1004_v62 = vsel %vm304_vm2, %v999_v26, %v1003_v48  ;;  %v1027_v6 = vrot.slane %v1025_v20, 1  ;;  %v11005_v26 = vld [vmem:[%s12329_s1 + $0xc] sm:$0xff]  }
  0x85   : > { %9152 = vmatmul.mubr.msk.bf16.gmra.mrb[28].mxu0 %vm446_vm1, %v10471_v39  ;;  %v12355_v39 = vshrl.u32 %v10732_v40, 16  ;;  %v1021_v40 = vshrl.u32 %v10742_v7, 16  ;;  %v1015_v7 = vor.u32 %v1013_v50, %v1011_v60  ;;  %v2601_v20 = vld [vmem:[%s10418_s26 + $0x90] sm:$0xf] }
  0x86   : > { %9159 = vmatprep.mubr.msk.bf16.mxu0 %vm446_vm1, %v996_v34  ;;  %v3131_v34 = vrot.slane %v10960_v12, 1 }
  0x87   : > { %9280 = vmatmul.mubr.msk.bf16.gmra.mrb[20].mxu1 %vm446_vm1, %v10593_v25  ;;  %v1007_v0 = vor.u32 %v12355_v39, %v1003_v48  ;;  %v1019_v25 = vrot.slane %v1017_v28, 1  ;;  %v10195_v39 = vld [vmem:[%s12329_s1 + $0x2c] ss:$0 sps:$4 sm:$0xff]  }
  0x88   : > { %9283 = vmatprep.mubr.msk.bf16.mxu1 %vm446_vm1, %v10610_v47  ;;  %v10986_v47 = vsel %vm1378_vm3, %v3129_v29, %v3131_v34  ;;  %v1470_v48 = vsel %vm495_vm0, %v10195_v39, 0 }
  0x89   : > { %v1012_v24 = vsel %vm304_vm2, %v1007_v0, %v1011_v60  ;;  %v1023_v28 = vor.u32 %v1021_v40, %v1019_v25  ;;  %v1029_v60 = vshrl.u32 %v10757_v56, 16  ;;  %v1033_v0 = vshll.u32 %v10770_v19, 16 }
  0x8a   : > { %v1020_v50 = vsel %vm304_vm2, %v1015_v7, %v1019_v25  ;;  %v1041_v56 = vshll.u32 %v10781_v3, 16  ;;  %v1049_v7 = vshll.u32 %v10797_v5, 16 }
  0x8b   : > { %v1031_v25 = vor.u32 %v1029_v60, %v1027_v6  ;;  %v1053_v60 = vshrl.u32 %v10797_v5, 16 }
  0x8d   : > { %9160 = vmatmul.mubr.msk.bf16.vlgmr.msra.gmra.mrb[0].mxu0 %vm446_vm1, %v1004_v62  ;;  %v1037_v62 = vshrl.u32 %v10770_v19, 16 }
  0x8e   : > { %9192 = vmatpush3.bf16.msra.mxu0 %v10688_v61  ;;  %9163 = vmatprep.mubr.msk.bf16.mxu0 %vm446_vm1, %v1012_v24  ;;  %v3133_v61 = vrot.slane %v10990_v14, 1  ;;  %v11028_v24 = vld [vmem:[%s10418_s26 + $0xf8] sm:$0xff]  }
  0x8f   : > { %9284 = vmatmul.mubr.msk.bf16.gmra.mrb[24].mxu1 %vm446_vm1, %v10619_v55  ;;  %10095 = vmatprep.subr.msk.bf16.mxu0 %vm495_vm0, %v10195_v39  ;;  %v3135_v55 = vrot.slane %v10997_v10, 1  ;;  %v7829_v39 = vcombine.low %v2601_v20, %v10820_v33  ;;  %v1045_v33 = vshrl.u32 %v10781_v3, 16  ;;  %v1051_v20 = vrot.slane %v1049_v7, 1 }
  0x90   : > { %9287 = vmatprep.mubr.msk.bf16.mxu1 %vm446_vm1, %v10640_v21  ;;  %v11014_v29 = vsel %vm1378_vm3, %v3131_v34, %v3133_v61  ;;  %v1028_v21 = vsel %vm304_vm2, %v1023_v28, %v1027_v6  ;;  %v1035_v34 = vrot.slane %v1033_v0, 1  ;;  %v1043_v28 = vrot.slane %v1041_v56, 1 }
  0x91   : > { %v11019_v40 = vsel %vm1378_vm3, %v3133_v61, %v3135_v55  ;;  %v3137_v61 = vrot.slane %v11028_v24, 1  ;;  %v2723_v0 = vshll.u32 %v7829_v39, 16  ;;  %v2721_v56 = vshrl.u32 %v7829_v39, 16 }
  0x92   : > { %9194 = vmatpush3.bf16.msra.mxu0 %v1470_v48  ;;  %12357 = vst [vmem:[#allocation14_spill] sm:$0xff] %v11019_v40  ;;  %v11033_v48 = vld [vmem:[%s10418_s26 + $0x100] sm:$0xff]   ;;  %v1039_v19 = vor.u32 %v1037_v62, %v1035_v34  ;;  %v2728_v3 = vshll.u32 %v10810_v15, 16  ;;  %v11054_v40 = vld [vmem:[%s10418_s26 + $0x110] ss:$0 sps:$4 sm:$0x11]   ;;  %v1055_v7 = vor.u32 %v1053_v60, %v1051_v20 }
  0x93   : > { %9371 = vmatprep.subr.bf16.mxu0 %v11005_v26  ;;  %v3139_v6 = vrot.slane %v11033_v48, 1  ;;  %v2725_v5 = vrot.slane %v2723_v0, 1  ;;  %v2732_v0 = vshrl.u32 %v10810_v15, 16  ;;  %v1069_v15 = vshrl.u32 %v10813_v30, 16 }
  0x95   : > { %9164 = vmatmul.mubr.msk.bf16.gmra.mrb[4].mxu0 %vm446_vm1, %v1020_v50  ;;  %v11044_v50 = vsel %vm1378_vm3, %v3135_v55, %v3137_v61  ;;  %v11049_v62 = vsel %vm1378_vm3, %v3137_v61, %v3139_v6  ;;  %v11058_v55 = vld [vmem:[%s10418_s26 + $0x108] sm:$0xff]   ;;  %v2730_v61 = vrot.slane %v2728_v3, 1  ;;  %v2740_v3 = vshrl.u32 %v10823_v35, 16 }
  0x96   : > { %9167 = vmatprep.mubr.msk.bf16.mxu0 %vm446_vm1, %v1028_v21  ;;  %v1057_v21 = vshll.u32 %v10802_v16, 16  ;;  %12358 = vst [vmem:[#allocation15_spill] sm:$0xff] %v11049_v62  ;;  %v3141_v39 = vrot.slane %v11058_v55, 1 }
  0x97   : > { %9288 = vmatmul.mubr.msk.bf16.gmra.mrb[28].mxu1 %vm446_vm1, %v10644_v27  ;;  %v1036_v27 = vsel %vm304_vm2, %v1031_v25, %v1035_v34  ;;  %v1047_v34 = vor.u32 %v1045_v33, %v1043_v28  ;;  %v1065_v25 = vshll.u32 %v10813_v30, 16  ;;  %v2734_v30 = vor.u32 %v2732_v0, %v2730_v61 }
  0x98   : > { %9291 = vmatprep.mubr.msk.bf16.mxu1 %vm446_vm1, %v10658_v37  ;;  %v1044_v37 = vsel %vm304_vm2, %v1039_v19, %v1043_v28  ;;  %v1059_v19 = vrot.slane %v1057_v21, 1  ;;  %v2726_v28 = vor.u32 %v2725_v5, %v2721_v56  ;;  %v11071_v33 = vsel %vm1378_vm3, %v3139_v6, %v3141_v39 }
  0x99   : > { %v1067_v60 = vrot.slane %v1065_v25, 1  ;;  %v2736_v21 = vshll.u32 %v10823_v35, 16 }
  0x9a   : > { %v2731_v56 = vsel %vm304_vm2, %v2726_v28, %v2730_v61  ;;  %v2752_v28 = vshll.u32 %v10847_v44, 16  ;;  %v2760_v61 = vshll.u32 %v10858_v52, 16 }
  0x9b   : > { %v2738_v5 = vrot.slane %v2736_v21, 1 }
  0x9d   : > { %9168 = vmatmul.mubr.msk.bf16.gmra.mrb[8].mxu0 %vm446_vm1, %v1036_v27  ;;  %v1061_v27 = vshrl.u32 %v10802_v16, 16  ;;  %v1073_v16 = vshll.u32 %v10833_v18, 16  ;;  %v2742_v35 = vor.u32 %v2740_v3, %v2738_v5  ;;  %v2762_v3 = vrot.slane %v2760_v61, 1 }
  0x9e   : > { %9171 = vmatprep.mubr.msk.bf16.mxu0 %vm446_vm1, %v1044_v37  ;;  %v3143_v37 = vrot.slane %v11054_v40, 1 }
  0x9f   : > { %9292 = vmatmul.mubr.msk.bf16.gmra.mrb[32].mxu1 %vm446_vm1, %v10663_v43  ;;  %v1052_v43 = vsel %vm304_vm2, %v1047_v34, %v1051_v20  ;;  %v1063_v6 = vor.u32 %v1061_v27, %v1059_v19  ;;  %v2744_v20 = vshll.u32 %v10836_v11, 16  ;;  %v1071_v34 = vor.u32 %v1069_v15, %v1067_v60 }
  0xa0   : > { %9295 = vmatprep.mubr.msk.bf16.mxu1 %vm446_vm1, %v10681_v59  ;;  %v11076_v62 = vsel %vm1378_vm3, %v3141_v39, %v3143_v37  ;;  %v1060_v59 = vsel %vm304_vm2, %v1055_v7, %v1059_v19  ;;  %v1075_v25 = vrot.slane %v1073_v16, 1  ;;  %v1077_v7 = vshrl.u32 %v10833_v18, 16 }
  0xa1   : > { %v1081_v39 = vshll.u32 %v10844_v42, 16  ;;  %v1068_v19 = vsel %vm304_vm2, %v1063_v6, %v1067_v60  ;;  %v2746_v27 = vrot.slane %v2744_v20, 1  ;;  %v2748_v37 = vshrl.u32 %v10836_v11, 16  ;;  %v10219_v60 = vld [vmem:[%s12329_s1 + $0x2c] ss:$0 sps:$4 sm:$0xff]  }
  0xa2   : > { %v1076_v0 = vsel %vm304_vm2, %v1071_v34, %v1075_v25  ;;  %v2739_v18 = vsel %vm304_vm2, %v2734_v30, %v2738_v5  ;;  %v2754_v15 = vrot.slane %v2752_v28, 1  ;;  %v1097_v20 = vshll.u32 %v10862_v8, 16 }
  0xa3   : > { %v2747_v11 = vsel %vm304_vm2, %v2742_v35, %v2746_v27  ;;  %v1083_v21 = vrot.slane %v1081_v39, 1  ;;  %v2750_v6 = vor.u32 %v2748_v37, %v2746_v27  ;;  %v3203_v5 = vsel %vm495_vm0, %v10219_v60, 0 }
  0xa4   : > { %v1093_v30 = vshrl.u32 %v10855_v1, 16  ;;  %v1101_v39 = vshrl.u32 %v10862_v8, 16  ;;  %v2764_v27 = vshrl.u32 %v10858_v52, 16  ;;  %v2776_v37 = vshll.u32 %v10880_v36, 16 }
  0xa5   : > { %9172 = vmatmul.mubr.msk.bf16.gmra.mrb[12].mxu0 %vm446_vm1, %v1052_v43  ;;  %v1089_v43 = vshll.u32 %v10855_v1, 16  ;;  %v2755_v35 = vsel %vm304_vm2, %v2750_v6, %v2754_v15  ;;  %v1099_v1 = vrot.slane %v1097_v20, 1  ;;  %v2788_v6 = vshrl.u32 %v10932_v4, 16 }
  0xa6   : > { %9175 = vmatprep.mubr.msk.bf16.mxu0 %vm446_vm1, %v1060_v59  ;;  %v2756_v59 = vshrl.u32 %v10847_v44, 16  ;;  %v11114_v44 = vld [vmem:[%s12329_s1 + $0xc] sm:$0xff]  }
  0xa7   : > { %9296 = vmatmul.mubr.msk.bf16.gmra.mrb[36].mxu1 %vm446_vm1, %v10692_v63  ;;  %v1085_v63 = vshrl.u32 %v10844_v42, 16  ;;  %v1079_v42 = vor.u32 %v1077_v7, %v1075_v25  ;;  %v2768_v7 = vshll.u32 %v10865_v51, 16  ;;  %v1103_v61 = vor.u32 %v1101_v39, %v1099_v1 }
  0xa8   : > { %9303 = vmatprep.mubr.msk.bf16.mxu1 %vm446_vm1, %v2731_v56  ;;  %v1091_v56 = vrot.slane %v1089_v43, 1  ;;  %v2758_v34 = vor.u32 %v2756_v59, %v2754_v15 }
  0xa9   : > { %v1087_v16 = vor.u32 %v1085_v63, %v1083_v21  ;;  %v1084_v25 = vsel %vm304_vm2, %v1079_v42, %v1083_v21  ;;  %v2772_v63 = vshrl.u32 %v10865_v51, 16  ;;  %v2770_v43 = vrot.slane %v2768_v7, 1 }
  0xaa   : > { %v2763_v28 = vsel %vm304_vm2, %v2758_v34, %v2762_v3  ;;  %v1095_v8 = vor.u32 %v1093_v30, %v1091_v56  ;;  %v1109_v21 = vshrl.u32 %v10877_v41, 16  ;;  %v1113_v51 = vshll.u32 %v10891_v13, 16 }
  0xab   : > { %v2784_v42 = vshll.u32 %v10932_v4, 16  ;;  %v2800_v30 = vshll.u32 %v10960_v12, 16  ;;  %v2796_v7 = vshrl.u32 %v10953_v57, 16 }
  0xac   : > { %v1115_v13 = vrot.slane %v1113_v51, 1 }
  0xad   : > { %9176 = vmatmul.mubr.msk.bf16.gmra.mrb[16].mxu0 %vm446_vm1, %v1068_v19  ;;  %v1105_v19 = vshll.u32 %v10877_v41, 16  ;;  %v2786_v20 = vrot.slane %v2784_v42, 1 }
  0xae   : > { %9179 = vmatprep.mubr.msk.bf16.mxu0 %vm446_vm1, %v1076_v0  ;;  %v2766_v0 = vor.u32 %v2764_v27, %v2762_v3  ;;  %v2792_v3 = vshll.u32 %v10953_v57, 16  ;;  %v2812_v57 = vshrl.u32 %v10990_v14, 16 }
  0xaf   : > { %9304 = vmatmul.mubr.msk.bf16.vlgmr.msra.gmra.mrb[8].mxu1 %vm446_vm1, %v2739_v18  ;;  %v1107_v52 = vrot.slane %v1105_v19, 1  ;;  %v2778_v18 = vrot.slane %v2776_v37, 1  ;;  %v2790_v34 = vor.u32 %v2788_v6, %v2786_v20  ;;  %v2804_v19 = vshrl.u32 %v10960_v12, 16 }
  0xb0   : > { %9307 = vmatprep.mubr.msk.bf16.mxu1 %vm446_vm1, %v2747_v11  ;;  %9336 = vmatpush3.bf16.msra.mxu1 %v10787_v2  ;;  %v1092_v2 = vsel %vm304_vm2, %v1087_v16, %v1091_v56  ;;  %v1100_v11 = vsel %vm304_vm2, %v1095_v8, %v1099_v1  ;;  %v2771_v15 = vsel %vm304_vm2, %v2766_v0, %v2770_v43  ;;  %v2780_v16 = vshrl.u32 %v10880_v36, 16 }
  0xb1   : > { %10099 = vmatprep.subr.msk.bf16.mxu1 %vm495_vm0, %v10219_v60  ;;  %v2774_v60 = vor.u32 %v2772_v63, %v2770_v43  ;;  %v1108_v59 = vsel %vm304_vm2, %v1103_v61, %v1107_v52  ;;  %v1111_v41 = vor.u32 %v1109_v21, %v1107_v52  ;;  %v2794_v36 = vrot.slane %v2792_v3, 1  ;;  %v10225_v63 = vld [vmem:[%s12329_s1 + $0x14] ss:$0 sps:$4 sm:$0xff]   ;;  %v12362_v3 = vld [vmem:[#allocation6_spill] sm:$0xff] }
  0xb2   : > { %v2816_v1 = vshll.u32 %v10997_v10, 16  ;;  %v2824_v8 = vshll.u32 %v11028_v24, 16  ;;  %v3966_v61 = vsel %vm495_vm0, %v10225_v63, 0  ;;  %v2840_v21 = vshll.u32 %v11058_v55, 16 }
  0xb3   : > { %v2779_v56 = vsel %vm304_vm2, %v2774_v60, %v2778_v18  ;;  %v2795_v39 = vsel %vm304_vm2, %v2790_v34, %v2794_v36  ;;  %v2798_v27 = vor.u32 %v2796_v7, %v2794_v36  ;;  %v11237_v36 = vld [vmem:[%s10418_s26 + $0x100] sm:$0xff]  }
  0xb4   : > { %9338 = vmatpush3.bf16.msra.mxu1 %v3203_v5  ;;  %v2782_v5 = vor.u32 %v2780_v16, %v2778_v18  ;;  %v2828_v18 = vshrl.u32 %v11028_v24, 16  ;;  %v2842_v24 = vrot.slane %v2840_v21, 1  ;;  %v2848_v16 = vshll.u32 %v11054_v40, 16  ;;  %v12359_v40 = vld [vmem:[#allocation2_spill] sm:$0xff] }
  0xb5   : > { %9180 = vmatmul.mubr.msk.bf16.gmra.mrb[20].mxu0 %vm446_vm1, %v1084_v25  ;;  %9515 = vmatprep.subr.bf16.mxu1 %v11114_v44  ;;  %v1116_v25 = vsel %vm304_vm2, %v1111_v41, %v1115_v13  ;;  %v12363_v41 = vld [vmem:[#allocation5_spill] sm:$0xff] }
  0xb6   : > { %9183 = vmatprep.mubr.msk.bf16.mxu0 %vm446_vm1, %v1092_v2  ;;  %v2787_v4 = vsel %vm304_vm2, %v2782_v5, %v2786_v20  ;;  %v2808_v2 = vshll.u32 %v10990_v14, 16  ;;  %v2818_v14 = vrot.slane %v2816_v1, 1  ;;  %v11230_v20 = vld [vmem:[%s12329_s1] sm:$0xff]   ;;  %v11276_v1 = vld [vmem:[%s10418_s26 + $0x118] sm:$0xff]  }
  0xb7   : > { %9308 = vmatmul.mubr.msk.bf16.gmra.mrb[12].mxu1 %vm446_vm1, %v2755_v35  ;;  %v2802_v35 = vrot.slane %v2800_v30, 1  ;;  %v11251_v30 = vld [vmem:[%s10418_s26 + $0x108] sm:$0xff]  }
  0xb8   : > { %9311 = vmatprep.mubr.msk.bf16.mxu1 %vm446_vm1, %v2763_v28  ;;  %v2810_v37 = vrot.slane %v2808_v2, 1  ;;  %v3777_v2 = vshrl.u32 %v11237_v36, 16 }
  0xb9   : > { %v2806_v28 = vor.u32 %v2804_v19, %v2802_v35  ;;  %v2803_v12 = vsel %vm304_vm2, %v2798_v27, %v2802_v35  ;;  %v11269_v27 = vld [vmem:[%s10418_s26 + $0x110] sm:$0xff]  }
  0xbb   : > { %v2811_v43 = vsel %vm304_vm2, %v2806_v28, %v2810_v37 }
  0xbd   : > { %9184 = vmatmul.mubr.msk.bf16.gmra.mrb[24].mxu0 %vm446_vm1, %v1100_v11  ;;  %v2836_v11 = vshrl.u32 %v11033_v48, 16 }
  0xbe   : > { %9187 = vmatprep.mubr.msk.bf16.mxu0 %vm446_vm1, %v1108_v59 }
  0xbf   : > { %9312 = vmatmul.mubr.msk.bf16.gmra.mrb[16].mxu1 %vm446_vm1, %v2771_v15 }
  0xc0   : > { %9315 = vmatprep.mubr.msk.bf16.mxu1 %vm446_vm1, %v2779_v56  ;;  %v2850_v56 = vrot.slane %v2848_v16, 1 }
  0xc5   : > { %9188 = vmatmul.mubr.msk.bf16.gmra.mrb[28].mxu0 %vm446_vm1, %v1116_v25 }
  0xc6   : > { %9195 = vmatprep.mubr.msk.bf16.mxu0 %vm446_vm1, %v10745_v49  ;;  %v2820_v49 = vshrl.u32 %v10997_v10, 16  ;;  %v11179_v10 = vld [vmem:[%s12329_s1] sm:$0xff]  }
  0xc7   : > { %9316 = vmatmul.mubr.msk.bf16.gmra.mrb[20].mxu1 %vm446_vm1, %v2787_v4  ;;  %v3779_v4 = vshll.u32 %v11237_v36, 16 }
  0xc8   : > { %9319 = vmatprep.mubr.msk.bf16.mxu1 %vm446_vm1, %v2795_v39  ;;  %v2822_v52 = vor.u32 %v2820_v49, %v2818_v14  ;;  %v3788_v49 = vshrl.u32 %v11251_v30, 16 }
  0xc9   : > { %v3781_v39 = vrot.slane %v3779_v4, 1  ;;  %v12377_v4 = vld [vmem:[#allocation14_spill] sm:$0xff] }
  0xcb   : > { %v3782_v28 = vor.u32 %v3781_v39, %v3777_v2 }
  0xcd   : > { %9196 = vmatmul.mubr.msk.bf16.vlgmr.msra.gmra.mrb[0].mxu0 %vm446_vm1, %v10752_v54  ;;  %v2814_v54 = vor.u32 %v2812_v57, %v2810_v37  ;;  %v12373_v37 = vld [vmem:[#allocation9_spill] sm:$0xff] }
  0xce   : > { %9372 = vmatpush3.bf16.msra.mxu0 %v11005_v26  ;;  %9199 = vmatprep.mubr.msk.bf16.mxu0 %vm446_vm1, %v10760_v58  ;;  %v2826_v26 = vrot.slane %v2824_v8, 1  ;;  %v2832_v58 = vshll.u32 %v11033_v48, 16 }
  0xcf   : > { %9320 = vmatmul.mubr.msk.bf16.gmra.mrb[24].mxu1 %vm446_vm1, %v2803_v12  ;;  %10100 = vmatprep.subr.msk.bf16.mxu0 %vm495_vm0, %v10225_v63  ;;  %v2819_v0 = vsel %vm304_vm2, %v2814_v54, %v2818_v14  ;;  %v12374_v63 = vld [vmem:[#allocation11_spill] sm:$0xff]  ;;  %v3792_v12 = vshll.u32 %v11269_v27, 16  ;;  %v3800_v14 = vshll.u32 %v11276_v1, 16 }
  0xd0   : > { %9323 = vmatprep.mubr.msk.bf16.mxu1 %vm446_vm1, %v2811_v43  ;;  %v2827_v60 = vsel %vm304_vm2, %v2822_v52, %v2826_v26  ;;  %v2834_v51 = vrot.slane %v2832_v58, 1  ;;  %v2830_v59 = vor.u32 %v2828_v18, %v2826_v26  ;;  %v3796_v43 = vshrl.u32 %v11269_v27, 16  ;;  %v11288_v52 = vld [vmem:[%s10418_s26 + $0x120] sm:$0xff]   ;;  %v12376_v58 = vld [vmem:[#allocation13_spill] sm:$0xff] }
  0xd1   : > { %v3794_v54 = vrot.slane %v3792_v12, 1  ;;  %v3802_v18 = vrot.slane %v3800_v14, 1 }
  0xd2   : > { %9374 = vmatpush3.bf16.msra.mxu0 %v3966_v61  ;;  %v2838_v42 = vor.u32 %v2836_v11, %v2834_v51  ;;  %v2835_v15 = vsel %vm304_vm2, %v2830_v59, %v2834_v51  ;;  %v12375_v61 = vld [vmem:[#allocation12_spill] sm:$0xff]  ;;  %v3808_v11 = vshll.u32 %v11288_v52, 16  ;;  %v3804_v51 = vshrl.u32 %v11276_v1, 16 }
  0xd3   : > { %9407 = vmatprep.subr.bf16.mxu0 %v11179_v10 }
  0xd4   : > { %v2843_v48 = vsel %vm304_vm2, %v2838_v42, %v2842_v24  ;;  %v3812_v42 = vshrl.u32 %v11288_v52, 16  ;;  %v3806_v16 = vor.u32 %v3804_v51, %v3802_v18 }
  0xd5   : > { %9200 = vmatmul.mubr.msk.bf16.gmra.mrb[4].mxu0 %vm446_vm1, %v10773_v53  ;;  %v2844_v53 = vshrl.u32 %v11058_v55, 16  ;;  %v10233_v55 = vld [vmem:[%s12329_s1 + $0x14] ss:$0 sps:$4 sm:$0xff]  }
  0xd6   : > { %9203 = vmatprep.mubr.msk.bf16.mxu0 %vm446_vm1, %v10790_v9  ;;  %v5699_v13 = vsel %vm495_vm0, %v10233_v55, 0 }
  0xd7   : > { %9324 = vmatmul.mubr.msk.bf16.gmra.mrb[28].mxu1 %vm446_vm1, %v2819_v0  ;;  %v2846_v9 = vor.u32 %v2844_v53, %v2842_v24  ;;  %v3798_v0 = vor.u32 %v3796_v43, %v3794_v54  ;;  %v11309_v53 = vld [vmem:[%s10418_s26 + $0x130] sm:$0xff]  }
  0xd8   : > { %9327 = vmatprep.mubr.msk.bf16.mxu1 %vm446_vm1, %v2827_v60  ;;  %v11294_v60 = vld [vmem:[%s10418_s26 + $0x128] sm:$0xff]  }
  0xd9   : > { %v2851_v6 = vsel %vm304_vm2, %v2846_v9, %v2850_v56  ;;  %v3803_v59 = vsel %vm304_vm2, %v3798_v0, %v3802_v18  ;;  %v3816_v24 = vshll.u32 %v11294_v60, 16  ;;  %v11316_v56 = vld [vmem:[%s10418_s26 + $0x138] sm:$0xff]   ;;  %v11369_v18 = vld [vmem:[%s10418_s26 + $0x190] sm:$0xff]  }
  0xdb   : > { %v3818_v9 = vrot.slane %v3816_v24, 1 }
  0xdd   : > { %9204 = vmatmul.mubr.msk.bf16.gmra.mrb[8].mxu0 %vm446_vm1, %v10805_v22  ;;  %v12360_v22 = vld [vmem:[#allocation4_spill] sm:$0xff] }
  0xde   : > { %9207 = vmatprep.mubr.msk.bf16.mxu0 %vm446_vm1, %v10827_v45  ;;  %v12361_v45 = vld [vmem:[#allocation3_spill] sm:$0xff] }
  0xdf   : > { %9328 = vmatmul.mubr.msk.bf16.gmra.mrb[32].mxu1 %vm446_vm1, %v2835_v15  ;;  %v10239_v15 = vld [vmem:[%s12329_s1 + $0x8] ss:$0 sps:$4 sm:$0xff]  }
  0xe0   : > { %9331 = vmatprep.mubr.msk.bf16.mxu1 %vm446_vm1, %v2843_v48 }
  0xe5   : > { %9208 = vmatmul.mubr.msk.bf16.gmra.mrb[12].mxu0 %vm446_vm1, %v10839_v38  ;;  %v12364_v38 = vld [vmem:[#allocation7_spill] sm:$0xff] }
  0xe6   : > { %9211 = vmatprep.mubr.msk.bf16.mxu0 %vm446_vm1, %v12359_v40 }
  0xe7   : > { %9332 = vmatmul.mubr.msk.bf16.gmra.mrb[36].mxu1 %vm446_vm1, %v2851_v6  ;;  %v4171_v6 = vsel %vm495_vm0, %v10239_v15, 0 }
  0xe8   : > { %9339 = vmatprep.mubr.msk.bf16.mxu1 %vm446_vm1, %v12360_v22  ;;  %v3820_v22 = vshrl.u32 %v11294_v60, 16 }
  0xed   : > { %9212 = vmatmul.mubr.msk.bf16.gmra.mrb[16].mxu0 %vm446_vm1, %v12361_v45 }
  0xee   : > { %9215 = vmatprep.mubr.msk.bf16.mxu0 %vm446_vm1, %v12362_v3  ;;  %v3832_v3 = vshll.u32 %v11316_v56, 16 }
  0xef   : > { %9340 = vmatmul.mubr.msk.bf16.vlgmr.msra.gmra.mrb[8].mxu1 %vm446_vm1, %v12363_v41  ;;  %v11336_v41 = vld [vmem:[%s10418_s26 + $0x140] sm:$0xff]  }
  0xf0   : > { %9343 = vmatprep.mubr.msk.bf16.mxu1 %vm446_vm1, %v12364_v38  ;;  %9516 = vmatpush3.bf16.msra.mxu1 %v11114_v44  ;;  %v11339_v38 = vld [vmem:[%s10418_s26 + $0x180] sm:$0xff]   ;;  %v3834_v39 = vrot.slane %v3832_v3, 1  ;;  %v3844_v12 = vshrl.u32 %v11336_v41, 16 }
  0xf1   : > { %10104 = vmatprep.subr.msk.bf16.mxu1 %vm495_vm0, %v10233_v55  ;;  %v11232_v5 = vpop.f32.mrb[0].mxu1  ;;  %v3828_v55 = vshrl.u32 %v11309_v53, 16 }
  0xf2   : > { %v11234_v34 = vpop.f32.mrb[1].mxu1 }
  0xf3   : > { %v11239_v25 = vpop.f32.mrb[2].mxu1 }
  0xf4   : > { %12365 = vst [vmem:[#allocation2_spill] sm:$0xff] %v11239_v25  ;;  %9518 = vmatpush3.bf16.msra.mxu1 %v5699_v13  ;;  %v11243_v44 = vpop.f32.mrb[3].mxu1  ;;  %v3822_v13 = vor.u32 %v3820_v22, %v3818_v9 }
  0xf5   : > { %9216 = vmatmul.mubr.msk.bf16.gmra.mrb[20].mxu0 %vm446_vm1, %v10904_v46  ;;  %12366 = vst [vmem:[#allocation4_spill] sm:$0xff] %v11243_v44  ;;  %9551 = vmatprep.subr.bf16.mxu1 %v11230_v20 }
  0xf6   : > { %9219 = vmatprep.mubr.msk.bf16.mxu0 %vm446_vm1, %v10914_v23  ;;  %v3784_v23 = vshll.u32 %v11251_v30, 16 }
  0xf7   : > { %9344 = vmatmul.mubr.msk.bf16.gmra.mrb[12].mxu1 %vm446_vm1, %v10907_v32  ;;  %v12370_v32 = vld [vmem:[#allocation8_spill] sm:$0xff] }
  0xf8   : > { %9347 = vmatprep.mubr.msk.bf16.mxu1 %vm446_vm1, %v10917_v31  ;;  %v12372_v31 = vld [vmem:[#allocation10_spill] sm:$0xff]  ;;  %v3786_v57 = vrot.slane %v3784_v23, 1  ;;  %v11345_v23 = vld [vmem:[%s10418_s26 + $0x148] sm:$0xff]  }
  0xf9   : > { %v11256_v46 = vpop.f32.mrb[4].mxu1 }
  0xfa   : > { %12367 = vst [vmem:[#allocation3_spill] sm:$0xff] %v11256_v46  ;;  %v11258_v7 = vpop.f32.mrb[5].mxu1  ;;  %v3787_v8 = vsel %vm304_vm2, %v3782_v28, %v3786_v57  ;;  %v3790_v26 = vor.u32 %v3788_v49, %v3786_v57  ;;  %v3836_v57 = vshrl.u32 %v11316_v56, 16  ;;  %v3848_v49 = vshll.u32 %v11345_v23, 16 }
  0xfb   : > { %12368 = vst [vmem:[#allocation6_spill] sm:$0xff] %v11258_v7  ;;  %v11262_v19 = vpop.f32.mrb[6].mxu1  ;;  %v11788_v7 = vld [vmem:[%s10418_s26 + $0x1c0] sm:$0xff]  }
  0xfc   : > { %12369 = vst [vmem:[#allocation5_spill] sm:$0xff] %v11262_v19  ;;  %v11266_v35 = vpop.f32.mrb[7].mxu1  ;;  %v3795_v21 = vsel %vm304_vm2, %v3790_v26, %v3794_v54  ;;  %v3838_v54 = vor.u32 %v3836_v57, %v3834_v39  ;;  %v12378_v26 = vld [vmem:[#allocation15_spill] sm:$0xff]  ;;  %v3850_v0 = vrot.slane %v3848_v49, 1  ;;  %v11760_v19 = vld [vmem:[%s10418_s26 + $0x1b8] sm:$0xff]  }
  0xfd   : > { %9220 = vmatmul.mubr.msk.bf16.gmra.mrb[24].mxu0 %vm446_vm1, %v12370_v32  ;;  %12371 = vst [vmem:[#allocation7_spill] sm:$0xff] %v11266_v35  ;;  %v3840_v32 = vshll.u32 %v11336_v41, 16  ;;  %v11406_v57 = vld [vmem:[%s10418_s26 + $0x1a8] sm:$0xff]   ;;  %12388 = vst [vmem:[#allocation17_spill] sm:$0xff] %v11760_v19 }
  0xfe   : > { %9223 = vmatprep.mubr.msk.bf16.mxu0 %vm446_vm1, %v12372_v31  ;;  %v11351_v31 = vld [vmem:[%s10418_s26 + $0x188] sm:$0xff]  }
  0xff   : > { %9348 = vmatmul.mubr.msk.bf16.gmra.mrb[16].mxu1 %vm446_vm1, %v12373_v37  ;;  %v5512_v37 = vshll.u32 %v11339_v38, 16  ;;  %v5517_v14 = vshll.u32 %v11351_v31, 16 }
 0x100   : > { %9351 = vmatprep.mubr.msk.bf16.mxu1 %vm446_vm1, %v12374_v63 }
 0x101   : > { %v5514_v43 = vrot.slane %v5512_v37, 1  ;;  %v5519_v51 = vrot.slane %v5517_v14, 1 }
 0x105   : > { %9224 = vmatmul.mubr.msk.bf16.gmra.mrb[28].mxu0 %vm446_vm1, %v12375_v61  ;;  %v11363_v61 = vld [vmem:[%s10418_s26 + $0x150] sm:$0xff]  }
 0x106   : > { %9375 = vmatprep.mubr.msk.bf16.mxu0 %vm446_vm1, %v3787_v8  ;;  %v5510_v8 = vshrl.u32 %v11339_v38, 16 }
 0x107   : > { %9352 = vmatmul.mubr.msk.bf16.gmra.mrb[20].mxu1 %vm446_vm1, %v12376_v58 }
 0x108   : > { %9355 = vmatprep.mubr.msk.bf16.mxu1 %vm446_vm1, %v10979_v17  ;;  %v3810_v17 = vrot.slane %v3808_v11, 1  ;;  %v11372_v11 = vld [vmem:[%s10418_s26 + $0x158] sm:$0xff]  }
 0x10a   : > { %v3814_v48 = vor.u32 %v3812_v42, %v3810_v17  ;;  %v3811_v40 = vsel %vm304_vm2, %v3806_v16, %v3810_v17  ;;  %v11378_v42 = vld [vmem:[%s10418_s26 + $0x198] sm:$0xff]   ;;  %v5525_v16 = vshll.u32 %v11369_v18, 16 }
 0x10b   : > { %v5533_v22 = vshll.u32 %v11378_v42, 16  ;;  %v5537_v14 = vshrl.u32 %v11378_v42, 16 }
 0x10c   : > { %v3819_v45 = vsel %vm304_vm2, %v3814_v48, %v3818_v9  ;;  %v3860_v48 = vshrl.u32 %v11363_v61, 16  ;;  %v5521_v9 = vshrl.u32 %v11351_v31, 16  ;;  %v5527_v3 = vrot.slane %v5525_v16, 1  ;;  %v11429_v16 = vld [vmem:[%s10418_s26 + $0x1b0] sm:$0xff]  }
 0x10d   : > { %9376 = vmatmul.mubr.msk.bf16.vlgmr.msra.gmra.mrb[32].mxu0 %vm446_vm1, %v3795_v21  ;;  %v5515_v21 = vor.u32 %v5514_v43, %v5510_v8  ;;  %v5535_v37 = vrot.slane %v5533_v22, 1 }
 0x10e   : > { %9408 = vmatpush3.bf16.msra.mxu0 %v11179_v10  ;;  %9379 = vmatprep.mubr.msk.bf16.mxu0 %vm446_vm1, %v3803_v59  ;;  %v11323_v10 = vld [vmem:[%s12329_s1 + $0x18] sm:$0xff]   ;;  %v3856_v59 = vshll.u32 %v11363_v61, 16 }
 0x10f   : > { %9356 = vmatmul.mubr.msk.bf16.gmra.mrb[24].mxu1 %vm446_vm1, %v10986_v47  ;;  %10101 = vmatprep.subr.msk.bf16.mxu0 %vm495_vm0, %v10239_v15  ;;  %v3824_v47 = vshll.u32 %v11309_v53, 16  ;;  %v3852_v15 = vshrl.u32 %v11345_v23, 16 }
 0x110   : > { %9359 = vmatprep.mubr.msk.bf16.mxu1 %vm446_vm1, %v11014_v29 }
 0x111   : > { %v3826_v29 = vrot.slane %v3824_v47, 1  ;;  %v3858_v47 = vrot.slane %v3856_v59, 1 }
 0x112   : > { %9410 = vmatpush3.bf16.msra.mxu0 %v4171_v6  ;;  %v5520_v6 = vsel %vm304_vm2, %v5515_v21, %v5519_v51  ;;  %v11421_v21 = vld [vmem:[%s10418_s26 + $0x170] sm:$0xff]  }
 0x113   : > { %9443 = vmatprep.subr.bf16.mxu0 %v11323_v10  ;;  %v3830_v2 = vor.u32 %v3828_v55, %v3826_v29  ;;  %v3827_v28 = vsel %vm304_vm2, %v3822_v13, %v3826_v29  ;;  %v3854_v55 = vor.u32 %v3852_v15, %v3850_v0  ;;  %v3862_v29 = vor.u32 %v3860_v48, %v3858_v47  ;;  %v11432_v48 = vld [vmem:[%s10418_s26 + $0x178] sm:$0xff]  }
 0x115   : > { %9380 = vmatmul.mubr.msk.bf16.gmra.mrb[36].mxu0 %vm446_vm1, %v3811_v40  ;;  %v3835_v63 = vsel %vm304_vm2, %v3830_v2, %v3834_v39  ;;  %v5529_v40 = vshrl.u32 %v11369_v18, 16  ;;  %v11401_v2 = vld [vmem:[%s10418_s26 + $0x168] sm:$0xff]   ;;  %v5523_v39 = vor.u32 %v5521_v9, %v5519_v51 }
 0x116   : > { %9383 = vmatprep.mubr.msk.bf16.mxu0 %vm446_vm1, %v3819_v45  ;;  %v11392_v45 = vld [vmem:[%s10418_s26 + $0x160] sm:$0xff]   ;;  %v3880_v8 = vshll.u32 %v11401_v2, 16  ;;  %v10262_v51 = vld [vmem:[%s12329_s1 + $0x8] ss:$0 sps:$4 sm:$0xff]  }
 0x117   : > { %9360 = vmatmul.mubr.msk.bf16.gmra.mrb[28].mxu1 %vm446_vm1, %v12377_v4  ;;  %v11398_v4 = vld [vmem:[%s10418_s26 + $0x1a0] sm:$0xff]   ;;  %v5528_v43 = vsel %vm304_vm2, %v5523_v39, %v5527_v3  ;;  %v5904_v22 = vsel %vm495_vm0, %v10262_v51, 0  ;;  %v3892_v39 = vshrl.u32 %v11421_v21, 16 }
 0x118   : > { %9363 = vmatprep.mubr.msk.bf16.mxu1 %vm446_vm1, %v11044_v50  ;;  %v3842_v50 = vrot.slane %v3840_v32, 1  ;;  %v5531_v32 = vor.u32 %v5529_v40, %v5527_v3  ;;  %v5541_v49 = vshll.u32 %v11398_v4, 16  ;;  %v11438_v40 = vld [vmem:[%s10418_s26 + $0x1b8] sm:$0xff]  }
 0x11a   : > { %v3846_v58 = vor.u32 %v3844_v12, %v3842_v50  ;;  %v3843_v24 = vsel %vm304_vm2, %v3838_v54, %v3842_v50  ;;  %v3876_v50 = vshrl.u32 %v11392_v45, 16  ;;  %v5536_v54 = vsel %vm304_vm2, %v5531_v32, %v5535_v37 }
 0x11b   : > { %v3896_v32 = vshll.u32 %v11432_v48, 16 }
 0x11c   : > { %v3851_v17 = vsel %vm304_vm2, %v3846_v58, %v3850_v0  ;;  %v5545_v58 = vshrl.u32 %v11398_v4, 16  ;;  %v5549_v0 = vshll.u32 %v11406_v57, 16 }
 0x11d   : > { %9384 = vmatmul.mubr.msk.bf16.gmra.mrb[40].mxu0 %vm446_vm1, %v3827_v28  ;;  %v3872_v28 = vshll.u32 %v11392_v45, 16 }
 0x11e   : > { %9387 = vmatprep.mubr.msk.bf16.mxu0 %vm446_vm1, %v3835_v63  ;;  %v3859_v63 = vsel %vm304_vm2, %v3854_v55, %v3858_v47  ;;  %v3888_v47 = vshll.u32 %v11421_v21, 16  ;;  %v11445_v55 = vld [vmem:[%s12329_s1 + $0x18] sm:$0xff]  }
 0x11f   : > { %9364 = vmatmul.mubr.msk.bf16.gmra.mrb[32].mxu1 %vm446_vm1, %v12378_v26  ;;  %v3874_v26 = vrot.slane %v3872_v28, 1  ;;  %v5553_v28 = vshrl.u32 %v11406_v57, 16 }
 0x120   : > { %9367 = vmatprep.mubr.msk.bf16.mxu1 %vm446_vm1, %v11071_v33  ;;  %v3864_v33 = vshll.u32 %v11372_v11, 16 }
 0x121   : > { %v3878_v15 = vor.u32 %v3876_v50, %v3874_v26 }
 0x122   : > { %v3866_v13 = vrot.slane %v3864_v33, 1  ;;  %v5539_v33 = vor.u32 %v5537_v14, %v5535_v37 }
 0x124   : > { %v3867_v12 = vsel %vm304_vm2, %v3862_v29, %v3866_v13  ;;  %v3884_v29 = vshrl.u32 %v11401_v2, 16 }
 0x125   : > { %9388 = vmatmul.mubr.msk.bf16.gmra.mrb[44].mxu0 %vm446_vm1, %v3843_v24  ;;  %v5543_v24 = vrot.slane %v5541_v49, 1  ;;  %v5565_v49 = vshll.u32 %v11438_v40, 16 }
 0x126   : > { %9391 = vmatprep.mubr.msk.bf16.mxu0 %vm446_vm1, %v3851_v17  ;;  %v3882_v17 = vrot.slane %v3880_v8, 1  ;;  %v10255_v8 = vld [vmem:[%s10418_s26 + $0x180] ss:$0 sps:$4 sm:$0x11]  }
 0x127   : > { %9368 = vmatmul.mubr.msk.bf16.gmra.mrb[36].mxu1 %vm446_vm1, %v11076_v62  ;;  %v3868_v62 = vshrl.u32 %v11372_v11, 16  ;;  %v5547_v9 = vor.u32 %v5545_v58, %v5543_v24  ;;  %v5544_v37 = vsel %vm304_vm2, %v5539_v33, %v5543_v24 }
 0x128   : > { %9519 = vmatprep.mubr.msk.bf16.mxu1 %vm446_vm1, %v5520_v6  ;;  %v5551_v6 = vrot.slane %v5549_v0, 1  ;;  %v3886_v50 = vor.u32 %v3884_v29, %v3882_v17 }
 0x129   : > { %v3870_v59 = vor.u32 %v3868_v62, %v3866_v13  ;;  %v5557_v13 = vshll.u32 %v11429_v16, 16  ;;  %v3890_v62 = vrot.slane %v3888_v47, 1 }
 0x12a   : > { %v5555_v58 = vor.u32 %v5553_v28, %v5551_v6 }
 0x12b   : > { %v3875_v3 = vsel %vm304_vm2, %v3870_v59, %v3874_v26  ;;  %v3894_v14 = vor.u32 %v3892_v39, %v3890_v62  ;;  %v11464_v26 = vld [vmem:[%s10418_s26 + $0x1c0] sm:$0xff]   ;;  %v11468_v59 = vld [vmem:[%s10418_s26 + $0x1c8] sm:$0xff]   ;;  %v3891_v24 = vsel %vm304_vm2, %v3886_v50, %v3890_v62  ;;  %v11487_v62 = vld [vmem:[%s10418_s26 + $0x1d8] sm:$0xff]  }
 0x12c   : > { %v5581_v29 = vshll.u32 %v11468_v59, 16 }
 0x12d   : > { %9392 = vmatmul.mubr.msk.bf16.gmra.mrb[48].mxu0 %vm446_vm1, %v3859_v63  ;;  %v5552_v63 = vsel %vm304_vm2, %v5547_v9, %v5551_v6  ;;  %v5573_v9 = vshll.u32 %v11464_v26, 16 }
 0x12e   : > { %9395 = vmatprep.mubr.msk.bf16.mxu0 %vm446_vm1, %v3867_v12  ;;  %v5561_v12 = vshrl.u32 %v11429_v16, 16 }
 0x12f   : > { %9520 = vmatmul.mubr.msk.bf16.vlgmr.msra.gmra.mrb[40].mxu1 %vm446_vm1, %v5528_v43  ;;  %v5559_v43 = vrot.slane %v5557_v13, 1  ;;  %v5575_v39 = vrot.slane %v5573_v9, 1  ;;  %v10267_v9 = vld [vmem:[%s12329_s1 + $0x20] ss:$0 sps:$4 sm:$0xff]  }
 0x130   : > { %9523 = vmatprep.mubr.msk.bf16.mxu1 %vm446_vm1, %v5536_v54  ;;  %9552 = vmatpush3.bf16.msra.mxu1 %v11230_v20  ;;  %v3883_v20 = vsel %vm304_vm2, %v3878_v15, %v3882_v17  ;;  %v3898_v54 = vrot.slane %v3896_v32, 1  ;;  %v3900_v15 = vshrl.u32 %v11432_v48, 16  ;;  %v3904_v17 = vshll.u32 %v10255_v8, 16  ;;  %v11483_v32 = vld [vmem:[%s10418_s26 + $0x1d0] sm:$0xff]  }
 0x131   : > { %10105 = vmatprep.subr.msk.bf16.mxu1 %vm495_vm0, %v10262_v51  ;;  %v5563_v0 = vor.u32 %v5561_v12, %v5559_v43  ;;  %v5567_v51 = vrot.slane %v5565_v49, 1  ;;  %v5560_v47 = vsel %vm304_vm2, %v5555_v58, %v5559_v43  ;;  %v5589_v49 = vshll.u32 %v11483_v32, 16 }
 0x132   : > { %v3899_v33 = vsel %vm304_vm2, %v3894_v14, %v3898_v54  ;;  %v3906_v13 = vrot.slane %v3904_v17, 1  ;;  %v5585_v8 = vshrl.u32 %v11468_v59, 16  ;;  %v5593_v14 = vshrl.u32 %v11483_v32, 16  ;;  %v11505_v17 = vld [vmem:[%s10418_s26 + $0x1e8] sm:$0xff]  }
 0x133   : > { %v5568_v6 = vsel %vm304_vm2, %v5563_v0, %v5567_v51  ;;  %v5591_v58 = vrot.slane %v5589_v49, 1  ;;  %v11501_v0 = vld [vmem:[%s10418_s26 + $0x1e0] sm:$0xff]  }
 0x134   : > { %9554 = vmatpush3.bf16.msra.mxu1 %v5904_v22  ;;  %v5569_v22 = vshrl.u32 %v11438_v40, 16 }
 0x135   : > { %9396 = vmatmul.mubr.msk.bf16.gmra.mrb[52].mxu0 %vm446_vm1, %v3875_v3  ;;  %9587 = vmatprep.subr.bf16.mxu1 %v11445_v55  ;;  %v5577_v3 = vshrl.u32 %v11464_v26, 16 }
 0x136   : > { %9399 = vmatprep.mubr.msk.bf16.mxu0 %vm446_vm1, %v3883_v20  ;;  %v3902_v20 = vor.u32 %v3900_v15, %v3898_v54  ;;  %v5597_v54 = vshll.u32 %v11487_v62, 16 }
 0x137   : > { %9524 = vmatmul.mubr.msk.bf16.gmra.mrb[44].mxu1 %vm446_vm1, %v5544_v37  ;;  %v5571_v37 = vor.u32 %v5569_v22, %v5567_v51  ;;  %v5579_v28 = vor.u32 %v5577_v3, %v5575_v39  ;;  %v5613_v3 = vshll.u32 %v11505_v17, 16 }
 0x138   : > { %9527 = vmatprep.mubr.msk.bf16.mxu1 %vm446_vm1, %v5552_v63  ;;  %v5583_v63 = vrot.slane %v5581_v29, 1  ;;  %v3907_v12 = vsel %vm304_vm2, %v3902_v20, %v3906_v13  ;;  %v5599_v15 = vrot.slane %v5597_v54, 1  ;;  %v11523_v20 = vld [vmem:[%s10418_s26 + $0x1f0] sm:$0xff]   ;;  %v11530_v13 = vld [vmem:[%s12329_s1 + $0x24] sm:$0xff]  }
 0x139   : > { %v5576_v50 = vsel %vm304_vm2, %v5571_v37, %v5575_v39  ;;  %v5615_v37 = vrot.slane %v5613_v3, 1  ;;  %v10266_v54 = vld [vmem:[%s10418_s26 + $0x200] ss:$0 sps:$4 sm:$0x11]  }
 0x13a   : > { %v5584_v43 = vsel %vm304_vm2, %v5579_v28, %v5583_v63  ;;  %v5587_v51 = vor.u32 %v5585_v8, %v5583_v63  ;;  %v5621_v28 = vshll.u32 %v11523_v20, 16 }
 0x13d   : > { %9400 = vmatmul.mubr.msk.bf16.gmra.mrb[56].mxu0 %vm446_vm1, %v3891_v24  ;;  %v5595_v24 = vor.u32 %v5593_v14, %v5591_v58 }
 0x13e   : > { %9403 = vmatprep.mubr.msk.bf16.mxu0 %vm446_vm1, %v3899_v33  ;;  %v5605_v33 = vshll.u32 %v11501_v0, 16 }
 0x13f   : > { %9528 = vmatmul.mubr.msk.bf16.gmra.mrb[48].mxu1 %vm446_vm1, %v5560_v47  ;;  %v5601_v47 = vshrl.u32 %v11487_v62, 16  ;;  %v5600_v22 = vsel %vm304_vm2, %v5595_v24, %v5599_v15 }
 0x140   : > { %9531 = vmatprep.mubr.msk.bf16.mxu1 %vm446_vm1, %v5568_v6  ;;  %v5609_v6 = vshrl.u32 %v11501_v0, 16  ;;  %v5607_v29 = vrot.slane %v5605_v33, 1 }
 0x142   : > { %v5611_v39 = vor.u32 %v5609_v6, %v5607_v29  ;;  %v11620_v6 = vld [vmem:[%s10418_s26 + $0x138] sm:$0xff]  }
 0x144   : > { %v5616_v49 = vsel %vm304_vm2, %v5611_v39, %v5615_v37  ;;  %v11634_v39 = vld [vmem:[%s10418_s26 + $0x148] sm:$0xff]  }
 0x145   : > { %9404 = vmatmul.mubr.msk.bf16.gmra.mrb[60].mxu0 %vm446_vm1, %v3907_v12  ;;  %v5617_v12 = vshrl.u32 %v11505_v17, 16 }
 0x146   : > { %9411 = vmatprep.mubr.msk.bf16.mxu0 %vm446_vm1, %v11237_v36  ;;  %v5592_v36 = vsel %vm304_vm2, %v5587_v51, %v5591_v58 }
 0x147   : > { %9532 = vmatmul.mubr.msk.bf16.gmra.mrb[52].mxu1 %vm446_vm1, %v5576_v50  ;;  %v5625_v50 = vshrl.u32 %v11523_v20, 16  ;;  %v5619_v14 = vor.u32 %v5617_v12, %v5615_v37 }
 0x148   : > { %9535 = vmatprep.mubr.msk.bf16.mxu1 %vm446_vm1, %v5584_v43  ;;  %v5623_v43 = vrot.slane %v5621_v28, 1  ;;  %v11640_v28 = vld [vmem:[%s10418_s26 + $0x1d8] sm:$0xff]  }
 0x14a   : > { %v5627_v58 = vor.u32 %v5625_v50, %v5623_v43  ;;  %v6067_v50 = vld [vmem:[%s10418_s26 + $0x190] sm:$0xf] }
 0x14d   : > { %9412 = vmatmul.mubr.msk.bf16.vlgmr.msra.gmra.mrb[32].mxu0 %vm446_vm1, %v11251_v30  ;;  %v4643_v30 = vsel %vm495_vm0, %v10267_v9, 0 }
 0x14e   : > { %9444 = vmatpush3.bf16.msra.mxu0 %v11323_v10  ;;  %9415 = vmatprep.mubr.msk.bf16.mxu0 %vm446_vm1, %v11269_v27  ;;  %v5603_v10 = vor.u32 %v5601_v47, %v5599_v15  ;;  %v11534_v27 = vld [vmem:[%s10418_s26 + $0x1f8] sm:$0xff]   ;;  %v5637_v15 = vshll.u32 %v10266_v54, 16  ;;  %v11605_v47 = vld [vmem:[%s10418_s26 + $0x120] sm:$0xff]  }
 0x14f   : > { %9536 = vmatmul.mubr.msk.bf16.gmra.mrb[56].mxu1 %vm446_vm1, %v5592_v36  ;;  %10102 = vmatprep.subr.msk.bf16.mxu0 %vm495_vm0, %v10267_v9  ;;  %v5629_v8 = vshll.u32 %v11534_v27, 16  ;;  %v5633_v24 = vshrl.u32 %v11534_v27, 16 }
 0x150   : > { %9539 = vmatprep.mubr.msk.bf16.mxu1 %vm446_vm1, %v5600_v22  ;;  %v5608_v63 = vsel %vm304_vm2, %v5603_v10, %v5607_v29  ;;  %v5639_v9 = vrot.slane %v5637_v15, 1  ;;  %v4469_v22 = vshll.u32 %v11605_v47, 16  ;;  %v4493_v10 = vshll.u32 %v11620_v6, 16  ;;  %v11661_v15 = vld [vmem:[%s10418_s26 + $0x150] sm:$0xff]  }
 0x151   : > { %v5631_v51 = vrot.slane %v5629_v8, 1  ;;  %v11646_v8 = vld [vmem:[%s10418_s26 + $0x194] sm:$0xf] }
 0x152   : > { %9446 = vmatpush3.bf16.msra.mxu0 %v4643_v30  ;;  %v11630_v30 = vld [vmem:[%s10418_s26 + $0x140] sm:$0xff]   ;;  %12379 = vst [vmem:[#allocation8_spill] sm:$0xff] %v11646_v8 }
 0x153   : > { %9479 = vmatprep.subr.bf16.mxu0 %v11530_v13  ;;  %v5632_v33 = vsel %vm304_vm2, %v5627_v58, %v5631_v51  ;;  %v4501_v54 = vshll.u32 %v11630_v30, 16  ;;  %v12331_v58 = vrot.slane %v11640_v28, 1 }
 0x155   : > { %9416 = vmatmul.mubr.msk.bf16.gmra.mrb[36].mxu0 %vm446_vm1, %v11276_v1  ;;  %v5624_v1 = vsel %vm304_vm2, %v5619_v14, %v5623_v43  ;;  %v11649_v43 = vld [vmem:[%s10418_s26 + $0x1e0] sm:$0xff]  }
 0x156   : > { %9419 = vmatprep.mubr.msk.bf16.mxu0 %vm446_vm1, %v11288_v52  ;;  %v5635_v52 = vor.u32 %v5633_v24, %v5631_v51  ;;  %v4495_v51 = vrot.slane %v4493_v10, 1  ;;  %v4509_v24 = vshll.u32 %v11634_v39, 16 }
 0x157   : > { %9540 = vmatmul.mubr.msk.bf16.gmra.mrb[60].mxu1 %vm446_vm1, %v5608_v63 }
 0x158   : > { %9543 = vmatprep.mubr.msk.bf16.mxu1 %vm446_vm1, %v5616_v49  ;;  %v5640_v36 = vsel %vm304_vm2, %v5635_v52, %v5639_v9  ;;  %v4505_v52 = vshrl.u32 %v11630_v30, 16  ;;  %v11666_v9 = vcombine.low %v6067_v50, %v11646_v8  ;;  %v11713_v50 = vld [vmem:[%s12329_s1 + $0xc] sm:$0xff]  }
 0x15d   : > { %9420 = vmatmul.mubr.msk.bf16.gmra.mrb[40].mxu0 %vm446_vm1, %v11294_v60  ;;  %v10275_v60 = vld [vmem:[%s12329_s1 + $0x20] ss:$0 sps:$4 sm:$0xff]  }
 0x15e   : > { %9423 = vmatprep.mubr.msk.bf16.mxu0 %vm446_vm1, %v11309_v53  ;;  %v4334_v53 = vld [vmem:[%s10418_s26 + $0x110] sm:$0xf] }
 0x15f   : > { %9544 = vmatmul.mubr.msk.bf16.gmra.mrb[64].mxu1 %vm446_vm1, %v5624_v1  ;;  %v4497_v1 = vshrl.u32 %v11620_v6, 16 }
 0x160   : > { %9547 = vmatprep.mubr.msk.bf16.mxu1 %vm446_vm1, %v5632_v33 }
 0x165   : > { %9424 = vmatmul.mubr.msk.bf16.gmra.mrb[44].mxu0 %vm446_vm1, %v11316_v56  ;;  %v11581_v56 = vld [vmem:[%s10418_s26 + $0x114] sm:$0xf] }
 0x166   : > { %9427 = vmatprep.mubr.msk.bf16.mxu0 %vm446_vm1, %v11336_v41  ;;  %v6376_v41 = vsel %vm495_vm0, %v10275_v60, 0 }
 0x167   : > { %9548 = vmatmul.mubr.msk.bf16.gmra.mrb[68].mxu1 %vm446_vm1, %v5640_v36 }
 0x168   : > { %9555 = vmatprep.mubr.msk.bf16.mxu1 %vm446_vm1, %v11339_v38  ;;  %v11588_v38 = vld [vmem:[%s12329_s1 + $0x24] sm:$0xff]  }
 0x16d   : > { %9428 = vmatmul.mubr.msk.bf16.gmra.mrb[48].mxu0 %vm446_vm1, %v11345_v23  ;;  %v7977_v23 = vcombine.low %v4334_v53, %v11581_v56 }
 0x16e   : > { %9431 = vmatprep.mubr.msk.bf16.mxu0 %vm446_vm1, %v11363_v61 }
 0x16f   : > { %9556 = vmatmul.mubr.msk.bf16.vlgmr.msra.gmra.mrb[40].mxu1 %vm446_vm1, %v11351_v31  ;;  %v11599_v31 = vld [vmem:[%s10418_s26 + $0x118] sm:$0xff]   ;;  %v4456_v61 = vshll.u32 %v7977_v23, 16 }
 0x170   : > { %9559 = vmatprep.mubr.msk.bf16.mxu1 %vm446_vm1, %v11369_v18  ;;  %9588 = vmatpush3.bf16.msra.mxu1 %v11445_v55  ;;  %v4454_v18 = vshrl.u32 %v7977_v23, 16 }
 0x171   : > { %10106 = vmatprep.subr.msk.bf16.mxu1 %vm495_vm0, %v10275_v60  ;;  %v4458_v55 = vrot.slane %v4456_v61, 1  ;;  %v4503_v61 = vrot.slane %v4501_v54, 1  ;;  %v4521_v54 = vshrl.u32 %v11661_v15, 16 }
 0x174   : > { %9590 = vmatpush3.bf16.msra.mxu1 %v6376_v41 }
 0x175   : > { %9432 = vmatmul.mubr.msk.bf16.gmra.mrb[52].mxu0 %vm446_vm1, %v11372_v11  ;;  %9623 = vmatprep.subr.bf16.mxu1 %v11588_v38  ;;  %v4461_v11 = vshll.u32 %v11599_v31, 16 }
 0x176   : > { %9435 = vmatprep.mubr.msk.bf16.mxu0 %vm446_vm1, %v11392_v45 }
 0x177   : > { %9560 = vmatmul.mubr.msk.bf16.gmra.mrb[44].mxu1 %vm446_vm1, %v11378_v42  ;;  %v4459_v42 = vor.u32 %v4458_v55, %v4454_v18  ;;  %v4463_v45 = vrot.slane %v4461_v11, 1  ;;  %v10281_v18 = vld [vmem:[%s12329_s1 + $0x2c] ss:$0 sps:$4 sm:$0xff]   ;;  %v11682_v55 = vld [vmem:[%s10418_s26 + $0x198] sm:$0xff]   ;;  %v4499_v11 = vor.u32 %v4497_v1, %v4495_v51  ;;  %v11725_v1 = vld [vmem:[%s10418_s26 + $0x1f0] sm:$0xff]  }
 0x178   : > { %9563 = vmatprep.mubr.msk.bf16.mxu1 %vm446_vm1, %v11398_v4  ;;  %v11614_v4 = vld [vmem:[%s10418_s26 + $0x128] sm:$0xff]   ;;  %12382 = vst [vmem:[#allocation11_spill] sm:$0xff] %v11682_v55 }
 0x179   : > { %v4464_v3 = vsel %vm304_vm2, %v4459_v42, %v4463_v45  ;;  %v4477_v29 = vshll.u32 %v11614_v4, 16  ;;  %v4481_v49 = vshrl.u32 %v11614_v4, 16  ;;  %v4511_v42 = vrot.slane %v4509_v24, 1 }
 0x17d   : > { %9436 = vmatmul.mubr.msk.bf16.gmra.mrb[56].mxu0 %vm446_vm1, %v11401_v2  ;;  %v11623_v2 = vld [vmem:[%s10418_s26 + $0x130] sm:$0xff]  }
 0x17e   : > { %9439 = vmatprep.mubr.msk.bf16.mxu0 %vm446_vm1, %v11421_v21  ;;  %v4465_v21 = vshrl.u32 %v11599_v31, 16  ;;  %v4485_v37 = vshll.u32 %v11623_v2, 16  ;;  %v4489_v14 = vshrl.u32 %v11623_v2, 16 }
 0x17f   : > { %9564 = vmatmul.mubr.msk.bf16.gmra.mrb[48].mxu1 %vm446_vm1, %v11406_v57  ;;  %v4473_v57 = vshrl.u32 %v11605_v47, 16 }
 0x180   : > { %9567 = vmatprep.mubr.msk.bf16.mxu1 %vm446_vm1, %v11429_v16  ;;  %v4471_v16 = vrot.slane %v4469_v22, 1  ;;  %v4467_v63 = vor.u32 %v4465_v21, %v4463_v45  ;;  %v4487_v33 = vrot.slane %v4485_v37, 1  ;;  %v4513_v45 = vshrl.u32 %v11634_v39, 16 }
 0x181   : > { %v4517_v22 = vshll.u32 %v11661_v15, 16  ;;  %v4507_v21 = vor.u32 %v4505_v52, %v4503_v61 }
 0x182   : > { %v4475_v12 = vor.u32 %v4473_v57, %v4471_v16  ;;  %v4472_v36 = vsel %vm304_vm2, %v4467_v63, %v4471_v16  ;;  %v4491_v23 = vor.u32 %v4489_v14, %v4487_v33  ;;  %v6189_v57 = vshll.u32 %v11666_v9, 16  ;;  %v11695_v16 = vld [vmem:[%s10418_s26 + $0x1a8] sm:$0xff]  }
 0x183   : > { %v6194_v63 = vshll.u32 %v11682_v55, 16  ;;  %v4519_v14 = vrot.slane %v4517_v22, 1  ;;  %v11728_v24 = vsel %vm304_vm2, %v4507_v21, %v4511_v42  ;;  %v11745_v22 = vld [vmem:[%s10418_s26 + $0x178] sm:$0xff]  }
 0x184   : > { %v4496_v37 = vsel %vm304_vm2, %v4491_v23, %v4495_v51  ;;  %v11722_v51 = vld [vmem:[%s10418_s26 + $0x1e8] sm:$0xff]   ;;  %v6191_v52 = vrot.slane %v6189_v57, 1  ;;  %12385 = vst [vmem:[#allocation14_spill] sm:$0xff] %v11745_v22 }
 0x185   : > { %9440 = vmatmul.mubr.msk.bf16.gmra.mrb[60].mxu0 %vm446_vm1, %v11432_v48  ;;  %v4479_v48 = vrot.slane %v4477_v29, 1  ;;  %v6599_v23 = vrot.slane %v11722_v51, 1  ;;  %v4523_v21 = vor.u32 %v4521_v54, %v4519_v14 }
 0x186   : > { %9447 = vmatprep.mubr.msk.bf16.mxu0 %vm446_vm1, %v4464_v3  ;;  %v11689_v3 = vld [vmem:[%s10418_s26 + $0x168] sm:$0xff]  }
 0x187   : > { %9568 = vmatmul.mubr.msk.bf16.gmra.mrb[52].mxu1 %vm446_vm1, %v11438_v40  ;;  %v6597_v40 = vrot.slane %v11649_v43, 1  ;;  %v4480_v53 = vsel %vm304_vm2, %v4475_v12, %v4479_v48  ;;  %v4483_v41 = vor.u32 %v4481_v49, %v4479_v48  ;;  %v4936_v12 = vsel %vm495_vm0, %v10281_v18, 0  ;;  %v11708_v49 = vld [vmem:[%s10418_s26 + $0x1a0] sm:$0xff]  }
 0x188   : > { %9571 = vmatprep.mubr.msk.bf16.mxu1 %vm446_vm1, %v11464_v26  ;;  %v11670_v26 = vld [vmem:[%s10418_s26 + $0x158] sm:$0xff]   ;;  %12384 = vst [vmem:[#allocation13_spill] sm:$0xff] %v11708_v49  ;;  %v4515_v48 = vor.u32 %v4513_v45, %v4511_v42  ;;  %v11742_v45 = vld [vmem:[%s10418_s26 + $0x1b0] sm:$0xff]   ;;  %v4545_v35 = vshrl.u32 %v11689_v3, 16 }
 0x189   : > { %12380 = vst [vmem:[#allocation10_spill] sm:$0xff] %v11670_v26  ;;  %v11675_v60 = vsel %vm1378_vm3, %v12331_v58, %v6597_v40  ;;  %v4525_v29 = vshll.u32 %v11670_v26, 16  ;;  %v4488_v10 = vsel %vm304_vm2, %v4483_v41, %v4487_v33  ;;  %v6187_v33 = vshrl.u32 %v11666_v9, 16  ;;  %v11734_v41 = vld [vmem:[%s10418_s26 + $0x170] sm:$0xff]  }
 0x18a   : > { %12381 = vst [vmem:[#allocation9_spill] sm:$0xff] %v11675_v60  ;;  %v6202_v9 = vshll.u32 %v11708_v49, 16  ;;  %v4529_v57 = vshrl.u32 %v11670_v26, 16  ;;  %v6206_v60 = vshrl.u32 %v11708_v49, 16  ;;  %v11781_v49 = vld [vmem:[%s10418_s26 + $0x1f8] sm:$0xff]  }
 0x18d   : > { %9448 = vmatmul.mubr.msk.bf16.vlgmr.msra.gmra.mrb[32].mxu0 %vm446_vm1, %v4472_v36  ;;  %v4527_v36 = vrot.slane %v4525_v29, 1  ;;  %v11750_v29 = vsel %vm1378_vm3, %v6597_v40, %v6599_v23  ;;  %v11764_v40 = vsel %vm304_vm2, %v4515_v48, %v4519_v14  ;;  %v6192_v14 = vor.u32 %v6191_v52, %v6187_v33 }
 0x18e   : > { %9480 = vmatpush3.bf16.msra.mxu0 %v11530_v13  ;;  %9451 = vmatprep.mubr.msk.bf16.mxu0 %vm446_vm1, %v4480_v53  ;;  %v11704_v13 = vld [vmem:[%s10418_s26 + $0x160] sm:$0xff]   ;;  %v6210_v53 = vshll.u32 %v11695_v16, 16  ;;  %12386 = vst [vmem:[#allocation15_spill] sm:$0xff] %v11750_v29  ;;  %v6603_v33 = vrot.slane %v11781_v49, 1 }
 0x18f   : > { %9572 = vmatmul.mubr.msk.bf16.gmra.mrb[56].mxu1 %vm446_vm1, %v11468_v59  ;;  %10103 = vmatprep.subr.msk.bf16.mxu0 %vm495_vm0, %v10281_v18  ;;  %12383 = vst [vmem:[#allocation12_spill] sm:$0xff] %v11704_v13  ;;  %v11718_v59 = vsel %vm304_vm2, %v4499_v11, %v4503_v61  ;;  %v6601_v61 = vrot.slane %v11725_v1, 1  ;;  %v6196_v18 = vrot.slane %v6194_v63, 1  ;;  %v6198_v11 = vshrl.u32 %v11682_v55, 16 }
 0x190   : > { %9575 = vmatprep.mubr.msk.bf16.mxu1 %vm446_vm1, %v11483_v32  ;;  %v4541_v32 = vshll.u32 %v11689_v3, 16  ;;  %v4533_v42 = vshll.u32 %v11704_v13, 16  ;;  %v6212_v54 = vrot.slane %v6210_v53, 1  ;;  %v6204_v3 = vrot.slane %v6202_v9, 1 }
 0x191   : > { %v11753_v63 = vsel %vm1378_vm3, %v6599_v23, %v6601_v61  ;;  %v6214_v23 = vshrl.u32 %v11695_v16, 16  ;;  %v11775_v48 = vsel %vm304_vm2, %v4523_v21, %v4527_v36  ;;  %v6200_v53 = vor.u32 %v6198_v11, %v6196_v18  ;;  %v11778_v16 = vld [vmem:[%s10418_s26 + $0x180] sm:$0xff]  }
 0x192   : > { %9482 = vmatpush3.bf16.msra.mxu0 %v4936_v12  ;;  %12387 = vst [vmem:[#allocation16_spill] sm:$0xff] %v11753_v63  ;;  %v4537_v12 = vshrl.u32 %v11704_v13, 16  ;;  %v4543_v58 = vrot.slane %v4541_v32, 1  ;;  %v4535_v32 = vrot.slane %v4533_v42, 1  ;;  %v6218_v63 = vshll.u32 %v11742_v45, 16 }
 0x193   : > { %9659 = vmatprep.subr.bf16.mxu0 %v11713_v50  ;;  %v4531_v29 = vor.u32 %v4529_v57, %v4527_v36  ;;  %v6208_v9 = vor.u32 %v6206_v60, %v6204_v3  ;;  %v6226_v55 = vshll.u32 %v11760_v19, 16  ;;  %v4553_v11 = vshrl.u32 %v11734_v41, 16 }
 0x194   : > { %v4539_v42 = vor.u32 %v4537_v12, %v4535_v32  ;;  %v4547_v13 = vor.u32 %v4545_v35, %v4543_v58  ;;  %v6220_v36 = vrot.slane %v6218_v63, 1  ;;  %v6222_v57 = vshrl.u32 %v11742_v45, 16  ;;  %v11799_v12 = vld [vmem:[%s10418_s26 + $0x188] sm:$0xff]  }
 0x195   : > { %9452 = vmatmul.mubr.msk.bf16.gmra.mrb[36].mxu0 %vm446_vm1, %v4488_v10  ;;  %v4549_v10 = vshll.u32 %v11734_v41, 16  ;;  %v4561_v35 = vshrl.u32 %v11745_v22, 16  ;;  %v4565_v60 = vshll.u32 %v11778_v16, 16  ;;  %v11810_v41 = vsel %vm304_vm2, %v6192_v14, %v6196_v18 }
 0x196   : > { %9455 = vmatprep.mubr.msk.bf16.mxu0 %vm446_vm1, %v4496_v37  ;;  %v4557_v37 = vshll.u32 %v11745_v22, 16  ;;  %v11813_v45 = vsel %vm304_vm2, %v4531_v29, %v4535_v32  ;;  %v6228_v63 = vrot.slane %v6226_v55, 1  ;;  %v11817_v22 = vld [vmem:[%s10418_s26 + $0x208] sm:$0xff]   ;;  %v11828_v18 = vsel %vm304_vm2, %v6208_v9, %v6212_v54 }
 0x197   : > { %9576 = vmatmul.mubr.msk.bf16.gmra.mrb[60].mxu1 %vm446_vm1, %v11487_v62  ;;  %v11784_v62 = vld [vmem:[%s10418_s26 + $0x200] sm:$0xff]   ;;  %v4551_v26 = vrot.slane %v4549_v10, 1  ;;  %v11802_v10 = vsel %vm1378_vm3, %v6601_v61, %v6603_v33  ;;  %v11822_v61 = vsel %vm304_vm2, %v6200_v53, %v6204_v3  ;;  %v6234_v29 = vshll.u32 %v11788_v7, 16  ;;  %v11832_v55 = vld [vmem:[%s10418_s26 + $0x1c8] sm:$0xff]  }
 0x198   : > { %9579 = vmatprep.mubr.msk.bf16.mxu1 %vm446_vm1, %v11501_v0  ;;  %v6216_v0 = vor.u32 %v6214_v23, %v6212_v54  ;;  %v6605_v52 = vrot.slane %v11784_v62, 1  ;;  %v11793_v21 = vrot.slane %v4557_v37, 1  ;;  %12389 = vst [vmem:[#allocation18_spill] sm:$0xff] %v11802_v10  ;;  %v6230_v37 = vshrl.u32 %v11760_v19, 16 }
 0x199   : > { %v11843_v3 = vld [vmem:[%s10418_s26 + $0x210] ss:$0 sps:$4 sm:$0x11]   ;;  %v6607_v54 = vrot.slane %v11817_v22, 1  ;;  %v6224_v53 = vor.u32 %v6222_v57, %v6220_v36  ;;  %v4567_v9 = vrot.slane %v4565_v60, 1  ;;  %v6236_v57 = vrot.slane %v6234_v29, 1 }
 0x19a   : > { %v11805_v23 = vsel %vm1378_vm3, %v6603_v33, %v6605_v52  ;;  %v11840_v32 = vsel %vm304_vm2, %v6216_v0, %v6220_v36  ;;  %v4569_v19 = vshrl.u32 %v11778_v16, 16  ;;  %v4577_v16 = vshrl.u32 %v11799_v12, 16 }
 0x19b   : > { %12390 = vst [vmem:[#allocation19_spill] sm:$0xff] %v11805_v23  ;;  %v6609_v23 = vrot.slane %v11843_v3, 1 }
 0x19d   : > { %9456 = vmatmul.mubr.msk.bf16.gmra.mrb[40].mxu0 %vm446_vm1, %v11718_v59  ;;  %v11825_v59 = vsel %vm304_vm2, %v4539_v42, %v4543_v58  ;;  %v4555_v58 = vor.u32 %v4553_v11, %v4551_v26  ;;  %v4563_v42 = vor.u32 %v4561_v35, %v11793_v21  ;;  %v11855_v11 = vsel %vm1378_vm3, %v6605_v52, %v6607_v54 }
 0x19e   : > { %9459 = vmatprep.mubr.msk.bf16.mxu0 %vm446_vm1, %v11728_v24  ;;  %v11837_v24 = vsel %vm304_vm2, %v4547_v13, %v4551_v26  ;;  %v11851_v13 = vld [vmem:[%s10418_s26 + $0x190] ss:$0 sps:$4 sm:$0x11]   ;;  %v6232_v26 = vor.u32 %v6230_v37, %v6228_v63  ;;  %12391 = vst [vmem:[#allocation20_spill] sm:$0xff] %v11855_v11  ;;  %v6242_v35 = vshll.u32 %v11832_v55, 16  ;;  %v6238_v52 = vshrl.u32 %v11788_v7, 16 }
 0x19f   : > { %9580 = vmatmul.mubr.msk.bf16.gmra.mrb[64].mxu1 %vm446_vm1, %v11505_v17  ;;  %v4573_v17 = vshll.u32 %v11799_v12, 16  ;;  %v11862_v11 = vld [vmem:[%s10418_s26 + $0x1d0] sm:$0xff]   ;;  %v11873_v8 = vsel %vm1378_vm3, %v6607_v54, %v6609_v23  ;;  %v11886_v23 = vsel %vm304_vm2, %v6224_v53, %v6228_v63 }
 0x1a0   : > { %v9197_v14 = vpop.f32.mrb[0].mxu0  ;;  %9583 = vmatprep.mubr.msk.bf16.mxu1 %vm446_vm1, %v11523_v20  ;;  %v6244_v54 = vrot.slane %v6242_v35, 1  ;;  %v11898_v63 = vsel %vm304_vm2, %v6232_v26, %v6236_v57  ;;  %v4838_v53 = vld [vmem:[%s10418_s26 + $0x110] sm:$0xe] }
 0x1a1   : > { %v1699_v33 = vmul.f32 0.2, %v9197_v14  ;;  %v1506_v0 = vpop.f32.mrb[1].mxu0  ;;  %vm1667_vm4 = vcmp.ge.f32.partialorder %v9197_v14, 0.0  ;;  %v4575_v46 = vrot.slane %v4573_v17, 1  ;;  %v8015_v26 = vcombine.low %v4838_v53, %v11581_v56 }
 0x1a2   : > { %v1697_v20 = vmul.f32 0.2, %v1506_v0  ;;  %v9198_v36 = vpop.f32.mrb[2].mxu0  ;;  %vm1665_vm5 = vcmp.ge.f32.partialorder %v1506_v0, 0.0  ;;  %v6266_v56 = vshll.u32 %v11649_v43, 16 }
 0x1a3   : > { %vm1668_vm6 = vcmp.ge.f32.partialorder %v9198_v36, 0.0  ;;  %v1700_v60 = vmul.f32 0.2, %v9198_v36  ;;  %v1509_v10 = vpop.f32.mrb[3].mxu0  ;;  %v1731_v44 = vsel %vm1667_vm4, %v9197_v14, %v1699_v33  ;;  %v4581_v33 = vshll.u32 %v11851_v13, 16 }
 0x1a4   : > { %vm1666_vm7 = vcmp.ge.f32.partialorder %v1509_v10, 0.0  ;;  %v1698_v37 = vmul.f32 0.2, %v1509_v10  ;;  %v1729_v7 = vsel %vm1665_vm5, %v1506_v0, %v1697_v20  ;;  %v6250_v0 = vshll.u32 %v11862_v11, 16 }
 0x1a5   : > { %v1732_v29 = vsel %vm1668_vm6, %v9198_v36, %v1700_v60  ;;  %9460 = vmatmul.mubr.msk.bf16.gmra.mrb[44].mxu0 %vm446_vm1, %v11764_v40  ;;  %v11883_v40 = vsel %vm304_vm2, %v4555_v58, %v11793_v21  ;;  %v6258_v20 = vshll.u32 %v11640_v28, 16 }
 0x1a6   : > { %v8392_v17 = vpack.c.bf16 %v1732_v29, %v1731_v44  ;;  %v1730_v14 = vsel %vm1666_vm7, %v1509_v10, %v1698_v37  ;;  %9463 = vmatprep.mubr.msk.bf16.mxu0 %vm446_vm1, %v11775_v48  ;;  %v4571_v44 = vor.u32 %v4569_v19, %v4567_v9  ;;  %v11892_v48 = vsel %vm304_vm2, %v4563_v42, %v4567_v9 }
 0x1a7   : > { %v8387_v25 = vpack.c.bf16 %v1730_v14, %v1729_v7  ;;  %9584 = vmatmul.mubr.msk.bf16.gmra.mrb[68].mxu1 %vm446_vm1, %v11534_v27  ;;  %v6246_v27 = vshrl.u32 %v11832_v55, 16  ;;  %v6240_v19 = vor.u32 %v6238_v52, %v6236_v57  ;;  %v4579_v42 = vor.u32 %v4577_v16, %v4575_v46 }
 0x1a8   : > { %8714 = vst [vmem:[%s11867_s13 + $0x8] sm:$0xff] %v8392_v17   ;;  %v9201_v10 = vpop.f32.mrb[4].mxu0  ;;  %9591 = vmatprep.mubr.msk.bf16.mxu1 %vm446_vm1, %v11810_v41  ;;  %v4583_v9 = vrot.slane %v4581_v33, 1  ;;  %v6254_v57 = vshrl.u32 %v11862_v11, 16  ;;  %v6260_v16 = vrot.slane %v6258_v20, 1  ;;  %v6262_v7 = vshrl.u32 %v11640_v28, 16 }
 0x1a9   : > { %8388 = vst [vmem:[%s11867_s13] sm:$0xff] %v8387_v25   ;;  %v1703_v21 = vmul.f32 0.2, %v9201_v10  ;;  %v1522_v58 = vpop.f32.mrb[5].mxu0  ;;  %vm1671_vm8 = vcmp.ge.f32.partialorder %v9201_v10, 0.0  ;;  %v11903_v25 = vsel %vm304_vm2, %v4571_v44, %v4575_v46  ;;  %v10305_v46 = vld [vmem:[%s12329_s1 + $0x2c] ss:$0 sps:$4 sm:$0xff]  }
 0x1aa   : > { %v1701_v41 = vmul.f32 0.2, %v1522_v58  ;;  %v9202_v36 = vpop.f32.mrb[6].mxu0  ;;  %vm1669_vm9 = vcmp.ge.f32.partialorder %v1522_v58, 0.0  ;;  %v4846_v20 = vrot.slane %v11599_v31, 1 }
 0x1ab   : > { %vm1672_vm10 = vcmp.ge.f32.partialorder %v9202_v36, 0.0  ;;  %v1704_v35 = vmul.f32 0.2, %v9202_v36  ;;  %v1525_v60 = vpop.f32.mrb[7].mxu0  ;;  %v1735_v52 = vsel %vm1671_vm8, %v9201_v10, %v1703_v21  ;;  %v6248_v10 = vor.u32 %v6246_v27, %v6244_v54 }
 0x1ac   : > { %vm1670_vm11 = vcmp.ge.f32.partialorder %v1525_v60, 0.0  ;;  %v1702_v37 = vmul.f32 0.2, %v1525_v60  ;;  %v1733_v17 = vsel %vm1669_vm9, %v1522_v58, %v1701_v41  ;;  %v6252_v21 = vrot.slane %v6250_v0, 1 }
 0x1ad   : > { %v1736_v29 = vsel %vm1672_vm10, %v9202_v36, %v1704_v35  ;;  %9464 = vmatmul.mubr.msk.bf16.gmra.mrb[48].mxu0 %vm446_vm1, %v11813_v45  ;;  %v11919_v45 = vsel %vm304_vm2, %v6240_v19, %v6244_v54  ;;  %v4845_v58 = vrot.slane %v8015_v26, 1  ;;  %v4848_v27 = vrot.slane %v11605_v47, 1 }
 0x1ae   : > { %v8402_v14 = vpack.c.bf16 %v1736_v29, %v1735_v52  ;;  %v1734_v33 = vsel %vm1670_vm11, %v1525_v60, %v1702_v37  ;;  %9467 = vmatprep.mubr.msk.bf16.mxu0 %vm446_vm1, %v11825_v59  ;;  %v11926_v59 = vsel %vm304_vm2, %v4579_v42, %v4583_v9  ;;  %v6256_v54 = vor.u32 %v6254_v57, %v6252_v21 }
 0x1af   : > { %v8397_v44 = vpack.c.bf16 %v1734_v33, %v1733_v17  ;;  %9592 = vmatmul.mubr.msk.bf16.vlgmr.msra.gmra.mrb[40].mxu1 %vm446_vm1, %v11822_v61  ;;  %v6274_v61 = vshll.u32 %v11722_v51, 16  ;;  %v6264_v36 = vor.u32 %v6262_v7, %v6260_v16  ;;  %v6268_v42 = vrot.slane %v6266_v56, 1 }
 0x1b0   : > { %8716 = vst [vmem:[%s11867_s13 + $0x18] sm:$0xff] %v8402_v14   ;;  %v9205_v53 = vpop.f32.mrb[8].mxu0  ;;  %9595 = vmatprep.mubr.msk.bf16.mxu1 %vm446_vm1, %v11828_v18  ;;  %9624 = vmatpush3.bf16.msra.mxu1 %v11588_v38  ;;  %v6669_v18 = vsel %vm495_vm0, %v10305_v46, 0  ;;  %v6270_v35 = vshrl.u32 %v11649_v43, 16  ;;  %v6278_v47 = vshrl.u32 %v11722_v51, 16  ;;  %v4850_v52 = vrot.slane %v11614_v4, 1 }
 0x1b1   : > { %8715 = vst [vmem:[%s11867_s13 + $0x10] sm:$0xff] %v8397_v44   ;;  %v1707_v19 = vmul.f32 0.2, %v9205_v53  ;;  %v1538_v41 = vpop.f32.mrb[9].mxu0  ;;  %10107 = vmatprep.subr.msk.bf16.mxu1 %vm495_vm0, %v10305_v46  ;;  %vm1675_vm12 = vcmp.ge.f32.partialorder %v9205_v53, 0.0  ;;  %v6276_v37 = vrot.slane %v6274_v61, 1  ;;  %v11946_v14 = vsel %vm304_vm2, %v6248_v10, %v6252_v21 }
 0x1b2   : > { %v1705_v38 = vmul.f32 0.2, %v1538_v41  ;;  %v9206_v0 = vpop.f32.mrb[10].mxu0  ;;  %vm1673_vm13 = vcmp.ge.f32.partialorder %v1538_v41, 0.0  ;;  %v6282_v29 = vshll.u32 %v11725_v1, 16  ;;  %v6290_v51 = vshll.u32 %v11781_v49, 16 }
 0x1b3   : > { %vm1676_vm14 = vcmp.ge.f32.partialorder %v9206_v0, 0.0  ;;  %v1708_v31 = vmul.f32 0.2, %v9206_v0  ;;  %v1541_v9 = vpop.f32.mrb[11].mxu0  ;;  %v1739_v26 = vsel %vm1675_vm12, %v9205_v53, %v1707_v19  ;;  %v11949_v4 = vsel %vm1378_vm3, %v4845_v58, %v4846_v20 }
 0x1b4   : > { %vm1674_vm15 = vcmp.ge.f32.partialorder %v1541_v9, 0.0  ;;  %v1706_v60 = vmul.f32 0.2, %v1541_v9  ;;  %9626 = vmatpush3.bf16.msra.mxu1 %v6669_v18  ;;  %v1737_v7 = vsel %vm1673_vm13, %v1538_v41, %v1705_v38  ;;  %v11961_v56 = vsel %vm304_vm2, %v6264_v36, %v6268_v42 }
 0x1b5   : > { %v1740_v57 = vsel %vm1676_vm14, %v9206_v0, %v1708_v31  ;;  %9468 = vmatmul.mubr.msk.bf16.gmra.mrb[52].mxu0 %vm446_vm1, %v11837_v24  ;;  %v11952_v24 = vsel %vm304_vm2, %v6256_v54, %v6260_v16  ;;  %v4852_v44 = vrot.slane %v11623_v2, 1  ;;  %v11966_v16 = vsel %vm1378_vm3, %v4848_v27, %v4850_v52 }
 0x1b6   : > { %v8412_v46 = vpack.c.bf16 %v1740_v57, %v1739_v26  ;;  %v1738_v43 = vsel %vm1674_vm15, %v1541_v9, %v1706_v60  ;;  %9471 = vmatprep.mubr.msk.bf16.mxu0 %vm446_vm1, %v11883_v40  ;;  %v11958_v40 = vsel %vm1378_vm3, %v4846_v20, %v4848_v27  ;;  %v6280_v53 = vor.u32 %v6278_v47, %v6276_v37 }
 0x1b7   : > { %v8407_v17 = vpack.c.bf16 %v1738_v43, %v1737_v7  ;;  %9596 = vmatmul.mubr.msk.bf16.gmra.mrb[44].mxu1 %vm446_vm1, %v11840_v32  ;;  %v6272_v32 = vor.u32 %v6270_v35, %v6268_v42  ;;  %v6284_v58 = vrot.slane %v6282_v29, 1  ;;  %v6286_v20 = vshrl.u32 %v11725_v1, 16 }
 0x1b8   : > { %8718 = vst [vmem:[%s11867_s13 + $0x28] sm:$0xff] %v8412_v46   ;;  %v9209_v33 = vpop.f32.mrb[12].mxu0  ;;  %9599 = vmatprep.mubr.msk.bf16.mxu1 %vm446_vm1, %v11886_v23  ;;  %v6292_v19 = vrot.slane %v6290_v51, 1  ;;  %v6294_v2 = vshrl.u32 %v11781_v49, 16  ;;  %v4854_v38 = vrot.slane %v11620_v6, 1  ;;  %v6298_v27 = vshll.u32 %v11784_v62, 16 }
 0x1b9   : > { %8717 = vst [vmem:[%s11867_s13 + $0x20] sm:$0xff] %v8407_v17   ;;  %v1711_v10 = vmul.f32 0.2, %v9209_v33  ;;  %v1554_v21 = vpop.f32.mrb[13].mxu0  ;;  %vm1679_vm4 = vcmp.ge.f32.partialorder %v9209_v33, 0.0  ;;  %v11975_v1 = vsel %vm304_vm2, %v6272_v32, %v6276_v37  ;;  %v6306_v42 = vshll.u32 %v11817_v22, 16 }
 0x1ba   : > { %v1709_v61 = vmul.f32 0.2, %v1554_v21  ;;  %v9210_v23 = vpop.f32.mrb[14].mxu0  ;;  %vm1677_vm5 = vcmp.ge.f32.partialorder %v1554_v21, 0.0  ;;  %v6288_v6 = vor.u32 %v6286_v20, %v6284_v58  ;;  %v11983_v60 = vsel %vm1378_vm3, %v4850_v52, %v4852_v44 }
 0x1bb   : > { %vm1680_vm6 = vcmp.ge.f32.partialorder %v9210_v23, 0.0  ;;  %v1712_v41 = vmul.f32 0.2, %v9210_v23  ;;  %v1557_v54 = vpop.f32.mrb[15].mxu0  ;;  %v1743_v0 = vsel %vm1679_vm4, %v9209_v33, %v1711_v10  ;;  %v4856_v37 = vrot.slane %v11630_v30, 1 }
 0x1bc   : > { %vm1678_vm7 = vcmp.ge.f32.partialorder %v1557_v54, 0.0  ;;  %v1710_v18 = vmul.f32 0.2, %v1557_v54  ;;  %v1741_v31 = vsel %vm1677_vm5, %v1554_v21, %v1709_v61  ;;  %v6296_v26 = vor.u32 %v6294_v2, %v6292_v19 }
 0x1bd   : > { %v1744_v36 = vsel %vm1680_vm6, %v9210_v23, %v1712_v41  ;;  %9472 = vmatmul.mubr.msk.bf16.gmra.mrb[56].mxu0 %vm446_vm1, %v11892_v48  ;;  %v11986_v48 = vsel %vm304_vm2, %v6280_v53, %v6284_v58  ;;  %v11995_v57 = vrot.slane %v6298_v27, 1  ;;  %v11999_v7 = vrot.slane %v6306_v42, 1 }
 0x1be   : > { %v8422_v9 = vpack.c.bf16 %v1744_v36, %v1743_v0  ;;  %v1742_v49 = vsel %vm1678_vm7, %v1557_v54, %v1710_v18  ;;  %9475 = vmatprep.mubr.msk.bf16.mxu0 %vm446_vm1, %v11903_v25  ;;  %v11993_v25 = vsel %vm1378_vm3, %v4852_v44, %v4854_v38  ;;  %v6310_v46 = vshrl.u32 %v11817_v22, 16 }
 0x1bf   : > { %v8417_v35 = vpack.c.bf16 %v1742_v49, %v1741_v31  ;;  %9600 = vmatmul.mubr.msk.bf16.gmra.mrb[48].mxu1 %vm446_vm1, %v11898_v63  ;;  %v6302_v63 = vshrl.u32 %v11784_v62, 16  ;;  %v6314_v43 = vshll.u32 %v11843_v3, 16  ;;  %v12004_v33 = vsel %vm304_vm2, %v6288_v6, %v6292_v19 }
 0x1c0   : > { %8720 = vst [vmem:[%s11867_s13 + $0x38] sm:$0xff] %v8422_v9   ;;  %v9213_v47 = vpop.f32.mrb[16].mxu0  ;;  %9603 = vmatprep.mubr.msk.bf16.mxu1 %vm446_vm1, %v11919_v45  ;;  %v4858_v32 = vrot.slane %v11634_v39, 1  ;;  %v12010_v53 = vsel %vm1378_vm3, %v4854_v38, %v4856_v37  ;;  %v12014_v20 = vsel %vm304_vm2, %v6296_v26, %v11995_v57  ;;  %v10311_v38 = vld [vmem:[%s12329_s1 + $0x14] ss:$0 sps:$4 sm:$0xff]  }
 0x1c1   : > { %8719 = vst [vmem:[%s11867_s13 + $0x30] sm:$0xff] %v8417_v35   ;;  %v1715_v52 = vmul.f32 0.2, %v9213_v47  ;;  %v1570_v29 = vpop.f32.mrb[17].mxu0  ;;  %vm1683_vm8 = vcmp.ge.f32.partialorder %v9213_v47, 0.0  ;;  %v12393_v39 = vld [vmem:[#allocation8_spill] sm:$0xff] }
 0x1c2   : > { %v9341_v51 = vpop.f32.mrb[8].mxu1  ;;  %v1713_v45 = vmul.f32 0.2, %v1570_v29  ;;  %v9214_v17 = vpop.f32.mrb[18].mxu0  ;;  %vm1681_vm9 = vcmp.ge.f32.partialorder %v1570_v29, 0.0  ;;  %v12078_v3 = vsel %vm1378_vm3, %v4856_v37, %v4858_v32 }
 0x1c3   : > { %v3432_v44 = vmul.f32 0.2, %v9341_v51  ;;  %v3239_v10 = vpop.f32.mrb[9].mxu1  ;;  %vm1684_vm10 = vcmp.ge.f32.partialorder %v9214_v17, 0.0  ;;  %v1573_v21 = vpop.f32.mrb[19].mxu0  ;;  %vm3400_vm11 = vcmp.ge.f32.partialorder %v9341_v51, 0.0  ;;  %v1747_v19 = vsel %vm1683_vm8, %v9213_v47, %v1715_v52 }
 0x1c4   : > { %v3430_v58 = vmul.f32 0.2, %v3239_v10  ;;  %v1716_v61 = vmul.f32 0.2, %v9214_v17  ;;  %v9342_v23 = vpop.f32.mrb[10].mxu1  ;;  %vm1682_vm13 = vcmp.ge.f32.partialorder %v1573_v21, 0.0 }
 0x1c5   : > { %vm3401_vm12 = vcmp.ge.f32.partialorder %v9342_v23, 0.0  ;;  %v3433_v41 = vmul.f32 0.2, %v9342_v23  ;;  %v3242_v54 = vpop.f32.mrb[11].mxu1  ;;  %9476 = vmatmul.mubr.msk.bf16.gmra.mrb[60].mxu0 %vm446_vm1, %v11926_v59  ;;  %vm3398_vm14 = vcmp.ge.f32.partialorder %v3239_v10, 0.0  ;;  %v3464_v27 = vsel %vm3400_vm11, %v9341_v51, %v3432_v44 }
 0x1c6   : > { %v1748_v2 = vsel %vm1684_vm10, %v9214_v17, %v1716_v61  ;;  %v1714_v18 = vmul.f32 0.2, %v1573_v21  ;;  %vm3399_vm15 = vcmp.ge.f32.partialorder %v3242_v54, 0.0  ;;  %9483 = vmatprep.mubr.msk.bf16.mxu0 %vm446_vm1, %v11949_v4  ;;  %v3431_v42 = vmul.f32 0.2, %v3242_v54 }
 0x1c7   : > { %v8432_v0 = vpack.c.bf16 %v1748_v2, %v1747_v19  ;;  %v3465_v36 = vsel %vm3401_vm12, %v9342_v23, %v3433_v41  ;;  %9604 = vmatmul.mubr.msk.bf16.gmra.mrb[52].mxu1 %vm446_vm1, %v11946_v14  ;;  %v1745_v59 = vsel %vm1681_vm9, %v1570_v29, %v1713_v45  ;;  %v4860_v4 = vrot.slane %v11661_v15, 1 }
 0x1c8   : > { %v8472_v31 = vpack.c.bf16 %v3465_v36, %v3464_v27  ;;  %v1746_v9 = vsel %vm1682_vm13, %v1573_v21, %v1714_v18  ;;  %v9217_v49 = vpop.f32.mrb[20].mxu0  ;;  %9607 = vmatprep.mubr.msk.bf16.mxu1 %vm446_vm1, %v11952_v24  ;;  %v3462_v6 = vsel %vm3398_vm14, %v3239_v10, %v3430_v58  ;;  %v3463_v47 = vsel %vm3399_vm15, %v3242_v54, %v3431_v42 }
 0x1c9   : > { %8722 = vst [vmem:[%s11867_s13 + $0x48] sm:$0xff] %v8432_v0   ;;  %v8427_v35 = vpack.c.bf16 %v1746_v9, %v1745_v59  ;;  %v1719_v26 = vmul.f32 0.2, %v9217_v49  ;;  %v1586_v14 = vpop.f32.mrb[21].mxu0  ;;  %v8467_v52 = vpack.c.bf16 %v3463_v47, %v3462_v6  ;;  %vm1687_vm4 = vcmp.ge.f32.partialorder %v9217_v49, 0.0 }
 0x1ca   : > { %8730 = vst [vmem:[%s11867_s13 + $0x88] sm:$0xff] %v8472_v31   ;;  %v9345_v29 = vpop.f32.mrb[12].mxu1  ;;  %v1717_v51 = vmul.f32 0.2, %v1586_v14  ;;  %v9218_v45 = vpop.f32.mrb[22].mxu0  ;;  %v7180_v17 = vsel %vm495_vm0, %v10311_v38, 0  ;;  %v6304_v21 = vor.u32 %v6302_v63, %v11995_v57  ;;  %v6312_v19 = vor.u32 %v6310_v46, %v11999_v7 }
 0x1cb   : > { %8721 = vst [vmem:[%s11867_s13 + $0x40] sm:$0xff] %v8427_v35   ;;  %v3436_v24 = vmul.f32 0.2, %v9345_v29  ;;  %vm1685_vm5 = vcmp.ge.f32.partialorder %v1586_v14, 0.0  ;;  %v3255_v44 = vpop.f32.mrb[13].mxu1  ;;  %vm1688_vm6 = vcmp.ge.f32.partialorder %v9218_v45, 0.0  ;;  %v1751_v41 = vsel %vm1687_vm4, %v9217_v49, %v1719_v26 }
 0x1cc   : > { %v1589_v10 = vpop.f32.mrb[23].mxu0  ;;  %8729 = vst [vmem:[%s11867_s13 + $0x80] sm:$0xff] %v8467_v52   ;;  %vm3404_vm7 = vcmp.ge.f32.partialorder %v9345_v29, 0.0  ;;  %v3434_v58 = vmul.f32 0.2, %v3255_v44  ;;  %v9346_v23 = vpop.f32.mrb[14].mxu1 }
 0x1cd   : > { %v1720_v61 = vmul.f32 0.2, %v9218_v45  ;;  %vm3405_vm8 = vcmp.ge.f32.partialorder %v9346_v23, 0.0  ;;  %v3437_v54 = vmul.f32 0.2, %v9346_v23  ;;  %vm1686_vm9 = vcmp.ge.f32.partialorder %v1589_v10, 0.0  ;;  %9484 = vmatmul.mubr.msk.bf16.vlgmr.msra.gmra.mrb[32].mxu0 %vm446_vm1, %v11958_v40 }
 0x1ce   : > { %v3258_v2 = vpop.f32.mrb[15].mxu1  ;;  %vm3402_vm10 = vcmp.ge.f32.partialorder %v3255_v44, 0.0  ;;  %v1718_v57 = vmul.f32 0.2, %v1589_v10  ;;  %9660 = vmatpush3.bf16.msra.mxu0 %v11713_v50  ;;  %9487 = vmatprep.mubr.msk.bf16.mxu0 %vm446_vm1, %v11966_v16  ;;  %v3468_v22 = vsel %vm3404_vm7, %v9345_v29, %v3436_v24  ;;  %v12059_v40 = vld [vmem:[%s12329_s1] sm:$0xff]   ;;  %v1749_v50 = vsel %vm1685_vm5, %v1586_v14, %v1717_v51 }
 0x1cf   : > { %v1752_v62 = vsel %vm1688_vm6, %v9218_v45, %v1720_v61  ;;  %vm3403_vm11 = vcmp.ge.f32.partialorder %v3258_v2, 0.0  ;;  %v3469_v46 = vsel %vm3405_vm8, %v9346_v23, %v3437_v54  ;;  %v3435_v18 = vmul.f32 0.2, %v3258_v2  ;;  %9608 = vmatmul.mubr.msk.bf16.gmra.mrb[56].mxu1 %vm446_vm1, %v11961_v56  ;;  %10108 = vmatprep.subr.msk.bf16.mxu0 %vm495_vm0, %v10311_v38 }
 0x1d0   : > { %v8442_v63 = vpack.c.bf16 %v1752_v62, %v1751_v41  ;;  %v8482_v27 = vpack.c.bf16 %v3469_v46, %v3468_v22  ;;  %v1750_v16 = vsel %vm1686_vm9, %v1589_v10, %v1718_v57  ;;  %v9221_v0 = vpop.f32.mrb[24].mxu0  ;;  %9611 = vmatprep.mubr.msk.bf16.mxu1 %vm446_vm1, %v11975_v1  ;;  %v6316_v56 = vrot.slane %v6314_v43, 1 }
 0x1d1   : > { %v3466_v38 = vsel %vm3402_vm10, %v3255_v44, %v3434_v58  ;;  %v8437_v36 = vpack.c.bf16 %v1750_v16, %v1749_v50  ;;  %v3467_v42 = vsel %vm3403_vm11, %v3258_v2, %v3435_v18  ;;  %v9695_v59 = vadd.f32 %v9221_v0, %v11232_v5  ;;  %v1602_v31 = vpop.f32.mrb[25].mxu0  ;;  %v6571_v5 = vld [vmem:[%s10418_s26 + $0x190] sm:$0xe]  ;;  %v12396_v18 = vld [vmem:[#allocation6_spill] sm:$0xff] }
 0x1d2   : > { %8724 = vst [vmem:[%s11867_s13 + $0x58] sm:$0xff] %v8442_v63   ;;  %8732 = vst [vmem:[%s11867_s13 + $0x98] sm:$0xff] %v8482_v27   ;;  %v8477_v9 = vpack.c.bf16 %v3467_v42, %v3466_v38  ;;  %v9349_v49 = vpop.f32.mrb[16].mxu1  ;;  %v9696_v6 = vadd.f32 %v1602_v31, %v11234_v34  ;;  %v9222_v1 = vpop.f32.mrb[26].mxu0  ;;  %v12082_v43 = vsel %vm304_vm2, %v6304_v21, %v11999_v7  ;;  %9662 = vmatpush3.bf16.msra.mxu0 %v7180_v17  ;;  %v12392_v7 = vld [vmem:[#allocation2_spill] sm:$0xff]  ;;  %v12394_v21 = vld [vmem:[#allocation4_spill] sm:$0xff] }
 0x1d3   : > { %8723 = vst [vmem:[%s11867_s13 + $0x50] sm:$0xff] %v8437_v36   ;;  %vm1691_vm12 = vcmp.ge.f32.partialorder %v9695_v59, 0.0  ;;  %v1723_v35 = vmul.f32 0.2, %v9695_v59  ;;  %v3440_v47 = vmul.f32 0.2, %v9349_v49  ;;  %v12091_v34 = vsel %vm1378_vm3, %v4858_v32, %v4860_v4  ;;  %9667 = vmatprep.subr.bf16.mxu0 %v12059_v40 }
 0x1d4   : > { %8731 = vst [vmem:[%s11867_s13 + $0x90] sm:$0xff] %v8477_v9   ;;  %vm3408_vm13 = vcmp.ge.f32.partialorder %v9349_v49, 0.0  ;;  %v1721_v30 = vmul.f32 0.2, %v9696_v6  ;;  %v3271_v37 = vpop.f32.mrb[17].mxu1  ;;  %v9697_v26 = vadd.f32 %v9222_v1, %v12392_v7  ;;  %v1605_v14 = vpop.f32.mrb[27].mxu0  ;;  %v12097_v52 = vsel %vm304_vm2, %v6312_v19, %v6316_v56 }
 0x1d5   : > { %vm1689_vm14 = vcmp.ge.f32.partialorder %v9696_v6, 0.0  ;;  %vm3406_vm15 = vcmp.ge.f32.partialorder %v3271_v37, 0.0  ;;  %v3438_v29 = vmul.f32 0.2, %v3271_v37  ;;  %v9350_v51 = vpop.f32.mrb[18].mxu1  ;;  %9488 = vmatmul.mubr.msk.bf16.gmra.mrb[36].mxu0 %vm446_vm1, %v11983_v60  ;;  %v8163_v32 = vcombine.low %v6571_v5, %v12393_v39 }
 0x1d6   : > { %v1755_v45 = vsel %vm1691_vm12, %v9695_v59, %v1723_v35  ;;  %vm1692_vm4 = vcmp.ge.f32.partialorder %v9697_v26, 0.0  ;;  %v1724_v17 = vmul.f32 0.2, %v9697_v26  ;;  %vm3409_vm5 = vcmp.ge.f32.partialorder %v9350_v51, 0.0  ;;  %v3274_v24 = vpop.f32.mrb[19].mxu1  ;;  %9491 = vmatprep.mubr.msk.bf16.mxu0 %vm446_vm1, %v11993_v25  ;;  %v12397_v59 = vld [vmem:[#allocation10_spill] sm:$0xff] }
 0x1d7   : > { %v3472_v44 = vsel %vm3408_vm13, %v9349_v49, %v3440_v47  ;;  %v3441_v10 = vmul.f32 0.2, %v9350_v51  ;;  %v9698_v58 = vadd.f32 %v1605_v14, %v12394_v21  ;;  %vm3407_vm6 = vcmp.ge.f32.partialorder %v3274_v24, 0.0  ;;  %9612 = vmatmul.mubr.msk.bf16.gmra.mrb[60].mxu1 %vm446_vm1, %v11986_v48  ;;  %v12395_v48 = vld [vmem:[#allocation3_spill] sm:$0xff] }
 0x1d8   : > { %v1753_v60 = vsel %vm1689_vm14, %v9696_v6, %v1721_v30  ;;  %v3470_v61 = vsel %vm3406_vm15, %v3271_v37, %v3438_v29  ;;  %v1756_v23 = vsel %vm1692_vm4, %v9697_v26, %v1724_v17  ;;  %v3439_v19 = vmul.f32 0.2, %v3274_v24  ;;  %v9225_v41 = vpop.f32.mrb[28].mxu0  ;;  %9615 = vmatprep.mubr.msk.bf16.mxu1 %vm446_vm1, %v12004_v33  ;;  %v12398_v49 = vld [vmem:[#allocation11_spill] sm:$0xff]  ;;  %v12399_v30 = vld [vmem:[#allocation5_spill] sm:$0xff] }
 0x1d9   : > { %v8452_v25 = vpack.c.bf16 %v1756_v23, %v1755_v45  ;;  %v3473_v54 = vsel %vm3409_vm5, %v9350_v51, %v3441_v10  ;;  %vm1690_vm7 = vcmp.ge.f32.partialorder %v9698_v58, 0.0  ;;  %v1722_v2 = vmul.f32 0.2, %v9698_v58  ;;  %v1618_v62 = vpop.f32.mrb[29].mxu0  ;;  %v12400_v14 = vld [vmem:[#allocation7_spill] sm:$0xff] }
 0x1da   : > { %v8492_v57 = vpack.c.bf16 %v3473_v54, %v3472_v44  ;;  %v3471_v22 = vsel %vm3407_vm6, %v3274_v24, %v3439_v19  ;;  %v9699_v63 = vadd.f32 %v9225_v41, %v12395_v48  ;;  %v9353_v46 = vpop.f32.mrb[20].mxu1  ;;  %v9700_v50 = vadd.f32 %v1618_v62, %v12396_v18  ;;  %v9226_v27 = vpop.f32.mrb[30].mxu0  ;;  %v12401_v62 = vld [vmem:[#allocation12_spill] sm:$0xff] }
 0x1db   : > { %8726 = vst [vmem:[%s11867_s13 + $0x68] sm:$0xff] %v8452_v25   ;;  %v1754_v16 = vsel %vm1690_vm7, %v9698_v58, %v1722_v2  ;;  %v8487_v0 = vpack.c.bf16 %v3471_v22, %v3470_v61  ;;  %vm3412_vm8 = vcmp.ge.f32.partialorder %v9353_v46, 0.0  ;;  %v3444_v33 = vmul.f32 0.2, %v9353_v46  ;;  %v3287_v56 = vpop.f32.mrb[21].mxu1  ;;  %v1621_v38 = vpop.f32.mrb[31].mxu0 }
 0x1dc   : > { %8734 = vst [vmem:[%s11867_s13 + $0xa8] sm:$0xff] %v8492_v57   ;;  %v8447_v36 = vpack.c.bf16 %v1754_v16, %v1753_v60  ;;  %v9354_v42 = vpop.f32.mrb[22].mxu1  ;;  %v4862_v31 = vrot.slane %v12397_v59, 1  ;;  %v6578_v9 = vrot.slane %v8163_v32, 1  ;;  %v6579_v6 = vrot.slane %v12398_v49, 1 }
 0x1dd   : > { %8733 = vst [vmem:[%s11867_s13 + $0xa0] sm:$0xff] %v8487_v0   ;;  %vm1695_vm9 = vcmp.ge.f32.partialorder %v9699_v63, 0.0  ;;  %v1727_v1 = vmul.f32 0.2, %v9699_v63  ;;  %v3476_v5 = vsel %vm3412_vm8, %v9353_v46, %v3444_v33  ;;  %vm1693_vm10 = vcmp.ge.f32.partialorder %v9700_v50, 0.0  ;;  %v3290_v35 = vpop.f32.mrb[23].mxu1  ;;  %9492 = vmatmul.mubr.msk.bf16.gmra.mrb[40].mxu0 %vm446_vm1, %v12010_v53 }
 0x1de   : > { %8725 = vst [vmem:[%s11867_s13 + $0x60] sm:$0xff] %v8447_v36   ;;  %v3442_v47 = vmul.f32 0.2, %v3287_v56  ;;  %v9701_v37 = vadd.f32 %v9226_v27, %v12399_v30  ;;  %vm3413_vm11 = vcmp.ge.f32.partialorder %v9354_v42, 0.0  ;;  %v3445_v7 = vmul.f32 0.2, %v9354_v42  ;;  %9495 = vmatprep.mubr.msk.bf16.mxu0 %vm446_vm1, %v12078_v3 }
 0x1df   : > { %v1725_v26 = vmul.f32 0.2, %v9700_v50  ;;  %vm3410_vm12 = vcmp.ge.f32.partialorder %v3287_v56, 0.0  ;;  %v9702_v29 = vadd.f32 %v1621_v38, %v12400_v14  ;;  %vm3411_vm13 = vcmp.ge.f32.partialorder %v3290_v35, 0.0  ;;  %9616 = vmatmul.mubr.msk.bf16.gmra.mrb[64].mxu1 %vm446_vm1, %v12014_v20  ;;  %v12402_v27 = vld [vmem:[#allocation13_spill] sm:$0xff]  ;;  %v10326_v33 = vld [vmem:[%s10418_s26 + $0x1a8] sm:$0xff]  }
 0x1e0   : > { %vm1696_vm14 = vcmp.ge.f32.partialorder %v9701_v37, 0.0  ;;  %v1728_v53 = vmul.f32 0.2, %v9701_v37  ;;  %v3477_v51 = vsel %vm3413_vm11, %v9354_v42, %v3445_v7  ;;  %v3443_v39 = vmul.f32 0.2, %v3290_v35  ;;  %9619 = vmatprep.mubr.msk.bf16.mxu1 %vm446_vm1, %v12082_v43 }
 0x1e1   : > { %v8502_v32 = vpack.c.bf16 %v3477_v51, %v3476_v5  ;;  %vm1694_vm15 = vcmp.ge.f32.partialorder %v9702_v29, 0.0  ;;  %v1726_v45 = vmul.f32 0.2, %v9702_v29  ;;  %v4863_v3 = vsel %vm1378_vm3, %v4860_v4, %v4862_v31 }
 0x1e2   : > { %v1759_v17 = vsel %vm1695_vm9, %v9699_v63, %v1727_v1  ;;  %v3474_v20 = vsel %vm3410_vm12, %v3287_v56, %v3442_v47  ;;  %v1760_v24 = vsel %vm1696_vm14, %v9701_v37, %v1728_v53  ;;  %v3475_v44 = vsel %vm3411_vm13, %v3290_v35, %v3443_v39  ;;  %v9357_v10 = vpop.f32.mrb[24].mxu1  ;;  %v10327_v37 = vld [vmem:[%s10418_s26 + $0x170] sm:$0xff]  }
 0x1e3   : > { %v1757_v21 = vsel %vm1693_vm10, %v9700_v50, %v1725_v26  ;;  %v8462_v43 = vpack.c.bf16 %v1760_v24, %v1759_v17  ;;  %8736 = vst [vmem:[%s11867_s13 + $0xb8] sm:$0xff] %v8502_v32   ;;  %v1758_v58 = vsel %vm1694_vm15, %v9702_v29, %v1726_v45  ;;  %v8497_v60 = vpack.c.bf16 %v3475_v44, %v3474_v20  ;;  %v3303_v61 = vpop.f32.mrb[25].mxu1  ;;  %v10328_v39 = vld [vmem:[%s10418_s26 + $0x1b0] sm:$0xff]  }
 0x1e4   : > { %v8457_v23 = vpack.c.bf16 %v1758_v58, %v1757_v21  ;;  %vm3416_vm4 = vcmp.ge.f32.partialorder %v9357_v10, 0.0  ;;  %v3448_v15 = vmul.f32 0.2, %v9357_v10  ;;  %v3446_v4 = vmul.f32 0.2, %v3303_v61  ;;  %v9358_v19 = vpop.f32.mrb[26].mxu1 }
 0x1e5   : > { %8728 = vst [vmem:[%s11867_s13 + $0x78] sm:$0xff] %v8462_v43   ;;  %8735 = vst [vmem:[%s11867_s13 + $0xb0] sm:$0xff] %v8497_v60   ;;  %vm3414_vm5 = vcmp.ge.f32.partialorder %v3303_v61, 0.0  ;;  %vm3417_vm6 = vcmp.ge.f32.partialorder %v9358_v19, 0.0  ;;  %v3449_v41 = vmul.f32 0.2, %v9358_v19  ;;  %9496 = vmatmul.mubr.msk.bf16.gmra.mrb[44].mxu0 %vm446_vm1, %v12091_v34  ;;  %v6580_v54 = vsel %vm1378_vm3, %v6578_v9, %v6579_v6 }
 0x1e6   : > { %v3306_v25 = vpop.f32.mrb[27].mxu1  ;;  %8727 = vst [vmem:[%s11867_s13 + $0x70] sm:$0xff] %v8457_v23   ;;  %9499 = vmatprep.mubr.msk.bf16.mxu0 %vm446_vm1, %v4863_v3  ;;  %v4864_v57 = vrot.slane %v12401_v62, 1  ;;  %v3480_v22 = vsel %vm3416_vm4, %v9357_v10, %v3448_v15  ;;  %v10325_v34 = vld [vmem:[%s10418_s26 + $0x168] sm:$0xff]   ;;  %v3478_v46 = vsel %vm3414_vm5, %v3303_v61, %v3446_v4  ;;  %v6581_v16 = vrot.slane %v12402_v27, 1  ;;  %v12404_v3 = vld [vmem:[#allocation17_spill] sm:$0xff] }
 0x1e7   : > { %vm3415_vm7 = vcmp.ge.f32.partialorder %v3306_v25, 0.0  ;;  %v3447_v2 = vmul.f32 0.2, %v3306_v25  ;;  %v3481_v48 = vsel %vm3417_vm6, %v9358_v19, %v3449_v41  ;;  %9620 = vmatmul.mubr.msk.bf16.gmra.mrb[68].mxu1 %vm446_vm1, %v12097_v52  ;;  %v4866_v63 = vrot.slane %v10325_v34, 1  ;;  %v12180_v43 = vld [vmem:[%s10418_s26 + $0x200] sm:$0xff]  }
 0x1e8   : > { %v8512_v18 = vpack.c.bf16 %v3481_v48, %v3480_v22  ;;  %9627 = vmatprep.mubr.msk.bf16.mxu1 %vm446_vm1, %v6580_v54  ;;  %v6583_v56 = vrot.slane %v10326_v33, 1  ;;  %v4865_v36 = vsel %vm1378_vm3, %v4862_v31, %v4864_v57  ;;  %v6582_v35 = vsel %vm1378_vm3, %v6579_v6, %v6581_v16  ;;  %v12403_v6 = vld [vmem:[#allocation14_spill] sm:$0xff] }
 0x1e9   : > { %v3479_v50 = vsel %vm3415_vm7, %v3306_v25, %v3447_v2  ;;  %v4867_v9 = vsel %vm1378_vm3, %v4864_v57, %v4866_v63  ;;  %v4868_v7 = vrot.slane %v10327_v37, 1  ;;  %v4870_v14 = vrot.slane %v12403_v6, 1  ;;  %v10329_v41 = vld [vmem:[%s10418_s26 + $0x180] sm:$0xff]   ;;  %v12191_v57 = vld [vmem:[%s10418_s26 + $0x208] sm:$0xff]  }
 0x1ea   : > { %v8507_v0 = vpack.c.bf16 %v3479_v50, %v3478_v46  ;;  %8738 = vst [vmem:[%s11867_s13 + $0xc8] sm:$0xff] %v8512_v18   ;;  %v9361_v38 = vpop.f32.mrb[28].mxu1  ;;  %v6584_v59 = vsel %vm1378_vm3, %v6581_v16, %v6583_v56  ;;  %v6585_v32 = vrot.slane %v10328_v39, 1  ;;  %v6587_v17 = vrot.slane %v12404_v3, 1  ;;  %v10330_v46 = vld [vmem:[%s10418_s26 + $0x1c0] sm:$0xff]  }
 0x1eb   : > { %v3452_v52 = vmul.f32 0.2, %v9361_v38  ;;  %v3319_v42 = vpop.f32.mrb[29].mxu1  ;;  %vm3420_vm8 = vcmp.ge.f32.partialorder %v9361_v38, 0.0  ;;  %v4869_v24 = vsel %vm1378_vm3, %v4866_v63, %v4868_v7  ;;  %v4871_v21 = vsel %vm1378_vm3, %v4868_v7, %v4870_v14  ;;  %v7296_v3 = vld [vmem:[%s10418_s26 + $0x210] sm:$0xf] }
 0x1ec   : > { %8737 = vst [vmem:[%s11867_s13 + $0xc0] sm:$0xff] %v8507_v0   ;;  %v3450_v1 = vmul.f32 0.2, %v3319_v42  ;;  %v9362_v5 = vpop.f32.mrb[30].mxu1  ;;  %vm3418_vm9 = vcmp.ge.f32.partialorder %v3319_v42, 0.0  ;;  %v6586_v61 = vsel %vm1378_vm3, %v6583_v56, %v6585_v32  ;;  %v6588_v4 = vsel %vm1378_vm3, %v6585_v32, %v6587_v17 }
 0x1ed   : > { %vm3421_vm10 = vcmp.ge.f32.partialorder %v9362_v5, 0.0  ;;  %v3453_v47 = vmul.f32 0.2, %v9362_v5  ;;  %v3322_v30 = vpop.f32.mrb[31].mxu1  ;;  %9500 = vmatmul.mubr.msk.bf16.gmra.mrb[48].mxu0 %vm446_vm1, %v4865_v36  ;;  %v3484_v49 = vsel %vm3420_vm8, %v9361_v38, %v3452_v52  ;;  %v4872_v25 = vrot.slane %v10329_v41, 1 }
 0x1ee   : > { %vm3419_vm11 = vcmp.ge.f32.partialorder %v3322_v30, 0.0  ;;  %v3451_v31 = vmul.f32 0.2, %v3322_v30  ;;  %9503 = vmatprep.mubr.msk.bf16.mxu0 %vm446_vm1, %v4867_v9  ;;  %v3482_v29 = vsel %vm3418_vm9, %v3319_v42, %v3450_v1  ;;  %v4874_v54 = vrot.slane %v11799_v12, 1 }
 0x1ef   : > { %v3485_v26 = vsel %vm3421_vm10, %v9362_v5, %v3453_v47  ;;  %9628 = vmatmul.mubr.msk.bf16.vlgmr.msra.gmra.mrb[40].mxu1 %vm446_vm1, %v6582_v35  ;;  %v7147_v22 = vshll.u32 %v12180_v43, 16  ;;  %v6589_v18 = vrot.slane %v10330_v46, 1  ;;  %v6591_v12 = vrot.slane %v11832_v55, 1 }
 0x1f0   : > { %v8522_v53 = vpack.c.bf16 %v3485_v26, %v3484_v49  ;;  %v3483_v51 = vsel %vm3419_vm11, %v3322_v30, %v3451_v31  ;;  %9631 = vmatprep.mubr.msk.bf16.mxu1 %vm446_vm1, %v6584_v59  ;;  %v4873_v16 = vsel %vm1378_vm3, %v4870_v14, %v4872_v25  ;;  %v4875_v0 = vsel %vm1378_vm3, %v4872_v25, %v4874_v54  ;;  %v10315_v59 = vld [vmem:[%s10418_s26 + $0x210] ss:$0 sps:$4 sm:$0x11]   ;;  %v12407_v25 = vld [vmem:[#allocation15_spill] sm:$0xff] }
 0x1f1   : > { %v8517_v45 = vpack.c.bf16 %v3483_v51, %v3482_v29  ;;  %v7145_v38 = vshrl.u32 %v12180_v43, 16  ;;  %v7149_v36 = vrot.slane %v7147_v22, 1  ;;  %v7152_v52 = vshll.u32 %v12191_v57, 16 }
 0x1f2   : > { %8740 = vst [vmem:[%s11867_s13 + $0xd8] sm:$0xff] %v8522_v53   ;;  %v9365_v20 = vpop.f32.mrb[32].mxu1  ;;  %v6590_v55 = vsel %vm1378_vm3, %v6587_v17, %v6589_v18  ;;  %v4876_v1 = vrot.slane %v11851_v13, 1  ;;  %v6592_v47 = vsel %vm1378_vm3, %v6589_v18, %v6591_v12  ;;  %v6593_v14 = vrot.slane %v11862_v11, 1  ;;  %v7297_v17 = vld [vmem:[%s10418_s26 + $0x214] sm:$0xf] }
 0x1f3   : > { %8739 = vst [vmem:[%s11867_s13 + $0xd0] sm:$0xff] %v8517_v45   ;;  %v3456_v44 = vmul.f32 0.2, %v9365_v20  ;;  %v3335_v10 = vpop.f32.mrb[33].mxu1  ;;  %vm3424_vm12 = vcmp.ge.f32.partialorder %v9365_v20, 0.0  ;;  %v7150_v13 = vor.u32 %v7149_v36, %v7145_v38  ;;  %v7154_v7 = vrot.slane %v7152_v52, 1 }
 0x1f4   : > { %v3454_v58 = vmul.f32 0.2, %v3335_v10  ;;  %v9366_v60 = vpop.f32.mrb[34].mxu1  ;;  %vm3422_vm13 = vcmp.ge.f32.partialorder %v3335_v10, 0.0  ;;  %v4877_v53 = vsel %vm1378_vm3, %v4874_v54, %v4876_v1  ;;  %v7156_v51 = vshrl.u32 %v12191_v57, 16 }
 0x1f5   : > { %vm3425_vm14 = vcmp.ge.f32.partialorder %v9366_v60, 0.0  ;;  %v3457_v23 = vmul.f32 0.2, %v9366_v60  ;;  %v3338_v15 = vpop.f32.mrb[35].mxu1  ;;  %9504 = vmatmul.mubr.msk.bf16.gmra.mrb[52].mxu0 %vm446_vm1, %v4869_v24  ;;  %v3488_v2 = vsel %vm3424_vm12, %v9365_v20, %v3456_v44  ;;  %v7160_v39 = vshll.u32 %v10315_v59, 16 }
 0x1f6   : > { %vm3423_vm15 = vcmp.ge.f32.partialorder %v3338_v15, 0.0  ;;  %v3455_v19 = vmul.f32 0.2, %v3338_v15  ;;  %9507 = vmatprep.mubr.msk.bf16.mxu0 %vm446_vm1, %v4871_v21  ;;  %v3486_v48 = vsel %vm3422_vm13, %v3335_v10, %v3454_v58  ;;  %v7155_v32 = vsel %vm304_vm2, %v7150_v13, %v7154_v7  ;;  %v10316_v58 = vld [vmem:[%s12329_s1 + $0x8] ss:$0 sps:$4 sm:$0xff]  }
 0x1f7   : > { %v3489_v62 = vsel %vm3425_vm14, %v9366_v60, %v3457_v23  ;;  %9632 = vmatmul.mubr.msk.bf16.gmra.mrb[44].mxu1 %vm446_vm1, %v6586_v61  ;;  %v6594_v45 = vsel %vm1378_vm3, %v6591_v12, %v6593_v14  ;;  %v12405_v20 = vrot.slane %v11640_v28, 1  ;;  %v7158_v24 = vor.u32 %v7156_v51, %v7154_v7  ;;  %v10320_v60 = vld [vmem:[%s10418_s26 + $0x218] sm:$0xff]   ;;  %v10322_v54 = vld [vmem:[%s10418_s26 + $0x220] ss:$0 sps:$4 sm:$0x11]  }
 0x1f8   : > { %v8532_v34 = vpack.c.bf16 %v3489_v62, %v3488_v2  ;;  %v3487_v63 = vsel %vm3423_vm15, %v3338_v15, %v3455_v19  ;;  %9635 = vmatprep.mubr.msk.bf16.mxu1 %vm446_vm1, %v6588_v4  ;;  %v7162_v44 = vrot.slane %v7160_v39, 1  ;;  %v8231_v10 = vcombine.low %v7296_v3, %v7297_v17  ;;  %v12406_v28 = vld [vmem:[#allocation9_spill] sm:$0xff]  ;;  %v12408_v2 = vld [vmem:[#allocation16_spill] sm:$0xff]  ;;  %v10318_v62 = vld [vmem:[%s12329_s1 + $0x20] ss:$0 sps:$4 sm:$0xff]  }
 0x1f9   : > { %v8527_v50 = vpack.c.bf16 %v3487_v63, %v3486_v48  ;;  %v6596_v11 = vsel %vm1378_vm3, %v6593_v14, %v12405_v20  ;;  %v7245_v23 = vsel %vm495_vm0, %v10316_v58, 0  ;;  %v10317_v15 = vld [vmem:[%s12329_s1 + $0x18] sm:$0xff]   ;;  %v7325_v41 = vshll.u32 %v10320_v60, 16  ;;  %v12409_v48 = vld [vmem:[#allocation18_spill] sm:$0xff]  ;;  %v10323_v36 = vld [vmem:[%s12329_s1 + $0x2c] ss:$0 sps:$4 sm:$0xff]  }
 0x1fa   : > { %8742 = vst [vmem:[%s11867_s13 + $0xe8] sm:$0xff] %v8532_v34   ;;  %v9369_v27 = vpop.f32.mrb[36].mxu1  ;;  %v7163_v21 = vsel %vm304_vm2, %v7158_v24, %v7162_v44  ;;  %v7320_v61 = vshll.u32 %v8231_v10, 16  ;;  %v7318_v4 = vshrl.u32 %v8231_v10, 16  ;;  %v7408_v34 = vld [vmem:[%s10418_s26 + $0x210] sm:$0xe] }
 0x1fb   : > { %8741 = vst [vmem:[%s11867_s13 + $0xe0] sm:$0xff] %v8527_v50   ;;  %v3460_v33 = vmul.f32 0.2, %v9369_v27  ;;  %v3351_v56 = vpop.f32.mrb[37].mxu1  ;;  %vm3428_vm4 = vcmp.ge.f32.partialorder %v9369_v27, 0.0  ;;  %v7329_v63 = vshrl.u32 %v10320_v60, 16  ;;  %v8241_v12 = vcombine.low %v7408_v34, %v7297_v17 }
 0x1fc   : > { %v3458_v42 = vmul.f32 0.2, %v3351_v56  ;;  %v9370_v9 = vpop.f32.mrb[38].mxu1  ;;  %vm3426_vm5 = vcmp.ge.f32.partialorder %v3351_v56, 0.0  ;;  %v7322_v19 = vrot.slane %v7320_v61, 1  ;;  %v7333_v46 = vshll.u32 %v10322_v54, 16 }
 0x1fd   : > { %vm3429_vm6 = vcmp.ge.f32.partialorder %v9370_v9, 0.0  ;;  %v3461_v5 = vmul.f32 0.2, %v9370_v9  ;;  %v3354_v35 = vpop.f32.mrb[39].mxu1  ;;  %9508 = vmatmul.mubr.msk.bf16.gmra.mrb[56].mxu0 %vm446_vm1, %v4873_v16  ;;  %v3492_v31 = vsel %vm3428_vm4, %v9369_v27, %v3460_v33  ;;  %v7353_v18 = vsel %vm495_vm0, %v10318_v62, 0  ;;  %v10321_v50 = vld [vmem:[%s12329_s1 + $0x24] sm:$0xff]  }
 0x1fe   : > { %vm3427_vm7 = vcmp.ge.f32.partialorder %v3354_v35, 0.0  ;;  %v3459_v30 = vmul.f32 0.2, %v3354_v35  ;;  %9511 = vmatprep.mubr.msk.bf16.mxu0 %vm446_vm1, %v4875_v0  ;;  %v3490_v49 = vsel %vm3426_vm5, %v3351_v56, %v3458_v42  ;;  %v7335_v16 = vrot.slane %v7333_v46, 1  ;;  %v12410_v0 = vld [vmem:[#allocation19_spill] sm:$0xff]  ;;  %v12411_v56 = vld [vmem:[#allocation20_spill] sm:$0xff] }
 0x1ff   : > { %v3493_v37 = vsel %vm3429_vm6, %v9370_v9, %v3461_v5  ;;  %9636 = vmatmul.mubr.msk.bf16.gmra.mrb[48].mxu1 %vm446_vm1, %v6590_v55  ;;  %v7416_v33 = vrot.slane %v10320_v60, 1  ;;  %v7436_v42 = vsel %vm495_vm0, %v10323_v36, 0  ;;  %v7418_v9 = vrot.slane %v10322_v54, 1 }
 0x200   : > { %v8542_v26 = vpack.c.bf16 %v3493_v37, %v3492_v31  ;;  %v3491_v6 = vsel %vm3427_vm7, %v3354_v35, %v3459_v30  ;;  %9639 = vmatprep.mubr.msk.bf16.mxu1 %vm446_vm1, %v6592_v47 }
 0x201   : > { %v8537_v29 = vpack.c.bf16 %v3491_v6, %v3490_v49  ;;  %v7419_v55 = vsel %vm1378_vm3, %v7416_v33, %v7418_v9 }
 0x202   : > { %8744 = vst [vmem:[%s11867_s13 + $0xf8] sm:$0xff] %v8542_v26  }
 0x203   : > { %8743 = vst [vmem:[%s11867_s13 + $0xf0] sm:$0xff] %v8537_v29  }
 0x205   : > { %9512 = vmatmul.mubr.msk.bf16.gmra.mrb[60].mxu0 %vm446_vm1, %v4877_v53 }
 0x206   : > { %9663 = vmatprep.mubr.msk.bf16.mxu0 %vm446_vm1, %v7155_v32 }
 0x207   : > { %9640 = vmatmul.mubr.msk.bf16.gmra.mrb[52].mxu1 %vm446_vm1, %v6594_v45 }
 0x208   : > { %9643 = vmatprep.mubr.msk.bf16.mxu1 %vm446_vm1, %v6596_v11 }
 0x20d   : > { %9664 = vmatmul.mubr.msk.bf16.vlgmr.msra.gmra.mrb[64].mxu0 %vm446_vm1, %v7163_v21 }
 0x20e   : > { %9668 = vmatpush3.bf16.msra.mxu0 %v12059_v40  ;;  %9671 = vmatprep.mubr.msk.bf16.mxu0 %vm446_vm1, %v12180_v43  ;;  %v7323_v40 = vor.u32 %v7322_v19, %v7318_v4  ;;  %v7327_v43 = vrot.slane %v7325_v41, 1 }
 0x20f   : > { %9644 = vmatmul.mubr.msk.bf16.gmra.mrb[56].mxu1 %vm446_vm1, %v12406_v28  ;;  %10109 = vmatprep.subr.msk.bf16.mxu0 %vm495_vm0, %v10316_v58 }
 0x210   : > { %9647 = vmatprep.mubr.msk.bf16.mxu1 %vm446_vm1, %v12407_v25  ;;  %v7328_v22 = vsel %vm304_vm2, %v7323_v40, %v7327_v43  ;;  %v7331_v27 = vor.u32 %v7329_v63, %v7327_v43 }
 0x212   : > { %9670 = vmatpush3.bf16.msra.mxu0 %v7245_v23  ;;  %v7336_v38 = vsel %vm304_vm2, %v7331_v27, %v7335_v16 }
 0x213   : > { %9675 = vmatprep.subr.bf16.mxu0 %v10317_v15 }
 0x217   : > { %9648 = vmatmul.mubr.msk.bf16.gmra.mrb[60].mxu1 %vm446_vm1, %v12408_v2 }
 0x218   : > { %9651 = vmatprep.mubr.msk.bf16.mxu1 %vm446_vm1, %v12409_v48 }
 0x219   : > { %9672 = vmatmul.mubr.msk.bf16.vlgmr.msra.gmra.mrb[64].mxu0 %vm446_vm1, %v12191_v57  ;;  %v7415_v57 = vrot.slane %v8241_v12, 1 }
 0x21a   : > { %9676 = vmatpush3.bf16.msra.mxu0 %v10317_v15  ;;  %9679 = vmatprep.mubr.msk.bf16.mxu0 %vm446_vm1, %v7328_v22 }
 0x21b   : > { %10110 = vmatprep.subr.msk.bf16.mxu0 %vm495_vm0, %v10318_v62  ;;  %v7417_v52 = vsel %vm1378_vm3, %v7415_v57, %v7416_v33 }
 0x21e   : > { %9678 = vmatpush3.bf16.msra.mxu0 %v7353_v18 }
 0x21f   : > { %9652 = vmatmul.mubr.msk.bf16.gmra.mrb[64].mxu1 %vm446_vm1, %v12410_v0  ;;  %9683 = vmatprep.subr.bf16.mxu0 %v10321_v50 }
 0x220   : > { %9655 = vmatprep.mubr.msk.bf16.mxu1 %vm446_vm1, %v12411_v56 }
 0x225   : > { %9680 = vmatmul.mubr.msk.bf16.vlgmr.msra.gmra.mrb[64].mxu0 %vm446_vm1, %v7336_v38 }
 0x226   : > { %9684 = vmatpush3.bf16.msra.mxu0 %v10321_v50  ;;  %9687 = vmatprep.mubr.msk.bf16.mxu0 %vm446_vm1, %v7417_v52 }
 0x227   : > { %9656 = vmatmul.mubr.msk.bf16.gmra.mrb[68].mxu1 %vm446_vm1, %v11873_v8  ;;  %10111 = vmatprep.subr.msk.bf16.mxu0 %vm495_vm0, %v10323_v36 }
 0x22a   : > { %9686 = vmatpush3.bf16.msra.mxu0 %v7436_v42 }
 0x231   : > { %9688 = vmatmul.mubr.msk.bf16.vlgmr.msra.gmra.mrb[64].mxu0 %vm446_vm1, %v7419_v55 }
 0x2a0   : > { %v9485_v1 = vpop.f32.mrb[32].mxu0 }
 0x2a1   : > { %v5165_v5 = vmul.f32 0.2, %v9485_v1  ;;  %v4972_v35 = vpop.f32.mrb[33].mxu0  ;;  %vm5133_vm2 = vcmp.ge.f32.partialorder %v9485_v1, 0.0 }
 0x2a2   : > { %v5163_v47 = vmul.f32 0.2, %v4972_v35  ;;  %v9486_v30 = vpop.f32.mrb[34].mxu0  ;;  %vm5131_vm8 = vcmp.ge.f32.partialorder %v4972_v35, 0.0 }
 0x2a3   : > { %vm5134_vm9 = vcmp.ge.f32.partialorder %v9486_v30, 0.0  ;;  %v5166_v8 = vmul.f32 0.2, %v9486_v30  ;;  %v4975_v59 = vpop.f32.mrb[35].mxu0  ;;  %v5197_v37 = vsel %vm5133_vm2, %v9485_v1, %v5165_v5 }
 0x2a4   : > { %vm5132_vm10 = vcmp.ge.f32.partialorder %v4975_v59, 0.0  ;;  %v5164_v31 = vmul.f32 0.2, %v4975_v59  ;;  %v5195_v7 = vsel %vm5131_vm8, %v4972_v35, %v5163_v47 }
 0x2a5   : > { %v5198_v13 = vsel %vm5134_vm9, %v9486_v30, %v5166_v8 }
 0x2a6   : > { %v8552_v49 = vpack.c.bf16 %v5198_v13, %v5197_v37  ;;  %v5196_v26 = vsel %vm5132_vm10, %v4975_v59, %v5164_v31 }
 0x2a7   : > { %v8547_v6 = vpack.c.bf16 %v5196_v26, %v5195_v7 }
 0x2a8   : > { %8746 = vst [vmem:[%s11867_s13 + $0x108] sm:$0xff] %v8552_v49   ;;  %v9489_v14 = vpop.f32.mrb[36].mxu0 }
 0x2a9   : > { %8745 = vst [vmem:[%s11867_s13 + $0x100] sm:$0xff] %v8547_v6   ;;  %v5169_v29 = vmul.f32 0.2, %v9489_v14  ;;  %v4988_v53 = vpop.f32.mrb[37].mxu0  ;;  %vm5137_vm0 = vcmp.ge.f32.partialorder %v9489_v14, 0.0 }
 0x2aa   : > { %v5167_v51 = vmul.f32 0.2, %v4988_v53  ;;  %v9490_v39 = vpop.f32.mrb[38].mxu0  ;;  %vm5135_vm1 = vcmp.ge.f32.partialorder %v4988_v53, 0.0 }
 0x2ab   : > { %vm5138_vm3 = vcmp.ge.f32.partialorder %v9490_v39, 0.0  ;;  %v5170_v32 = vmul.f32 0.2, %v9490_v39  ;;  %v4991_v45 = vpop.f32.mrb[39].mxu0  ;;  %v5201_v17 = vsel %vm5137_vm0, %v9489_v14, %v5169_v29 }
 0x2ac   : > { %vm5136_vm11 = vcmp.ge.f32.partialorder %v4991_v45, 0.0  ;;  %v5168_v3 = vmul.f32 0.2, %v4991_v45  ;;  %v5199_v11 = vsel %vm5135_vm1, %v4988_v53, %v5167_v51 }
 0x2ad   : > { %v5202_v20 = vsel %vm5138_vm3, %v9490_v39, %v5170_v32 }
 0x2ae   : > { %v8562_v24 = vpack.c.bf16 %v5202_v20, %v5201_v17  ;;  %v5200_v44 = vsel %vm5136_vm11, %v4991_v45, %v5168_v3 }
 0x2af   : > { %v8557_v10 = vpack.c.bf16 %v5200_v44, %v5199_v11 }
 0x2b0   : > { %8748 = vst [vmem:[%s11867_s13 + $0x118] sm:$0xff] %v8562_v24   ;;  %v9493_v21 = vpop.f32.mrb[40].mxu0 }
 0x2b1   : > { %8747 = vst [vmem:[%s11867_s13 + $0x110] sm:$0xff] %v8557_v10   ;;  %v5173_v58 = vmul.f32 0.2, %v9493_v21  ;;  %v5004_v60 = vpop.f32.mrb[41].mxu0  ;;  %vm5141_vm12 = vcmp.ge.f32.partialorder %v9493_v21, 0.0 }
 0x2b2   : > { %v5171_v61 = vmul.f32 0.2, %v5004_v60  ;;  %v9494_v28 = vpop.f32.mrb[42].mxu0  ;;  %vm5139_vm13 = vcmp.ge.f32.partialorder %v5004_v60, 0.0 }
 0x2b3   : > { %vm5142_vm14 = vcmp.ge.f32.partialorder %v9494_v28, 0.0  ;;  %v5174_v23 = vmul.f32 0.2, %v9494_v28  ;;  %v5007_v15 = vpop.f32.mrb[43].mxu0  ;;  %v5205_v19 = vsel %vm5141_vm12, %v9493_v21, %v5173_v58 }
 0x2b4   : > { %vm5140_vm15 = vcmp.ge.f32.partialorder %v5007_v15, 0.0  ;;  %v5172_v4 = vmul.f32 0.2, %v5007_v15  ;;  %v5203_v25 = vsel %vm5139_vm13, %v5004_v60, %v5171_v61 }
 0x2b5   : > { %v5206_v41 = vsel %vm5142_vm14, %v9494_v28, %v5174_v23 }
 0x2b6   : > { %v8572_v40 = vpack.c.bf16 %v5206_v41, %v5205_v19  ;;  %v5204_v43 = vsel %vm5140_vm15, %v5007_v15, %v5172_v4 }
 0x2b7   : > { %v8567_v54 = vpack.c.bf16 %v5204_v43, %v5203_v25 }
 0x2b8   : > { %8750 = vst [vmem:[%s11867_s13 + $0x128] sm:$0xff] %v8572_v40   ;;  %v9497_v2 = vpop.f32.mrb[44].mxu0 }
 0x2b9   : > { %8749 = vst [vmem:[%s11867_s13 + $0x120] sm:$0xff] %v8567_v54   ;;  %v5177_v62 = vmul.f32 0.2, %v9497_v2  ;;  %v5020_v22 = vpop.f32.mrb[45].mxu0  ;;  %vm5145_vm4 = vcmp.ge.f32.partialorder %v9497_v2, 0.0 }
 0x2ba   : > { %v5175_v48 = vmul.f32 0.2, %v5020_v22  ;;  %v9498_v34 = vpop.f32.mrb[46].mxu0  ;;  %vm5143_vm5 = vcmp.ge.f32.partialorder %v5020_v22, 0.0 }
 0x2bb   : > { %vm5146_vm6 = vcmp.ge.f32.partialorder %v9498_v34, 0.0  ;;  %v5178_v63 = vmul.f32 0.2, %v9498_v34  ;;  %v5023_v46 = vpop.f32.mrb[47].mxu0  ;;  %v5209_v50 = vsel %vm5145_vm4, %v9497_v2, %v5177_v62 }
 0x2bc   : > { %vm5144_vm7 = vcmp.ge.f32.partialorder %v5023_v46, 0.0  ;;  %v5176_v18 = vmul.f32 0.2, %v5023_v46  ;;  %v5207_v27 = vsel %vm5143_vm5, %v5020_v22, %v5175_v48 }
 0x2bd   : > { %v5210_v12 = vsel %vm5146_vm6, %v9498_v34, %v5178_v63 }
 0x2be   : > { %v8582_v16 = vpack.c.bf16 %v5210_v12, %v5209_v50  ;;  %v5208_v0 = vsel %vm5144_vm7, %v5023_v46, %v5176_v18 }
 0x2bf   : > { %v8577_v57 = vpack.c.bf16 %v5208_v0, %v5207_v27 }
 0x2c0   : > { %8752 = vst [vmem:[%s11867_s13 + $0x138] sm:$0xff] %v8582_v16   ;;  %v9501_v33 = vpop.f32.mrb[48].mxu0 }
 0x2c1   : > { %8751 = vst [vmem:[%s11867_s13 + $0x130] sm:$0xff] %v8577_v57   ;;  %v5181_v56 = vmul.f32 0.2, %v9501_v33  ;;  %v5036_v38 = vpop.f32.mrb[49].mxu0  ;;  %vm5149_vm2 = vcmp.ge.f32.partialorder %v9501_v33, 0.0 }
 0x2c2   : > { %v9629_v36 = vpop.f32.mrb[40].mxu1  ;;  %v5179_v52 = vmul.f32 0.2, %v5036_v38  ;;  %v9502_v42 = vpop.f32.mrb[50].mxu0  ;;  %vm5147_vm8 = vcmp.ge.f32.partialorder %v5036_v38, 0.0 }
 0x2c3   : > { %v6898_v9 = vmul.f32 0.2, %v9629_v36  ;;  %v6705_v55 = vpop.f32.mrb[41].mxu1  ;;  %vm5150_vm9 = vcmp.ge.f32.partialorder %v9502_v42, 0.0  ;;  %v5039_v1 = vpop.f32.mrb[51].mxu0  ;;  %vm6866_vm10 = vcmp.ge.f32.partialorder %v9629_v36, 0.0  ;;  %v5213_v30 = vsel %vm5149_vm2, %v9501_v33, %v5181_v56 }
 0x2c4   : > { %v6896_v5 = vmul.f32 0.2, %v6705_v55  ;;  %v5182_v35 = vmul.f32 0.2, %v9502_v42  ;;  %v9630_v47 = vpop.f32.mrb[42].mxu1  ;;  %vm5148_vm1 = vcmp.ge.f32.partialorder %v5039_v1, 0.0  ;;  %v5211_v6 = vsel %vm5147_vm8, %v5036_v38, %v5179_v52 }
 0x2c5   : > { %vm6867_vm0 = vcmp.ge.f32.partialorder %v9630_v47, 0.0  ;;  %v6899_v8 = vmul.f32 0.2, %v9630_v47  ;;  %v6708_v59 = vpop.f32.mrb[43].mxu1  ;;  %vm6864_vm3 = vcmp.ge.f32.partialorder %v6705_v55, 0.0  ;;  %v6930_v13 = vsel %vm6866_vm10, %v9629_v36, %v6898_v9 }
 0x2c6   : > { %v5214_v31 = vsel %vm5150_vm9, %v9502_v42, %v5182_v35  ;;  %v5180_v37 = vmul.f32 0.2, %v5039_v1  ;;  %vm6865_vm11 = vcmp.ge.f32.partialorder %v6708_v59, 0.0  ;;  %v6897_v26 = vmul.f32 0.2, %v6708_v59 }
 0x2c7   : > { %v8592_v7 = vpack.c.bf16 %v5214_v31, %v5213_v30  ;;  %v6931_v49 = vsel %vm6867_vm0, %v9630_v47, %v6899_v8  ;;  %v6928_v51 = vsel %vm6864_vm3, %v6705_v55, %v6896_v5 }
 0x2c8   : > { %v8632_v14 = vpack.c.bf16 %v6931_v49, %v6930_v13  ;;  %v5212_v29 = vsel %vm5148_vm1, %v5039_v1, %v5180_v37  ;;  %v9505_v53 = vpop.f32.mrb[52].mxu0  ;;  %v6929_v32 = vsel %vm6865_vm11, %v6708_v59, %v6897_v26 }
 0x2c9   : > { %8754 = vst [vmem:[%s11867_s13 + $0x148] sm:$0xff] %v8592_v7   ;;  %v8587_v39 = vpack.c.bf16 %v5212_v29, %v5211_v6  ;;  %v5185_v45 = vmul.f32 0.2, %v9505_v53  ;;  %v5052_v3 = vpop.f32.mrb[53].mxu0  ;;  %v8627_v17 = vpack.c.bf16 %v6929_v32, %v6928_v51  ;;  %vm5153_vm12 = vcmp.ge.f32.partialorder %v9505_v53, 0.0 }
 0x2ca   : > { %8762 = vst [vmem:[%s11867_s13 + $0x188] sm:$0xff] %v8632_v14   ;;  %v9633_v20 = vpop.f32.mrb[44].mxu1  ;;  %v5183_v11 = vmul.f32 0.2, %v5052_v3  ;;  %v9506_v24 = vpop.f32.mrb[54].mxu0  ;;  %vm5151_vm13 = vcmp.ge.f32.partialorder %v5052_v3, 0.0 }
 0x2cb   : > { %8753 = vst [vmem:[%s11867_s13 + $0x140] sm:$0xff] %v8587_v39   ;;  %v6902_v44 = vmul.f32 0.2, %v9633_v20  ;;  %v6721_v10 = vpop.f32.mrb[45].mxu1  ;;  %vm5154_vm14 = vcmp.ge.f32.partialorder %v9506_v24, 0.0  ;;  %v5055_v21 = vpop.f32.mrb[55].mxu0  ;;  %v5217_v28 = vsel %vm5153_vm12, %v9505_v53, %v5185_v45 }
 0x2cc   : > { %8761 = vst [vmem:[%s11867_s13 + $0x180] sm:$0xff] %v8627_v17   ;;  %vm6870_vm15 = vcmp.ge.f32.partialorder %v9633_v20, 0.0  ;;  %v6900_v58 = vmul.f32 0.2, %v6721_v10  ;;  %v5186_v60 = vmul.f32 0.2, %v9506_v24  ;;  %v5215_v54 = vsel %vm5151_vm13, %v5052_v3, %v5183_v11 }
 0x2cd   : > { %v9634_v61 = vpop.f32.mrb[46].mxu1  ;;  %vm5152_vm5 = vcmp.ge.f32.partialorder %v5055_v21, 0.0  ;;  %vm6868_vm6 = vcmp.ge.f32.partialorder %v6721_v10, 0.0  ;;  %v5184_v19 = vmul.f32 0.2, %v5055_v21  ;;  %v6934_v41 = vsel %vm6870_vm15, %v9633_v20, %v6902_v44 }
 0x2ce   : > { %vm6871_vm4 = vcmp.ge.f32.partialorder %v9634_v61, 0.0  ;;  %v6903_v23 = vmul.f32 0.2, %v9634_v61  ;;  %v6724_v15 = vpop.f32.mrb[47].mxu1  ;;  %v5218_v4 = vsel %vm5154_vm14, %v9506_v24, %v5186_v60  ;;  %v6932_v48 = vsel %vm6868_vm6, %v6721_v10, %v6900_v58 }
 0x2cf   : > { %vm6869_vm7 = vcmp.ge.f32.partialorder %v6724_v15, 0.0  ;;  %v8602_v25 = vpack.c.bf16 %v5218_v4, %v5217_v28  ;;  %v6901_v43 = vmul.f32 0.2, %v6724_v15  ;;  %v5216_v62 = vsel %vm5152_vm5, %v5055_v21, %v5184_v19 }
 0x2d0   : > { %v6935_v40 = vsel %vm6871_vm4, %v9634_v61, %v6903_v23  ;;  %v9509_v22 = vpop.f32.mrb[56].mxu0  ;;  %v8597_v34 = vpack.c.bf16 %v5216_v62, %v5215_v54 }
 0x2d1   : > { %v8642_v2 = vpack.c.bf16 %v6935_v40, %v6934_v41  ;;  %8756 = vst [vmem:[%s11867_s13 + $0x158] sm:$0xff] %v8602_v25   ;;  %v6933_v63 = vsel %vm6869_vm7, %v6724_v15, %v6901_v43  ;;  %v5189_v46 = vmul.f32 0.2, %v9509_v22  ;;  %v5068_v18 = vpop.f32.mrb[57].mxu0  ;;  %vm5157_vm2 = vcmp.ge.f32.partialorder %v9509_v22, 0.0 }
 0x2d2   : > { %v8637_v50 = vpack.c.bf16 %v6933_v63, %v6932_v48  ;;  %v9637_v12 = vpop.f32.mrb[48].mxu1  ;;  %v5187_v27 = vmul.f32 0.2, %v5068_v18  ;;  %v9510_v16 = vpop.f32.mrb[58].mxu0  ;;  %8755 = vst [vmem:[%s11867_s13 + $0x150] sm:$0xff] %v8597_v34   ;;  %vm5155_vm8 = vcmp.ge.f32.partialorder %v5068_v18, 0.0 }
 0x2d3   : > { %8764 = vst [vmem:[%s11867_s13 + $0x198] sm:$0xff] %v8642_v2   ;;  %v6906_v0 = vmul.f32 0.2, %v9637_v12  ;;  %v6737_v57 = vpop.f32.mrb[49].mxu1  ;;  %vm5158_vm9 = vcmp.ge.f32.partialorder %v9510_v16, 0.0  ;;  %v5071_v33 = vpop.f32.mrb[59].mxu0  ;;  %v5221_v52 = vsel %vm5157_vm2, %v9509_v22, %v5189_v46 }
 0x2d4   : > { %8763 = vst [vmem:[%s11867_s13 + $0x190] sm:$0xff] %v8637_v50   ;;  %vm6874_vm10 = vcmp.ge.f32.partialorder %v9637_v12, 0.0  ;;  %v6904_v56 = vmul.f32 0.2, %v6737_v57  ;;  %v5190_v38 = vmul.f32 0.2, %v9510_v16  ;;  %v5219_v8 = vsel %vm5155_vm8, %v5068_v18, %v5187_v27 }
 0x2d5   : > { %v9638_v36 = vpop.f32.mrb[50].mxu1  ;;  %vm5156_vm1 = vcmp.ge.f32.partialorder %v5071_v33, 0.0  ;;  %vm6872_vm3 = vcmp.ge.f32.partialorder %v6737_v57, 0.0  ;;  %v5188_v1 = vmul.f32 0.2, %v5071_v33  ;;  %v6938_v5 = vsel %vm6874_vm10, %v9637_v12, %v6906_v0 }
 0x2d6   : > { %vm6875_vm0 = vcmp.ge.f32.partialorder %v9638_v36, 0.0  ;;  %v6907_v42 = vmul.f32 0.2, %v9638_v36  ;;  %v6740_v9 = vpop.f32.mrb[51].mxu1  ;;  %v5222_v55 = vsel %vm5158_vm9, %v9510_v16, %v5190_v38  ;;  %v6936_v13 = vsel %vm6872_vm3, %v6737_v57, %v6904_v56 }
 0x2d7   : > { %vm6873_vm11 = vcmp.ge.f32.partialorder %v6740_v9, 0.0  ;;  %v8612_v35 = vpack.c.bf16 %v5222_v55, %v5221_v52  ;;  %v6905_v30 = vmul.f32 0.2, %v6740_v9  ;;  %v5220_v31 = vsel %vm5156_vm1, %v5071_v33, %v5188_v1 }
 0x2d8   : > { %v6939_v47 = vsel %vm6875_vm0, %v9638_v36, %v6907_v42  ;;  %v9513_v37 = vpop.f32.mrb[60].mxu0  ;;  %v8607_v7 = vpack.c.bf16 %v5220_v31, %v5219_v8 }
 0x2d9   : > { %v8652_v59 = vpack.c.bf16 %v6939_v47, %v6938_v5  ;;  %8758 = vst [vmem:[%s11867_s13 + $0x168] sm:$0xff] %v8612_v35   ;;  %v6937_v49 = vsel %vm6873_vm11, %v6740_v9, %v6905_v30  ;;  %v5193_v26 = vmul.f32 0.2, %v9513_v37  ;;  %v5084_v6 = vpop.f32.mrb[61].mxu0  ;;  %vm5161_vm12 = vcmp.ge.f32.partialorder %v9513_v37, 0.0 }
 0x2da   : > { %v8647_v14 = vpack.c.bf16 %v6937_v49, %v6936_v13  ;;  %v9641_v29 = vpop.f32.mrb[52].mxu1  ;;  %v5191_v53 = vmul.f32 0.2, %v5084_v6  ;;  %v9514_v51 = vpop.f32.mrb[62].mxu0  ;;  %8757 = vst [vmem:[%s11867_s13 + $0x160] sm:$0xff] %v8607_v7   ;;  %vm5159_vm13 = vcmp.ge.f32.partialorder %v5084_v6, 0.0 }
 0x2db   : > { %8766 = vst [vmem:[%s11867_s13 + $0x1a8] sm:$0xff] %v8652_v59   ;;  %v6910_v39 = vmul.f32 0.2, %v9641_v29  ;;  %v6753_v32 = vpop.f32.mrb[53].mxu1  ;;  %vm5162_vm14 = vcmp.ge.f32.partialorder %v9514_v51, 0.0  ;;  %v5087_v45 = vpop.f32.mrb[63].mxu0  ;;  %v5225_v11 = vsel %vm5161_vm12, %v9513_v37, %v5193_v26 }
 0x2dc   : > { %8765 = vst [vmem:[%s11867_s13 + $0x1a0] sm:$0xff] %v8647_v14   ;;  %vm6878_vm15 = vcmp.ge.f32.partialorder %v9641_v29, 0.0  ;;  %v6908_v3 = vmul.f32 0.2, %v6753_v32  ;;  %v5194_v17 = vmul.f32 0.2, %v9514_v51  ;;  %v5223_v23 = vsel %vm5159_vm13, %v5084_v6, %v5191_v53 }
 0x2dd   : > { %v9642_v20 = vpop.f32.mrb[54].mxu1  ;;  %vm5160_vm5 = vcmp.ge.f32.partialorder %v5087_v45, 0.0  ;;  %vm6876_vm6 = vcmp.ge.f32.partialorder %v6753_v32, 0.0  ;;  %v5192_v21 = vmul.f32 0.2, %v5087_v45  ;;  %v6942_v58 = vsel %vm6878_vm15, %v9641_v29, %v6910_v39 }
 0x2de   : > { %vm6879_vm4 = vcmp.ge.f32.partialorder %v9642_v20, 0.0  ;;  %v6911_v24 = vmul.f32 0.2, %v9642_v20  ;;  %v6756_v44 = vpop.f32.mrb[55].mxu1  ;;  %v5226_v10 = vsel %vm5162_vm14, %v9514_v51, %v5194_v17  ;;  %v6940_v19 = vsel %vm6876_vm6, %v6753_v32, %v6908_v3 }
 0x2df   : > { %vm6877_vm7 = vcmp.ge.f32.partialorder %v6756_v44, 0.0  ;;  %v8622_v60 = vpack.c.bf16 %v5226_v10, %v5225_v11  ;;  %v6909_v28 = vmul.f32 0.2, %v6756_v44  ;;  %v5224_v4 = vsel %vm5160_vm5, %v5087_v45, %v5192_v21 }
 0x2e0   : > { %v6943_v61 = vsel %vm6879_vm4, %v9642_v20, %v6911_v24  ;;  %v8617_v41 = vpack.c.bf16 %v5224_v4, %v5223_v23 }
 0x2e1   : > { %v8662_v15 = vpack.c.bf16 %v6943_v61, %v6942_v58  ;;  %8760 = vst [vmem:[%s11867_s13 + $0x178] sm:$0xff] %v8622_v60   ;;  %v6941_v25 = vsel %vm6877_vm7, %v6756_v44, %v6909_v28 }
 0x2e2   : > { %v8657_v40 = vpack.c.bf16 %v6941_v25, %v6940_v19  ;;  %v9645_v43 = vpop.f32.mrb[56].mxu1  ;;  %8759 = vst [vmem:[%s11867_s13 + $0x170] sm:$0xff] %v8617_v41  }
 0x2e3   : > { %8768 = vst [vmem:[%s11867_s13 + $0x1b8] sm:$0xff] %v8662_v15   ;;  %v6914_v54 = vmul.f32 0.2, %v9645_v43  ;;  %v6769_v2 = vpop.f32.mrb[57].mxu1  ;;  %vm6882_vm2 = vcmp.ge.f32.partialorder %v9645_v43, 0.0 }
 0x2e4   : > { %8767 = vst [vmem:[%s11867_s13 + $0x1b0] sm:$0xff] %v8657_v40   ;;  %v6912_v62 = vmul.f32 0.2, %v6769_v2  ;;  %v9646_v22 = vpop.f32.mrb[58].mxu1  ;;  %vm6880_vm8 = vcmp.ge.f32.partialorder %v6769_v2, 0.0 }
 0x2e5   : > { %vm6883_vm9 = vcmp.ge.f32.partialorder %v9646_v22, 0.0  ;;  %v6915_v48 = vmul.f32 0.2, %v9646_v22  ;;  %v6772_v34 = vpop.f32.mrb[59].mxu1  ;;  %v6946_v46 = vsel %vm6882_vm2, %v9645_v43, %v6914_v54 }
 0x2e6   : > { %vm6881_vm10 = vcmp.ge.f32.partialorder %v6772_v34, 0.0  ;;  %v6913_v63 = vmul.f32 0.2, %v6772_v34  ;;  %v6944_v50 = vsel %vm6880_vm8, %v6769_v2, %v6912_v62 }
 0x2e7   : > { %v6947_v18 = vsel %vm6883_vm9, %v9646_v22, %v6915_v48 }
 0x2e8   : > { %v8672_v12 = vpack.c.bf16 %v6947_v18, %v6946_v46  ;;  %v6945_v27 = vsel %vm6881_vm10, %v6772_v34, %v6913_v63 }
 0x2e9   : > { %v8667_v16 = vpack.c.bf16 %v6945_v27, %v6944_v50 }
 0x2ea   : > { %8770 = vst [vmem:[%s11867_s13 + $0x1c8] sm:$0xff] %v8672_v12   ;;  %v9649_v0 = vpop.f32.mrb[60].mxu1 }
 0x2eb   : > { %8769 = vst [vmem:[%s11867_s13 + $0x1c0] sm:$0xff] %v8667_v16   ;;  %v6918_v57 = vmul.f32 0.2, %v9649_v0  ;;  %v6785_v33 = vpop.f32.mrb[61].mxu1  ;;  %vm6886_vm0 = vcmp.ge.f32.partialorder %v9649_v0, 0.0 }
 0x2ec   : > { %v6916_v56 = vmul.f32 0.2, %v6785_v33  ;;  %v9650_v38 = vpop.f32.mrb[62].mxu1  ;;  %vm6884_vm1 = vcmp.ge.f32.partialorder %v6785_v33, 0.0 }
 0x2ed   : > { %vm6887_vm3 = vcmp.ge.f32.partialorder %v9650_v38, 0.0  ;;  %v6919_v36 = vmul.f32 0.2, %v9650_v38  ;;  %v6788_v52 = vpop.f32.mrb[63].mxu1  ;;  %v6950_v9 = vsel %vm6886_vm0, %v9649_v0, %v6918_v57 }
 0x2ee   : > { %vm6885_vm11 = vcmp.ge.f32.partialorder %v6788_v52, 0.0  ;;  %v6917_v42 = vmul.f32 0.2, %v6788_v52  ;;  %v6948_v1 = vsel %vm6884_vm1, %v6785_v33, %v6916_v56 }
 0x2ef   : > { %v6951_v55 = vsel %vm6887_vm3, %v9650_v38, %v6919_v36 }
 0x2f0   : > { %v8682_v5 = vpack.c.bf16 %v6951_v55, %v6950_v9  ;;  %v6949_v35 = vsel %vm6885_vm11, %v6788_v52, %v6917_v42 }
 0x2f1   : > { %v8677_v47 = vpack.c.bf16 %v6949_v35, %v6948_v1 }
 0x2f2   : > { %8772 = vst [vmem:[%s11867_s13 + $0x1d8] sm:$0xff] %v8682_v5   ;;  %v9653_v30 = vpop.f32.mrb[64].mxu1 }
 0x2f3   : > { %8771 = vst [vmem:[%s11867_s13 + $0x1d0] sm:$0xff] %v8677_v47   ;;  %v6922_v8 = vmul.f32 0.2, %v9653_v30  ;;  %v6801_v59 = vpop.f32.mrb[65].mxu1  ;;  %vm6890_vm12 = vcmp.ge.f32.partialorder %v9653_v30, 0.0 }
 0x2f4   : > { %v6920_v31 = vmul.f32 0.2, %v6801_v59  ;;  %v9654_v37 = vpop.f32.mrb[66].mxu1  ;;  %vm6888_vm13 = vcmp.ge.f32.partialorder %v6801_v59, 0.0 }
 0x2f5   : > { %vm6891_vm14 = vcmp.ge.f32.partialorder %v9654_v37, 0.0  ;;  %v6923_v13 = vmul.f32 0.2, %v9654_v37  ;;  %v6804_v7 = vpop.f32.mrb[67].mxu1  ;;  %v6954_v26 = vsel %vm6890_vm12, %v9653_v30, %v6922_v8 }
 0x2f6   : > { %vm6889_vm15 = vcmp.ge.f32.partialorder %v6804_v7, 0.0  ;;  %v6921_v49 = vmul.f32 0.2, %v6804_v7  ;;  %v6952_v14 = vsel %vm6888_vm13, %v6801_v59, %v6920_v31 }
 0x2f7   : > { %v6955_v6 = vsel %vm6891_vm14, %v9654_v37, %v6923_v13 }
 0x2f8   : > { %v8692_v29 = vpack.c.bf16 %v6955_v6, %v6954_v26  ;;  %v6953_v53 = vsel %vm6889_vm15, %v6804_v7, %v6921_v49 }
 0x2f9   : > { %v8687_v51 = vpack.c.bf16 %v6953_v53, %v6952_v14 }
 0x2fa   : > { %8774 = vst [vmem:[%s11867_s13 + $0x1e8] sm:$0xff] %v8692_v29   ;;  %v9657_v39 = vpop.f32.mrb[68].mxu1 }
 0x2fb   : > { %8773 = vst [vmem:[%s11867_s13 + $0x1e0] sm:$0xff] %v8687_v51   ;;  %v6926_v32 = vmul.f32 0.2, %v9657_v39  ;;  %v6817_v45 = vpop.f32.mrb[69].mxu1  ;;  %vm6894_vm4 = vcmp.ge.f32.partialorder %v9657_v39, 0.0 }
 0x2fc   : > { %v6924_v3 = vmul.f32 0.2, %v6817_v45  ;;  %v9658_v17 = vpop.f32.mrb[70].mxu1  ;;  %vm6892_vm5 = vcmp.ge.f32.partialorder %v6817_v45, 0.0 }
 0x2fd   : > { %vm6895_vm6 = vcmp.ge.f32.partialorder %v9658_v17, 0.0  ;;  %v6927_v20 = vmul.f32 0.2, %v9658_v17  ;;  %v6820_v11 = vpop.f32.mrb[71].mxu1  ;;  %v6958_v44 = vsel %vm6894_vm4, %v9657_v39, %v6926_v32 }
 0x2fe   : > { %vm6893_vm7 = vcmp.ge.f32.partialorder %v6820_v11, 0.0  ;;  %v6925_v24 = vmul.f32 0.2, %v6820_v11  ;;  %v6956_v21 = vsel %vm6892_vm5, %v6817_v45, %v6924_v3 }
 0x2ff   : > { %v6959_v10 = vsel %vm6895_vm6, %v9658_v17, %v6927_v20 }
 0x300   : > { %v8702_v58 = vpack.c.bf16 %v6959_v10, %v6958_v44  ;;  %v6957_v60 = vsel %vm6893_vm7, %v6820_v11, %v6925_v24 }
 0x301   : > { %v8697_v61 = vpack.c.bf16 %v6957_v60, %v6956_v21 }
 0x302   : > { %8776 = vst [vmem:[%s11867_s13 + $0x1f8] sm:$0xff] %v8702_v58  }
 0x303   : > { %8775 = vst [vmem:[%s11867_s13 + $0x1f0] sm:$0xff] %v8697_v61  }
 0x304   : > { %v9689_v28 = vpop.f32.mrb[64].mxu0 }
 0x305   : > { %v7497_v23 = vmul.f32 0.2, %v9689_v28  ;;  %v7472_v15 = vpop.f32.mrb[65].mxu0  ;;  %vm7493_vm2 = vcmp.ge.f32.partialorder %v9689_v28, 0.0 }
 0x306   : > { %v7495_v4 = vmul.f32 0.2, %v7472_v15  ;;  %v9690_v19 = vpop.f32.mrb[66].mxu0  ;;  %vm7491_vm8 = vcmp.ge.f32.partialorder %v7472_v15, 0.0 }
 0x307   : > { %vm7494_vm9 = vcmp.ge.f32.partialorder %v9690_v19, 0.0  ;;  %v7498_v41 = vmul.f32 0.2, %v9690_v19  ;;  %v7475_v25 = vpop.f32.mrb[67].mxu0  ;;  %v7501_v43 = vsel %vm7493_vm2, %v9689_v28, %v7497_v23 }
 0x308   : > { %vm7492_vm10 = vcmp.ge.f32.partialorder %v7475_v25, 0.0  ;;  %v7496_v40 = vmul.f32 0.2, %v7475_v25  ;;  %v7499_v2 = vsel %vm7491_vm8, %v7472_v15, %v7495_v4 }
 0x309   : > { %v7502_v54 = vsel %vm7494_vm9, %v9690_v19, %v7498_v41 }
 0x30a   : > { %v8712_v62 = vpack.c.bf16 %v7502_v54, %v7501_v43  ;;  %v7500_v22 = vsel %vm7492_vm10, %v7475_v25, %v7496_v40 }
 0x30b   : > { %v8707_v48 = vpack.c.bf16 %v7500_v22, %v7499_v2 }
 0x30c   : > { %8778 = vst [vmem:[%s11867_s13 + $0x208] sm:$0xff] %v8712_v62  }
 0x30d   : > { %8777 = vst [vmem:[%s11867_s13 + $0x200] sm:$0xff] %v8707_v48  }
 0x30e PF: > { %s12_s11 = sadd.s32 1, %s10353_s11   ;;  %s12412_s9 = smov %s10349_s10 }
 0x30f   : > { %p9_p5 = scmp.ge.s32.totalorder %s12_s11, 4   ;;  %s12413_s10 = smov %s12415_s12 }
 0x311   :  { %11 = sbr.rel (!%p9_p5) target bundleno = 2 (0x2), region = 61 }

// kernel: _lambda_.6
= control target key start
LH: loop header
LB: loop body
LE: loop exit
PB: predicated region body
PF: predicated region fallthrough
CT: control target
= control target key end

     0   :  { %s3718_s15 = smov 0   ;;  %s3720_s16 = smov 0   ;;  %s4871_s0 = inlined_call_operand.vmem [shape: bf16[2,1,306,32], index: 0, kind: input, shape index: {}]   ;;  %s4872_s1 = inlined_call_operand.vmem [shape: bf16[4,32,128], index: 1, kind: input, shape index: {}]   ;;  %s4873_s2 = inlined_call_operand.vmem [shape: bf16[2,1,272,128], index: 2, kind: output, shape index: {0}]   ;;  %s4874_s3 = inlined_call_operand.vmem [shape: f32[2,1,1,128], index: 3, kind: output, shape index: {1}]   ;;  %s4875_s4 = inlined_call_operand.vmem [shape: f32[2,1,1,128], index: 4, kind: output, shape index: {2}]  }
   0x1   :  { %s3722_s17 = smov 0  }
   0x2 LB: > { %s27_s18 = sadd.s32 1, %s3685_s16  ;;  %p2889_p0 = scmp.ge.s32.totalorder %s3689_s17, 1  ;;  %s3689_s17 = sphi %s3722_s17, %s15_s17   ;;  %s3685_s16 = sphi %s3720_s16, %s4992_s16   ;;  %s3681_s15 = sphi %s3718_s15, %s4991_s15  }
   0x3   : > { %p29_p1 = scmp.ge.s32.totalorder %s27_s18, 2  ;;  %p191_p2 = scmp.lt.s32.totalorder %s3689_s17, 3 }
   0x5   : > { %s4994_s18 = smov (%p29_p1, %s27_s18), 0  ;;  %p192_p3 = pnand %p2889_p0, %p191_p2 }
   0x7   : > { %195 = sbr.rel (%p192_p3) target bundleno = 415 (0x19f), region = 28 }
   0xe   : > { %v3739_v0 = vld [vmem:[%s4872_s1] sm:$0xff]   ;;  %p237_p4 = scmp.lt.s32.totalorder %s3681_s15, 1  ;;  %v3744_v1 = vld [vmem:[%s4872_s1 + $0x8] sm:$0xff]   ;;  %v3613_v2 = vld [vmem:[%s4872_s1 + $0x10] sm:$0xff]   ;;  %vm393_vm0 = vsmask.f32 7424 }
   0xf   : > { %3331 = vmatprep.subr.bf16.mxu0 %v3739_v0  ;;  %v3616_v3 = vld [vmem:[%s4872_s1 + $0x18] sm:$0xff]   ;;  %3295 = vmatprep.subr.bf16.mxu1 %v3613_v2  ;;  %v3617_v4 = vld [vmem:[%s4872_s1 + $0x20] sm:$0xff]   ;;  %vm538_vm1 = vcmask 261120   ;;  %v3620_v5 = vld [vmem:[%s4872_s1 + $0x28] sm:$0xff]   ;;  %vm1468_vm2 = vcmask 1046528   ;;  %vm3692_vm3 = vmmov 0  }
  0x10   : > { %s4996_s15 = smov (!%p237_p4, %s3681_s15), 1  ;;  %3332 = vmatpush3.bf16.msra.mxu0 %v3739_v0  ;;  %3296 = vmatpush3.bf16.msra.mxu1 %v3613_v2  ;;  %v3625_v36 = vld [vmem:[%s4872_s1 + $0x30] sm:$0xff]  }
  0x11   : > { %3333 = vmatprep.subr.bf16.mxu0 %v3744_v1  ;;  %s3583_s27 = smul.u32 156, %s4996_s15  ;;  %3297 = vmatprep.subr.bf16.mxu1 %v3616_v3  ;;  %s260_s13 = scalar_lea.vmem %s4874_s3, %s4996_s15 }
  0x12   : > { %s3584_s7 = smul.u32 136, %s4996_s15  ;;  %s266_s20 = scalar_lea.vmem %s4875_s4, %s4996_s15 }
  0x13   : > { %s3764_s6 = scalar_lea.vmem %s4871_s0, %s3583_s27 }
  0x14   : > { %3334 = vmatpush3.bf16.msra.mxu0 %v3744_v1  ;;  %v3614_v6 = vld [vmem:[%s3764_s6] sm:$0xff]   ;;  %v3615_v7 = vld [vmem:[%s3764_s6 + $0x8] sm:$0xff]   ;;  %3298 = vmatpush3.bf16.msra.mxu1 %v3616_v3  ;;  %v3618_v12 = vld [vmem:[%s3764_s6 + $0x10] sm:$0xff]   ;;  %s4479_s10 = scalar_lea.vmem %s4873_s2, %s3584_s7 }
  0x15   : > { %3367 = vmatprep.subr.bf16.mxu0 %v3617_v4  ;;  %3335 = vmatprep.mubr.msk.bf16.mxu0 %vm538_vm1, %v3614_v6  ;;  %v395_v8 = vshrl.u32 %v3614_v6, 16  ;;  %v397_v9 = vshll.u32 %v3614_v6, 16  ;;  %v402_v10 = vshll.u32 %v3615_v7, 16  ;;  %v406_v11 = vshrl.u32 %v3615_v7, 16  ;;  %v3619_v13 = vld [vmem:[%s3764_s6 + $0x18] sm:$0xff]   ;;  %v3778_v15 = vld [vmem:[%s3764_s6 + $0x20] sm:$0xff]  }
  0x16   : > { %3471 = vmatprep.subr.bf16.mxu1 %v3739_v0  ;;  %v410_v17 = vshll.u32 %v3618_v12, 16  ;;  %v414_v18 = vshrl.u32 %v3618_v12, 16  ;;  %v418_v19 = vshll.u32 %v3619_v13, 16  ;;  %v422_v21 = vshrl.u32 %v3619_v13, 16  ;;  %v953_v23 = vld [vmem:[%s3764_s6 + $0x8] sm:$0xf] }
  0x17   : > { %3336 = vmatmul.mubr.msk.bf16.vlgmr.msra.gmra.mrb[0].mxu0 %vm538_vm1, %v3615_v7  ;;  %v399_v14 = vrot.slane %v397_v9, 1  ;;  %v404_v16 = vrot.slane %v402_v10, 1  ;;  %v426_v22 = vshll.u32 %v3778_v15, 16  ;;  %v3784_v24 = vld [vmem:[%s3764_s6 + $0xc] sm:$0xf]  ;;  %v3789_v30 = vld [vmem:[%s3764_s6 + $0x10] sm:$0xff]  }
  0x18   : > { %3368 = vmatpush3.bf16.msra.mxu0 %v3617_v4  ;;  %3339 = vmatprep.mubr.msk.bf16.mxu0 %vm538_vm1, %v3618_v12  ;;  %v412_v26 = vrot.slane %v410_v17, 1  ;;  %v420_v27 = vrot.slane %v418_v19, 1  ;;  %v2953_v28 = vcombine.low %v953_v23, %v3784_v24  ;;  %v3794_v35 = vld [vmem:[%s3764_s6 + $0x18] sm:$0xff]   ;;  %v1082_v38 = vshll.u32 %v3789_v30, 16  ;;  %v3803_v40 = vld [vmem:[%s3764_s6 + $0x28] sm:$0xff]   ;;  %v3813_v48 = vld [vmem:[%s3764_s6 + $0x30] sm:$0xff]  }
  0x19   : > { %3369 = vmatprep.subr.bf16.mxu0 %v3620_v5  ;;  %v400_v20 = vor.u32 %v399_v14, %v395_v8  ;;  %v408_v25 = vor.u32 %v406_v11, %v404_v16  ;;  %v428_v33 = vrot.slane %v426_v22, 1  ;;  %v1086_v39 = vshrl.u32 %v3789_v30, 16  ;;  %v3817_v50 = vld [vmem:[%s3764_s6 + $0x20] sm:$0xff]   ;;  %v3825_v61 = vld [vmem:[%s3764_s6 + $0x28] sm:$0xff]   ;;  %v3829_v63 = vld [vmem:[%s3764_s6 + $0x38] sm:$0xff]  }
  0x1a   : > { %v416_v32 = vor.u32 %v414_v18, %v412_v26  ;;  %v1075_v34 = vshrl.u32 %v2953_v28, 16  ;;  %v1077_v37 = vshll.u32 %v2953_v28, 16  ;;  %v424_v42 = vor.u32 %v422_v21, %v420_v27  ;;  %v3840_v8 = vld [vmem:[%s3764_s6 + $0x40] sm:$0xff]   ;;  %v3857_v21 = vld [vmem:[%s3764_s6 + $0x48] sm:$0xff]  }
  0x1b   : > { %v405_v29 = vsel %vm393_vm0, %v400_v20, %v404_v16  ;;  %v413_v31 = vsel %vm393_vm0, %v408_v25, %v412_v26  ;;  %v1090_v43 = vshll.u32 %v3794_v35, 16  ;;  %v430_v44 = vshrl.u32 %v3778_v15, 16  ;;  %v3851_v16 = vld [vmem:[%s3764_s6 + $0x38] sm:$0xff]   ;;  %v3862_v25 = vld [vmem:[%s3764_s6 + $0x50] sm:$0xff]  }
  0x1c   : > { %3370 = vmatpush3.bf16.msra.mxu0 %v3620_v5  ;;  %3299 = vmatprep.mubr.msk.bf16.mxu1 %vm538_vm1, %v405_v29  ;;  %v421_v41 = vsel %vm393_vm0, %v416_v32, %v420_v27  ;;  %v1079_v45 = vrot.slane %v1077_v37, 1  ;;  %v1084_v46 = vrot.slane %v1082_v38, 1  ;;  %v434_v47 = vshll.u32 %v3803_v40, 16  ;;  %v3867_v29 = vld [vmem:[%s3764_s6 + $0x40] sm:$0xff]  }
  0x1d   : > { %3300 = vmatmul.mubr.msk.bf16.vlgmr.msra.gmra.mrb[0].mxu1 %vm538_vm1, %v413_v31  ;;  %3403 = vmatprep.subr.bf16.mxu0 %v3625_v36  ;;  %v438_v49 = vshrl.u32 %v3803_v40, 16  ;;  %v1092_v51 = vrot.slane %v1090_v43, 1  ;;  %v432_v52 = vor.u32 %v430_v44, %v428_v33  ;;  %v1094_v53 = vshrl.u32 %v3794_v35, 16  ;;  %v3881_v44 = vld [vmem:[%s3764_s6 + $0x58] sm:$0xff]  }
  0x1e   : > { %3473 = vmatpush3.bf16.msra.mxu1 %v3739_v0  ;;  %3303 = vmatprep.mubr.msk.bf16.mxu1 %vm538_vm1, %v421_v41  ;;  %v1080_v54 = vor.u32 %v1079_v45, %v1075_v34  ;;  %v1088_v55 = vor.u32 %v1086_v39, %v1084_v46  ;;  %v436_v56 = vrot.slane %v434_v47, 1  ;;  %v442_v57 = vshll.u32 %v3813_v48, 16  ;;  %v3876_v41 = vld [vmem:[%s3764_s6 + $0x48] sm:$0xff]  }
  0x1f   : > { %3340 = vmatmul.mubr.msk.bf16.gmra.mrb[4].mxu0 %vm538_vm1, %v3619_v13  ;;  %3472 = vmatprep.subr.bf16.mxu1 %v3744_v1  ;;  %v429_v58 = vsel %vm393_vm0, %v424_v42, %v428_v33  ;;  %v1096_v59 = vor.u32 %v1094_v53, %v1092_v51  ;;  %v1098_v60 = vshll.u32 %v3817_v50, 16  ;;  %v1102_v62 = vshrl.u32 %v3817_v50, 16 }
  0x20   : > { %v1085_v0 = vsel %vm393_vm0, %v1080_v54, %v1084_v46  ;;  %v1093_v2 = vsel %vm393_vm0, %v1088_v55, %v1092_v51  ;;  %v437_v3 = vsel %vm393_vm0, %v432_v52, %v436_v56  ;;  %v3691_v4 = vmov 0.0   ;;  %v3887_v51 = vld [vmem:[%s3764_s6 + $0x60] sm:$0xff]   ;;  %v3893_v54 = vld [vmem:[%s3764_s6 + $0x50] sm:$0xff]  }
  0x21   : > { %3371 = vmatprep.mubr.msk.bf16.mxu0 %vm538_vm1, %v1085_v0  ;;  %v1100_v5 = vrot.slane %v1098_v60, 1  ;;  %v1106_v6 = vshll.u32 %v3825_v61, 16  ;;  %v446_v7 = vshrl.u32 %v3813_v48, 16  ;;  %v440_v9 = vor.u32 %v438_v49, %v436_v56 }
  0x22   : > { %3474 = vmatpush3.bf16.msra.mxu1 %v3744_v1  ;;  %v3843_v1 = vld [vmem:[%s3764_s6 + $0x30] sm:$0xff]   ;;  %v444_v10 = vrot.slane %v442_v57, 1  ;;  %v450_v11 = vshll.u32 %v3829_v63, 16  ;;  %v458_v19 = vshll.u32 %v3840_v8, 16  ;;  %v1110_v20 = vshrl.u32 %v3825_v61, 16 }
  0x23   : > { %3439 = vmatprep.subr.bf16.mxu1 %v3691_v4  ;;  %v1101_v12 = vsel %vm393_vm0, %v1096_v59, %v1100_v5  ;;  %v1104_v13 = vor.u32 %v1102_v62, %v1100_v5  ;;  %v1108_v14 = vrot.slane %v1106_v6, 1  ;;  %v454_v22 = vshrl.u32 %v3829_v63, 16 }
  0x24   : > { %v448_v17 = vor.u32 %v446_v7, %v444_v10  ;;  %v452_v18 = vrot.slane %v450_v11, 1  ;;  %v1114_v23 = vshll.u32 %v3843_v1, 16  ;;  %v445_v26 = vsel %vm393_vm0, %v440_v9, %v444_v10 }
  0x25   : > { %3304 = vmatmul.mubr.msk.bf16.gmra.mrb[4].mxu1 %vm538_vm1, %v429_v58  ;;  %v1112_v27 = vor.u32 %v1110_v20, %v1108_v14  ;;  %v1122_v28 = vshll.u32 %v3851_v16, 16  ;;  %v1109_v31 = vsel %vm393_vm0, %v1104_v13, %v1108_v14  ;;  %v460_v32 = vrot.slane %v458_v19, 1  ;;  %v3642_v13 = vld [vmem:[%s4872_s1 + $0x38] sm:$0xff]   ;;  %v3915_v19 = vld [vmem:[%s3764_s6 + $0x68] sm:$0xff]   ;;  %v3918_v20 = vld [vmem:[%s3764_s6 + $0x70] sm:$0xff]  }
  0x26   : > { %3307 = vmatprep.mubr.msk.bf16.mxu1 %vm538_vm1, %v437_v3  ;;  %v1116_v33 = vrot.slane %v1114_v23, 1  ;;  %v1118_v34 = vshrl.u32 %v3843_v1, 16  ;;  %v462_v37 = vshrl.u32 %v3840_v8, 16  ;;  %v466_v38 = vshll.u32 %v3857_v21, 16  ;;  %v3901_v3 = vld [vmem:[%s3764_s6 + $0x58] sm:$0xff]  }
  0x27   : > { %3372 = vmatmul.mubr.msk.bf16.vlgmr.msra.gmra.mrb[0].mxu0 %vm538_vm1, %v1093_v2  ;;  %v474_v39 = vshll.u32 %v3862_v25, 16  ;;  %v1126_v43 = vshrl.u32 %v3851_v16, 16  ;;  %v456_v45 = vor.u32 %v454_v22, %v452_v18  ;;  %v1124_v46 = vrot.slane %v1122_v28, 1 }
  0x28   : > { %3404 = vmatpush3.bf16.msra.mxu0 %v3625_v36  ;;  %3375 = vmatprep.mubr.msk.bf16.mxu0 %vm538_vm1, %v1101_v12  ;;  %v453_v36 = vsel %vm393_vm0, %v448_v17, %v452_v18  ;;  %v1117_v42 = vsel %vm393_vm0, %v1112_v27, %v1116_v33  ;;  %v470_v47 = vshrl.u32 %v3857_v21, 16  ;;  %v1130_v49 = vshll.u32 %v3867_v29, 16 }
  0x29   : > { %v1120_v52 = vor.u32 %v1118_v34, %v1116_v33  ;;  %v1138_v53 = vshll.u32 %v3876_v41, 16  ;;  %v464_v55 = vor.u32 %v462_v37, %v460_v32  ;;  %v468_v56 = vrot.slane %v466_v38, 1  ;;  %3405 = vmatprep.subr.bf16.mxu0 %v3642_v13 }
  0x2a   : > { %v476_v57 = vrot.slane %v474_v39, 1  ;;  %v482_v58 = vshll.u32 %v3881_v44, 16  ;;  %v1128_v59 = vor.u32 %v1126_v43, %v1124_v46  ;;  %v1132_v60 = vrot.slane %v1130_v49, 1  ;;  %v3936_v43 = vld [vmem:[%s3764_s6 + $0x78] sm:$0xff]  }
  0x2b   : > { %v1134_v62 = vshrl.u32 %v3867_v29, 16  ;;  %v461_v0 = vsel %vm393_vm0, %v456_v45, %v460_v32  ;;  %v478_v2 = vshrl.u32 %v3862_v25, 16  ;;  %v1140_v5 = vrot.slane %v1138_v53, 1 }
  0x2c   : > { %v486_v6 = vshrl.u32 %v3881_v44, 16  ;;  %v490_v7 = vshll.u32 %v3887_v51, 16  ;;  %v1146_v9 = vshll.u32 %v3893_v54, 16  ;;  %v1125_v10 = vsel %vm393_vm0, %v1120_v52, %v1124_v46  ;;  %3406 = vmatpush3.bf16.msra.mxu0 %v3642_v13 }
  0x2d   : > { %3308 = vmatmul.mubr.msk.bf16.gmra.mrb[8].mxu1 %vm538_vm1, %v445_v26  ;;  %v469_v11 = vsel %vm393_vm0, %v464_v55, %v468_v56  ;;  %v484_v12 = vrot.slane %v482_v58, 1  ;;  %v1133_v14 = vsel %vm393_vm0, %v1128_v59, %v1132_v60  ;;  %v1142_v17 = vshrl.u32 %v3876_v41, 16  ;;  %v3923_v26 = vld [vmem:[%s3764_s6 + $0x60] sm:$0xff]  }
  0x2e   : > { %3311 = vmatprep.mubr.msk.bf16.mxu1 %vm538_vm1, %v453_v36  ;;  %v1154_v18 = vshll.u32 %v3901_v3, 16  ;;  %v472_v22 = vor.u32 %v470_v47, %v468_v56  ;;  %v1150_v23 = vshrl.u32 %v3893_v54, 16  ;;  %v1136_v27 = vor.u32 %v1134_v62, %v1132_v60  ;;  %v3932_v36 = vld [vmem:[%s3764_s6 + $0x68] sm:$0xff]  }
  0x2f   : > { %3376 = vmatmul.mubr.msk.bf16.gmra.mrb[4].mxu0 %vm538_vm1, %v1109_v31  ;;  %v1148_v28 = vrot.slane %v1146_v9, 1  ;;  %v498_v31 = vshll.u32 %v3915_v19, 16  ;;  %v480_v32 = vor.u32 %v478_v2, %v476_v57  ;;  %v494_v33 = vshrl.u32 %v3887_v51, 16 }
  0x30   : > { %3379 = vmatprep.mubr.msk.bf16.mxu0 %vm538_vm1, %v1117_v42  ;;  %v1162_v34 = vshll.u32 %v3923_v26, 16  ;;  %v492_v37 = vrot.slane %v490_v7, 1  ;;  %v1144_v38 = vor.u32 %v1142_v17, %v1140_v5  ;;  %v1156_v39 = vrot.slane %v1154_v18, 1  ;;  %v3952_v7 = vld [vmem:[%s3764_s6 + $0x78] sm:$0xff]  }
  0x31   : > { %v502_v42 = vshrl.u32 %v3915_v19, 16  ;;  %v477_v45 = vsel %vm393_vm0, %v472_v22, %v476_v57  ;;  %v488_v46 = vor.u32 %v486_v6, %v484_v12  ;;  %v506_v47 = vshll.u32 %v3918_v20, 16  ;;  %v3648_v57 = vld [vmem:[%s3764_s6 + $0x80] ss:$0 sps:$4 sm:$0x11]  }
  0x32   : > { %v1158_v49 = vshrl.u32 %v3901_v3, 16  ;;  %v1141_v52 = vsel %vm393_vm0, %v1136_v27, %v1140_v5  ;;  %v1152_v53 = vor.u32 %v1150_v23, %v1148_v28  ;;  %v500_v55 = vrot.slane %v498_v31, 1 }
  0x33   : > { %v1166_v56 = vshrl.u32 %v3923_v26, 16  ;;  %v485_v58 = vsel %vm393_vm0, %v480_v32, %v484_v12  ;;  %v496_v59 = vor.u32 %v494_v33, %v492_v37  ;;  %v1164_v60 = vrot.slane %v1162_v34, 1  ;;  %v3957_v12 = vld [vmem:[%s3764_s6 + $0x80] sm:$0xff]  }
  0x34   : > { %v1170_v62 = vshll.u32 %v3932_v36, 16  ;;  %v1149_v2 = vsel %vm393_vm0, %v1144_v38, %v1148_v28  ;;  %v514_v6 = vshll.u32 %v3936_v43, 16  ;;  %v493_v5 = vsel %vm393_vm0, %v488_v46, %v492_v37 }
  0x35   : > { %3312 = vmatmul.mubr.msk.bf16.gmra.mrb[12].mxu1 %vm538_vm1, %v461_v0  ;;  %v3947_v0 = vld [vmem:[%s3764_s6 + $0x70] sm:$0xff]   ;;  %v508_v9 = vrot.slane %v506_v47, 1  ;;  %v1157_v13 = vsel %vm393_vm0, %v1152_v53, %v1156_v39  ;;  %v510_v17 = vshrl.u32 %v3918_v20, 16  ;;  %v501_v22 = vsel %vm393_vm0, %v496_v59, %v500_v55 }
  0x36   : > { %3315 = vmatprep.mubr.msk.bf16.mxu1 %vm538_vm1, %v469_v11  ;;  %v522_v11 = vshll.u32 %v3648_v57, 16  ;;  %v1178_v18 = vshll.u32 %v3947_v0, 16  ;;  %v1168_v23 = vor.u32 %v1166_v56, %v1164_v60  ;;  %v1172_v27 = vrot.slane %v1170_v62, 1 }
  0x37   : > { %3380 = vmatmul.mubr.msk.bf16.gmra.mrb[8].mxu0 %vm538_vm1, %v1125_v10  ;;  %v1160_v10 = vor.u32 %v1158_v49, %v1156_v39  ;;  %v1186_v28 = vshll.u32 %v3952_v7, 16  ;;  %v3967_v31 = vrot.slane %v514_v6, 1  ;;  %v518_v32 = vshrl.u32 %v3936_v43, 16 }
  0x38   : > { %3383 = vmatprep.mubr.msk.bf16.mxu0 %vm538_vm1, %v1133_v14  ;;  %v504_v14 = vor.u32 %v502_v42, %v500_v55  ;;  %v1174_v33 = vshrl.u32 %v3932_v36, 16  ;;  %v1194_v34 = vshll.u32 %v3957_v12, 16  ;;  %v3973_v38 = vrot.slane %v522_v11, 1  ;;  %v3977_v42 = vld [vmem:[%s3764_s6 + $0x88] ss:$0 sps:$4 sm:$0x11]  }
  0x39   : > { %v1165_v37 = vsel %vm393_vm0, %v1160_v10, %v1164_v60  ;;  %v1182_v39 = vshrl.u32 %v3947_v0, 16  ;;  %v512_v47 = vor.u32 %v510_v17, %v508_v9  ;;  %v1180_v49 = vrot.slane %v1178_v18, 1  ;;  %v3657_v11 = vld [vmem:[%s3764_s6 + $0x88] ss:$0 sps:$4 sm:$0x11]  }
  0x3a   : > { %v509_v46 = vsel %vm393_vm0, %v504_v14, %v508_v9  ;;  %v3983_v53 = vrot.slane %v1186_v28, 1  ;;  %v1202_v55 = vshll.u32 %v3977_v42, 16  ;;  %v1472_v56 = vrot.slane %v3794_v35, 1  ;;  %v3658_v35 = vld [vmem:[%s4872_s1] sm:$0xff]  }
  0x3b   : > { %v1173_v59 = vsel %vm393_vm0, %v1168_v23, %v1172_v27  ;;  %v1190_v60 = vshrl.u32 %v3952_v7, 16  ;;  %v1476_v57 = vrot.slane %v3825_v61, 1  ;;  %v1478_v10 = vrot.slane %v3843_v1, 1 }
  0x3c   : > { %v1204_v6 = vrot.slane %v1202_v55, 1  ;;  %v517_v61 = vsel %vm393_vm0, %v512_v47, %v3967_v31  ;;  %v1480_v14 = vrot.slane %v3851_v16, 1  ;;  %v1482_v17 = vrot.slane %v3867_v29, 1 }
  0x3d   : > { %3316 = vmatmul.mubr.msk.bf16.gmra.mrb[16].mxu1 %vm538_vm1, %v477_v45  ;;  %v1198_v45 = vshrl.u32 %v3957_v12, 16  ;;  %v4017_v18 = vsel %vm1468_vm2, %v1476_v57, %v1478_v10  ;;  %v1488_v29 = vrot.slane %v3901_v3, 1  ;;  %v2404_v3 = vshll.u32 %v3657_v11, 16  ;;  %v2520_v11 = vld [vmem:[%s3764_s6 + $0x8c] sm:$0xf] }
  0x3e   : > { %3319 = vmatprep.mubr.msk.bf16.mxu1 %vm538_vm1, %v485_v58  ;;  %v1474_v58 = vrot.slane %v3817_v50, 1  ;;  %v4000_v50 = vld [vmem:[%s3764_s6 + $0x80] sm:$0xff]   ;;  %v4022_v23 = vsel %vm1468_vm2, %v1478_v10, %v1480_v14  ;;  %v4025_v16 = vsel %vm1468_vm2, %v1480_v14, %v1482_v17  ;;  %v1494_v47 = vrot.slane %v3947_v0, 1 }
  0x3f   : > { %3384 = vmatmul.mubr.msk.bf16.gmra.mrb[12].mxu0 %vm538_vm1, %v1141_v52  ;;  %v3981_v52 = vrot.slane %v1194_v34, 1  ;;  %v1496_v55 = vrot.slane %v3952_v7, 1  ;;  %v1500_v14 = vrot.slane %v3977_v42, 1  ;;  %v520_v42 = vor.u32 %v518_v32, %v3967_v31  ;;  %v1459_v31 = vld [vmem:[%s3764_s6 + $0x8] sm:$0xe] }
  0x40   : > { %3387 = vmatprep.mubr.msk.bf16.mxu0 %vm538_vm1, %v1149_v2  ;;  %v1176_v2 = vor.u32 %v1174_v33, %v1172_v27  ;;  %v3996_v9 = vsel %vm1468_vm2, %v1472_v56, %v1474_v58  ;;  %v1490_v27 = vrot.slane %v3923_v26, 1  ;;  %v1492_v26 = vrot.slane %v3932_v36, 1 }
  0x41   : > { %v1200_v62 = vor.u32 %v1198_v45, %v3981_v52  ;;  %v4059_v7 = vsel %vm1468_vm2, %v1494_v47, %v1496_v55  ;;  %v525_v32 = vsel %vm393_vm0, %v520_v42, %v3973_v38 }
  0x42   : > { %v4050_v10 = vsel %vm1468_vm2, %v1490_v27, %v1492_v26 }
  0x43   : > { %v4014_v1 = vsel %vm393_vm0, %v1200_v62, %v1204_v6  ;;  %v2519_v62 = vld [vmem:[%s3764_s6 + $0x88] sm:$0xf]  ;;  %v2406_v6 = vrot.slane %v2404_v3, 1 }
  0x45   : > { %3320 = vmatmul.mubr.msk.bf16.gmra.mrb[20].mxu1 %vm538_vm1, %v493_v5  ;;  %v4008_v5 = vsel %vm1468_vm2, %v1474_v58, %v1476_v57  ;;  %v1498_v58 = vrot.slane %v3957_v12, 1  ;;  %v1181_v57 = vsel %vm393_vm0, %v1176_v2, %v1180_v49  ;;  %v3663_v2 = vld [vmem:[%s3764_s6 + $0x90] ss:$0 sps:$4 sm:$0x11]  }
  0x46   : > { %3323 = vmatprep.mubr.msk.bf16.mxu1 %vm538_vm1, %v501_v22  ;;  %v1486_v22 = vrot.slane %v3893_v54, 1  ;;  %v2399_v54 = vshll.u32 %v4000_v50, 16 }
  0x47   : > { %3388 = vmatmul.mubr.msk.bf16.gmra.mrb[16].mxu0 %vm538_vm1, %v1157_v13  ;;  %v1484_v13 = vrot.slane %v3876_v41, 1  ;;  %v2397_v41 = vshrl.u32 %v4000_v50, 16  ;;  %v4062_v12 = vsel %vm1468_vm2, %v1496_v55, %v1498_v58 }
  0x48   : > { %3391 = vmatprep.mubr.msk.bf16.mxu0 %vm538_vm1, %v1165_v37  ;;  %v4038_v34 = vsel %vm1468_vm2, %v1486_v22, %v1488_v29  ;;  %v4041_v37 = vsel %vm1468_vm2, %v1488_v29, %v1490_v27  ;;  %v2401_v45 = vrot.slane %v2399_v54, 1  ;;  %v1192_v29 = vor.u32 %v1190_v60, %v3983_v53 }
  0x49   : > { %v4030_v28 = vsel %vm1468_vm2, %v1482_v17, %v1484_v13  ;;  %v4033_v33 = vsel %vm1468_vm2, %v1484_v13, %v1486_v22  ;;  %v4056_v17 = vsel %vm1468_vm2, %v1492_v26, %v1494_v47  ;;  %v3059_v13 = vcombine.low %v2519_v62, %v2520_v11 }
  0x4a   : > { %v2402_v36 = vor.u32 %v2401_v45, %v2397_v41  ;;  %v1184_v22 = vor.u32 %v1182_v39, %v1180_v49  ;;  %v2604_v41 = vld [vmem:[%s3764_s6 + $0x88] sm:$0xe]  ;;  %v2613_v26 = vrot.slane %v3663_v2, 1  ;;  %v1197_v39 = vsel %vm393_vm0, %v1192_v29, %v3981_v52 }
  0x4b   : > { %v2537_v54 = vshll.u32 %v3059_v13, 16  ;;  %v3068_v3 = vcombine.low %v2604_v41, %v2520_v11  ;;  %v2992_v49 = vcombine.low %v1459_v31, %v3784_v24  ;;  %v1470_v52 = vrot.slane %v3789_v30, 1  ;;  %v3652_v24 = vld [vmem:[%s4872_s1 + $0x10] sm:$0xff]  }
  0x4c   : > { %v2407_v27 = vsel %vm393_vm0, %v2402_v36, %v2406_v6  ;;  %v1189_v0 = vsel %vm393_vm0, %v1184_v22, %v3983_v53 }
  0x4d   : > { %3324 = vmatmul.mubr.msk.bf16.gmra.mrb[24].mxu1 %vm538_vm1, %v509_v46  ;;  %v4071_v46 = vsel %vm1468_vm2, %v1498_v58, %v1500_v14  ;;  %v2539_v45 = vrot.slane %v2537_v54, 1  ;;  %v2612_v55 = vrot.slane %v3068_v3, 1  ;;  %v1469_v53 = vrot.slane %v2992_v49, 1 }
  0x4e   : > { %3327 = vmatprep.mubr.msk.bf16.mxu1 %vm538_vm1, %v517_v61  ;;  %v2535_v61 = vshrl.u32 %v3059_v13, 16  ;;  %v1473_v30 = vsel %vm1468_vm2, %v1470_v52, %v1472_v56 }
  0x4f   : > { %3392 = vmatmul.mubr.msk.bf16.gmra.mrb[20].mxu0 %vm538_vm1, %v1173_v59  ;;  %v2542_v59 = vshll.u32 %v3663_v2, 16  ;;  %v4088_v58 = vsel %vm1468_vm2, %v2612_v55, %v2613_v26  ;;  %v1471_v62 = vsel %vm1468_vm2, %v1469_v53, %v1470_v52 }
  0x50   : > { %3395 = vmatprep.mubr.msk.bf16.mxu0 %vm538_vm1, %v1181_v57  ;;  %v2540_v60 = vor.u32 %v2539_v45, %v2535_v61 }
  0x51   : > { %v2544_v47 = vrot.slane %v2542_v59, 1 }
  0x53   : > { %v2545_v38 = vsel %vm393_vm0, %v2540_v60, %v2544_v47 }
  0x55   : > { %3328 = vmatmul.mubr.msk.bf16.gmra.mrb[28].mxu1 %vm538_vm1, %v525_v32 }
  0x56   : > { %3343 = vmatprep.mubr.msk.bf16.mxu1 %vm538_vm1, %v3778_v15  ;;  %v3655_v15 = vld [vmem:[%s4872_s1 + $0x18] sm:$0xff]  }
  0x57   : > { %3396 = vmatmul.mubr.msk.bf16.gmra.mrb[24].mxu0 %vm538_vm1, %v1189_v0 }
  0x58   : > { %3399 = vmatprep.mubr.msk.bf16.mxu0 %vm538_vm1, %v1197_v39 }
  0x5d   : > { %3344 = vmatmul.mubr.msk.bf16.vlgmr.msra.gmra.mrb[8].mxu1 %vm538_vm1, %v3803_v40  ;;  %v3659_v40 = vld [vmem:[%s4872_s1 + $0x8] sm:$0xff]  }
  0x5e   : > { %3440 = vmatpush3.bf16.msra.mxu1 %v3652_v24  ;;  %3347 = vmatprep.mubr.msk.bf16.mxu1 %vm538_vm1, %v3813_v48  ;;  %v3660_v48 = vld [vmem:[%s4872_s1 + $0x20] sm:$0xff]  }
  0x5f   : > { %3400 = vmatmul.mubr.msk.bf16.gmra.mrb[28].mxu0 %vm538_vm1, %v4014_v1  ;;  %3441 = vmatprep.subr.bf16.mxu1 %v3691_v4 }
  0x60   : > { %3407 = vmatprep.mubr.msk.bf16.mxu0 %vm538_vm1, %v1471_v62 }
  0x62   : > { %3442 = vmatpush3.bf16.msra.mxu1 %v3655_v15 }
  0x63   : > { %3447 = vmatprep.subr.bf16.mxu1 %v3691_v4 }
  0x65   : > { %3348 = vmatmul.mubr.msk.bf16.gmra.mrb[12].mxu1 %vm538_vm1, %v3829_v63  ;;  %v3661_v63 = vld [vmem:[%s4872_s1 + $0x28] sm:$0xff]  }
  0x66   : > { %3351 = vmatprep.mubr.msk.bf16.mxu1 %vm538_vm1, %v3840_v8  ;;  %v3664_v8 = vld [vmem:[%s4872_s1 + $0x30] sm:$0xff]  }
  0x67   : > { %3408 = vmatmul.mubr.msk.bf16.vlgmr.msra.gmra.mrb[0].mxu0 %vm538_vm1, %v1473_v30 }
  0x68   : > { %3411 = vmatprep.mubr.msk.bf16.mxu0 %vm538_vm1, %v3996_v9 }
  0x6d   : > { %3352 = vmatmul.mubr.msk.bf16.gmra.mrb[16].mxu1 %vm538_vm1, %v3857_v21  ;;  %v3665_v21 = vld [vmem:[%s4872_s1 + $0x38] sm:$0xff]  }
  0x6e   : > { %3355 = vmatprep.mubr.msk.bf16.mxu1 %vm538_vm1, %v3862_v25 }
  0x6f   : > { %3412 = vmatmul.mubr.msk.bf16.gmra.mrb[4].mxu0 %vm538_vm1, %v4008_v5 }
  0x70   : > { %3415 = vmatprep.mubr.msk.bf16.mxu0 %vm538_vm1, %v4017_v18 }
  0x75   : > { %3356 = vmatmul.mubr.msk.bf16.gmra.mrb[20].mxu1 %vm538_vm1, %v3881_v44 }
  0x76   : > { %3359 = vmatprep.mubr.msk.bf16.mxu1 %vm538_vm1, %v3887_v51 }
  0x77   : > { %3416 = vmatmul.mubr.msk.bf16.gmra.mrb[8].mxu0 %vm538_vm1, %v4022_v23 }
  0x78   : > { %3419 = vmatprep.mubr.msk.bf16.mxu0 %vm538_vm1, %v4025_v16 }
  0x7d   : > { %3360 = vmatmul.mubr.msk.bf16.gmra.mrb[24].mxu1 %vm538_vm1, %v3915_v19 }
  0x7e   : > { %3363 = vmatprep.mubr.msk.bf16.mxu1 %vm538_vm1, %v3918_v20 }
  0x7f   : > { %3420 = vmatmul.mubr.msk.bf16.gmra.mrb[12].mxu0 %vm538_vm1, %v4030_v28 }
  0x80   : > { %3423 = vmatprep.mubr.msk.bf16.mxu0 %vm538_vm1, %v4033_v33 }
  0x85   : > { %3364 = vmatmul.mubr.msk.bf16.gmra.mrb[28].mxu1 %vm538_vm1, %v3936_v43 }
  0x86   : > { %3443 = vmatprep.mubr.msk.bf16.mxu1 %vm3692_vm3, %v3691_v4 }
  0x87   : > { %3424 = vmatmul.mubr.msk.bf16.gmra.mrb[16].mxu0 %vm538_vm1, %v4038_v34 }
  0x88   : > { %3427 = vmatprep.mubr.msk.bf16.mxu0 %vm538_vm1, %v4041_v37 }
  0x8d   : > { %3444 = vmatmul.mubr.msk.bf16.vlgmr.msra.gmra.mrb[32].mxu1 %vm538_vm1, %v2407_v27 }
  0x8e   : > { %3448 = vmatpush3.bf16.msra.mxu1 %v3658_v35  ;;  %3451 = vmatprep.mubr.msk.bf16.mxu1 %vm3692_vm3, %v3691_v4 }
  0x8f   : > { %3428 = vmatmul.mubr.msk.bf16.gmra.mrb[20].mxu0 %vm538_vm1, %v4050_v10  ;;  %3449 = vmatprep.subr.bf16.mxu1 %v3691_v4 }
  0x90   : > { %3431 = vmatprep.mubr.msk.bf16.mxu0 %vm538_vm1, %v4056_v17 }
  0x92   : > { %3450 = vmatpush3.bf16.msra.mxu1 %v3659_v40 }
  0x93   : > { %3455 = vmatprep.subr.bf16.mxu1 %v3691_v4 }
  0x97   : > { %3432 = vmatmul.mubr.msk.bf16.gmra.mrb[24].mxu0 %vm538_vm1, %v4059_v7 }
  0x98   : > { %3435 = vmatprep.mubr.msk.bf16.mxu0 %vm538_vm1, %v4062_v12 }
  0x99   : > { %3452 = vmatmul.mubr.msk.bf16.vlgmr.msra.gmra.mrb[32].mxu1 %vm538_vm1, %v4000_v50 }
  0x9a   : > { %3456 = vmatpush3.bf16.msra.mxu1 %v3660_v48  ;;  %3459 = vmatprep.mubr.msk.bf16.mxu1 %vm3692_vm3, %v3691_v4 }
  0x9b   : > { %3457 = vmatprep.subr.bf16.mxu1 %v3691_v4 }
  0x9e   : > { %3458 = vmatpush3.bf16.msra.mxu1 %v3661_v63 }
  0x9f   : > { %3436 = vmatmul.mubr.msk.bf16.gmra.mrb[28].mxu0 %vm538_vm1, %v4071_v46  ;;  %3463 = vmatprep.subr.bf16.mxu1 %v3691_v4 }
  0xa5   : > { %3460 = vmatmul.mubr.msk.bf16.vlgmr.msra.gmra.mrb[32].mxu1 %vm538_vm1, %v2545_v38 }
  0xa6   : > { %3464 = vmatpush3.bf16.msra.mxu1 %v3664_v8  ;;  %3467 = vmatprep.mubr.msk.bf16.mxu1 %vm3692_vm3, %v3691_v4 }
  0xa7   : > { %3465 = vmatprep.subr.bf16.mxu1 %v3691_v4  ;;  %v1915_v4 = vlaneseq }
  0xa9   : > { %v4216_v50 = vshrl.u32 %v1915_v4, 7 }
  0xaa   : > { %3466 = vmatpush3.bf16.msra.mxu1 %v3665_v21 }
  0xab   : > { %v1918_v5 = vadd.s32 16, %v4216_v50  ;;  %v1919_v1 = vadd.s32 24, %v4216_v50  ;;  %v4221_v18 = vadd.s32 8, %v4216_v50  ;;  %v4877_v16 = vcvt.s32.f32 %v4216_v50 }
  0xac   : > { %v1922_v33 = vadd.s32 48, %v4216_v50  ;;  %v1920_v57 = vadd.s32 32, %v4216_v50  ;;  %v1923_v36 = vadd.s32 56, %v4216_v50  ;;  %v1921_v13 = vadd.s32 40, %v4216_v50 }
  0xad   : > { %4883 = vst [vmem:[#allocation2_spill] sm:$0xff] %v4221_v18  ;;  %v1950_v23 = vcvt.s32.f32 %v1918_v5  ;;  %v1951_v28 = vcvt.s32.f32 %v1919_v1  ;;  %v4876_v34 = vcvt.s32.f32 %v4221_v18  ;;  %v4231_v6 = vadd.f32 0.5, %v4877_v16 }
  0xae   : > { %v1954_v14 = vcvt.s32.f32 %v1922_v33  ;;  %v1952_v7 = vcvt.s32.f32 %v1920_v57  ;;  %v1955_v22 = vcvt.s32.f32 %v1923_v36  ;;  %v1953_v3 = vcvt.s32.f32 %v1921_v13 }
  0xaf   : > { %v4226_v37 = vadd.f32 0.5, %v1950_v23  ;;  %v4233_v10 = vadd.f32 0.5, %v1951_v28  ;;  %v4237_v11 = vadd.f32 0.5, %v4876_v34  ;;  %v2013_v12 = vmul.f32 0.05882353, %v4231_v6 }
  0xb0   : > { %v4243_v42 = vadd.f32 0.5, %v1954_v14  ;;  %v4247_v27 = vadd.f32 0.5, %v1952_v7  ;;  %v4250_v26 = vadd.f32 0.5, %v1955_v22  ;;  %v4261_v39 = vadd.f32 0.5, %v1953_v3 }
  0xb1   : > { %3468 = vmatmul.mubr.msk.bf16.vlgmr.msra.gmra.mrb[32].mxu1 %vm538_vm1, %v4088_v58  ;;  %v2015_v17 = vmul.f32 0.05882353, %v4226_v37  ;;  %v2016_v2 = vmul.f32 0.05882353, %v4233_v10  ;;  %v2014_v46 = vmul.f32 0.05882353, %v4237_v11  ;;  %v2045_v59 = vfloor.f32 %v2013_v12 }
  0xb2   : > { %v2019_v61 = vmul.f32 0.05882353, %v4243_v42  ;;  %v2017_v32 = vmul.f32 0.05882353, %v4247_v27  ;;  %v1926_v49 = vadd.s32 80, %v4216_v50  ;;  %v1924_v53 = vadd.s32 64, %v4216_v50 }
  0xb3   : > { %v2047_v29 = vfloor.f32 %v2015_v17  ;;  %v2048_v41 = vfloor.f32 %v2016_v2  ;;  %v2046_v54 = vfloor.f32 %v2014_v46  ;;  %v4255_v45 = vmul.f32 17.0, %v2045_v59 }
  0xb4   : > { %v2051_v55 = vfloor.f32 %v2019_v61  ;;  %v2020_v60 = vmul.f32 0.05882353, %v4250_v26  ;;  %v2049_v38 = vfloor.f32 %v2017_v32  ;;  %v1927_v52 = vadd.s32 88, %v4216_v50 }
  0xb5   : > { %v4252_v31 = vmul.f32 17.0, %v2047_v29  ;;  %v4257_v47 = vmul.f32 17.0, %v2048_v41  ;;  %v4259_v0 = vmul.f32 17.0, %v2046_v54  ;;  %v1925_v30 = vadd.s32 72, %v4216_v50 }
  0xb6   : > { %v4273_v15 = vmul.f32 17.0, %v2051_v55  ;;  %v2018_v40 = vmul.f32 0.05882353, %v4261_v39  ;;  %v1958_v48 = vcvt.s32.f32 %v1926_v49  ;;  %v1930_v63 = vadd.s32 112, %v4216_v50 }
  0xb7   : > { %v2052_v8 = vfloor.f32 %v2020_v60  ;;  %v1928_v21 = vadd.s32 96, %v4216_v50  ;;  %v1931_v4 = vadd.s32 120, %v4216_v50  ;;  %v1929_v5 = vadd.s32 104, %v4216_v50 }
  0xb8   : > { %v4283_v1 = vmul.f32 17.0, %v2049_v38  ;;  %v1956_v23 = vcvt.s32.f32 %v1924_v53  ;;  %v1959_v28 = vcvt.s32.f32 %v1927_v52  ;;  %v1934_v33 = vadd.s32 144, %v4216_v50 }
  0xb9   : > { %v1957_v14 = vcvt.s32.f32 %v1925_v30  ;;  %v1932_v36 = vadd.s32 128, %v4216_v50  ;;  %v1935_v17 = vadd.s32 152, %v4216_v50  ;;  %v2050_v7 = vfloor.f32 %v2018_v40 }
  0xba   : > { %v4290_v12 = vadd.f32 0.5, %v1958_v48  ;;  %v1962_v2 = vcvt.s32.f32 %v1930_v63  ;;  %v1933_v46 = vadd.s32 136, %v4216_v50  ;;  %v4293_v13 = vmul.f32 17.0, %v2052_v8 }
  0xbb   : > { %v1960_v22 = vcvt.s32.f32 %v1928_v21  ;;  %v1963_v29 = vcvt.s32.f32 %v1931_v4  ;;  %v1961_v59 = vcvt.s32.f32 %v1929_v5  ;;  %v4297_v61 = vadd.f32 0.5, %v1956_v23 }
  0xbc   : > { %v4299_v54 = vadd.f32 0.5, %v1959_v28  ;;  %v1966_v3 = vcvt.s32.f32 %v1934_v33  ;;  %v4301_v32 = vadd.f32 0.5, %v1957_v14  ;;  %v1964_v55 = vcvt.s32.f32 %v1932_v36 }
  0xbd   : > { %v1967_v49 = vcvt.s32.f32 %v1935_v17  ;;  %v1938_v60 = vadd.s32 176, %v4216_v50  ;;  %v4304_v38 = vmul.f32 17.0, %v2050_v7  ;;  %v2023_v53 = vmul.f32 0.05882353, %v4290_v12 }
  0xbe   : > { %v4307_v52 = vadd.f32 0.5, %v1962_v2  ;;  %v1965_v30 = vcvt.s32.f32 %v1933_v46  ;;  %v4309_v40 = vadd.f32 0.5, %v1960_v22  ;;  %v4311_v48 = vadd.f32 0.5, %v1963_v29 }
  0xbf   : > { %v4313_v63 = vadd.f32 0.5, %v1961_v59  ;;  %v1936_v8 = vadd.s32 160, %v4216_v50  ;;  %v2021_v4 = vmul.f32 0.05882353, %v4297_v61  ;;  %v2024_v5 = vmul.f32 0.05882353, %v4299_v54 }
  0xc0   : > { %v4320_v23 = vadd.f32 0.5, %v1966_v3  ;;  %v2022_v28 = vmul.f32 0.05882353, %v4301_v32  ;;  %v4323_v33 = vadd.f32 0.5, %v1964_v55  ;;  %v4325_v14 = vadd.f32 0.5, %v1967_v49 }
  0xc1   : > { %v1970_v36 = vcvt.s32.f32 %v1938_v60  ;;  %v2055_v7 = vfloor.f32 %v2023_v53  ;;  %v2027_v2 = vmul.f32 0.05882353, %v4307_v52  ;;  %v4330_v46 = vadd.f32 0.5, %v1965_v30 }
  0xc2   : > { %4884 = vst [vmem:[#allocation3_spill] sm:$0xff] %v4320_v23  ;;  %4885 = vst [vmem:[#allocation4_spill] sm:$0xff] %v4325_v14  ;;  %v2025_v22 = vmul.f32 0.05882353, %v4309_v40  ;;  %v2028_v29 = vmul.f32 0.05882353, %v4311_v48  ;;  %v1968_v3 = vcvt.s32.f32 %v1936_v8  ;;  %v2053_v55 = vfloor.f32 %v2021_v4 }
  0xc3   : > { %v2026_v59 = vmul.f32 0.05882353, %v4313_v63  ;;  %v2056_v34 = vfloor.f32 %v2024_v5  ;;  %v2031_v49 = vmul.f32 0.05882353, %v4320_v23  ;;  %v1939_v60 = vadd.s32 184, %v4216_v50 }
  0xc4   : > { %v2054_v16 = vfloor.f32 %v2022_v28  ;;  %v2029_v53 = vmul.f32 0.05882353, %v4323_v33  ;;  %v2032_v21 = vmul.f32 0.05882353, %v4325_v14  ;;  %v4339_v30 = vadd.f32 0.5, %v1970_v36 }
  0xc5   : > { %v4343_v57 = vmul.f32 17.0, %v2055_v7  ;;  %v2059_v41 = vfloor.f32 %v2027_v2  ;;  %v2030_v8 = vmul.f32 0.05882353, %v4330_v46  ;;  %v1937_v4 = vadd.s32 168, %v4216_v50 }
  0xc6   : > { %v2057_v62 = vfloor.f32 %v2025_v22  ;;  %v2060_v35 = vfloor.f32 %v2028_v29  ;;  %v2058_v28 = vfloor.f32 %v2026_v59  ;;  %v4349_v58 = vadd.f32 0.5, %v1968_v3 }
  0xc7   : > { %v4889_v36 = vsub.f32 %v4231_v6, %v4255_v45  ;;  %v4360_v2 = vmul.f32 17.0, %v2053_v55  ;;  %v4362_v18 = vmul.f32 17.0, %v2056_v34  ;;  %v4366_v29 = vmul.f32 17.0, %v2054_v16 }
  0xc8   : > { %v2061_v59 = vfloor.f32 %v2029_v53  ;;  %v2064_v3 = vfloor.f32 %v2032_v21  ;;  %v4892_v6 = vsub.f32 %v4226_v37, %v4252_v31  ;;  %v4895_v34 = vsub.f32 %v4237_v11, %v4259_v0 }
  0xc9   : > { %vm4356_vm4 = vcmp.lt.f32.partialorder %v4889_v36, 16.0  ;;  %v4385_v21 = vmul.f32 17.0, %v2059_v41  ;;  %v4387_v53 = vmul.f32 17.0, %v2057_v62  ;;  %v4389_v37 = vmul.f32 17.0, %v2060_v35 }
  0xca   : > { %vm4372_vm5 = vcmp.lt.f32.partialorder %v4892_v6, 16.0  ;;  %vm4379_vm6 = vcmp.lt.f32.partialorder %v4895_v34, 16.0  ;;  %v4391_v31 = vmul.f32 17.0, %v2058_v28  ;;  %v2033_v36 = vmul.f32 0.05882353, %v4349_v58 }
  0xcb   : > { %v4898_v11 = vsub.f32 %v4233_v10, %v4257_v47  ;;  %v4411_v28 = vmul.f32 17.0, %v2061_v59  ;;  %v4413_v10 = vmul.f32 17.0, %v2064_v3  ;;  %v4905_v41 = vsub.f32 %v4247_v27, %v4283_v1 }
  0xcc   : > { %v2065_v34 = vfloor.f32 %v2033_v36  ;;  %v1940_v3 = vadd.s32 192, %v4216_v50  ;;  %v4918_v0 = vsub.f32 %v4297_v61, %v4360_v2 }
  0xcd   : > { %vm4397_vm7 = vcmp.lt.f32.partialorder %v4898_v11, 16.0  ;;  %4902 = vst [vmem:[#allocation9_spill] sm:$0xff] %v4413_v10  ;;  %vm4439_vm8 = vcmp.lt.f32.partialorder %v4905_v41, 16.0 }
  0xce   : > { %v1972_v27 = vcvt.s32.f32 %v1940_v3  ;;  %vm4519_vm12 = vcmp.lt.f32.partialorder %v4918_v0, 16.0 }
  0xf0   : > { %v4200_v25 = vpop.f32.mrb[0].mxu1 }
  0xf1   : > { %v4202_v44 = vpop.f32.mrb[1].mxu1 }
  0xf2   : > { %v4204_v51 = vpop.f32.mrb[2].mxu1 }
  0xf3   : > { %v4206_v19 = vpop.f32.mrb[3].mxu1 }
  0xf8   : > { %v4208_v20 = vpop.f32.mrb[4].mxu1 }
  0xf9   : > { %v4210_v43 = vpop.f32.mrb[5].mxu1 }
  0xfa   : > { %v4212_v56 = vpop.f32.mrb[6].mxu1 }
  0xfb   : > { %v4214_v9 = vpop.f32.mrb[7].mxu1 }
 0x130   : > { %v4341_v17 = vpop.f32.mrb[8].mxu1 }
 0x131   : > { %4886 = vst [vmem:[#allocation5_spill] sm:$0xff] %v4341_v17  ;;  %v4347_v5 = vpop.f32.mrb[9].mxu1  ;;  %v2063_v17 = vfloor.f32 %v2031_v49  ;;  %v2062_v49 = vfloor.f32 %v2030_v8 }
 0x132   : > { %4887 = vst [vmem:[#allocation6_spill] sm:$0xff] %v4347_v5  ;;  %v4351_v24 = vpop.f32.mrb[10].mxu1  ;;  %v1971_v5 = vcvt.s32.f32 %v1939_v60  ;;  %v1969_v60 = vcvt.s32.f32 %v1937_v4 }
 0x133   : > { %4888 = vst [vmem:[#allocation7_spill] sm:$0xff] %v4351_v24  ;;  %v4364_v22 = vpop.f32.mrb[11].mxu1  ;;  %v2035_v24 = vmul.f32 0.05882353, %v4339_v30  ;;  %v4405_v35 = vmul.f32 17.0, %v2063_v17  ;;  %v4419_v11 = vmul.f32 17.0, %v2062_v49 }
 0x134   : > { %v4407_v8 = vadd.f32 0.5, %v1971_v5  ;;  %v4421_v62 = vadd.f32 0.5, %v1969_v60  ;;  %v1942_v17 = vadd.s32 208, %v4216_v50 }
 0x135   : > { %4901 = vst [vmem:[#allocation8_spill] sm:$0xff] %v4405_v35  ;;  %v2067_v47 = vfloor.f32 %v2035_v24  ;;  %v4909_v35 = vsub.f32 %v4243_v42, %v4273_v15  ;;  %v4482_v15 = vmul.f32 17.0, %v2065_v34 }
 0x136   : > { %v2036_v24 = vmul.f32 0.05882353, %v4407_v8 }
 0x137   : > { %v4454_v1 = vmul.f32 17.0, %v2067_v47  ;;  %vm4460_vm9 = vcmp.lt.f32.partialorder %v4909_v35, 16.0  ;;  %v4493_v47 = vadd.s32 200, %v4216_v50 }
 0x138   : > { %v4415_v6 = vpop.f32.mrb[12].mxu1 }
 0x139   : > { %v4424_v5 = vpop.f32.mrb[13].mxu1 }
 0x13a   : > { %4903 = vst [vmem:[#allocation10_spill] sm:$0xff] %v4424_v5  ;;  %v3409_v16 = vpop.f32.mrb[0].mxu0  ;;  %v4434_v60 = vpop.f32.mrb[14].mxu1 }
 0x13b   : > { %v3475_v49 = vadd.f32 %v3409_v16, %v4200_v25  ;;  %4904 = vst [vmem:[#allocation11_spill] sm:$0xff] %v4434_v60  ;;  %v1596_v4 = vpop.f32.mrb[1].mxu0  ;;  %v4448_v25 = vpop.f32.mrb[15].mxu1 }
 0x13c   : > { %v3476_v36 = vadd.f32 %v1596_v4, %v4202_v44  ;;  %4908 = vst [vmem:[#allocation12_spill] sm:$0xff] %v4448_v25  ;;  %v3410_v16 = vpop.f32.mrb[2].mxu0  ;;  %v4912_v44 = vsub.f32 %v4261_v39, %v4304_v38  ;;  %v1943_v38 = vadd.s32 216, %v4216_v50 }
 0x13d   : > { %v3477_v41 = vadd.f32 %v3410_v16, %v4204_v51  ;;  %v1599_v59 = vpop.f32.mrb[3].mxu0  ;;  %v2034_v51 = vmul.f32 0.05882353, %v4421_v62  ;;  %v1974_v16 = vcvt.s32.f32 %v1942_v17  ;;  %v2068_v17 = vfloor.f32 %v2036_v24 }
 0x13e   : > { %vm4467_vm10 = vcmp.lt.f32.partialorder %v4912_v44, 16.0  ;;  %v2237_v42 = vsel %vm4356_vm4, %v3476_v36, 0.0  ;;  %v3478_v39 = vadd.f32 %v1599_v59, %v4206_v19  ;;  %v4915_v44 = vsub.f32 %v4250_v26, %v4293_v13 }
 0x13f   : > { %v3118_v35 = vpack.c.bf16 %v3477_v41, %v3475_v49  ;;  %v2239_v19 = vsel %vm4372_vm5, %v3475_v49, 0.0  ;;  %v2306_v13 = vmul.f32 %v3476_v36, %v2237_v42  ;;  %v2066_v24 = vfloor.f32 %v2034_v51 }
 0x140   : > { %vm4488_vm11 = vcmp.lt.f32.partialorder %v4915_v44, 16.0  ;;  %v3113_v34 = vpack.c.bf16 %v3478_v39, %v3476_v36  ;;  %v2238_v59 = vsel %vm4379_vm6, %v3478_v39, 0.0  ;;  %v4502_v10 = vpop.f32.mrb[16].mxu1  ;;  %v2240_v3 = vsel %vm4397_vm7, %v3477_v41, 0.0 }
 0x141   : > { %3195 = vst [vmem:[%s4479_s10 + $0x8] sm:$0xff] %v3118_v35   ;;  %v2269_v44 = vadd.f32 %v2238_v59, %v2237_v42  ;;  %v2307_v60 = vmul.f32 %v3478_v39, %v2238_v59  ;;  %v4507_v45 = vpop.f32.mrb[17].mxu1  ;;  %v4511_v25 = vadd.f32 0.5, %v1974_v16  ;;  %v1975_v26 = vcvt.s32.f32 %v1943_v38 }
 0x142   : > { %3114 = vst [vmem:[%s4479_s10] sm:$0xff] %v3113_v34   ;;  %v3413_v14 = vpop.f32.mrb[4].mxu0  ;;  %v2308_v36 = vmul.f32 %v3475_v49, %v2239_v19  ;;  %v4514_v59 = vpop.f32.mrb[18].mxu1  ;;  %v4526_v49 = vmul.f32 17.0, %v2068_v17  ;;  %v4924_v17 = vsub.f32 %v4301_v32, %v4366_v29  ;;  %v4927_v32 = vsub.f32 %v4299_v54, %v4362_v18 }
 0x143   : > { %v2270_v35 = vadd.f32 %v2269_v44, %v2239_v19  ;;  %v2338_v42 = vadd.f32 %v2307_v60, %v2306_v13  ;;  %v3479_v39 = vadd.f32 %v3413_v14, %v4208_v20  ;;  %v1612_v51 = vpop.f32.mrb[5].mxu0  ;;  %v4524_v16 = vpop.f32.mrb[19].mxu1  ;;  %v4528_v60 = vadd.f32 0.5, %v1972_v27 }
 0x144   : > { %v3480_v55 = vadd.f32 %v1612_v51, %v4210_v43  ;;  %v3414_v38 = vpop.f32.mrb[6].mxu0  ;;  %v1973_v20 = vcvt.s32.f32 %v4493_v47  ;;  %v2309_v14 = vmul.f32 %v3477_v41, %v2240_v3  ;;  %v4921_v44 = vsub.f32 %v4290_v12, %v4343_v57 }
 0x145   : > { %v2339_v19 = vadd.f32 %v2338_v42, %v2308_v36  ;;  %v2271_v13 = vadd.f32 %v2270_v35, %v2240_v3  ;;  %v3481_v61 = vadd.f32 %v3414_v38, %v4212_v56  ;;  %v1615_v2 = vpop.f32.mrb[7].mxu0  ;;  %vm4542_vm14 = vcmp.lt.f32.partialorder %v4924_v17, 16.0  ;;  %v4930_v17 = vld [vmem:[#allocation5_spill] sm:$0xff] }
 0x146   : > { %vm4535_vm13 = vcmp.lt.f32.partialorder %v4921_v44, 16.0  ;;  %v2241_v41 = vsel %vm4439_vm8, %v3480_v55, 0.0  ;;  %v3482_v56 = vadd.f32 %v1615_v2, %v4214_v9  ;;  %v4549_v47 = vmul.f32 17.0, %v2066_v24 }
 0x147   : > { %v2039_v57 = vmul.f32 0.05882353, %v4511_v25  ;;  %v2272_v12 = vadd.f32 %v2271_v13, %v2241_v41  ;;  %v2310_v3 = vmul.f32 %v3480_v55, %v2241_v41  ;;  %v2340_v36 = vadd.f32 %v2339_v19, %v2309_v14 }
 0x148   : > { %v3128_v35 = vpack.c.bf16 %v3481_v61, %v3479_v39  ;;  %vm4555_vm15 = vcmp.lt.f32.partialorder %v4927_v32, 16.0  ;;  %v2243_v5 = vsel %vm4460_vm9, %v3479_v39, 0.0  ;;  %v3123_v9 = vpack.c.bf16 %v3482_v56, %v3480_v55  ;;  %v4566_v14 = vpop.f32.mrb[20].mxu1 }
 0x149   : > { %v2242_v24 = vsel %vm4467_vm10, %v3482_v56, 0.0  ;;  %v4563_v42 = vadd.f32 0.5, %v1975_v26  ;;  %v2341_v51 = vadd.f32 %v2340_v36, %v2310_v3  ;;  %v2132_v18 = vsub.f32 %v4407_v8, %v4526_v49  ;;  %v4573_v23 = vpop.f32.mrb[21].mxu1  ;;  %v4934_v36 = vld [vmem:[#allocation6_spill] sm:$0xff] }
 0x14a   : > { %3197 = vst [vmem:[%s4479_s10 + $0x18] sm:$0xff] %v3128_v35   ;;  %v2273_v0 = vadd.f32 %v2272_v12, %v2242_v24  ;;  %v2311_v38 = vmul.f32 %v3482_v56, %v2242_v24  ;;  %v2244_v54 = vsel %vm4488_vm11, %v3481_v61, 0.0  ;;  %3196 = vst [vmem:[%s4479_s10 + $0x10] sm:$0xff] %v3123_v9   ;;  %v3417_v55 = vpop.f32.mrb[8].mxu0  ;;  %v2130_v4 = vsub.f32 %v4421_v62, %v4549_v47  ;;  %v4581_v56 = vpop.f32.mrb[22].mxu1 }
 0x14b   : > { %v2037_v26 = vmul.f32 0.05882353, %v4528_v60  ;;  %v4578_v19 = vadd.f32 0.5, %v1973_v20  ;;  %v2312_v13 = vmul.f32 %v3479_v39, %v2243_v5  ;;  %v3483_v41 = vadd.f32 %v3417_v55, %v4930_v17  ;;  %v1628_v7 = vpop.f32.mrb[9].mxu0  ;;  %v4591_v32 = vpop.f32.mrb[23].mxu1 }
 0x14c   : > { %v2274_v2 = vadd.f32 %v2273_v0, %v2243_v5  ;;  %v2342_v44 = vadd.f32 %v2341_v51, %v2311_v38  ;;  %v4931_v12 = vsub.f32 %v4309_v40, %v4387_v53  ;;  %v3484_v35 = vadd.f32 %v1628_v7, %v4934_v36  ;;  %v3418_v20 = vpop.f32.mrb[10].mxu0  ;;  %v4935_v38 = vld [vmem:[#allocation7_spill] sm:$0xff] }
 0x14d   : > { %v2071_v39 = vfloor.f32 %v2039_v57  ;;  %v4594_v5 = vmul.f32 0.05882353, %v4563_v42  ;;  %v1946_v9 = vadd.s32 240, %v4216_v50  ;;  %v2313_v24 = vmul.f32 %v3481_v61, %v2244_v54  ;;  %v1631_v53 = vpop.f32.mrb[11].mxu0 }
 0x14e   : > { %vm4586_vm0 = vcmp.lt.f32.partialorder %v4931_v12, 16.0  ;;  %v2343_v51 = vadd.f32 %v2342_v44, %v2312_v13  ;;  %v2275_v0 = vadd.f32 %v2274_v2, %v2244_v54  ;;  %v3485_v40 = vadd.f32 %v3418_v20, %v4935_v38 }
 0x14f   : > { %v4936_v55 = vsub.f32 %v4307_v52, %v4385_v21  ;;  %v4939_v57 = vsub.f32 %v4313_v63, %v4391_v31  ;;  %v2245_v61 = vsel %vm4519_vm12, %v3484_v35, 0.0  ;;  %v3486_v54 = vadd.f32 %v1631_v53, %v4364_v22 }
 0x150   : > { %v2069_v13 = vfloor.f32 %v2037_v26  ;;  %v4616_v52 = vmul.f32 0.05882353, %v4578_v19  ;;  %v2276_v21 = vadd.f32 %v2275_v0, %v2245_v61  ;;  %v2314_v2 = vmul.f32 %v3484_v35, %v2245_v61  ;;  %v4631_v0 = vpop.f32.mrb[24].mxu1 }
 0x151   : > { %vm4601_vm1 = vcmp.lt.f32.partialorder %v4936_v55, 16.0  ;;  %vm4608_vm2 = vcmp.lt.f32.partialorder %v4939_v57, 16.0  ;;  %v2344_v44 = vadd.f32 %v2343_v51, %v2313_v24  ;;  %v3138_v12 = vpack.c.bf16 %v3485_v40, %v3483_v41  ;;  %v4638_v43 = vpop.f32.mrb[25].mxu1 }
 0x152   : > { %v4942_v63 = vsub.f32 %v4311_v48, %v4389_v37  ;;  %v2247_v34 = vsel %vm4535_vm13, %v3483_v41, 0.0  ;;  %v3133_v22 = vpack.c.bf16 %v3486_v54, %v3484_v35  ;;  %v2246_v26 = vsel %vm4542_vm14, %v3486_v54, 0.0  ;;  %v3421_v35 = vpop.f32.mrb[12].mxu0 }
 0x153   : > { %v1944_v36 = vadd.s32 224, %v4216_v50  ;;  %v2345_v20 = vadd.f32 %v2344_v44, %v2314_v2  ;;  %3199 = vst [vmem:[%s4479_s10 + $0x28] sm:$0xff] %v3138_v12   ;;  %v2277_v24 = vadd.f32 %v2276_v21, %v2246_v26  ;;  %v2315_v51 = vmul.f32 %v3486_v54, %v2246_v26  ;;  %v4644_v21 = vpop.f32.mrb[26].mxu1  ;;  %v4949_v26 = vld [vmem:[#allocation11_spill] sm:$0xff] }
 0x154   : > { %vm4621_vm3 = vcmp.lt.f32.partialorder %v4942_v63, 16.0  ;;  %v4633_v48 = vmul.f32 17.0, %v2071_v39  ;;  %v2248_v37 = vsel %vm4555_vm15, %v3485_v40, 0.0  ;;  %3198 = vst [vmem:[%s4479_s10 + $0x20] sm:$0xff] %v3133_v22   ;;  %v4640_v38 = vmul.f32 17.0, %v2069_v13  ;;  %v1644_v39 = vpop.f32.mrb[13].mxu0 }
 0x155   : > { %v2072_v27 = vfloor.f32 %v4594_v5  ;;  %v1978_v53 = vcvt.s32.f32 %v1946_v9  ;;  %v2316_v55 = vmul.f32 %v3483_v41, %v2247_v34  ;;  %v2278_v57 = vadd.f32 %v2277_v24, %v2247_v34  ;;  %v4948_v13 = vld [vmem:[#allocation10_spill] sm:$0xff]  ;;  %v4654_v12 = vpop.f32.mrb[27].mxu1  ;;  %v3422_v5 = vpop.f32.mrb[14].mxu0  ;;  %v4951_v24 = vld [vmem:[#allocation8_spill] sm:$0xff] }
 0x156   : > { %v2346_v61 = vadd.f32 %v2345_v20, %v2315_v51  ;;  %v3487_v54 = vadd.f32 %v3421_v35, %v4415_v6  ;;  %v4945_v29 = vsub.f32 %v4323_v33, %v4411_v28  ;;  %v3488_v44 = vadd.f32 %v1644_v39, %v4948_v13  ;;  %v1647_v33 = vpop.f32.mrb[15].mxu0  ;;  %v4950_v28 = vld [vmem:[#allocation3_spill] sm:$0xff] }
 0x157   : > { %v2070_v41 = vfloor.f32 %v4616_v52  ;;  %v1976_v9 = vcvt.s32.f32 %v1944_v36  ;;  %v1947_v6 = vadd.s32 248, %v4216_v50  ;;  %v2317_v63 = vmul.f32 %v3485_v40, %v2248_v37  ;;  %v4958_v36 = vld [vmem:[#allocation12_spill] sm:$0xff] }
 0x158   : > { %vm4649_vm4 = vcmp.lt.f32.partialorder %v4945_v29, 16.0  ;;  %v2347_v34 = vadd.f32 %v2346_v61, %v2316_v55  ;;  %v2279_v22 = vadd.f32 %v2278_v57, %v2248_v37  ;;  %v3489_v20 = vadd.f32 %v3422_v5, %v4949_v26 }
 0x159   : > { %v4952_v51 = vsub.f32 %v4950_v28, %v4951_v24  ;;  %v4955_v39 = vsub.f32 %v4330_v46, %v4419_v11  ;;  %v2249_v40 = vsel %vm4586_vm0, %v3488_v44, 0.0  ;;  %v3490_v37 = vadd.f32 %v1647_v33, %v4958_v36  ;;  %v4959_v46 = vld [vmem:[#allocation4_spill] sm:$0xff]  ;;  %v4960_v11 = vld [vmem:[#allocation9_spill] sm:$0xff] }
 0x15a   : > { %v4676_v55 = vadd.f32 0.5, %v1978_v53  ;;  %v1945_v57 = vadd.s32 232, %v4216_v50  ;;  %v2280_v61 = vadd.f32 %v2279_v22, %v2249_v40  ;;  %v2318_v29 = vmul.f32 %v3488_v44, %v2249_v40 }
 0x15b   : > { %vm4662_vm5 = vcmp.lt.f32.partialorder %v4952_v51, 16.0  ;;  %vm4669_vm6 = vcmp.lt.f32.partialorder %v4955_v39, 16.0  ;;  %v2348_v13 = vadd.f32 %v2347_v34, %v2317_v63  ;;  %v3148_v5 = vpack.c.bf16 %v3489_v20, %v3487_v54  ;;  %v4693_v51 = vpop.f32.mrb[28].mxu1 }
 0x15c   : > { %v4961_v26 = vsub.f32 %v4959_v46, %v4960_v11  ;;  %v2251_v3 = vsel %vm4601_vm1, %v3487_v54, 0.0  ;;  %v3143_v33 = vpack.c.bf16 %v3490_v37, %v3488_v44  ;;  %v2250_v53 = vsel %vm4608_vm2, %v3490_v37, 0.0  ;;  %v4700_v17 = vpop.f32.mrb[29].mxu1  ;;  %v3425_v44 = vpop.f32.mrb[16].mxu0 }
 0x15d   : > { %v4690_v24 = vadd.f32 0.5, %v1976_v9  ;;  %v2349_v22 = vadd.f32 %v2348_v13, %v2318_v29  ;;  %3201 = vst [vmem:[%s4479_s10 + $0x38] sm:$0xff] %v3148_v5   ;;  %v2281_v63 = vadd.f32 %v2280_v61, %v2250_v53  ;;  %v2319_v34 = vmul.f32 %v3490_v37, %v2250_v53  ;;  %v4705_v61 = vpop.f32.mrb[30].mxu1 }
 0x15e   : > { %vm4682_vm7 = vcmp.lt.f32.partialorder %v4961_v26, 16.0  ;;  %v4695_v39 = vmul.f32 17.0, %v2072_v27  ;;  %v2252_v40 = vsel %vm4621_vm3, %v3489_v20, 0.0  ;;  %3200 = vst [vmem:[%s4479_s10 + $0x30] sm:$0xff] %v3143_v33   ;;  %v4702_v36 = vmul.f32 17.0, %v2070_v41  ;;  %v1660_v27 = vpop.f32.mrb[17].mxu0 }
 0x15f   : > { %v1979_v7 = vcvt.s32.f32 %v1947_v6  ;;  %v1977_v9 = vcvt.s32.f32 %v1945_v57  ;;  %v2320_v46 = vmul.f32 %v3487_v54, %v2251_v3  ;;  %v2282_v29 = vadd.f32 %v2281_v63, %v2251_v3  ;;  %v4715_v11 = vpop.f32.mrb[31].mxu1  ;;  %v3426_v6 = vpop.f32.mrb[18].mxu0 }
 0x160   : > { %v2350_v13 = vadd.f32 %v2349_v22, %v2319_v34  ;;  %v3491_v37 = vadd.f32 %v3425_v44, %v4502_v10  ;;  %v4964_v31 = vsub.f32 %v4349_v58, %v4482_v15  ;;  %v3492_v41 = vadd.f32 %v1660_v27, %v4507_v45  ;;  %v1663_v15 = vpop.f32.mrb[19].mxu0 }
 0x161   : > { %v2135_v54 = vsub.f32 %v4511_v25, %v4633_v48  ;;  %v2043_v10 = vmul.f32 0.05882353, %v4676_v55  ;;  %v2041_v57 = vmul.f32 0.05882353, %v4690_v24  ;;  %v2321_v26 = vmul.f32 %v3489_v20, %v2252_v40 }
 0x162   : > { %vm4710_vm8 = vcmp.lt.f32.partialorder %v4964_v31, 16.0  ;;  %v2351_v3 = vadd.f32 %v2350_v13, %v2320_v46  ;;  %v2283_v33 = vadd.f32 %v2282_v29, %v2252_v40  ;;  %v3493_v58 = vadd.f32 %v3426_v6, %v4514_v59  ;;  %v3429_v49 = vpop.f32.mrb[20].mxu0 }
 0x163   : > { %v4967_v53 = vsub.f32 %v4339_v30, %v4454_v1  ;;  %vm4732_vm10 = vcmp.lt.f32.partialorder %v2130_v4, 16.0  ;;  %v2253_v48 = vsel %vm4649_vm4, %v3492_v41, 0.0  ;;  %v3494_v59 = vadd.f32 %v1663_v15, %v4524_v16  ;;  %v1676_v31 = vpop.f32.mrb[21].mxu0 }
 0x164   : > { %v4739_v20 = vadd.f32 0.5, %v1979_v7  ;;  %v4741_v30 = vadd.f32 0.5, %v1977_v9  ;;  %v2284_v1 = vadd.f32 %v2283_v33, %v2253_v48  ;;  %v2322_v22 = vmul.f32 %v3492_v41, %v2253_v48 }
 0x165   : > { %vm4725_vm9 = vcmp.lt.f32.partialorder %v4967_v53, 16.0  ;;  %v2352_v63 = vadd.f32 %v2351_v3, %v2321_v26  ;;  %v3158_v34 = vpack.c.bf16 %v3493_v58, %v3491_v37  ;;  %vm4746_vm11 = vcmp.lt.f32.partialorder %v2132_v18, 16.0 }
 0x166   : > { %v2255_v47 = vsel %vm4662_vm5, %v3491_v37, 0.0  ;;  %v3153_v16 = vpack.c.bf16 %v3494_v59, %v3492_v41  ;;  %v2254_v4 = vsel %vm4669_vm6, %v3494_v59, 0.0  ;;  %v2075_v2 = vfloor.f32 %v2043_v10 }
 0x167   : > { %v2353_v40 = vadd.f32 %v2352_v63, %v2322_v22  ;;  %3203 = vst [vmem:[%s4479_s10 + $0x48] sm:$0xff] %v3158_v34   ;;  %v2285_v44 = vadd.f32 %v2284_v1, %v2254_v4  ;;  %v2323_v7 = vmul.f32 %v3494_v59, %v2254_v4  ;;  %v2133_v9 = vsub.f32 %v4528_v60, %v4640_v38  ;;  %v3430_v60 = vpop.f32.mrb[22].mxu0 }
 0x168   : > { %v2256_v8 = vsel %vm4682_vm7, %v3493_v58, 0.0  ;;  %3202 = vst [vmem:[%s4479_s10 + $0x40] sm:$0xff] %v3153_v16   ;;  %v2136_v18 = vsub.f32 %v4563_v42, %v4695_v39  ;;  %v2073_v35 = vfloor.f32 %v2041_v57  ;;  %v2042_v52 = vmul.f32 0.05882353, %v4741_v30  ;;  %v1679_v57 = vpop.f32.mrb[23].mxu0 }
 0x169   : > { %v2324_v46 = vmul.f32 %v3491_v37, %v2255_v47  ;;  %v2286_v29 = vadd.f32 %v2285_v44, %v2255_v47  ;;  %v2354_v13 = vadd.f32 %v2353_v40, %v2323_v7  ;;  %v3495_v27 = vadd.f32 %v3429_v49, %v4566_v14 }
 0x16a   : > { %v3496_v41 = vadd.f32 %v1676_v31, %v4573_v23  ;;  %v2134_v38 = vsub.f32 %v4578_v19, %v4702_v36  ;;  %v4767_v28 = vmul.f32 17.0, %v2075_v2  ;;  %v2044_v6 = vmul.f32 0.05882353, %v4739_v20  ;;  %v3433_v63 = vpop.f32.mrb[24].mxu0 }
 0x16b   : > { %v2325_v42 = vmul.f32 %v3493_v58, %v2256_v8  ;;  %v2355_v39 = vadd.f32 %v2354_v13, %v2324_v46  ;;  %v2287_v10 = vadd.f32 %v2286_v29, %v2256_v8  ;;  %v3497_v37 = vadd.f32 %v3430_v60, %v4581_v56  ;;  %v1692_v40 = vpop.f32.mrb[25].mxu0 }
 0x16c   : > { %vm4771_vm12 = vcmp.lt.f32.partialorder %v2135_v54, 16.0  ;;  %v2257_v23 = vsel %vm4710_vm8, %v3496_v41, 0.0  ;;  %v3498_v19 = vadd.f32 %v1679_v57, %v4591_v32  ;;  %v2105_v36 = vmul.f32 17.0, %v2073_v35  ;;  %v3434_v44 = vpop.f32.mrb[26].mxu0 }
 0x16d   : > { %v2074_v26 = vfloor.f32 %v2042_v52  ;;  %v2288_v3 = vadd.f32 %v2287_v10, %v2257_v23  ;;  %v2326_v33 = vmul.f32 %v3496_v41, %v2257_v23  ;;  %v2356_v58 = vadd.f32 %v2355_v39, %v2325_v42  ;;  %v1695_v46 = vpop.f32.mrb[27].mxu0 }
 0x16e   : > { %v3168_v15 = vpack.c.bf16 %v3497_v37, %v3495_v27  ;;  %v2259_v56 = vsel %vm4725_vm9, %v3495_v27, 0.0  ;;  %v3163_v53 = vpack.c.bf16 %v3498_v19, %v3496_v41  ;;  %v2258_v54 = vsel %vm4732_vm10, %v3498_v19, 0.0 }
 0x16f   : > { %v2076_v48 = vfloor.f32 %v2044_v6  ;;  %v2357_v59 = vadd.f32 %v2356_v58, %v2326_v33  ;;  %v2289_v5 = vadd.f32 %v2288_v3, %v2258_v54  ;;  %v2327_v1 = vmul.f32 %v3498_v19, %v2258_v54 }
 0x170   : > { %3205 = vst [vmem:[%s4479_s10 + $0x58] sm:$0xff] %v3168_v15   ;;  %vm4783_vm13 = vcmp.lt.f32.partialorder %v2133_v9, 16.0  ;;  %v2260_v22 = vsel %vm4746_vm11, %v3497_v37, 0.0  ;;  %3204 = vst [vmem:[%s4479_s10 + $0x50] sm:$0xff] %v3163_v53   ;;  %vm4790_vm14 = vcmp.lt.f32.partialorder %v2136_v18, 16.0  ;;  %vm4794_vm15 = vcmp.lt.f32.partialorder %v2134_v38, 16.0 }
 0x171   : > { %v2106_v34 = vmul.f32 17.0, %v2074_v26  ;;  %v2328_v47 = vmul.f32 %v3495_v27, %v2259_v56  ;;  %v2290_v16 = vadd.f32 %v2289_v5, %v2259_v56  ;;  %v2358_v4 = vadd.f32 %v2357_v59, %v2327_v1 }
 0x172   : > { %v3499_v2 = vadd.f32 %v3433_v63, %v4631_v0  ;;  %v3500_v62 = vadd.f32 %v1692_v40, %v4638_v43  ;;  %v2139_v7 = vsub.f32 %v4676_v55, %v4767_v28  ;;  %v2137_v9 = vsub.f32 %v4690_v24, %v2105_v36  ;;  %v4983_v28 = vld [vmem:[#allocation2_spill] sm:$0xff]  ;;  %v3437_v10 = vpop.f32.mrb[28].mxu0 }
 0x173   : > { %v2108_v8 = vmul.f32 17.0, %v2076_v48  ;;  %v2329_v49 = vmul.f32 %v3497_v37, %v2260_v22  ;;  %v2359_v18 = vadd.f32 %v2358_v4, %v2328_v47  ;;  %v2291_v35 = vadd.f32 %v2290_v16, %v2260_v22  ;;  %v1708_v3 = vpop.f32.mrb[29].mxu0 }
 0x174   : > { %v3501_v52 = vadd.f32 %v3434_v44, %v4644_v21  ;;  %v2261_v0 = vsel %vm4783_vm13, %v3500_v62, 0.0  ;;  %v3502_v29 = vadd.f32 %v1695_v46, %v4654_v12  ;;  %v2138_v43 = vsub.f32 %v4741_v30, %v2106_v34  ;;  %v3438_v15 = vpop.f32.mrb[30].mxu0 }
 0x175   : > { %v4982_v55 = vcvt.s32.f32 %v4216_v50  ;;  %v2292_v24 = vadd.f32 %v2291_v35, %v2261_v0  ;;  %v2330_v27 = vmul.f32 %v3500_v62, %v2261_v0  ;;  %v2360_v31 = vadd.f32 %v2359_v18, %v2329_v49  ;;  %v1711_v59 = vpop.f32.mrb[31].mxu0 }
 0x176   : > { %v3178_v41 = vpack.c.bf16 %v3501_v52, %v3499_v2  ;;  %v2263_v21 = vsel %vm4771_vm12, %v3499_v2, 0.0  ;;  %v3173_v60 = vpack.c.bf16 %v3502_v29, %v3500_v62  ;;  %v2262_v38 = vsel %vm4794_vm15, %v3502_v29, 0.0 }
 0x177   : > { %v4810_v13 = vadd.f32 256.5, %v4982_v55  ;;  %v4984_v12 = vcvt.s32.f32 %v4983_v28  ;;  %v2361_v30 = vadd.f32 %v2360_v31, %v2330_v27  ;;  %v2293_v50 = vadd.f32 %v2292_v24, %v2262_v38 }
 0x178   : > { %3207 = vst [vmem:[%s4479_s10 + $0x68] sm:$0xff] %v3178_v41   ;;  %v2331_v42 = vmul.f32 %v3502_v29, %v2262_v38  ;;  %v2264_v39 = vsel %vm4790_vm14, %v3501_v52, 0.0  ;;  %3206 = vst [vmem:[%s4479_s10 + $0x60] sm:$0xff] %v3173_v60   ;;  %vm4824_vm0 = vcmp.lt.f32.partialorder %v2137_v9, 16.0  ;;  %v2140_v57 = vsub.f32 %v4739_v20, %v2108_v8 }
 0x179   : > { %v4818_v6 = vadd.f32 256.5, %v4984_v12  ;;  %v2685_v14 = vmul.f32 0.05882353, %v4810_v13  ;;  %v2332_v23 = vmul.f32 %v3499_v2, %v2263_v21  ;;  %v2294_v19 = vadd.f32 %v2293_v50, %v2263_v21 }
 0x17a   : > { %v2362_v36 = vadd.f32 %v2361_v30, %v2331_v42  ;;  %v3503_v26 = vadd.f32 %v3437_v10, %v4693_v51  ;;  %vm4831_vm1 = vcmp.lt.f32.partialorder %v2139_v7, 16.0  ;;  %v3504_v58 = vadd.f32 %v1708_v3, %v4700_v17 }
 0x17b   : > { %vm4836_vm2 = vcmp.lt.f32.partialorder %v2138_v43, 16.0  ;;  %v2686_v20 = vmul.f32 0.05882353, %v4818_v6  ;;  %v2333_v53 = vmul.f32 %v3501_v52, %v2264_v39  ;;  %v2295_v48 = vadd.f32 %v2294_v19, %v2264_v39 }
 0x17c   : > { %v2363_v54 = vadd.f32 %v2362_v36, %v2332_v23  ;;  %v3505_v51 = vadd.f32 %v3438_v15, %v4705_v61  ;;  %v2265_v5 = vsel %vm4824_vm0, %v3504_v58, 0.0  ;;  %vm2172_vm3 = vcmp.lt.f32.partialorder %v2140_v57, 16.0 }
 0x17d   : > { %v3506_v17 = vadd.f32 %v1711_v59, %v4715_v11  ;;  %v2687_v1 = vfloor.f32 %v2685_v14  ;;  %v2296_v32 = vadd.f32 %v2295_v48, %v2265_v5  ;;  %v2334_v22 = vmul.f32 %v3504_v58, %v2265_v5 }
 0x17e   : > { %v2364_v63 = vadd.f32 %v2363_v54, %v2333_v53  ;;  %v3188_v45 = vpack.c.bf16 %v3505_v51, %v3503_v26  ;;  %v2267_v25 = vsel %vm4831_vm1, %v3503_v26, 0.0  ;;  %v2688_v2 = vfloor.f32 %v2686_v20 }
 0x17f   : > { %v3183_v34 = vpack.c.bf16 %v3506_v17, %v3504_v58  ;;  %v2266_v61 = vsel %vm4836_vm2, %v3506_v17, 0.0  ;;  %v2268_v40 = vsel %vm2172_vm3, %v3505_v51, 0.0  ;;  %v2336_v11 = vmul.f32 %v3503_v26, %v2267_v25 }
 0x180   : > { %v2365_v47 = vadd.f32 %v2364_v63, %v2334_v22  ;;  %3209 = vst [vmem:[%s4479_s10 + $0x78] sm:$0xff] %v3188_v45   ;;  %v2297_v16 = vadd.f32 %v2296_v32, %v2266_v61  ;;  %v2335_v4 = vmul.f32 %v3506_v17, %v2266_v61  ;;  %v2689_v7 = vmul.f32 17.0, %v2687_v1 }
 0x181   : > { %3208 = vst [vmem:[%s4479_s10 + $0x70] sm:$0xff] %v3183_v34   ;;  %v2337_v9 = vmul.f32 %v3505_v51, %v2268_v40  ;;  %v2690_v18 = vmul.f32 17.0, %v2688_v2 }
 0x182   : > { %v2298_v62 = vadd.f32 %v2297_v16, %v2267_v25  ;;  %v2366_v44 = vadd.f32 %v2365_v47, %v2335_v4  ;;  %v2691_v46 = vsub.f32 %v4810_v13, %v2689_v7 }
 0x183   : > { %v2692_v43 = vsub.f32 %v4818_v6, %v2690_v18 }
 0x184   : > { %v2299_v8 = vadd.f32 %v2298_v62, %v2268_v40  ;;  %v2367_v49 = vadd.f32 %v2366_v44, %v2336_v11  ;;  %vm2693_vm4 = vcmp.lt.f32.partialorder %v2691_v46, 16.0  ;;  %v2664_v41 = vpop.f32.mrb[32].mxu1 }
 0x185   : > { %vm2694_vm5 = vcmp.lt.f32.partialorder %v2692_v43, 16.0  ;;  %v2699_v21 = vsel %vm2693_vm4, %v2664_v41, 0.0  ;;  %v3469_v60 = vpop.f32.mrb[33].mxu1 }
 0x186   : > { %v2300_v35 = vrot.slane %v2299_v8, 4  ;;  %v2368_v52 = vadd.f32 %v2367_v49, %v2337_v9  ;;  %v2667_v12 = vpop.f32.mrb[34].mxu1  ;;  %v2708_v13 = vmul.f32 %v2699_v21, %v2664_v41 }
 0x187   : > { %v3193_v6 = vpack.c.bf16 %v2667_v12, %v2664_v41  ;;  %v2700_v30 = vsel %vm2694_vm5, %v2667_v12, 0.0  ;;  %v3470_v50 = vpop.f32.mrb[35].mxu1 }
 0x188   : > { %v2301_v0 = vadd.f32 %v2300_v35, %v2299_v8  ;;  %v2369_v29 = vrot.slane %v2368_v52, 4  ;;  %v2701_v10 = vadd.f32 %v2700_v30, %v2699_v21  ;;  %v2709_v37 = vmul.f32 %v2700_v30, %v2667_v12 }
 0x189   : > { %3210 = vst [vmem:[%s4479_s10 + $0x80] sm:$0xff] %v3193_v6  }
 0x18a   : > { %v2302_v55 = vrot.slane %v2301_v0, 2  ;;  %v2370_v24 = vadd.f32 %v2369_v29, %v2368_v52  ;;  %v2702_v14 = vrot.slane %v2701_v10, 4  ;;  %v2710_v23 = vadd.f32 %v2709_v37, %v2708_v13 }
 0x18c   : > { %v2303_v27 = vadd.f32 %v2302_v55, %v2301_v0  ;;  %v2371_v31 = vrot.slane %v2370_v24, 2  ;;  %v2703_v19 = vadd.f32 %v2702_v14, %v2701_v10  ;;  %v2711_v36 = vrot.slane %v2710_v23, 4 }
 0x18e   : > { %v2304_v38 = vrot.slane %v2303_v27, 1  ;;  %v2372_v28 = vadd.f32 %v2371_v31, %v2370_v24  ;;  %v2704_v26 = vrot.slane %v2703_v19, 2  ;;  %v2712_v3 = vadd.f32 %v2711_v36, %v2710_v23 }
 0x190   : > { %v2305_v42 = vadd.f32 %v2304_v38, %v2303_v27  ;;  %v2373_v39 = vrot.slane %v2372_v28, 1  ;;  %v2705_v33 = vadd.f32 %v2704_v26, %v2703_v19  ;;  %v2713_v58 = vrot.slane %v2712_v3, 2 }
 0x192   : > { %v2374_v57 = vadd.f32 %v2373_v39, %v2372_v28  ;;  %2375 = vst [vmem:[%s260_s13] sm:$0x1] %v2305_v42  ;;  %v2706_v15 = vrot.slane %v2705_v33, 1  ;;  %v2714_v56 = vadd.f32 %v2713_v58, %v2712_v3 }
 0x194   : > { %2376 = vst [vmem:[%s266_s20] sm:$0x1] %v2374_v57  ;;  %v2707_v20 = vadd.f32 %v2706_v15, %v2705_v33  ;;  %v2715_v53 = vrot.slane %v2714_v56, 1 }
 0x196   : > { %v2716_v48 = vadd.f32 %v2715_v53, %v2714_v56 }
 0x199   : > { %v2717_v54 = vld [vmem:[%s260_s13] sm:$0x1] }
 0x19a   : > { %v2718_v51 = vadd.f32 %v2717_v54, %v2707_v20 }
 0x19b   : > { %v2720_v59 = vld [vmem:[%s266_s20] sm:$0x1] }
 0x19c   : > { %2719 = vst [vmem:[%s260_s13] sm:$0x1] %v2718_v51  ;;  %v2721_v5 = vadd.f32 %v2720_v59, %v2716_v48 }
 0x19e   : > { %2722 = vst [vmem:[%s266_s20] sm:$0x1] %v2721_v5 }
 0x19f PF: > { %s15_s17 = sadd.s32 1, %s3689_s17   ;;  %s4991_s15 = smov %s3685_s16 }
 0x1a0   : > { %p12_p5 = scmp.ge.s32.totalorder %s15_s17, 4   ;;  %s4992_s16 = smov %s4994_s18 }
 0x1a2   :  { %14 = sbr.rel (!%p12_p5) target bundleno = 2 (0x2), region = 85 }

// kernel: _lambda_.7
= control target key start
LH: loop header
LB: loop body
LE: loop exit
PB: predicated region body
PF: predicated region fallthrough
CT: control target
= control target key end

     0   :  { %s1700_s15 = smov 0   ;;  %s1702_s16 = smov 0   ;;  %s1976_s0 = inlined_call_operand.vmem [shape: bf16[2,1,90,64], index: 0, kind: input, shape index: {}]   ;;  %s1977_s1 = inlined_call_operand.vmem [shape: bf16[4,64,128], index: 1, kind: input, shape index: {}]   ;;  %s1978_s2 = inlined_call_operand.vmem [shape: bf16[2,1,72,128], index: 2, kind: output, shape index: {0}]   ;;  %s1979_s3 = inlined_call_operand.vmem [shape: f32[2,1,1,128], index: 3, kind: output, shape index: {1}]   ;;  %s1980_s4 = inlined_call_operand.vmem [shape: f32[2,1,1,128], index: 4, kind: output, shape index: {2}]  }
   0x1   :  { %s1704_s17 = smov 0  }
   0x2 LB: > { %s27_s18 = sadd.s32 1, %s1667_s16  ;;  %p1278_p0 = scmp.ge.s32.totalorder %s1671_s17, 1  ;;  %s1671_s17 = sphi %s1704_s17, %s15_s17   ;;  %s1667_s16 = sphi %s1702_s16, %s1982_s16   ;;  %s1663_s15 = sphi %s1700_s15, %s1981_s15  }
   0x3   : > { %p29_p1 = scmp.ge.s32.totalorder %s27_s18, 2  ;;  %p191_p2 = scmp.lt.s32.totalorder %s1671_s17, 3 }
   0x5   : > { %s1984_s18 = smov (%p29_p1, %s27_s18), 0  ;;  %p192_p3 = pnand %p1278_p0, %p191_p2 }
   0x6   : > { %v1621_v0 = vld [vmem:[%s1977_s1 + $0x20] sm:$0xff] (!%p192_p3)   ;;  %v1673_v1 = vmov (!%p192_p3), 0.0   ;;  %v1623_v3 = vld [vmem:[%s1977_s1 + $0x28] sm:$0xff] (!%p192_p3)   ;;  %vm1674_vm0 = vmmov (!%p192_p3), 0   ;;  %p237_p4 = scmp.lt.s32.totalorder (!%p192_p3), %s1663_s15, 1  ;;  %v1625_v5 = vld [vmem:[%s1977_s1 + $0x30] sm:$0xff] (!%p192_p3)  }
   0x7   : > { %195 = sbr.rel (%p192_p3) target bundleno = 333 (0x14d), region = 28  ;;  %1432 = vmatprep.subr.bf16.mxu1 (!%p192_p3), %v1673_v1  ;;  %1488 = vmatprep.subr.bf16.mxu0 (!%p192_p3), %v1673_v1  ;;  %v1622_v2 = vld [vmem:[%s1977_s1 + $0x40] sm:$0xff] (!%p192_p3)   ;;  %v1624_v4 = vld [vmem:[%s1977_s1 + $0x48] sm:$0xff] (!%p192_p3)   ;;  %v1626_v6 = vld [vmem:[%s1977_s1 + $0x50] sm:$0xff] (!%p192_p3)   ;;  %vm320_vm1 = vsmask.f32 (!%p192_p3), 7424 }
   0x8   : > { %1433 = vmatpush3.bf16.msra.mxu1 (!%p192_p3), %v1621_v0  ;;  %1440 = vmatprep.mubr.msk.bf16.mxu1 (!%p192_p3), %vm1674_vm0, %v1673_v1  ;;  %v1627_v7 = vld [vmem:[%s1977_s1 + $0x38] sm:$0xff] (!%p192_p3)   ;;  %vm384_vm2 = vcmask (!%p192_p3), 523264   ;;  %v1633_v23 = vld [vmem:[%s1977_s1] sm:$0xff] (!%p192_p3)   ;;  %v1637_v36 = vld [vmem:[%s1977_s1 + $0x8] sm:$0xff] (!%p192_p3)   ;;  %vm796_vm3 = vcmask (!%p192_p3), 1046528  }
   0x9   : > { %1489 = vmatpush3.bf16.msra.mxu0 (!%p192_p3), %v1622_v2  ;;  %1434 = vmatprep.subr.bf16.mxu1 (!%p192_p3), %v1673_v1  ;;  %v1628_v8 = vld [vmem:[%s1977_s1 + $0x58] sm:$0xff] (!%p192_p3)   ;;  %v1634_v31 = vld [vmem:[%s1977_s1 + $0x60] sm:$0xff] (!%p192_p3)   ;;  %v1638_v44 = vld [vmem:[%s1977_s1 + $0x68] sm:$0xff] (!%p192_p3)  }
   0xa   : > { %1490 = vmatprep.subr.bf16.mxu0 (!%p192_p3), %v1673_v1  ;;  %1496 = vmatprep.mubr.msk.bf16.mxu0 (!%p192_p3), %vm1674_vm0, %v1673_v1  ;;  %v1641_v50 = vld [vmem:[%s1977_s1 + $0x10] sm:$0xff] (!%p192_p3)   ;;  %v1645_v58 = vld [vmem:[%s1977_s1 + $0x18] sm:$0xff] (!%p192_p3)  }
   0xb   : > { %v1642_v51 = vld [vmem:[%s1977_s1 + $0x70] sm:$0xff] (!%p192_p3)   ;;  %v1646_v62 = vld [vmem:[%s1977_s1 + $0x78] sm:$0xff] (!%p192_p3)  }
   0xc   : > { %1435 = vmatpush3.bf16.msra.mxu1 (!%p192_p3), %v1623_v3 }
   0xd   : > { %1491 = vmatpush3.bf16.msra.mxu0 (!%p192_p3), %v1624_v4  ;;  %1436 = vmatprep.subr.bf16.mxu1 (!%p192_p3), %v1673_v1 }
   0xe   : > { %s1986_s15 = smov (!%p237_p4, %s1663_s15), 1  ;;  %1492 = vmatprep.subr.bf16.mxu0 %v1673_v1 }
   0xf   : > { %s1593_s29 = smul.u32 48, %s1986_s15  ;;  %s260_s13 = scalar_lea.vmem %s1979_s3, %s1986_s15 }
  0x10   : > { %1437 = vmatpush3.bf16.msra.mxu1 %v1625_v5  ;;  %s1594_s7 = smul.u32 36, %s1986_s15  ;;  %s266_s20 = scalar_lea.vmem %s1980_s4, %s1986_s15 }
  0x11   : > { %s1755_s10 = scalar_lea.vmem %s1976_s0, %s1593_s29  ;;  %1493 = vmatpush3.bf16.msra.mxu0 %v1626_v6  ;;  %1438 = vmatprep.subr.bf16.mxu1 %v1673_v1 }
  0x12   : > { %v1761_v9 = vld [vmem:[%s1755_s10] sm:$0xff]   ;;  %v1764_v10 = vld [vmem:[%s1755_s10 + $0x8] sm:$0xff]   ;;  %1494 = vmatprep.subr.bf16.mxu0 %v1673_v1  ;;  %v1784_v24 = vld [vmem:[%s1755_s10 + $0x10] sm:$0xff]  }
  0x13   : > { %v580_v11 = vld [vmem:[%s1755_s10 + $0x4] sm:$0xf]  ;;  %v1769_v12 = vld [vmem:[%s1755_s10 + $0x8] sm:$0xf]  ;;  %v322_v13 = vshrl.u32 %v1761_v9, 16  ;;  %v324_v14 = vshll.u32 %v1761_v9, 16 }
  0x14   : > { %v329_v15 = vshll.u32 %v1764_v10, 16  ;;  %v1321_v16 = vcombine.low %v580_v11, %v1769_v12  ;;  %v1777_v17 = vld [vmem:[%s1755_s10 + $0xc] sm:$0xff]   ;;  %v333_v18 = vshrl.u32 %v1764_v10, 16  ;;  %1439 = vmatpush3.bf16.msra.mxu1 %v1627_v7  ;;  %v1789_v26 = vld [vmem:[%s1755_s10 + $0x14] sm:$0xff]   ;;  %v337_v29 = vshll.u32 %v1784_v24, 16  ;;  %v1810_v41 = vld [vmem:[%s1755_s10 + $0x1c] sm:$0xff]  }
  0x15   : > { %v326_v19 = vrot.slane %v324_v14, 1  ;;  %1495 = vmatpush3.bf16.msra.mxu0 %v1628_v8  ;;  %1460 = vmatprep.subr.bf16.mxu1 %v1673_v1  ;;  %v632_v25 = vshll.u32 %v1777_v17, 16  ;;  %v636_v32 = vshrl.u32 %v1777_v17, 16  ;;  %v640_v35 = vshll.u32 %v1789_v26, 16  ;;  %v1804_v37 = vld [vmem:[%s1755_s10 + $0x18] sm:$0xff]  }
  0x16   : > { %v331_v20 = vrot.slane %v329_v15, 1  ;;  %v625_v21 = vshrl.u32 %v1321_v16, 16  ;;  %v627_v22 = vshll.u32 %v1321_v16, 16  ;;  %1516 = vmatprep.subr.bf16.mxu0 %v1673_v1  ;;  %v339_v40 = vrot.slane %v337_v29, 1  ;;  %v1833_v52 = vld [vmem:[%s1755_s10 + $0x20] sm:$0xf] }
  0x17   : > { %v327_v27 = vor.u32 %v326_v19, %v322_v13  ;;  %v634_v30 = vrot.slane %v632_v25, 1  ;;  %v642_v43 = vrot.slane %v640_v35, 1  ;;  %v341_v45 = vshrl.u32 %v1784_v24, 16  ;;  %v285_v53 = vld [vmem:[%s1755_s10 + $0x24] sm:$0x1] }
  0x18   : > { %v629_v28 = vrot.slane %v627_v22, 1  ;;  %v335_v39 = vor.u32 %v333_v18, %v331_v20  ;;  %v345_v46 = vshll.u32 %v1804_v37, 16  ;;  %v644_v48 = vshrl.u32 %v1789_v26, 16  ;;  %v1850_v61 = vld [vmem:[%s1755_s10 + $0x24] sm:$0x1f]  }
  0x19   : > { %v332_v33 = vsel %vm320_vm1, %v327_v27, %v331_v20  ;;  %v638_v42 = vor.u32 %v636_v32, %v634_v30  ;;  %v648_v49 = vshll.u32 %v1810_v41, 16  ;;  %v343_v55 = vor.u32 %v341_v45, %v339_v40  ;;  %v783_v19 = vld [vmem:[%s1755_s10 + $0x4] sm:$0xe]  ;;  %s1937_s10 = scalar_lea.vmem %s1978_s2, %s1594_s7 }
  0x1a   : > { %v630_v34 = vor.u32 %v629_v28, %v625_v21  ;;  %1441 = vmatmul.mubr.msk.bf16.vlgmr.msra.gmra.mrb[0].mxu1 %vm384_vm2, %v332_v33  ;;  %v340_v47 = vsel %vm320_vm1, %v335_v39, %v339_v40  ;;  %v347_v56 = vrot.slane %v345_v46, 1  ;;  %v1293_v57 = vcombine.low %v1833_v52, %v285_v53 }
  0x1b   : > { %1461 = vmatpush3.bf16.msra.mxu1 %v1633_v23  ;;  %1444 = vmatprep.mubr.msk.bf16.mxu1 %vm1674_vm0, %v1673_v1  ;;  %v643_v54 = vsel %vm320_vm1, %v638_v42, %v642_v43  ;;  %v646_v59 = vor.u32 %v644_v48, %v642_v43  ;;  %v650_v60 = vrot.slane %v648_v49, 1  ;;  %v349_v0 = vshrl.u32 %v1804_v37, 16 }
  0x1c   : > { %v635_v38 = vsel %vm320_vm1, %v630_v34, %v634_v30  ;;  %1462 = vmatprep.subr.bf16.mxu1 %v1673_v1  ;;  %v348_v63 = vsel %vm320_vm1, %v343_v55, %v347_v56  ;;  %v353_v2 = vshll.u32 %v1293_v57, 16  ;;  %v652_v4 = vshrl.u32 %v1810_v41, 16 }
  0x1d   : > { %1497 = vmatmul.mubr.msk.bf16.vlgmr.msra.gmra.mrb[0].mxu0 %vm384_vm2, %v635_v38  ;;  %v651_v3 = vsel %vm320_vm1, %v646_v59, %v650_v60  ;;  %v656_v5 = vshll.u32 %v1850_v61, 16  ;;  %v351_v6 = vor.u32 %v349_v0, %v347_v56  ;;  %v357_v15 = vshrl.u32 %v1293_v57, 16 }
  0x1e   : > { %1517 = vmatpush3.bf16.msra.mxu0 %v1634_v31  ;;  %1500 = vmatprep.mubr.msk.bf16.mxu0 %vm1674_vm0, %v1673_v1  ;;  %v355_v7 = vrot.slane %v353_v2, 1  ;;  %v654_v8 = vor.u32 %v652_v4, %v650_v60  ;;  %v660_v16 = vshrl.u32 %v1850_v61, 16  ;;  %v1343_v21 = vcombine.low %v783_v19, %v1769_v12 }
  0x1f   : > { %1518 = vmatprep.subr.bf16.mxu0 %v1673_v1  ;;  %1463 = vmatpush3.bf16.msra.mxu1 %v1637_v36  ;;  %v658_v11 = vrot.slane %v656_v5, 1  ;;  %v798_v23 = vrot.slane %v1777_v17, 1  ;;  %v800_v12 = vrot.slane %v1789_v26, 1  ;;  %v972_v28 = vlaneseq }
  0x20   : > { %1464 = vmatprep.subr.bf16.mxu1 %v1673_v1  ;;  %v356_v13 = vsel %vm320_vm1, %v351_v6, %v355_v7  ;;  %v359_v18 = vor.u32 %v357_v15, %v355_v7  ;;  %v797_v22 = vrot.slane %v1343_v21, 1 }
  0x21   : > { %v659_v14 = vsel %vm320_vm1, %v654_v8, %v658_v11  ;;  %v662_v20 = vor.u32 %v660_v16, %v658_v11  ;;  %v801_v27 = vsel %vm796_vm3, %v798_v23, %v800_v12  ;;  %v973_v29 = vshrl.u32 %v972_v28, 7 }
  0x22   : > { %1519 = vmatpush3.bf16.msra.mxu0 %v1638_v44  ;;  %1445 = vmatmul.mubr.msk.bf16.gmra.mrb[4].mxu1 %vm384_vm2, %v340_v47  ;;  %v799_v25 = vsel %vm796_vm3, %v797_v22, %v798_v23 }
  0x23   : > { %1520 = vmatprep.subr.bf16.mxu0 %v1673_v1  ;;  %1448 = vmatprep.mubr.msk.bf16.mxu1 %vm1674_vm0, %v1673_v1  ;;  %v974_v30 = vadd.s32 8, %v973_v29  ;;  %v982_v31 = vcvt.s32.f32 %v973_v29  ;;  %v975_v34 = vadd.s32 16, %v973_v29  ;;  %v976_v35 = vadd.s32 24, %v973_v29 }
  0x24   : > { %1465 = vmatpush3.bf16.msra.mxu1 %v1641_v50  ;;  %v977_v40 = vadd.s32 32, %v973_v29  ;;  %v978_v44 = vadd.s32 40, %v973_v29  ;;  %v979_v55 = vadd.s32 48, %v973_v29  ;;  %v980_v60 = vadd.s32 56, %v973_v29 }
  0x25   : > { %1501 = vmatmul.mubr.msk.bf16.gmra.mrb[4].mxu0 %vm384_vm2, %v643_v54  ;;  %1466 = vmatprep.subr.bf16.mxu1 %v1673_v1  ;;  %v983_v32 = vcvt.s32.f32 %v974_v30  ;;  %v991_v33 = vadd.f32 0.5, %v982_v31  ;;  %v984_v38 = vcvt.s32.f32 %v975_v34  ;;  %v985_v39 = vcvt.s32.f32 %v976_v35 }
  0x26   : > { %1504 = vmatprep.mubr.msk.bf16.mxu0 %vm1674_vm0, %v1673_v1  ;;  %1521 = vmatpush3.bf16.msra.mxu0 %v1642_v51  ;;  %v986_v46 = vcvt.s32.f32 %v977_v40  ;;  %v987_v50 = vcvt.s32.f32 %v978_v44  ;;  %v981_v21 = vadd.s32 64, %v973_v29 }
  0x27   : > { %1522 = vmatprep.subr.bf16.mxu0 %v1673_v1  ;;  %v992_v36 = vadd.f32 0.5, %v983_v32  ;;  %v993_v42 = vadd.f32 0.5, %v984_v38  ;;  %v1924_v43 = vadd.f32 0.5, %v985_v39 }
  0x28   : > { %1467 = vmatpush3.bf16.msra.mxu1 %v1645_v58  ;;  %v1929_v57 = vadd.f32 0.5, %v987_v50 }
  0x29   : > { %v1003_v48 = vmul.f32 0.11111111, %v993_v42  ;;  %v1004_v49 = vmul.f32 0.11111111, %v1924_v43 }
  0x2a   : > { %1523 = vmatpush3.bf16.msra.mxu0 %v1646_v62  ;;  %1449 = vmatmul.mubr.msk.bf16.gmra.mrb[8].mxu1 %vm384_vm2, %v348_v63  ;;  %v1006_v8 = vmul.f32 0.11111111, %v1929_v57 }
  0x2b   : > { %1452 = vmatprep.mubr.msk.bf16.mxu1 %vm1674_vm0, %v1673_v1  ;;  %v1012_v54 = vfloor.f32 %v1003_v48  ;;  %v1013_v56 = vfloor.f32 %v1004_v49 }
  0x2d   : > { %1505 = vmatmul.mubr.msk.bf16.gmra.mrb[8].mxu0 %vm384_vm2, %v651_v3  ;;  %v1021_v2 = vmul.f32 9.0, %v1012_v54  ;;  %v988_v3 = vcvt.s32.f32 %v979_v55  ;;  %v1022_v7 = vmul.f32 9.0, %v1013_v56 }
  0x2e   : > { %1508 = vmatprep.mubr.msk.bf16.mxu0 %vm1674_vm0, %v1673_v1 }
  0x2f   : > { %v1030_v19 = vsub.f32 %v993_v42, %v1021_v2 }
  0x31   : > { %vm1039_vm6 = vcmp.lt.f32.partialorder %v1030_v19, 8.0 }
  0x32   : > { %1453 = vmatmul.mubr.msk.bf16.gmra.mrb[12].mxu1 %vm384_vm2, %v356_v13  ;;  %v989_v13 = vcvt.s32.f32 %v980_v60 }
  0x33   : > { %1456 = vmatprep.mubr.msk.bf16.mxu1 %vm1674_vm0, %v1673_v1 }
  0x35   : > { %1509 = vmatmul.mubr.msk.bf16.gmra.mrb[12].mxu0 %vm384_vm2, %v659_v14 }
  0x36   : > { %1512 = vmatprep.mubr.msk.bf16.mxu0 %vm1674_vm0, %v1673_v1 }
  0x3a   : > { %1457 = vmatmul.mubr.msk.bf16.gmra.mrb[16].mxu1 %vm384_vm2, %v359_v18 }
  0x3b   : > { %1468 = vmatprep.mubr.msk.bf16.mxu1 %vm1674_vm0, %v1673_v1 }
  0x3d   : > { %1513 = vmatmul.mubr.msk.bf16.gmra.mrb[16].mxu0 %vm384_vm2, %v662_v20  ;;  %v1939_v20 = vadd.f32 0.5, %v988_v3 }
  0x3e   : > { %1524 = vmatprep.mubr.msk.bf16.mxu0 %vm1674_vm0, %v1673_v1 }
  0x3f   : > { %v1007_v29 = vmul.f32 0.11111111, %v1939_v20 }
  0x42   : > { %1469 = vmatmul.mubr.msk.bf16.vlgmr.msra.gmra.mrb[0].mxu1 %vm384_vm2, %v1761_v9  ;;  %v802_v9 = vrot.slane %v1810_v41, 1 }
  0x43   : > { %1472 = vmatprep.mubr.msk.bf16.mxu1 %vm1674_vm0, %v1673_v1 }
  0x44   : > { %v803_v17 = vsel %vm796_vm3, %v800_v12, %v802_v9  ;;  %v1015_v12 = vfloor.f32 %v1006_v8 }
  0x45   : > { %1525 = vmatmul.mubr.msk.bf16.vlgmr.msra.gmra.mrb[0].mxu0 %vm384_vm2, %v799_v25  ;;  %v1031_v25 = vsub.f32 %v1924_v43, %v1022_v7 }
  0x46   : > { %1528 = vmatprep.mubr.msk.bf16.mxu0 %vm1674_vm0, %v1673_v1 }
  0x47   : > { %vm1040_vm7 = vcmp.lt.f32.partialorder %v1031_v25, 8.0 }
  0x4a   : > { %1473 = vmatmul.mubr.msk.bf16.gmra.mrb[4].mxu1 %vm384_vm2, %v1764_v10  ;;  %v804_v10 = vrot.slane %v1850_v61, 1 }
  0x4b   : > { %1476 = vmatprep.mubr.msk.bf16.mxu1 %vm1674_vm0, %v1673_v1 }
  0x4c   : > { %v805_v26 = vsel %vm796_vm3, %v802_v9, %v804_v10 }
  0x4d   : > { %1529 = vmatmul.mubr.msk.bf16.gmra.mrb[4].mxu0 %vm384_vm2, %v801_v27 }
  0x4e   : > { %1532 = vmatprep.mubr.msk.bf16.mxu0 %vm1674_vm0, %v1673_v1 }
  0x52   : > { %1477 = vmatmul.mubr.msk.bf16.gmra.mrb[8].mxu1 %vm384_vm2, %v1784_v24  ;;  %v1303_v24 = vcombine.low %v1833_v52, %v1833_v52  ;;  %v1927_v52 = vadd.f32 0.5, %v986_v46 }
  0x53   : > { %1480 = vmatprep.mubr.msk.bf16.mxu1 %vm1674_vm0, %v1673_v1 }
  0x54   : > { %v1005_v62 = vmul.f32 0.11111111, %v1927_v52 }
  0x55   : > { %1533 = vmatmul.mubr.msk.bf16.gmra.mrb[8].mxu0 %vm384_vm2, %v803_v17 }
  0x56   : > { %1536 = vmatprep.mubr.msk.bf16.mxu0 %vm1674_vm0, %v1673_v1  ;;  %v1014_v18 = vfloor.f32 %v1005_v62 }
  0x58   : > { %v1023_v28 = vmul.f32 9.0, %v1014_v18 }
  0x5a   : > { %1481 = vmatmul.mubr.msk.bf16.gmra.mrb[12].mxu1 %vm384_vm2, %v1804_v37  ;;  %v1001_v37 = vmul.f32 0.11111111, %v991_v33  ;;  %v1032_v42 = vsub.f32 %v1927_v52, %v1023_v28 }
  0x5b   : > { %1484 = vmatprep.mubr.msk.bf16.mxu1 %vm1674_vm0, %v1673_v1 }
  0x5c   : > { %v1010_v41 = vfloor.f32 %v1001_v37  ;;  %v1024_v37 = vmul.f32 9.0, %v1015_v12  ;;  %vm1041_vm8 = vcmp.lt.f32.partialorder %v1032_v42, 8.0 }
  0x5d   : > { %1537 = vmatmul.mubr.msk.bf16.gmra.mrb[12].mxu0 %vm384_vm2, %v805_v26  ;;  %v1942_v26 = vadd.f32 0.5, %v989_v13 }
  0x5e   : > { %1540 = vmatprep.mubr.msk.bf16.mxu0 %vm1674_vm0, %v1673_v1  ;;  %v1002_v1 = vmul.f32 0.11111111, %v992_v36  ;;  %v1019_v47 = vmul.f32 9.0, %v1010_v41  ;;  %v1033_v49 = vsub.f32 %v1929_v57, %v1024_v37 }
  0x5f   : > { %v1008_v39 = vmul.f32 0.11111111, %v1942_v26 }
  0x60   : > { %v1011_v45 = vfloor.f32 %v1002_v1  ;;  %v1028_v53 = vsub.f32 %v991_v33, %v1019_v47  ;;  %v990_v33 = vcvt.s32.f32 %v981_v21  ;;  %vm1042_vm9 = vcmp.lt.f32.partialorder %v1033_v49, 8.0 }
  0x61   : > { %v1017_v55 = vfloor.f32 %v1008_v39 }
  0x62   : > { %1485 = vmatmul.mubr.msk.bf16.gmra.mrb[16].mxu1 %vm384_vm2, %v1303_v24  ;;  %v1020_v51 = vmul.f32 9.0, %v1011_v45  ;;  %vm1037_vm4 = vcmp.lt.f32.partialorder %v1028_v53, 8.0  ;;  %v1016_v45 = vfloor.f32 %v1007_v29  ;;  %v1948_v46 = vadd.f32 0.5, %v990_v33 }
  0x63   : > { %v1026_v57 = vmul.f32 9.0, %v1017_v55 }
  0x64   : > { %v1029_v59 = vsub.f32 %v992_v36, %v1020_v51  ;;  %v1025_v60 = vmul.f32 9.0, %v1016_v45 }
  0x65   : > { %1541 = vmatmul.mubr.msk.bf16.gmra.mrb[16].mxu0 %vm384_vm2, %v804_v10  ;;  %v1035_v21 = vsub.f32 %v1942_v26, %v1026_v57 }
  0x66   : > { %vm1038_vm5 = vcmp.lt.f32.partialorder %v1029_v59, 8.0  ;;  %v1034_v8 = vsub.f32 %v1939_v20, %v1025_v60 }
  0x67   : > { %vm1044_vm11 = vcmp.lt.f32.partialorder %v1035_v21, 8.0 }
  0x68   : > { %vm1043_vm10 = vcmp.lt.f32.partialorder %v1034_v8, 8.0 }
 0x115   : > { %v542_v58 = vpop.f32.mrb[0].mxu1 }
 0x116   : > { %v1470_v61 = vpop.f32.mrb[1].mxu1 }
 0x117   : > { %v545_v0 = vpop.f32.mrb[2].mxu1  ;;  %v1009_v61 = vmul.f32 0.11111111, %v1948_v46 }
 0x118   : > { %v879_v63 = vpop.f32.mrb[0].mxu0  ;;  %v1471_v6 = vpop.f32.mrb[3].mxu1 }
 0x119   : > { %v1544_v4 = vadd.f32 %v879_v63, %v542_v58  ;;  %v1526_v5 = vpop.f32.mrb[1].mxu0 }
 0x11a   : > { %v882_v11 = vpop.f32.mrb[2].mxu0 }
 0x11b   : > { %v1064_v14 = vsel %vm1037_vm4, %v1544_v4, 0.0  ;;  %v1545_v15 = vadd.f32 %v882_v11, %v545_v0  ;;  %v1527_v16 = vpop.f32.mrb[3].mxu0  ;;  %v1018_v11 = vfloor.f32 %v1009_v61 }
 0x11c   : > { %v1087_v27 = vmul.f32 %v1544_v4, %v1064_v14 }
 0x11d   : > { %v1376_v22 = vpack.c.bf16 %v1545_v15, %v1544_v4  ;;  %v1065_v23 = vsel %vm1038_vm5, %v1545_v15, 0.0  ;;  %v550_v10 = vpop.f32.mrb[4].mxu1 }
 0x11e   : > { %v1073_v9 = vadd.f32 %v1065_v23, %v1064_v14  ;;  %v1088_v17 = vmul.f32 %v1545_v15, %v1065_v23  ;;  %v1474_v24 = vpop.f32.mrb[5].mxu1 }
 0x11f   : > { %1377 = vst [vmem:[%s1937_s10] sm:$0xff] %v1376_v22   ;;  %v553_v32 = vpop.f32.mrb[6].mxu1 }
 0x120   : > { %v1096_v30 = vadd.f32 %v1088_v17, %v1087_v27  ;;  %v887_v31 = vpop.f32.mrb[4].mxu0  ;;  %v1475_v36 = vpop.f32.mrb[7].mxu1  ;;  %v1027_v27 = vmul.f32 9.0, %v1018_v11 }
 0x121   : > { %v1546_v34 = vadd.f32 %v887_v31, %v550_v10  ;;  %v1530_v35 = vpop.f32.mrb[5].mxu0 }
 0x122   : > { %v890_v38 = vpop.f32.mrb[6].mxu0  ;;  %v1036_v26 = vsub.f32 %v1948_v46, %v1027_v27 }
 0x123   : > { %v1066_v1 = vsel %vm1039_vm6, %v1546_v34, 0.0  ;;  %v1547_v40 = vadd.f32 %v890_v38, %v553_v32  ;;  %v1531_v41 = vpop.f32.mrb[7].mxu0 }
 0x124   : > { %v1074_v43 = vadd.f32 %v1073_v9, %v1066_v1  ;;  %v1089_v44 = vmul.f32 %v1546_v34, %v1066_v1  ;;  %vm1045_vm12 = vcmp.lt.f32.partialorder %v1036_v26, 8.0 }
 0x125   : > { %v1381_v47 = vpack.c.bf16 %v1547_v40, %v1546_v34  ;;  %v1067_v48 = vsel %vm1040_vm7, %v1547_v40, 0.0  ;;  %v558_v54 = vpop.f32.mrb[8].mxu1 }
 0x126   : > { %v1097_v50 = vadd.f32 %v1096_v30, %v1089_v44  ;;  %v1075_v51 = vadd.f32 %v1074_v43, %v1067_v48  ;;  %v1090_v53 = vmul.f32 %v1547_v40, %v1067_v48  ;;  %v1478_v56 = vpop.f32.mrb[9].mxu1 }
 0x127   : > { %1393 = vst [vmem:[%s1937_s10 + $0x8] sm:$0xff] %v1381_v47   ;;  %v561_v52 = vpop.f32.mrb[10].mxu1 }
 0x128   : > { %v1098_v58 = vadd.f32 %v1097_v50, %v1090_v53  ;;  %v895_v59 = vpop.f32.mrb[8].mxu0  ;;  %v1479_v0 = vpop.f32.mrb[11].mxu1 }
 0x129   : > { %v1548_v62 = vadd.f32 %v895_v59, %v558_v54  ;;  %v1534_v63 = vpop.f32.mrb[9].mxu0 }
 0x12a   : > { %v898_v2 = vpop.f32.mrb[10].mxu0 }
 0x12b   : > { %v1068_v3 = vsel %vm1041_vm8, %v1548_v62, 0.0  ;;  %v1549_v4 = vadd.f32 %v898_v2, %v561_v52  ;;  %v1535_v5 = vpop.f32.mrb[11].mxu0 }
 0x12c   : > { %v1076_v6 = vadd.f32 %v1075_v51, %v1068_v3  ;;  %v1091_v7 = vmul.f32 %v1548_v62, %v1068_v3 }
 0x12d   : > { %v1386_v13 = vpack.c.bf16 %v1549_v4, %v1548_v62  ;;  %v1069_v14 = vsel %vm1042_vm9, %v1549_v4, 0.0  ;;  %v566_v19 = vpop.f32.mrb[12].mxu1 }
 0x12e   : > { %v1099_v15 = vadd.f32 %v1098_v58, %v1091_v7  ;;  %v1077_v16 = vadd.f32 %v1076_v6, %v1069_v14  ;;  %v1092_v18 = vmul.f32 %v1549_v4, %v1069_v14  ;;  %v1482_v22 = vpop.f32.mrb[13].mxu1 }
 0x12f   : > { %1394 = vst [vmem:[%s1937_s10 + $0x10] sm:$0xff] %v1386_v13   ;;  %v569_v12 = vpop.f32.mrb[14].mxu1 }
 0x130   : > { %v1100_v23 = vadd.f32 %v1099_v15, %v1092_v18  ;;  %v903_v25 = vpop.f32.mrb[12].mxu0  ;;  %v1483_v20 = vpop.f32.mrb[15].mxu1 }
 0x131   : > { %v1550_v9 = vadd.f32 %v903_v25, %v566_v19  ;;  %v1538_v17 = vpop.f32.mrb[13].mxu0 }
 0x132   : > { %v906_v10 = vpop.f32.mrb[14].mxu0 }
 0x133   : > { %v1070_v24 = vsel %vm1043_vm10, %v1550_v9, 0.0  ;;  %v1551_v28 = vadd.f32 %v906_v10, %v569_v12  ;;  %v1539_v30 = vpop.f32.mrb[15].mxu0 }
 0x134   : > { %v1078_v31 = vadd.f32 %v1077_v16, %v1070_v24  ;;  %v1093_v32 = vmul.f32 %v1550_v9, %v1070_v24 }
 0x135   : > { %v1391_v29 = vpack.c.bf16 %v1551_v28, %v1550_v9  ;;  %v1071_v33 = vsel %vm1044_vm11, %v1551_v28, 0.0  ;;  %v574_v37 = vpop.f32.mrb[16].mxu1 }
 0x136   : > { %v1101_v34 = vadd.f32 %v1100_v23, %v1093_v32  ;;  %v1079_v35 = vadd.f32 %v1078_v31, %v1071_v33  ;;  %v1094_v36 = vmul.f32 %v1551_v28, %v1071_v33  ;;  %v1486_v38 = vpop.f32.mrb[17].mxu1 }
 0x137   : > { %1395 = vst [vmem:[%s1937_s10 + $0x18] sm:$0xff] %v1391_v29   ;;  %v577_v40 = vpop.f32.mrb[18].mxu1 }
 0x138   : > { %v1102_v39 = vadd.f32 %v1101_v34, %v1094_v36  ;;  %v911_v1 = vpop.f32.mrb[16].mxu0  ;;  %v1487_v43 = vpop.f32.mrb[19].mxu1 }
 0x139   : > { %v1552_v41 = vadd.f32 %v911_v1, %v574_v37  ;;  %v1542_v42 = vpop.f32.mrb[17].mxu0 }
 0x13a   : > { %v914_v44 = vpop.f32.mrb[18].mxu0 }
 0x13b   : > { %v1372_v45 = vpack.c.bf16 %v1552_v41, %v1552_v41  ;;  %v1072_v46 = vsel %vm1045_vm12, %v1552_v41, 0.0  ;;  %v1543_v47 = vpop.f32.mrb[19].mxu0 }
 0x13c   : > { %v1080_v48 = vadd.f32 %v1079_v35, %v1072_v46  ;;  %v1095_v49 = vmul.f32 %v1552_v41, %v1072_v46 }
 0x13d   : > { %971 = vst [vmem:[%s1937_s10 + $0x20] sm:$0xf] %v1372_v45 }
 0x13e   : > { %v1081_v50 = vrot.slane %v1080_v48, 4  ;;  %v1103_v51 = vadd.f32 %v1102_v39, %v1095_v49 }
 0x140   : > { %v1082_v53 = vadd.f32 %v1081_v50, %v1080_v48  ;;  %v1104_v54 = vrot.slane %v1103_v51, 4 }
 0x142   : > { %v1083_v55 = vrot.slane %v1082_v53, 2  ;;  %v1105_v56 = vadd.f32 %v1104_v54, %v1103_v51 }
 0x144   : > { %v1084_v58 = vadd.f32 %v1083_v55, %v1082_v53  ;;  %v1106_v59 = vrot.slane %v1105_v56, 2 }
 0x146   : > { %v1085_v52 = vrot.slane %v1084_v58, 1  ;;  %v1107_v60 = vadd.f32 %v1106_v59, %v1105_v56 }
 0x148   : > { %v1086_v61 = vadd.f32 %v1085_v52, %v1084_v58  ;;  %v1108_v62 = vrot.slane %v1107_v60, 1 }
 0x14a   : > { %v1109_v63 = vadd.f32 %v1108_v62, %v1107_v60  ;;  %1110 = vst [vmem:[%s260_s13] sm:$0x1] %v1086_v61 }
 0x14c   : > { %1111 = vst [vmem:[%s266_s20] sm:$0x1] %v1109_v63 }
 0x14d PF: > { %s15_s17 = sadd.s32 1, %s1671_s17   ;;  %s1981_s15 = smov %s1667_s16 }
 0x14e   : > { %p12_p5 = scmp.ge.s32.totalorder %s15_s17, 4   ;;  %s1982_s16 = smov %s1984_s18 }
 0x150   :  { %14 = sbr.rel (!%p12_p5) target bundleno = 2 (0x2), region = 85 }

// kernel: _lambda_.8
= control target key start
LH: loop header
LB: loop body
LE: loop exit
PB: predicated region body
PF: predicated region fallthrough
CT: control target
= control target key end

     0   :  { %s1392_s15 = smov 0   ;;  %s1394_s16 = smov 0   ;;  %s1549_s0 = inlined_call_operand.vmem [shape: bf16[2,1,30,128], index: 0, kind: input, shape index: {}]   ;;  %s1550_s1 = inlined_call_operand.vmem [shape: bf16[4,128,128], index: 1, kind: input, shape index: {}]   ;;  %s1551_s2 = inlined_call_operand.vmem [shape: bf16[2,1,20,128], index: 2, kind: output, shape index: {0}]   ;;  %s1552_s3 = inlined_call_operand.vmem [shape: f32[2,1,1,128], index: 3, kind: output, shape index: {1}]   ;;  %s1553_s4 = inlined_call_operand.vmem [shape: f32[2,1,1,128], index: 4, kind: output, shape index: {2}]  }
   0x1   :  { %s1396_s17 = smov 0  }
   0x2 LB: > { %s27_s18 = sadd.s32 1, %s1361_s16  ;;  %p1045_p0 = scmp.ge.s32.totalorder %s1365_s17, 1  ;;  %s1365_s17 = sphi %s1396_s17, %s15_s17   ;;  %s1361_s16 = sphi %s1394_s16, %s1555_s16   ;;  %s1357_s15 = sphi %s1392_s15, %s1554_s15  }
   0x3   : > { %p29_p1 = scmp.ge.s32.totalorder %s27_s18, 2  ;;  %p191_p2 = scmp.lt.s32.totalorder %s1365_s17, 3 }
   0x5   : > { %s1557_s18 = smov (%p29_p1, %s27_s18), 0  ;;  %p192_p3 = pnand %p1045_p0, %p191_p2 }
   0x6   : > { %v1305_v0 = vld [vmem:[%s1550_s1 + $0x40] sm:$0xff] (!%p192_p3)   ;;  %v1307_v2 = vld [vmem:[%s1550_s1 + $0x48] sm:$0xff] (!%p192_p3)   ;;  %p237_p4 = scmp.lt.s32.totalorder (!%p192_p3), %s1357_s15, 1  ;;  %v1309_v4 = vld [vmem:[%s1550_s1 + $0x50] sm:$0xff] (!%p192_p3)   ;;  %vm313_vm0 = vsmask.f32 (!%p192_p3), 7424 }
   0x7   : > { %195 = sbr.rel (%p192_p3) target bundleno = 309 (0x135), region = 28  ;;  %v1306_v1 = vld [vmem:[%s1550_s1 + $0x80] sm:$0xff] (!%p192_p3)   ;;  %1189 = vmatprep.subr.bf16.mxu1 (!%p192_p3), %v1305_v0  ;;  %v1308_v3 = vld [vmem:[%s1550_s1 + $0x88] sm:$0xff] (!%p192_p3)   ;;  %v1310_v5 = vld [vmem:[%s1550_s1 + $0x90] sm:$0xff] (!%p192_p3)   ;;  %vm559_vm1 = vsmask.f32 (!%p192_p3), 5376 }
   0x8   : > { %1229 = vmatprep.subr.bf16.mxu0 (!%p192_p3), %v1306_v1  ;;  %1190 = vmatpush3.bf16.msra.mxu1 (!%p192_p3), %v1305_v0  ;;  %v1311_v6 = vld [vmem:[%s1550_s1 + $0x58] sm:$0xff] (!%p192_p3)   ;;  %v1313_v8 = vld [vmem:[%s1550_s1 + $0x60] sm:$0xff] (!%p192_p3)   ;;  %v1315_v10 = vld [vmem:[%s1550_s1 + $0x68] sm:$0xff] (!%p192_p3)   ;;  %vm699_vm2 = vcmask (!%p192_p3), 1044480   ;;  %v820_v0 = vlaneseq (!%p192_p3)  ;;  %vm856_vm6 = vcmask (!%p192_p3), 1043456  }
   0x9   : > { %1230 = vmatpush3.bf16.msra.mxu0 (!%p192_p3), %v1306_v1  ;;  %1191 = vmatprep.subr.bf16.mxu1 (!%p192_p3), %v1307_v2  ;;  %v1312_v7 = vld [vmem:[%s1550_s1 + $0x98] sm:$0xff] (!%p192_p3)   ;;  %v1314_v9 = vld [vmem:[%s1550_s1 + $0xa0] sm:$0xff] (!%p192_p3)   ;;  %v1316_v11 = vld [vmem:[%s1550_s1 + $0xa8] sm:$0xff] (!%p192_p3)  }
   0xa   : > { %1231 = vmatprep.subr.bf16.mxu0 (!%p192_p3), %v1308_v3  ;;  %v1317_v14 = vld [vmem:[%s1550_s1 + $0x70] sm:$0xff] (!%p192_p3)   ;;  %v1319_v29 = vld [vmem:[%s1550_s1 + $0x78] sm:$0xff] (!%p192_p3)   ;;  %v1323_v36 = vld [vmem:[%s1550_s1] sm:$0xff] (!%p192_p3)   ;;  %v821_v1 = vshrl.u32 (!%p192_p3), %v820_v0, 7 }
   0xb   : > { %v1318_v15 = vld [vmem:[%s1550_s1 + $0xb0] sm:$0xff] (!%p192_p3)   ;;  %v1320_v31 = vld [vmem:[%s1550_s1 + $0xb8] sm:$0xff] (!%p192_p3)   ;;  %v1326_v41 = vld [vmem:[%s1550_s1 + $0xc0] sm:$0xff] (!%p192_p3)  }
   0xc   : > { %1192 = vmatpush3.bf16.msra.mxu1 (!%p192_p3), %v1307_v2  ;;  %v1327_v44 = vld [vmem:[%s1550_s1 + $0x8] sm:$0xff] (!%p192_p3)   ;;  %v1329_v46 = vld [vmem:[%s1550_s1 + $0x10] sm:$0xff] (!%p192_p3)   ;;  %v1331_v51 = vld [vmem:[%s1550_s1 + $0x18] sm:$0xff] (!%p192_p3)   ;;  %v823_v2 = vadd.s32 (!%p192_p3), 16, %v821_v1 }
   0xd   : > { %1232 = vmatpush3.bf16.msra.mxu0 (!%p192_p3), %v1308_v3  ;;  %1193 = vmatprep.subr.bf16.mxu1 (!%p192_p3), %v1309_v4  ;;  %v1328_v45 = vld [vmem:[%s1550_s1 + $0xc8] sm:$0xff] (!%p192_p3)   ;;  %v1330_v47 = vld [vmem:[%s1550_s1 + $0xd0] sm:$0xff] (!%p192_p3)   ;;  %v1332_v53 = vld [vmem:[%s1550_s1 + $0xd8] sm:$0xff] (!%p192_p3)   ;;  %v822_v3 = vadd.s32 (!%p192_p3), 8, %v821_v1 }
   0xe   : > { %s1559_s15 = smov (!%p237_p4, %s1357_s15), 1  ;;  %1233 = vmatprep.subr.bf16.mxu0 %v1310_v5  ;;  %v1333_v55 = vld [vmem:[%s1550_s1 + $0x20] sm:$0xff]   ;;  %v1335_v57 = vld [vmem:[%s1550_s1 + $0x28] sm:$0xff]   ;;  %v1337_v59 = vld [vmem:[%s1550_s1 + $0x30] sm:$0xff]  }
   0xf   : > { %s1140_s9 = sshll.u32 %s1559_s15, 4  ;;  %v1334_v56 = vld [vmem:[%s1550_s1 + $0xe0] sm:$0xff]   ;;  %v1336_v58 = vld [vmem:[%s1550_s1 + $0xe8] sm:$0xff]   ;;  %v1338_v60 = vld [vmem:[%s1550_s1 + $0xf0] sm:$0xff]   ;;  %s260_s28 = scalar_lea.vmem %s1552_s3, %s1559_s15 }
  0x10   : > { %1194 = vmatpush3.bf16.msra.mxu1 %v1309_v4  ;;  %s1446_s20 = scalar_lea.vmem %s1549_s0, %s1140_s9  ;;  %v1339_v61 = vld [vmem:[%s1550_s1 + $0x38] sm:$0xff]   ;;  %v826_v4 = vcvt.s32.f32 %v823_v2  ;;  %s266_s5 = scalar_lea.vmem %s1553_s4, %s1559_s15 }
  0x11   : > { %1234 = vmatpush3.bf16.msra.mxu0 %v1310_v5  ;;  %1195 = vmatprep.subr.bf16.mxu1 %v1311_v6  ;;  %v1321_v12 = vld [vmem:[%s1446_s20] sm:$0xff]   ;;  %v1322_v13 = vld [vmem:[%s1446_s20 + $0x8] ss:$0 sps:$4 sm:$0x77]   ;;  %v1340_v62 = vld [vmem:[%s1550_s1 + $0xf8] sm:$0xff]   ;;  %v824_v5 = vcvt.s32.f32 %v821_v1 }
  0x12   : > { %1235 = vmatprep.subr.bf16.mxu0 %v1312_v7  ;;  %v315_v16 = vshrl.u32 %v1321_v12, 16  ;;  %v317_v17 = vshll.u32 %v1321_v12, 16  ;;  %v322_v18 = vshll.u32 %v1322_v13, 16  ;;  %v528_v19 = vld [vmem:[%s1446_s20] sm:$0xc]  ;;  %v326_v38 = vshrl.u32 %v1322_v13, 16 }
  0x13   : > { %v529_v20 = vld [vmem:[%s1446_s20 + $0x4] sm:$0xf]  ;;  %v1465_v24 = vld [vmem:[%s1446_s20 + $0x8] sm:$0x1f]   ;;  %v678_v48 = vld [vmem:[%s1446_s20] sm:$0x8] }
  0x14   : > { %1196 = vmatpush3.bf16.msra.mxu1 %v1311_v6  ;;  %v319_v21 = vrot.slane %v317_v17, 1  ;;  %v324_v22 = vrot.slane %v322_v18, 1  ;;  %v1100_v23 = vcombine.low %v528_v19, %v529_v20  ;;  %v569_v28 = vshrl.u32 %v1465_v24, 16  ;;  %v1342_v63 = vld [vmem:[%s1446_s20 + $0x8] ss:$0 sps:$4 sm:$0x33]  }
  0x15   : > { %1236 = vmatpush3.bf16.msra.mxu0 %v1312_v7  ;;  %1197 = vmatprep.subr.bf16.mxu1 %v1313_v8  ;;  %v572_v30 = vshll.u32 %v1465_v24, 16  ;;  %v1126_v49 = vcombine.low %v678_v48, %v529_v20  ;;  %v701_v50 = vrot.slane %v1465_v24, 3  ;;  %v825_v6 = vcvt.s32.f32 %v822_v3  ;;  %s1280_s20 = smul.u32 12, %s1559_s15 }
  0x16   : > { %1237 = vmatprep.subr.bf16.mxu0 %v1314_v9  ;;  %v320_v25 = vor.u32 %v319_v21, %v315_v16  ;;  %v561_v26 = vshrl.u32 %v1100_v23, 16  ;;  %v564_v27 = vshll.u32 %v1100_v23, 16  ;;  %v571_v35 = vrot.slane %v569_v28, 2 }
  0x17   : > { %v574_v37 = vrot.slane %v572_v30, 3  ;;  %v328_v43 = vor.u32 %v326_v38, %v324_v22  ;;  %v700_v52 = vrot.slane %v1126_v49, 3  ;;  %v829_v7 = vadd.f32 0.5, %v826_v4  ;;  %s254_s25 = scalar_lea.vmem %s1551_s2, %s1280_s20 }
  0x18   : > { %1198 = vmatpush3.bf16.msra.mxu1 %v1313_v8  ;;  %v325_v32 = vsel %vm313_vm0, %v320_v25, %v324_v22  ;;  %v563_v33 = vrot.slane %v561_v26, 2  ;;  %v566_v34 = vrot.slane %v564_v27, 3  ;;  %v827_v8 = vadd.f32 0.5, %v824_v5 }
  0x19   : > { %1238 = vmatpush3.bf16.msra.mxu0 %v1314_v9  ;;  %1199 = vmatprep.subr.bf16.mxu1 %v1315_v10  ;;  %v575_v40 = vor.u32 %v574_v37, %v571_v35  ;;  %v702_v54 = vsel %vm699_vm2, %v700_v52, %v701_v50  ;;  %v828_v9 = vadd.f32 0.5, %v825_v6 }
  0x1a   : > { %1239 = vmatprep.subr.bf16.mxu0 %v1316_v11  ;;  %1205 = vmatprep.mubr.bf16.mxu1 %v325_v32  ;;  %v567_v39 = vor.u32 %v566_v34, %v563_v33 }
  0x1c   : > { %1200 = vmatpush3.bf16.msra.mxu1 %v1315_v10  ;;  %v576_v42 = vsel %vm559_vm1, %v567_v39, %v575_v40  ;;  %v833_v10 = vmul.f32 0.2, %v829_v7 }
  0x1d   : > { %1240 = vmatpush3.bf16.msra.mxu0 %v1316_v11  ;;  %1201 = vmatprep.subr.bf16.mxu1 %v1317_v14  ;;  %v831_v11 = vmul.f32 0.2, %v827_v8 }
  0x1e   : > { %1241 = vmatprep.subr.bf16.mxu0 %v1318_v15  ;;  %1245 = vmatprep.mubr.bf16.mxu0 %v576_v42  ;;  %v836_v13 = vfloor.f32 %v833_v10 }
  0x20   : > { %1202 = vmatpush3.bf16.msra.mxu1 %v1317_v14  ;;  %v834_v14 = vfloor.f32 %v831_v11  ;;  %v839_v16 = vmul.f32 5.0, %v836_v13 }
  0x21   : > { %1242 = vmatpush3.bf16.msra.mxu0 %v1318_v15  ;;  %1203 = vmatprep.subr.bf16.mxu1 %v1319_v29 }
  0x22   : > { %1243 = vmatprep.subr.bf16.mxu0 %v1320_v31  ;;  %v837_v17 = vmul.f32 5.0, %v834_v14  ;;  %v842_v19 = vsub.f32 %v829_v7, %v839_v16 }
  0x24   : > { %1204 = vmatpush3.bf16.msra.mxu1 %v1319_v29  ;;  %v840_v20 = vsub.f32 %v827_v8, %v837_v17  ;;  %vm845_vm3 = vcmp.lt.f32.partialorder %v842_v19, 4.0 }
  0x25   : > { %1244 = vmatpush3.bf16.msra.mxu0 %v1320_v31  ;;  %1209 = vmatprep.subr.bf16.mxu1 %v1323_v36 }
  0x26   : > { %1249 = vmatprep.subr.bf16.mxu0 %v1326_v41  ;;  %vm843_vm4 = vcmp.lt.f32.partialorder %v840_v20, 4.0 }
  0x27   : > { %1206 = vmatmul.mubr.bf16.vlgmr.msra.gmra.mrb[0].mxu1 %v328_v43 }
  0x28   : > { %1210 = vmatpush3.bf16.msra.mxu1 %v1323_v36  ;;  %1246 = vmatmul.mubr.bf16.vlgmr.msra.gmra.mrb[0].mxu0 %v575_v40 }
  0x29   : > { %1250 = vmatpush3.bf16.msra.mxu0 %v1326_v41  ;;  %1211 = vmatprep.subr.bf16.mxu1 %v1327_v44 }
  0x2a   : > { %1251 = vmatprep.subr.bf16.mxu0 %v1328_v45  ;;  %1225 = vmatprep.mubr.bf16.mxu1 %v1321_v12  ;;  %v832_v12 = vmul.f32 0.2, %v828_v9 }
  0x2b   : > { %1265 = vmatprep.mubr.bf16.mxu0 %v702_v54 }
  0x2c   : > { %1212 = vmatpush3.bf16.msra.mxu1 %v1327_v44  ;;  %v835_v15 = vfloor.f32 %v832_v12 }
  0x2d   : > { %1252 = vmatpush3.bf16.msra.mxu0 %v1328_v45  ;;  %1213 = vmatprep.subr.bf16.mxu1 %v1329_v46 }
  0x2e   : > { %1253 = vmatprep.subr.bf16.mxu0 %v1330_v47  ;;  %v838_v18 = vmul.f32 5.0, %v835_v15 }
  0x30   : > { %1214 = vmatpush3.bf16.msra.mxu1 %v1329_v46  ;;  %v841_v22 = vsub.f32 %v828_v9, %v838_v18 }
  0x31   : > { %1254 = vmatpush3.bf16.msra.mxu0 %v1330_v47  ;;  %1215 = vmatprep.subr.bf16.mxu1 %v1331_v51 }
  0x32   : > { %1255 = vmatprep.subr.bf16.mxu0 %v1332_v53  ;;  %vm844_vm5 = vcmp.lt.f32.partialorder %v841_v22, 4.0 }
  0x34   : > { %1216 = vmatpush3.bf16.msra.mxu1 %v1331_v51 }
  0x35   : > { %1256 = vmatpush3.bf16.msra.mxu0 %v1332_v53  ;;  %1217 = vmatprep.subr.bf16.mxu1 %v1333_v55 }
  0x36   : > { %1257 = vmatprep.subr.bf16.mxu0 %v1334_v56 }
  0x38   : > { %1218 = vmatpush3.bf16.msra.mxu1 %v1333_v55 }
  0x39   : > { %1258 = vmatpush3.bf16.msra.mxu0 %v1334_v56  ;;  %1219 = vmatprep.subr.bf16.mxu1 %v1335_v57 }
  0x3a   : > { %1259 = vmatprep.subr.bf16.mxu0 %v1336_v58 }
  0x3c   : > { %1220 = vmatpush3.bf16.msra.mxu1 %v1335_v57 }
  0x3d   : > { %1260 = vmatpush3.bf16.msra.mxu0 %v1336_v58  ;;  %1221 = vmatprep.subr.bf16.mxu1 %v1337_v59 }
  0x3e   : > { %1261 = vmatprep.subr.bf16.mxu0 %v1338_v60 }
  0x40   : > { %1222 = vmatpush3.bf16.msra.mxu1 %v1337_v59 }
  0x41   : > { %1262 = vmatpush3.bf16.msra.mxu0 %v1338_v60  ;;  %1223 = vmatprep.subr.bf16.mxu1 %v1339_v61 }
  0x42   : > { %1263 = vmatprep.subr.bf16.mxu0 %v1340_v62 }
  0x44   : > { %1224 = vmatpush3.bf16.msra.mxu1 %v1339_v61 }
  0x45   : > { %1264 = vmatpush3.bf16.msra.mxu0 %v1340_v62 }
  0x47   : > { %1226 = vmatmul.mubr.bf16.vlgmr.msra.gmra.mrb[0].mxu1 %v1342_v63 }
  0x48   : > { %1266 = vmatmul.mubr.bf16.vlgmr.msra.gmra.mrb[0].mxu0 %v701_v50 }
 0x11a   : > { %v1227_v21 = vpop.f32.mrb[0].mxu1 }
 0x11b   : > { %v1267_v23 = vpop.f32.mrb[0].mxu0  ;;  %v514_v24 = vpop.f32.mrb[1].mxu1 }
 0x11c   : > { %v1269_v25 = vadd.f32 %v1267_v23, %v1227_v21  ;;  %v787_v26 = vpop.f32.mrb[1].mxu0  ;;  %v1228_v27 = vpop.f32.mrb[2].mxu1 }
 0x11d   : > { %v1270_v28 = vadd.f32 %v787_v26, %v514_v24  ;;  %v1268_v29 = vpop.f32.mrb[2].mxu0  ;;  %v517_v30 = vpop.f32.mrb[3].mxu1 }
 0x11e   : > { %v1143_v31 = vpack.c.bf16 %v1269_v25, %v1269_v25  ;;  %v854_v32 = vsel %vm845_vm3, %v1269_v25, 0.0  ;;  %v790_v33 = vpop.f32.mrb[3].mxu0 }
 0x11f   : > { %v852_v34 = vsel %vm843_vm4, %v1270_v28, 0.0  ;;  %v1271_v35 = vadd.f32 %v790_v33, %v517_v30  ;;  %v867_v36 = vmul.f32 %v1269_v25, %v854_v32  ;;  %v857_v42 = vsel %vm856_vm6, %v854_v32, 0.0 }
 0x120   : > { %819 = vst [vmem:[%s254_s25 + $0x8] sm:$0x3] %v1143_v31  ;;  %v865_v39 = vmul.f32 %v1270_v28, %v852_v34 }
 0x121   : > { %v1147_v37 = vpack.c.bf16 %v1271_v35, %v1270_v28  ;;  %v853_v38 = vsel %vm844_vm5, %v1271_v35, 0.0  ;;  %v869_v45 = vsel %vm856_vm6, %v867_v36, 0.0 }
 0x122   : > { %v855_v40 = vadd.f32 %v853_v38, %v852_v34  ;;  %v866_v41 = vmul.f32 %v1271_v35, %v853_v38 }
 0x123   : > { %1148 = vst [vmem:[%s254_s25] sm:$0xff] %v1147_v37  }
 0x124   : > { %v858_v43 = vadd.f32 %v857_v42, %v855_v40  ;;  %v868_v44 = vadd.f32 %v866_v41, %v865_v39 }
 0x126   : > { %v859_v46 = vrot.slane %v858_v43, 4  ;;  %v870_v47 = vadd.f32 %v869_v45, %v868_v44 }
 0x128   : > { %v860_v48 = vadd.f32 %v859_v46, %v858_v43  ;;  %v871_v49 = vrot.slane %v870_v47, 4 }
 0x12a   : > { %v861_v50 = vrot.slane %v860_v48, 2  ;;  %v872_v51 = vadd.f32 %v871_v49, %v870_v47 }
 0x12c   : > { %v862_v52 = vadd.f32 %v861_v50, %v860_v48  ;;  %v873_v53 = vrot.slane %v872_v51, 2 }
 0x12e   : > { %v863_v54 = vrot.slane %v862_v52, 1  ;;  %v874_v55 = vadd.f32 %v873_v53, %v872_v51 }
 0x130   : > { %v864_v56 = vadd.f32 %v863_v54, %v862_v52  ;;  %v875_v57 = vrot.slane %v874_v55, 1 }
 0x132   : > { %v876_v58 = vadd.f32 %v875_v57, %v874_v55  ;;  %877 = vst [vmem:[%s260_s28] sm:$0x1] %v864_v56 }
 0x134   : > { %878 = vst [vmem:[%s266_s5] sm:$0x1] %v876_v58 }
 0x135 PF: > { %s15_s17 = sadd.s32 1, %s1365_s17   ;;  %s1554_s15 = smov %s1361_s16 }
 0x136   : > { %p12_p5 = scmp.ge.s32.totalorder %s15_s17, 4   ;;  %s1555_s16 = smov %s1557_s18 }
 0x138   :  { %14 = sbr.rel (!%p12_p5) target bundleno = 2 (0x2), region = 85 }

// kernel: _lambda_.9
= control target key start
LH: loop header
LB: loop body
LE: loop exit
PB: predicated region body
PF: predicated region fallthrough
CT: control target
= control target key end

     0   :  { %s2224_s9 = smov 0   ;;  %s2584_s0 = inlined_call_operand.vmem [shape: bf16[2,24,64], index: 0, kind: input, shape index: {}]   ;;  %s2585_s1 = inlined_call_operand.vmem [shape: bf16[16,64,128], index: 1, kind: input, shape index: {}]   ;;  %s2586_s2 = inlined_call_operand.vmem [shape: f32[2,4,128], index: 2, kind: output, shape index: {}]  }
   0x1 LB: > { %s1558_s10 = sadd.s32 4294967295, %s2205_s9   ;;  %p1562_p0 = scmp.ge.s32.totalorder %s2205_s9, 1  ;;  %s2205_s9 = sphi %s2224_s9, %s12_s9  }
   0x2   : > { %p112_p1 = scmp.lt.s32.totalorder %s2205_s9, 3 }
   0x4   : > { %p113_p2 = pnand %p1562_p0, %p112_p1 }
   0x5   : > { %v2121_v0 = vld [vmem:[%s2585_s1 + $0x20] sm:$0xff] (!%p113_p2)   ;;  %v2207_v1 = vmov (!%p113_p2), 0.0   ;;  %v2123_v3 = vld [vmem:[%s2585_s1 + $0x28] sm:$0xff] (!%p113_p2)   ;;  %vm2208_vm0 = vmmov (!%p113_p2), 0   ;;  %p133_p3 = scmp.lt.s32.totalorder (!%p113_p2), %s1558_s10, 1  ;;  %v2125_v5 = vld [vmem:[%s2585_s1 + $0x30] sm:$0xff] (!%p113_p2)  }
   0x6   : > { %116 = sbr.rel (%p113_p2) target bundleno = 351 (0x15f), region = 28  ;;  %1861 = vmatprep.subr.bf16.mxu1 (!%p113_p2), %v2207_v1  ;;  %1957 = vmatprep.subr.bf16.mxu0 (!%p113_p2), %v2207_v1  ;;  %v2122_v2 = vld [vmem:[%s2585_s1 + $0x100] sm:$0xff] (!%p113_p2)   ;;  %v2124_v4 = vld [vmem:[%s2585_s1 + $0x108] sm:$0xff] (!%p113_p2)   ;;  %v2126_v6 = vld [vmem:[%s2585_s1 + $0x110] sm:$0xff] (!%p113_p2)   ;;  %vm196_vm1 = vcmask (!%p113_p2), 523264  }
   0x7   : > { %1862 = vmatpush3.bf16.msra.mxu1 (!%p113_p2), %v2121_v0  ;;  %1869 = vmatprep.mubr.msk.bf16.mxu1 (!%p113_p2), %vm2208_vm0, %v2207_v1  ;;  %v2127_v8 = vld [vmem:[%s2585_s1 + $0x38] sm:$0xff] (!%p113_p2)   ;;  %v2130_v16 = vld [vmem:[%s2585_s1] sm:$0xff] (!%p113_p2)   ;;  %v2135_v19 = vld [vmem:[%s2585_s1 + $0x8] sm:$0xff] (!%p113_p2)  }
   0x8   : > { %1958 = vmatpush3.bf16.msra.mxu0 (!%p113_p2), %v2122_v2  ;;  %1863 = vmatprep.subr.bf16.mxu1 (!%p113_p2), %v2207_v1  ;;  %v2128_v9 = vld [vmem:[%s2585_s1 + $0x118] sm:$0xff] (!%p113_p2)   ;;  %v2134_v18 = vld [vmem:[%s2585_s1 + $0x120] sm:$0xff] (!%p113_p2)   ;;  %v2136_v20 = vld [vmem:[%s2585_s1 + $0x128] sm:$0xff] (!%p113_p2)  }
   0x9   : > { %1959 = vmatprep.subr.bf16.mxu0 (!%p113_p2), %v2207_v1  ;;  %1965 = vmatprep.mubr.msk.bf16.mxu0 (!%p113_p2), %vm2208_vm0, %v2207_v1  ;;  %v2137_v21 = vld [vmem:[%s2585_s1 + $0x10] sm:$0xff] (!%p113_p2)   ;;  %v2139_v25 = vld [vmem:[%s2585_s1 + $0x18] sm:$0xff] (!%p113_p2)   ;;  %v2141_v30 = vld [vmem:[%s2585_s1 + $0x40] sm:$0xff] (!%p113_p2)  }
   0xa   : > { %v2138_v23 = vld [vmem:[%s2585_s1 + $0x130] sm:$0xff] (!%p113_p2)   ;;  %v2140_v28 = vld [vmem:[%s2585_s1 + $0x138] sm:$0xff] (!%p113_p2)   ;;  %v2143_v32 = vld [vmem:[%s2585_s1 + $0x140] sm:$0xff] (!%p113_p2)  }
   0xb   : > { %1864 = vmatpush3.bf16.msra.mxu1 (!%p113_p2), %v2123_v3  ;;  %v2144_v33 = vld [vmem:[%s2585_s1 + $0x48] sm:$0xff] (!%p113_p2)   ;;  %v2146_v35 = vld [vmem:[%s2585_s1 + $0x50] sm:$0xff] (!%p113_p2)   ;;  %v2148_v38 = vld [vmem:[%s2585_s1 + $0x58] sm:$0xff] (!%p113_p2)  }
   0xc   : > { %1960 = vmatpush3.bf16.msra.mxu0 (!%p113_p2), %v2124_v4  ;;  %1865 = vmatprep.subr.bf16.mxu1 (!%p113_p2), %v2207_v1  ;;  %v2145_v34 = vld [vmem:[%s2585_s1 + $0x148] sm:$0xff] (!%p113_p2)   ;;  %v2147_v36 = vld [vmem:[%s2585_s1 + $0x150] sm:$0xff] (!%p113_p2)   ;;  %v2149_v40 = vld [vmem:[%s2585_s1 + $0x158] sm:$0xff] (!%p113_p2)  }
   0xd   : > { %s2588_s10 = smov (!%p133_p3, %s1558_s10), 1  ;;  %1961 = vmatprep.subr.bf16.mxu0 %v2207_v1  ;;  %v2151_v42 = vld [vmem:[%s2585_s1 + $0x60] sm:$0xff]   ;;  %v2154_v46 = vld [vmem:[%s2585_s1 + $0x68] sm:$0xff]   ;;  %v2156_v49 = vld [vmem:[%s2585_s1 + $0x70] sm:$0xff]  }
   0xe   : > { %s2110_s21 = smul.u32 12, %s2588_s10  ;;  %v2153_v44 = vld [vmem:[%s2585_s1 + $0x160] sm:$0xff]   ;;  %v2155_v48 = vld [vmem:[%s2585_s1 + $0x168] sm:$0xff]   ;;  %v2157_v54 = vld [vmem:[%s2585_s1 + $0x170] sm:$0xff]   ;;  %s1564_s16 = sshll.u32 %s2588_s10, 2 }
   0xf   : > { %1866 = vmatpush3.bf16.msra.mxu1 %v2125_v5  ;;  %v2158_v55 = vld [vmem:[%s2585_s1 + $0x78] sm:$0xff]   ;;  %v2161_v62 = vld [vmem:[%s2585_s1 + $0x80] sm:$0xff]   ;;  %v2164_v2 = vld [vmem:[%s2585_s1 + $0x88] sm:$0xff]   ;;  %s141_s19 = scalar_lea.vmem %s2586_s2, %s1564_s16 }
  0x10   : > { %s2266_s26 = scalar_lea.vmem %s2584_s0, %s2110_s21  ;;  %1962 = vmatpush3.bf16.msra.mxu0 %v2126_v6  ;;  %1867 = vmatprep.subr.bf16.mxu1 %v2207_v1  ;;  %v2159_v60 = vld [vmem:[%s2585_s1 + $0x178] sm:$0xff]   ;;  %v2163_v0 = vld [vmem:[%s2585_s1 + $0x180] sm:$0xff]   ;;  %v2165_v3 = vld [vmem:[%s2585_s1 + $0x188] sm:$0xff]  }
  0x11   : > { %v2129_v7 = vld [vmem:[%s2266_s26] ss:$0 sps:$4 sm:$0x77]   ;;  %v2276_v10 = vld [vmem:[%s2266_s26] sm:$0x8]  ;;  %1963 = vmatprep.subr.bf16.mxu0 %v2207_v1  ;;  %v2166_v4 = vld [vmem:[%s2585_s1 + $0x90] sm:$0xff]  }
  0x12   : > { %v166_v11 = vshrl.u32 %v2129_v7, 16  ;;  %v168_v12 = vshll.u32 %v2129_v7, 16  ;;  %v734_v13 = vld [vmem:[%s2266_s26 + $0x4] sm:$0x3]  ;;  %v143_v29 = vld [vmem:[%s2266_s26] sm:$0x3] }
  0x13   : > { %v2282_v14 = vcombine.low %v2276_v10, %v734_v13  ;;  %1868 = vmatpush3.bf16.msra.mxu1 %v2127_v8  ;;  %v2142_v22 = vld [vmem:[%s2266_s26 + $0x4] ss:$0 sps:$4 sm:$0x77]   ;;  %v2150_v37 = vld [vmem:[%s2266_s26] ss:$0 sps:$4 sm:$0x66]  }
  0x14   : > { %v170_v15 = vrot.slane %v168_v12, 1  ;;  %1964 = vmatpush3.bf16.msra.mxu0 %v2128_v9  ;;  %1873 = vmatprep.subr.bf16.mxu1 %v2207_v1  ;;  %v916_v24 = vshll.u32 %v2142_v22, 16  ;;  %v914_v26 = vshrl.u32 %v2142_v22, 16  ;;  %v2152_v39 = vld [vmem:[%s2266_s26 + $0x4] ss:$0 sps:$4 sm:$0x66]  }
  0x15   : > { %1969 = vmatprep.subr.bf16.mxu0 %v2207_v1  ;;  %v320_v41 = vrot.slane %v2150_v37, 1  ;;  %v1001_v43 = vrot.slane %v2152_v39, 1  ;;  %v2160_v45 = vld [vmem:[%s2266_s26] ss:$0 sps:$4 sm:$0xee]   ;;  %v2167_v5 = vld [vmem:[%s2585_s1 + $0x190] sm:$0xff]  }
  0x16   : > { %v171_v17 = vor.u32 %v170_v15, %v166_v11  ;;  %v918_v27 = vrot.slane %v916_v24, 1  ;;  %v2162_v47 = vld [vmem:[%s2266_s26 + $0x4] ss:$0 sps:$4 sm:$0xee]   ;;  %v403_v50 = vshrl.u32 %v2160_v45, 16  ;;  %v406_v51 = vshll.u32 %v2160_v45, 16 }
  0x17   : > { %1966 = vmatmul.mubr.msk.bf16.vlgmr.msra.gmra.mrb[0].mxu0 %vm196_vm1, %v734_v13  ;;  %v1084_v52 = vshrl.u32 %v2162_v47, 16  ;;  %v1087_v53 = vshll.u32 %v2162_v47, 16  ;;  %v2170_v6 = vld [vmem:[%s2266_s26] ss:$0 sps:$4 sm:$0xcc]   ;;  %v2168_v8 = vld [vmem:[%s2585_s1 + $0x98] sm:$0xff]  }
  0x18   : > { %1870 = vmatmul.mubr.msk.bf16.vlgmr.msra.gmra.mrb[0].mxu1 %vm196_vm1, %v171_v17  ;;  %1970 = vmatpush3.bf16.msra.mxu0 %v2134_v18  ;;  %v919_v31 = vor.u32 %v918_v27, %v914_v26  ;;  %v405_v56 = vrot.slane %v403_v50, 1  ;;  %v408_v57 = vrot.slane %v406_v51, 2  ;;  %v2172_v7 = vld [vmem:[%s2266_s26 + $0x4] ss:$0 sps:$4 sm:$0xcc]   ;;  %v2169_v9 = vld [vmem:[%s2585_s1 + $0x198] sm:$0xff]  }
  0x19   : > { %1874 = vmatpush3.bf16.msra.mxu1 %v2130_v16  ;;  %1971 = vmatprep.subr.bf16.mxu0 %v2207_v1  ;;  %v1086_v58 = vrot.slane %v1084_v52, 1  ;;  %v1089_v59 = vrot.slane %v1087_v53, 2  ;;  %v491_v11 = vrot.slane %v2170_v6, 2  ;;  %v560_v12 = vld [vmem:[%s2266_s26] sm:$0xc]  ;;  %v1172_v16 = vrot.slane %v2172_v7, 2 }
  0x1a   : > { %1875 = vmatprep.subr.bf16.mxu1 %v2207_v1  ;;  %1881 = vmatprep.mubr.msk.bf16.mxu1 %vm2208_vm0, %v2207_v1  ;;  %v409_v61 = vor.u32 %v408_v57, %v405_v56  ;;  %v2446_v13 = vld [vmem:[%s2266_s26 + $0x4] sm:$0x1]  ;;  %v1241_v18 = vld [vmem:[%s2266_s26 + $0x4] sm:$0xc]  ;;  %v2176_v26 = vld [vmem:[%s2585_s1 + $0xb0] sm:$0xff]   ;;  %v748_v56 = vshrl.u32 %v2282_v14, 16 }
  0x1b   : > { %1977 = vmatprep.mubr.msk.bf16.mxu0 %vm2208_vm0, %v2207_v1  ;;  %v1090_v63 = vor.u32 %v1089_v59, %v1086_v58  ;;  %v2171_v15 = vld [vmem:[%s2585_s1 + $0xa0] sm:$0xff]   ;;  %v1648_v45 = vcombine.low %v2276_v10, %v2446_v13  ;;  %v1415_v51 = vld [vmem:[%s2266_s26 + $0x8] sm:$0x3]  ;;  %v751_v57 = vshll.u32 %v2282_v14, 16  ;;  %v2195_v58 = vld [vmem:[%s2585_s1 + $0xf0] sm:$0xff]  }
  0x1c   : > { %1972 = vmatpush3.bf16.msra.mxu0 %v2136_v20  ;;  %v2173_v17 = vld [vmem:[%s2585_s1 + $0x1a0] sm:$0xff]   ;;  %v1634_v20 = vcombine.low %v560_v12, %v2446_v13  ;;  %v750_v14 = vrot.slane %v748_v56, 3 }
  0x1d   : > { %1876 = vmatpush3.bf16.msra.mxu1 %v2135_v19  ;;  %1973 = vmatprep.subr.bf16.mxu0 %v2207_v1  ;;  %v2457_v19 = vld [vmem:[%s2266_s26 + $0x8] sm:$0x1]  ;;  %v2180_v37 = vld [vmem:[%s2585_s1 + $0xc0] sm:$0xff]  }
  0x1e   : > { %1877 = vmatprep.subr.bf16.mxu1 %v2207_v1  ;;  %v1745_v22 = vcombine.low %v1241_v18, %v2457_v19  ;;  %v577_v24 = vshrl.u32 %v1634_v20, 16  ;;  %v2182_v39 = vld [vmem:[%s2585_s1 + $0x1c0] sm:$0xff]  }
  0x1f   : > { %v2189_v10 = vld [vmem:[%s2585_s1 + $0xe0] sm:$0xff]  }
  0x20   : > { %1974 = vmatpush3.bf16.msra.mxu0 %v2138_v23  ;;  %v2175_v23 = vld [vmem:[%s2585_s1 + $0x1a8] sm:$0xff]   ;;  %v1258_v27 = vshrl.u32 %v1745_v22, 16  ;;  %v2192_v52 = vld [vmem:[%s2585_s1 + $0x1e0] sm:$0xff]  }
  0x21   : > { %1878 = vmatpush3.bf16.msra.mxu1 %v2137_v21  ;;  %1975 = vmatprep.subr.bf16.mxu0 %v2207_v1  ;;  %v2174_v21 = vld [vmem:[%s2585_s1 + $0xa8] sm:$0xff]  }
  0x22   : > { %1879 = vmatprep.subr.bf16.mxu1 %v2207_v1 }
  0x24   : > { %1976 = vmatpush3.bf16.msra.mxu0 %v2140_v28  ;;  %v1261_v28 = vshll.u32 %v1745_v22, 16 }
  0x25   : > { %1880 = vmatpush3.bf16.msra.mxu1 %v2139_v25  ;;  %1981 = vmatprep.subr.bf16.mxu0 %v2207_v1  ;;  %v580_v25 = vshll.u32 %v1634_v20, 16 }
  0x26   : > { %1885 = vmatprep.subr.bf16.mxu1 %v2207_v1 }
  0x27   : > { %1978 = vmatmul.mubr.msk.bf16.vlgmr.msra.gmra.mrb[0].mxu0 %vm196_vm1, %v919_v31  ;;  %v582_v31 = vrot.slane %v580_v25, 3 }
  0x28   : > { %1882 = vmatmul.mubr.msk.bf16.vlgmr.msra.gmra.mrb[0].mxu1 %vm196_vm1, %v143_v29  ;;  %1982 = vmatpush3.bf16.msra.mxu0 %v2143_v32  ;;  %v2177_v29 = vld [vmem:[%s2585_s1 + $0x1b0] sm:$0xff]   ;;  %v2178_v32 = vld [vmem:[%s2585_s1 + $0xb8] sm:$0xff]  }
  0x29   : > { %1886 = vmatpush3.bf16.msra.mxu1 %v2141_v30  ;;  %1983 = vmatprep.subr.bf16.mxu0 %v2207_v1  ;;  %v579_v30 = vrot.slane %v577_v24, 2 }
  0x2a   : > { %1887 = vmatprep.subr.bf16.mxu1 %v2207_v1  ;;  %1893 = vmatprep.mubr.msk.bf16.mxu1 %vm2208_vm0, %v2207_v1 }
  0x2b   : > { %1989 = vmatprep.mubr.msk.bf16.mxu0 %vm2208_vm0, %v2207_v1 }
  0x2c   : > { %1984 = vmatpush3.bf16.msra.mxu0 %v2145_v34  ;;  %v1263_v34 = vrot.slane %v1261_v28, 3 }
  0x2d   : > { %1888 = vmatpush3.bf16.msra.mxu1 %v2144_v33  ;;  %1985 = vmatprep.subr.bf16.mxu0 %v2207_v1  ;;  %v1260_v33 = vrot.slane %v1258_v27, 2 }
  0x2e   : > { %1889 = vmatprep.subr.bf16.mxu1 %v2207_v1 }
  0x30   : > { %1986 = vmatpush3.bf16.msra.mxu0 %v2147_v36  ;;  %v583_v36 = vor.u32 %v582_v31, %v579_v30 }
  0x31   : > { %1890 = vmatpush3.bf16.msra.mxu1 %v2146_v35  ;;  %1987 = vmatprep.subr.bf16.mxu0 %v2207_v1  ;;  %v2179_v35 = vld [vmem:[%s2585_s1 + $0x1b8] sm:$0xff]  }
  0x32   : > { %1891 = vmatprep.subr.bf16.mxu1 %v2207_v1 }
  0x34   : > { %1988 = vmatpush3.bf16.msra.mxu0 %v2149_v40  ;;  %v2183_v40 = vld [vmem:[%s2585_s1 + $0xc8] sm:$0xff]  }
  0x35   : > { %1892 = vmatpush3.bf16.msra.mxu1 %v2148_v38  ;;  %1993 = vmatprep.subr.bf16.mxu0 %v2207_v1  ;;  %v1264_v38 = vor.u32 %v1263_v34, %v1260_v33 }
  0x36   : > { %1897 = vmatprep.subr.bf16.mxu1 %v2207_v1 }
  0x37   : > { %1990 = vmatmul.mubr.msk.bf16.vlgmr.msra.gmra.mrb[0].mxu0 %vm196_vm1, %v1001_v43  ;;  %v2186_v43 = vld [vmem:[%s2585_s1 + $0x1d0] sm:$0xff]  }
  0x38   : > { %1894 = vmatmul.mubr.msk.bf16.vlgmr.msra.gmra.mrb[0].mxu1 %vm196_vm1, %v320_v41  ;;  %1994 = vmatpush3.bf16.msra.mxu0 %v2153_v44  ;;  %v2184_v41 = vld [vmem:[%s2585_s1 + $0x1c8] sm:$0xff]   ;;  %v1333_v44 = vld [vmem:[%s2266_s26 + $0x4] sm:$0x8] }
  0x39   : > { %1898 = vmatpush3.bf16.msra.mxu1 %v2151_v42  ;;  %1995 = vmatprep.subr.bf16.mxu0 %v2207_v1  ;;  %v2185_v42 = vld [vmem:[%s2585_s1 + $0xd0] sm:$0xff]   ;;  %v1759_v47 = vcombine.low %v1333_v44, %v2457_v19  ;;  %v1773_v53 = vcombine.low %v1333_v44, %v1415_v51 }
  0x3a   : > { %1899 = vmatprep.subr.bf16.mxu1 %v2207_v1  ;;  %1905 = vmatprep.mubr.msk.bf16.mxu1 %vm2208_vm0, %v2207_v1 }
  0x3b   : > { %2001 = vmatprep.mubr.msk.bf16.mxu0 %vm2208_vm0, %v2207_v1  ;;  %v1346_v50 = vrot.slane %v1759_v47, 3  ;;  %v1429_v59 = vshrl.u32 %v1773_v53, 16 }
  0x3c   : > { %1996 = vmatpush3.bf16.msra.mxu0 %v2155_v48  ;;  %v2188_v48 = vld [vmem:[%s2585_s1 + $0x1d8] sm:$0xff]  }
  0x3d   : > { %1900 = vmatpush3.bf16.msra.mxu1 %v2154_v46  ;;  %1997 = vmatprep.subr.bf16.mxu0 %v2207_v1  ;;  %v2187_v46 = vld [vmem:[%s2585_s1 + $0xd8] sm:$0xff]  }
  0x3e   : > { %1901 = vmatprep.subr.bf16.mxu1 %v2207_v1 }
  0x40   : > { %1998 = vmatpush3.bf16.msra.mxu0 %v2157_v54  ;;  %v2193_v54 = vld [vmem:[%s2585_s1 + $0xe8] sm:$0xff]  }
  0x41   : > { %1902 = vmatpush3.bf16.msra.mxu1 %v2156_v49  ;;  %1999 = vmatprep.subr.bf16.mxu0 %v2207_v1  ;;  %v665_v49 = vrot.slane %v1648_v45, 3 }
  0x42   : > { %1903 = vmatprep.subr.bf16.mxu1 %v2207_v1 }
  0x44   : > { %2000 = vmatpush3.bf16.msra.mxu0 %v2159_v60  ;;  %v1432_v60 = vshll.u32 %v1773_v53, 16 }
  0x45   : > { %1904 = vmatpush3.bf16.msra.mxu1 %v2158_v55  ;;  %2005 = vmatprep.subr.bf16.mxu0 %v2207_v1  ;;  %v2194_v55 = vld [vmem:[%s2585_s1 + $0x1e8] sm:$0xff]  }
  0x46   : > { %1909 = vmatprep.subr.bf16.mxu1 %v2207_v1 }
  0x47   : > { %2002 = vmatmul.mubr.msk.bf16.vlgmr.msra.gmra.mrb[0].mxu0 %vm196_vm1, %v1090_v63  ;;  %v2197_v63 = vld [vmem:[%s2585_s1 + $0xf8] sm:$0xff]  }
  0x48   : > { %1906 = vmatmul.mubr.msk.bf16.vlgmr.msra.gmra.mrb[0].mxu1 %vm196_vm1, %v409_v61  ;;  %2006 = vmatpush3.bf16.msra.mxu0 %v2163_v0  ;;  %v2196_v61 = vld [vmem:[%s2585_s1 + $0x1f0] sm:$0xff]   ;;  %v1431_v0 = vrot.slane %v1429_v59, 3 }
  0x49   : > { %1910 = vmatpush3.bf16.msra.mxu1 %v2161_v62  ;;  %2007 = vmatprep.subr.bf16.mxu0 %v2207_v1  ;;  %v753_v62 = vrot.slane %v751_v57, 4 }
  0x4a   : > { %1911 = vmatprep.subr.bf16.mxu1 %v2207_v1  ;;  %1917 = vmatprep.mubr.msk.bf16.mxu1 %vm2208_vm0, %v2207_v1 }
  0x4b   : > { %2013 = vmatprep.mubr.msk.bf16.mxu0 %vm2208_vm0, %v2207_v1 }
  0x4c   : > { %2008 = vmatpush3.bf16.msra.mxu0 %v2165_v3  ;;  %v2198_v3 = vld [vmem:[%s2585_s1 + $0x1f8] sm:$0xff]  }
  0x4d   : > { %1912 = vmatpush3.bf16.msra.mxu1 %v2164_v2  ;;  %2009 = vmatprep.subr.bf16.mxu0 %v2207_v1  ;;  %v1434_v2 = vrot.slane %v1432_v60, 4 }
  0x4e   : > { %1913 = vmatprep.subr.bf16.mxu1 %v2207_v1 }
  0x50   : > { %2010 = vmatpush3.bf16.msra.mxu0 %v2167_v5  ;;  %v1435_v5 = vor.u32 %v1434_v2, %v1431_v0 }
  0x51   : > { %1914 = vmatpush3.bf16.msra.mxu1 %v2166_v4  ;;  %2011 = vmatprep.subr.bf16.mxu0 %v2207_v1  ;;  %v754_v4 = vor.u32 %v753_v62, %v750_v14 }
  0x52   : > { %1915 = vmatprep.subr.bf16.mxu1 %v2207_v1 }
  0x54   : > { %2012 = vmatpush3.bf16.msra.mxu0 %v2169_v9 }
  0x55   : > { %1916 = vmatpush3.bf16.msra.mxu1 %v2168_v8  ;;  %2017 = vmatprep.subr.bf16.mxu0 %v2207_v1 }
  0x56   : > { %1921 = vmatprep.subr.bf16.mxu1 %v2207_v1 }
  0x57   : > { %2014 = vmatmul.mubr.msk.bf16.vlgmr.msra.gmra.mrb[0].mxu0 %vm196_vm1, %v1172_v16 }
  0x58   : > { %1918 = vmatmul.mubr.msk.bf16.vlgmr.msra.gmra.mrb[0].mxu1 %vm196_vm1, %v491_v11  ;;  %2018 = vmatpush3.bf16.msra.mxu0 %v2173_v17 }
  0x59   : > { %1922 = vmatpush3.bf16.msra.mxu1 %v2171_v15  ;;  %2019 = vmatprep.subr.bf16.mxu0 %v2207_v1 }
  0x5a   : > { %1923 = vmatprep.subr.bf16.mxu1 %v2207_v1  ;;  %1929 = vmatprep.mubr.msk.bf16.mxu1 %vm2208_vm0, %v2207_v1 }
  0x5b   : > { %2025 = vmatprep.mubr.msk.bf16.mxu0 %vm2208_vm0, %v2207_v1 }
  0x5c   : > { %2020 = vmatpush3.bf16.msra.mxu0 %v2175_v23 }
  0x5d   : > { %1924 = vmatpush3.bf16.msra.mxu1 %v2174_v21  ;;  %2021 = vmatprep.subr.bf16.mxu0 %v2207_v1 }
  0x5e   : > { %1925 = vmatprep.subr.bf16.mxu1 %v2207_v1 }
  0x60   : > { %2022 = vmatpush3.bf16.msra.mxu0 %v2177_v29 }
  0x61   : > { %1926 = vmatpush3.bf16.msra.mxu1 %v2176_v26  ;;  %2023 = vmatprep.subr.bf16.mxu0 %v2207_v1 }
  0x62   : > { %1927 = vmatprep.subr.bf16.mxu1 %v2207_v1 }
  0x64   : > { %2024 = vmatpush3.bf16.msra.mxu0 %v2179_v35 }
  0x65   : > { %1928 = vmatpush3.bf16.msra.mxu1 %v2178_v32  ;;  %2029 = vmatprep.subr.bf16.mxu0 %v2207_v1 }
  0x66   : > { %1933 = vmatprep.subr.bf16.mxu1 %v2207_v1 }
  0x67   : > { %2026 = vmatmul.mubr.msk.bf16.vlgmr.msra.gmra.mrb[0].mxu0 %vm196_vm1, %v1264_v38 }
  0x68   : > { %1930 = vmatmul.mubr.msk.bf16.vlgmr.msra.gmra.mrb[0].mxu1 %vm196_vm1, %v583_v36  ;;  %2030 = vmatpush3.bf16.msra.mxu0 %v2182_v39 }
  0x69   : > { %1934 = vmatpush3.bf16.msra.mxu1 %v2180_v37  ;;  %2031 = vmatprep.subr.bf16.mxu0 %v2207_v1 }
  0x6a   : > { %1935 = vmatprep.subr.bf16.mxu1 %v2207_v1  ;;  %1941 = vmatprep.mubr.msk.bf16.mxu1 %vm2208_vm0, %v2207_v1 }
  0x6b   : > { %2037 = vmatprep.mubr.msk.bf16.mxu0 %vm2208_vm0, %v2207_v1 }
  0x6c   : > { %2032 = vmatpush3.bf16.msra.mxu0 %v2184_v41 }
  0x6d   : > { %1936 = vmatpush3.bf16.msra.mxu1 %v2183_v40  ;;  %2033 = vmatprep.subr.bf16.mxu0 %v2207_v1 }
  0x6e   : > { %1937 = vmatprep.subr.bf16.mxu1 %v2207_v1 }
  0x70   : > { %2034 = vmatpush3.bf16.msra.mxu0 %v2186_v43 }
  0x71   : > { %1938 = vmatpush3.bf16.msra.mxu1 %v2185_v42  ;;  %2035 = vmatprep.subr.bf16.mxu0 %v2207_v1 }
  0x72   : > { %1939 = vmatprep.subr.bf16.mxu1 %v2207_v1 }
  0x74   : > { %2036 = vmatpush3.bf16.msra.mxu0 %v2188_v48 }
  0x75   : > { %1940 = vmatpush3.bf16.msra.mxu1 %v2187_v46  ;;  %2041 = vmatprep.subr.bf16.mxu0 %v2207_v1 }
  0x76   : > { %1945 = vmatprep.subr.bf16.mxu1 %v2207_v1 }
  0x77   : > { %2038 = vmatmul.mubr.msk.bf16.vlgmr.msra.gmra.mrb[0].mxu0 %vm196_vm1, %v1346_v50 }
  0x78   : > { %1942 = vmatmul.mubr.msk.bf16.vlgmr.msra.gmra.mrb[0].mxu1 %vm196_vm1, %v665_v49  ;;  %2042 = vmatpush3.bf16.msra.mxu0 %v2192_v52 }
  0x79   : > { %1946 = vmatpush3.bf16.msra.mxu1 %v2189_v10  ;;  %2043 = vmatprep.subr.bf16.mxu0 %v2207_v1 }
  0x7a   : > { %1947 = vmatprep.subr.bf16.mxu1 %v2207_v1  ;;  %1953 = vmatprep.mubr.msk.bf16.mxu1 %vm2208_vm0, %v2207_v1 }
  0x7b   : > { %2049 = vmatprep.mubr.msk.bf16.mxu0 %vm2208_vm0, %v2207_v1 }
  0x7c   : > { %2044 = vmatpush3.bf16.msra.mxu0 %v2194_v55 }
  0x7d   : > { %1948 = vmatpush3.bf16.msra.mxu1 %v2193_v54  ;;  %2045 = vmatprep.subr.bf16.mxu0 %v2207_v1 }
  0x7e   : > { %1949 = vmatprep.subr.bf16.mxu1 %v2207_v1 }
  0x80   : > { %2046 = vmatpush3.bf16.msra.mxu0 %v2196_v61 }
  0x81   : > { %1950 = vmatpush3.bf16.msra.mxu1 %v2195_v58  ;;  %2047 = vmatprep.subr.bf16.mxu0 %v2207_v1 }
  0x82   : > { %1951 = vmatprep.subr.bf16.mxu1 %v2207_v1 }
  0x84   : > { %2048 = vmatpush3.bf16.msra.mxu0 %v2198_v3 }
  0x85   : > { %1952 = vmatpush3.bf16.msra.mxu1 %v2197_v63 }
  0x87   : > { %2050 = vmatmul.mubr.msk.bf16.vlgmr.msra.gmra.mrb[0].mxu0 %vm196_vm1, %v1435_v5 }
  0x88   : > { %1954 = vmatmul.mubr.msk.bf16.vlgmr.msra.gmra.mrb[0].mxu1 %vm196_vm1, %v754_v4 }
 0x15a   : > { %v1497_v7 = vpop.f32.mrb[0].mxu0 }
 0x15b   : > { %v816_v6 = vpop.f32.mrb[0].mxu1  ;;  %v2051_v11 = vpop.f32.mrb[1].mxu0 }
 0x15c   : > { %v1955_v8 = vpop.f32.mrb[1].mxu1  ;;  %v2053_v9 = vadd.f32 %v1497_v7, %v816_v6  ;;  %v1500_v1 = vpop.f32.mrb[2].mxu0 }
 0x15d   : > { %v819_v12 = vpop.f32.mrb[2].mxu1  ;;  %v2052_v15 = vpop.f32.mrb[3].mxu0 }
 0x15e   : > { %v1956_v13 = vpop.f32.mrb[3].mxu1  ;;  %1504 = vst [vmem:[%s141_s19] sm:$0xf] %v2053_v9 }
 0x15f PF: > { %s12_s9 = sadd.s32 1, %s2205_s9  }
 0x160   : > { %p9_p4 = scmp.ge.s32.totalorder %s12_s9, 4  }
 0x162   :  { %11 = sbr.rel (!%p9_p4) target bundleno = 1 (0x1), region = 73 }

</bundles_post_ra>
